<compile_context>
chip_gen: v5e
topology: v5e:2x2
jax: 0.10.0
libtpu: 0.0.40
codegen_flags: <defaults>
</compile_context>

<pallas_src>
import functools

import jax
import jax.numpy as jnp
import numpy as np
from jax.experimental import pallas as pl
from jax.experimental.pallas import tpu as pltpu

_BN_EPS = 1e-5
_MAX_TM = 512                      # cap on the M tile of the fused matmul
_LANE = 128                        # lane width: pad weight columns to this
_VMEM_LIMIT = 32 * 1024 * 1024     # explicit scoped-VMEM budget (v5e..v7x)

# Architecture channel plan (static Python ints -> safe for slicing under jit).
_ENC_CH = [(3, 32), (32, 64), (64, 128), (128, 256)]
_DEC_CH = [(256, 128), (128, 64), (64, 32), (32, 32)]


# --------------------------------------------------------------------------- #
# Pallas kernel: out = [relu]( A @ B + shift ), bf16 operands, f32 accumulate  #
# A: (tm, K) bf16   B: (K, N) bf16   shift: (1, N) f32   out: (tm, N) out_dtype#
# --------------------------------------------------------------------------- #
def _fused_matmul_kernel(a_ref, b_ref, shift_ref, o_ref, *, apply_relu):
    acc = jnp.dot(a_ref[...], b_ref[...],
                  preferred_element_type=jnp.float32)   # bf16 MXU, f32 acc
    y = acc + shift_ref[...]                            # bias + folded BN
    if apply_relu:
        y = jnp.maximum(y, 0.0)
    o_ref[...] = y.astype(o_ref.dtype)


def _round_up(x, m):
    return ((x + m - 1) // m) * m


def _choose_tm(m):
    """Layer-aware M tile: one full block when small, else >=2 blocks (v7x)."""
    if m <= 128:
        return m                                   # block dim == array dim
    return min(_MAX_TM, _round_up(pl.cdiv(m, 2), 8))


def fused_matmul(a_bf16, b_bf16, shift_f32, apply_relu,
                 out_dtype=jnp.bfloat16):
    """a: (M, K) bf16, b: (K, N) bf16, shift: (N,) f32 -> (M, N) out_dtype."""
    M, K = a_bf16.shape
    N = b_bf16.shape[1]
    tm = _choose_tm(M)
    grid_m = pl.cdiv(M, tm)        # ragged last block handled by Pallas

    return pl.pallas_call(
        functools.partial(_fused_matmul_kernel, apply_relu=apply_relu),
        out_shape=jax.ShapeDtypeStruct((M, N), out_dtype),
        grid=(grid_m,),
        in_specs=[
            pl.BlockSpec((tm, K), lambda i: (i, 0)),
            pl.BlockSpec((K, N), lambda i: (0, 0)),     # resident weights
            pl.BlockSpec((1, N), lambda i: (0, 0)),     # resident shift
        ],
        out_specs=pl.BlockSpec((tm, N), lambda i: (i, 0)),
        compiler_params=pltpu.CompilerParams(
            dimension_semantics=("parallel",),   # M blocks are independent
            vmem_limit_bytes=_VMEM_LIMIT,
        ),
    )(a_bf16, b_bf16, shift_f32.reshape(1, N))


# --------------------------------------------------------------------------- #
# Conv / ConvTranspose layers built on the fused matmul (NHWC, bf16 acts)      #
# --------------------------------------------------------------------------- #
def _im2col_3x3(x, stride):
    """x: (N, H, W, C), padding=1, kernel=3 -> (N*Ho*Wo, 9*C), Ho, Wo."""
    n, h, w, c = x.shape
    xp = jnp.pad(x, ((0, 0), (1, 1), (1, 1), (0, 0)))
    ho = (h - 1) // stride + 1
    wo = (w - 1) // stride + 1
    cols = []
    for di in range(3):
        for dj in range(3):
            cols.append(
                xp[:, di:di + (ho - 1) * stride + 1:stride,
                      dj:dj + (wo - 1) * stride + 1:stride, :])
    patches = jnp.concatenate(cols, axis=-1)
    return patches.reshape(n * ho * wo, 9 * c), ho, wo


def conv3x3(x, layer, cout, stride=1, relu=False, out_dtype=jnp.bfloat16):
    """3x3 conv (pad=1) [+ folded BN + ReLU] via the fused matmul kernel."""
    n = x.shape[0]
    a, ho, wo = _im2col_3x3(x, stride)
    y = fused_matmul(a, layer["w"], layer["shift"], relu, out_dtype=out_dtype)
    if y.shape[1] != cout:                # drop zero-weight lane-padding cols
        y = y[:, :cout]
    return y.reshape(n, ho, wo, cout)


def upconv2x2(x, layer, cout):
    """ConvTranspose2d(kernel=2, stride=2) via the fused matmul kernel."""
    n, h, w, cin = x.shape
    a = x.reshape(n * h * w, cin)
    y = fused_matmul(a, layer["w"], layer["shift"], False)   # (M, 4*Cout)
    y = y.reshape(n, h, w, 2, 2, cout)                       # (n,h,w,a,b,co)
    y = jnp.transpose(y, (0, 1, 3, 2, 4, 5)).reshape(n, 2 * h, 2 * w, cout)
    return y


# --------------------------------------------------------------------------- #
# Parameter init (PyTorch-style) + one-time weight prep for the kernel         #
# --------------------------------------------------------------------------- #
def _init_conv(key, cin, cout, k=3):
    kw, kb = jax.random.split(key)
    bound = 1.0 / np.sqrt(cin * k * k)
    w = jax.random.uniform(kw, (cout, cin, k, k), jnp.float32, -bound, bound)
    b = jax.random.uniform(kb, (cout,), jnp.float32, -bound, bound)
    return w, b


def _init_convT(key, cin, cout, k=2):
    kw, kb = jax.random.split(key)
    bound = 1.0 / np.sqrt(cout * k * k)
    w = jax.random.uniform(kw, (cin, cout, k, k), jnp.float32, -bound, bound)
    b = jax.random.uniform(kb, (cout,), jnp.float32, -bound, bound)
    return w, b


def _prep_conv(w, b, with_bn):
    """Conv2d weight (Cout,Cin,3,3) -> bf16 operand (lane-padded) + f32 shift."""
    cout = w.shape[0]
    bm = jnp.transpose(w, (2, 3, 1, 0)).reshape(-1, cout)    # (9*Cin, Cout)
    if with_bn:
        # Fresh nn.BatchNorm2d, eval mode: gamma=1, beta=0, mean=0, var=1.
        gamma = jnp.ones((cout,), jnp.float32)
        beta = jnp.zeros((cout,), jnp.float32)
        mean = jnp.zeros((cout,), jnp.float32)
        var = jnp.ones((cout,), jnp.float32)
        inv = gamma / jnp.sqrt(var + _BN_EPS)
        bm = bm * inv[None, :]                               # fold BN scale
        shift = beta + (b - mean) * inv                      # fold bias + BN
    else:
        shift = b
    # Lane-dense output: pad columns to a multiple of 128 with zero weights.
    n_pad = (-cout) % _LANE
    if n_pad:
        bm = jnp.pad(bm, ((0, 0), (0, n_pad)))
        shift = jnp.pad(shift, (0, n_pad))
    return dict(w=bm.astype(jnp.bfloat16), shift=shift.astype(jnp.float32))


def _prep_convT(w, b):
    """ConvTranspose2d weight (Cin,Cout,2,2) -> bf16 operand, cols (a,b,cout)."""
    cin, cout = w.shape[0], w.shape[1]
    bm = jnp.transpose(w, (0, 2, 3, 1)).reshape(cin, 4 * cout)  # >=128 cols
    shift = jnp.tile(b, 4)
    return dict(w=bm.astype(jnp.bfloat16), shift=shift.astype(jnp.float32))


def init_unet_params(key, num_classes):
    keys = iter(jax.random.split(key, 20))
    enc = []
    for cin, cout in _ENC_CH:
        w1, b1 = _init_conv(next(keys), cin, cout)
        w2, b2 = _init_conv(next(keys), cout, cout)
        enc.append(dict(c1=_prep_conv(w1, b1, True),
                        c2=_prep_conv(w2, b2, True)))
    dec = []
    for cin, cout in _DEC_CH:
        wt, bt = _init_convT(next(keys), cin, cout)
        w, b = _init_conv(next(keys), cout, cout)
        dec.append(dict(up=_prep_convT(wt, bt), c=_prep_conv(w, b, True)))
    wf, bf = _init_conv(next(keys), 32, num_classes)
    return dict(enc=enc, dec=dec, final=_prep_conv(wf, bf, False))


# --------------------------------------------------------------------------- #
# UNet forward (NCHW in/out, NHWC bf16 internally)                             #
# --------------------------------------------------------------------------- #
def _conv_block(x, p, cout, stride):
    x = conv3x3(x, p["c1"], cout, stride=stride, relu=True)
    x = conv3x3(x, p["c2"], cout, stride=1, relu=True)
    return x


def _upconv_block(x, p, cout):
    x = upconv2x2(x, p["up"], cout)
    x = conv3x3(x, p["c"], cout, stride=1, relu=True)
    return x


def unet_forward(params, x_nchw, *, num_classes):
    x = jnp.transpose(x_nchw, (0, 2, 3, 1)).astype(jnp.bfloat16)  # NCHW->NHWC
    feats = []
    for p, (_, cout) in zip(params["enc"], _ENC_CH):
        x = _conv_block(x, p, cout, stride=2)
        feats.append(x)
    for i, (p, (_, cout)) in enumerate(zip(params["dec"], _DEC_CH)):
        x = _upconv_block(x, p, cout)
        if i < len(params["dec"]) - 1:
            x = x + feats[-i - 2]
    x = conv3x3(x, params["final"], num_classes, stride=1, relu=False,
                out_dtype=jnp.float32)                    # final stays f32
    return jnp.transpose(x, (0, 3, 1, 2))                 # NHWC -> NCHW


# --------------------------------------------------------------------------- #
if __name__ == "__main__":
    num_classes = 4
    key = jax.random.PRNGKey(0)
    kp, kx = jax.random.split(key)

    params = init_unet_params(kp, num_classes)
    x_nchw = jax.random.normal(kx, (2, 3, 16, 16), jnp.float32)  # NCHW input

    fwd = jax.jit(functools.partial(unet_forward, num_classes=num_classes))
    out_nchw = fwd(params, x_nchw)
    jax.block_until_ready(out_nchw)

    assert out_nchw.shape == (2, num_classes, 16, 16), out_nchw.shape
    assert out_nchw.dtype == jnp.float32
    assert bool(jnp.all(jnp.isfinite(out_nchw)))
    print("KERNEL_OK")
</pallas_src>

<mosaic_0001>
module attributes {stable_mosaic.version = 11 : i64} {
  func.func @_fused_matmul_kernel(%arg0: i32, %arg1: memref<128x27xbf16, #tpu.memory_space<vmem>>, %arg2: memref<27x128xbf16, #tpu.memory_space<vmem>>, %arg3: memref<1x128xf32, #tpu.memory_space<vmem>>, %arg4: memref<128x128xbf16, #tpu.memory_space<vmem>>) attributes {dimension_semantics = [#tpu.dimension_semantics<parallel>], iteration_bounds = array<i64: 1>, scalar_prefetch = 0 : i64, scratch_operands = 0 : i64, tpu.core_type = #tpu.core_type<tc>, window_params = [{transform_indices = @transform_0, window_bounds = array<i64: 128, 27>}, {pipeline_mode = #tpu.pipeline_mode<synchronous>, transform_indices = @transform_1, window_bounds = array<i64: 27, 128>}, {pipeline_mode = #tpu.pipeline_mode<synchronous>, transform_indices = @transform_2, window_bounds = array<i64: 1, 128>}, {transform_indices = @transform_3, window_bounds = array<i64: 128, 128>}]} {
    %c0 = arith.constant 0 : index
    %c0_0 = arith.constant 0 : index
    %0 = vector.load %arg1[%c0, %c0_0] : memref<128x27xbf16, #tpu.memory_space<vmem>>, vector<128x27xbf16>
    %c0_1 = arith.constant 0 : index
    %c0_2 = arith.constant 0 : index
    %1 = vector.load %arg2[%c0_1, %c0_2] : memref<27x128xbf16, #tpu.memory_space<vmem>>, vector<27x128xbf16>
    %cst = arith.constant dense<0.000000e+00> : vector<128x128xf32>
    %2 = tpu.matmul %0, %1, %cst {dimension_numbers = #tpu.dot_dimension_numbers<[1], [0], [0], [1], [0, 0, 1, 1], [], []>} : vector<128x27xbf16>, vector<27x128xbf16>, vector<128x128xf32> -> vector<128x128xf32>
    %c0_3 = arith.constant 0 : index
    %c0_4 = arith.constant 0 : index
    %3 = vector.load %arg3[%c0_3, %c0_4] : memref<1x128xf32, #tpu.memory_space<vmem>>, vector<1x128xf32>
    %4 = vector.broadcast %3 : vector<1x128xf32> to vector<128x128xf32>
    %5 = arith.addf %2, %4 : vector<128x128xf32>
    %cst_5 = arith.constant 0.000000e+00 : f32
    %6 = vector.broadcast %cst_5 : f32 to vector<128x128xf32>
    %7 = arith.maximumf %5, %6 : vector<128x128xf32>
    %8 = arith.truncf %7 : vector<128x128xf32> to vector<128x128xbf16>
    %c0_6 = arith.constant 0 : index
    %c0_7 = arith.constant 0 : index
    %9 = vector.load %arg4[%c0_6, %c0_7] : memref<128x128xbf16, #tpu.memory_space<vmem>>, vector<128x128xbf16>
    tpu.vector_store %arg4[%c0_6, %c0_7], %8 {strides = array<i32>} : memref<128x128xbf16, #tpu.memory_space<vmem>>, vector<128x128xbf16>,
    return
  }
  func.func @transform_0(%arg0: i32) -> (i32, i32) {
    %c0_i32 = arith.constant 0 : i32
    %c0_i32_0 = arith.constant 0 : i32
    return %arg0, %c0_i32 : i32, i32
  }
  func.func @transform_1(%arg0: i32) -> (i32, i32) {
    %c0_i32 = arith.constant 0 : i32
    %c0_i32_0 = arith.constant 0 : i32
    %c0_i32_1 = arith.constant 0 : i32
    return %c0_i32, %c0_i32_0 : i32, i32
  }
  func.func @transform_2(%arg0: i32) -> (i32, i32) {
    %c0_i32 = arith.constant 0 : i32
    %c0_i32_0 = arith.constant 0 : i32
    %c0_i32_1 = arith.constant 0 : i32
    return %c0_i32, %c0_i32_0 : i32, i32
  }
  func.func @transform_3(%arg0: i32) -> (i32, i32) {
    %c0_i32 = arith.constant 0 : i32
    %c0_i32_0 = arith.constant 0 : i32
    return %arg0, %c0_i32 : i32, i32
  }
}

module attributes {stable_mosaic.version = 11 : i64} {
  func.func @_fused_matmul_kernel(%arg0: i32, %arg1: memref<128x288xbf16, #tpu.memory_space<vmem>>, %arg2: memref<288x128xbf16, #tpu.memory_space<vmem>>, %arg3: memref<1x128xf32, #tpu.memory_space<vmem>>, %arg4: memref<128x128xbf16, #tpu.memory_space<vmem>>) attributes {dimension_semantics = [#tpu.dimension_semantics<parallel>], iteration_bounds = array<i64: 1>, scalar_prefetch = 0 : i64, scratch_operands = 0 : i64, tpu.core_type = #tpu.core_type<tc>, window_params = [{transform_indices = @transform_0, window_bounds = array<i64: 128, 288>}, {pipeline_mode = #tpu.pipeline_mode<synchronous>, transform_indices = @transform_1, window_bounds = array<i64: 288, 128>}, {pipeline_mode = #tpu.pipeline_mode<synchronous>, transform_indices = @transform_2, window_bounds = array<i64: 1, 128>}, {transform_indices = @transform_3, window_bounds = array<i64: 128, 128>}]} {
    %c0 = arith.constant 0 : index
    %c0_0 = arith.constant 0 : index
    %0 = vector.load %arg1[%c0, %c0_0] : memref<128x288xbf16, #tpu.memory_space<vmem>>, vector<128x288xbf16>
    %c0_1 = arith.constant 0 : index
    %c0_2 = arith.constant 0 : index
    %1 = vector.load %arg2[%c0_1, %c0_2] : memref<288x128xbf16, #tpu.memory_space<vmem>>, vector<288x128xbf16>
    %cst = arith.constant dense<0.000000e+00> : vector<128x128xf32>
    %2 = tpu.matmul %0, %1, %cst {dimension_numbers = #tpu.dot_dimension_numbers<[1], [0], [0], [1], [0, 0, 1, 1], [], []>} : vector<128x288xbf16>, vector<288x128xbf16>, vector<128x128xf32> -> vector<128x128xf32>
    %c0_3 = arith.constant 0 : index
    %c0_4 = arith.constant 0 : index
    %3 = vector.load %arg3[%c0_3, %c0_4] : memref<1x128xf32, #tpu.memory_space<vmem>>, vector<1x128xf32>
    %4 = vector.broadcast %3 : vector<1x128xf32> to vector<128x128xf32>
    %5 = arith.addf %2, %4 : vector<128x128xf32>
    %cst_5 = arith.constant 0.000000e+00 : f32
    %6 = vector.broadcast %cst_5 : f32 to vector<128x128xf32>
    %7 = arith.maximumf %5, %6 : vector<128x128xf32>
    %8 = arith.truncf %7 : vector<128x128xf32> to vector<128x128xbf16>
    %c0_6 = arith.constant 0 : index
    %c0_7 = arith.constant 0 : index
    %9 = vector.load %arg4[%c0_6, %c0_7] : memref<128x128xbf16, #tpu.memory_space<vmem>>, vector<128x128xbf16>
    tpu.vector_store %arg4[%c0_6, %c0_7], %8 {strides = array<i32>} : memref<128x128xbf16, #tpu.memory_space<vmem>>, vector<128x128xbf16>,
    return
  }
  func.func @transform_0(%arg0: i32) -> (i32, i32) {
    %c0_i32 = arith.constant 0 : i32
    %c0_i32_0 = arith.constant 0 : i32
    return %arg0, %c0_i32 : i32, i32
  }
  func.func @transform_1(%arg0: i32) -> (i32, i32) {
    %c0_i32 = arith.constant 0 : i32
    %c0_i32_0 = arith.constant 0 : i32
    %c0_i32_1 = arith.constant 0 : i32
    return %c0_i32, %c0_i32_0 : i32, i32
  }
  func.func @transform_2(%arg0: i32) -> (i32, i32) {
    %c0_i32 = arith.constant 0 : i32
    %c0_i32_0 = arith.constant 0 : i32
    %c0_i32_1 = arith.constant 0 : i32
    return %c0_i32, %c0_i32_0 : i32, i32
  }
  func.func @transform_3(%arg0: i32) -> (i32, i32) {
    %c0_i32 = arith.constant 0 : i32
    %c0_i32_0 = arith.constant 0 : i32
    return %arg0, %c0_i32 : i32, i32
  }
}

module attributes {stable_mosaic.version = 11 : i64} {
  func.func @_fused_matmul_kernel(%arg0: i32, %arg1: memref<32x288xbf16, #tpu.memory_space<vmem>>, %arg2: memref<288x128xbf16, #tpu.memory_space<vmem>>, %arg3: memref<1x128xf32, #tpu.memory_space<vmem>>, %arg4: memref<32x128xbf16, #tpu.memory_space<vmem>>) attributes {dimension_semantics = [#tpu.dimension_semantics<parallel>], iteration_bounds = array<i64: 1>, scalar_prefetch = 0 : i64, scratch_operands = 0 : i64, tpu.core_type = #tpu.core_type<tc>, window_params = [{transform_indices = @transform_0, window_bounds = array<i64: 32, 288>}, {pipeline_mode = #tpu.pipeline_mode<synchronous>, transform_indices = @transform_1, window_bounds = array<i64: 288, 128>}, {pipeline_mode = #tpu.pipeline_mode<synchronous>, transform_indices = @transform_2, window_bounds = array<i64: 1, 128>}, {transform_indices = @transform_3, window_bounds = array<i64: 32, 128>}]} {
    %c0 = arith.constant 0 : index
    %c0_0 = arith.constant 0 : index
    %0 = vector.load %arg1[%c0, %c0_0] : memref<32x288xbf16, #tpu.memory_space<vmem>>, vector<32x288xbf16>
    %c0_1 = arith.constant 0 : index
    %c0_2 = arith.constant 0 : index
    %1 = vector.load %arg2[%c0_1, %c0_2] : memref<288x128xbf16, #tpu.memory_space<vmem>>, vector<288x128xbf16>
    %cst = arith.constant dense<0.000000e+00> : vector<32x128xf32>
    %2 = tpu.matmul %0, %1, %cst {dimension_numbers = #tpu.dot_dimension_numbers<[1], [0], [0], [1], [0, 0, 1, 1], [], []>} : vector<32x288xbf16>, vector<288x128xbf16>, vector<32x128xf32> -> vector<32x128xf32>
    %c0_3 = arith.constant 0 : index
    %c0_4 = arith.constant 0 : index
    %3 = vector.load %arg3[%c0_3, %c0_4] : memref<1x128xf32, #tpu.memory_space<vmem>>, vector<1x128xf32>
    %4 = vector.broadcast %3 : vector<1x128xf32> to vector<32x128xf32>
    %5 = arith.addf %2, %4 : vector<32x128xf32>
    %cst_5 = arith.constant 0.000000e+00 : f32
    %6 = vector.broadcast %cst_5 : f32 to vector<32x128xf32>
    %7 = arith.maximumf %5, %6 : vector<32x128xf32>
    %8 = arith.truncf %7 : vector<32x128xf32> to vector<32x128xbf16>
    %c0_6 = arith.constant 0 : index
    %c0_7 = arith.constant 0 : index
    %9 = vector.load %arg4[%c0_6, %c0_7] : memref<32x128xbf16, #tpu.memory_space<vmem>>, vector<32x128xbf16>
    tpu.vector_store %arg4[%c0_6, %c0_7], %8 {strides = array<i32>} : memref<32x128xbf16, #tpu.memory_space<vmem>>, vector<32x128xbf16>,
    return
  }
  func.func @transform_0(%arg0: i32) -> (i32, i32) {
    %c0_i32 = arith.constant 0 : i32
    %c0_i32_0 = arith.constant 0 : i32
    return %arg0, %c0_i32 : i32, i32
  }
  func.func @transform_1(%arg0: i32) -> (i32, i32) {
    %c0_i32 = arith.constant 0 : i32
    %c0_i32_0 = arith.constant 0 : i32
    %c0_i32_1 = arith.constant 0 : i32
    return %c0_i32, %c0_i32_0 : i32, i32
  }
  func.func @transform_2(%arg0: i32) -> (i32, i32) {
    %c0_i32 = arith.constant 0 : i32
    %c0_i32_0 = arith.constant 0 : i32
    %c0_i32_1 = arith.constant 0 : i32
    return %c0_i32, %c0_i32_0 : i32, i32
  }
  func.func @transform_3(%arg0: i32) -> (i32, i32) {
    %c0_i32 = arith.constant 0 : i32
    %c0_i32_0 = arith.constant 0 : i32
    return %arg0, %c0_i32 : i32, i32
  }
}

module attributes {stable_mosaic.version = 11 : i64} {
  func.func @_fused_matmul_kernel(%arg0: i32, %arg1: memref<32x576xbf16, #tpu.memory_space<vmem>>, %arg2: memref<576x128xbf16, #tpu.memory_space<vmem>>, %arg3: memref<1x128xf32, #tpu.memory_space<vmem>>, %arg4: memref<32x128xbf16, #tpu.memory_space<vmem>>) attributes {dimension_semantics = [#tpu.dimension_semantics<parallel>], iteration_bounds = array<i64: 1>, scalar_prefetch = 0 : i64, scratch_operands = 0 : i64, tpu.core_type = #tpu.core_type<tc>, window_params = [{transform_indices = @transform_0, window_bounds = array<i64: 32, 576>}, {pipeline_mode = #tpu.pipeline_mode<synchronous>, transform_indices = @transform_1, window_bounds = array<i64: 576, 128>}, {pipeline_mode = #tpu.pipeline_mode<synchronous>, transform_indices = @transform_2, window_bounds = array<i64: 1, 128>}, {transform_indices = @transform_3, window_bounds = array<i64: 32, 128>}]} {
    %c0 = arith.constant 0 : index
    %c0_0 = arith.constant 0 : index
    %0 = vector.load %arg1[%c0, %c0_0] : memref<32x576xbf16, #tpu.memory_space<vmem>>, vector<32x576xbf16>
    %c0_1 = arith.constant 0 : index
    %c0_2 = arith.constant 0 : index
    %1 = vector.load %arg2[%c0_1, %c0_2] : memref<576x128xbf16, #tpu.memory_space<vmem>>, vector<576x128xbf16>
    %cst = arith.constant dense<0.000000e+00> : vector<32x128xf32>
    %2 = tpu.matmul %0, %1, %cst {dimension_numbers = #tpu.dot_dimension_numbers<[1], [0], [0], [1], [0, 0, 1, 1], [], []>} : vector<32x576xbf16>, vector<576x128xbf16>, vector<32x128xf32> -> vector<32x128xf32>
    %c0_3 = arith.constant 0 : index
    %c0_4 = arith.constant 0 : index
    %3 = vector.load %arg3[%c0_3, %c0_4] : memref<1x128xf32, #tpu.memory_space<vmem>>, vector<1x128xf32>
    %4 = vector.broadcast %3 : vector<1x128xf32> to vector<32x128xf32>
    %5 = arith.addf %2, %4 : vector<32x128xf32>
    %cst_5 = arith.constant 0.000000e+00 : f32
    %6 = vector.broadcast %cst_5 : f32 to vector<32x128xf32>
    %7 = arith.maximumf %5, %6 : vector<32x128xf32>
    %8 = arith.truncf %7 : vector<32x128xf32> to vector<32x128xbf16>
    %c0_6 = arith.constant 0 : index
    %c0_7 = arith.constant 0 : index
    %9 = vector.load %arg4[%c0_6, %c0_7] : memref<32x128xbf16, #tpu.memory_space<vmem>>, vector<32x128xbf16>
    tpu.vector_store %arg4[%c0_6, %c0_7], %8 {strides = array<i32>} : memref<32x128xbf16, #tpu.memory_space<vmem>>, vector<32x128xbf16>,
    return
  }
  func.func @transform_0(%arg0: i32) -> (i32, i32) {
    %c0_i32 = arith.constant 0 : i32
    %c0_i32_0 = arith.constant 0 : i32
    return %arg0, %c0_i32 : i32, i32
  }
  func.func @transform_1(%arg0: i32) -> (i32, i32) {
    %c0_i32 = arith.constant 0 : i32
    %c0_i32_0 = arith.constant 0 : i32
    %c0_i32_1 = arith.constant 0 : i32
    return %c0_i32, %c0_i32_0 : i32, i32
  }
  func.func @transform_2(%arg0: i32) -> (i32, i32) {
    %c0_i32 = arith.constant 0 : i32
    %c0_i32_0 = arith.constant 0 : i32
    %c0_i32_1 = arith.constant 0 : i32
    return %c0_i32, %c0_i32_0 : i32, i32
  }
  func.func @transform_3(%arg0: i32) -> (i32, i32) {
    %c0_i32 = arith.constant 0 : i32
    %c0_i32_0 = arith.constant 0 : i32
    return %arg0, %c0_i32 : i32, i32
  }
}

module attributes {stable_mosaic.version = 11 : i64} {
  func.func @_fused_matmul_kernel(%arg0: i32, %arg1: memref<8x576xbf16, #tpu.memory_space<vmem>>, %arg2: memref<576x128xbf16, #tpu.memory_space<vmem>>, %arg3: memref<1x128xf32, #tpu.memory_space<vmem>>, %arg4: memref<8x128xbf16, #tpu.memory_space<vmem>>) attributes {dimension_semantics = [#tpu.dimension_semantics<parallel>], iteration_bounds = array<i64: 1>, scalar_prefetch = 0 : i64, scratch_operands = 0 : i64, tpu.core_type = #tpu.core_type<tc>, window_params = [{transform_indices = @transform_0, window_bounds = array<i64: 8, 576>}, {pipeline_mode = #tpu.pipeline_mode<synchronous>, transform_indices = @transform_1, window_bounds = array<i64: 576, 128>}, {pipeline_mode = #tpu.pipeline_mode<synchronous>, transform_indices = @transform_2, window_bounds = array<i64: 1, 128>}, {transform_indices = @transform_3, window_bounds = array<i64: 8, 128>}]} {
    %c0 = arith.constant 0 : index
    %c0_0 = arith.constant 0 : index
    %0 = vector.load %arg1[%c0, %c0_0] : memref<8x576xbf16, #tpu.memory_space<vmem>>, vector<8x576xbf16>
    %c0_1 = arith.constant 0 : index
    %c0_2 = arith.constant 0 : index
    %1 = vector.load %arg2[%c0_1, %c0_2] : memref<576x128xbf16, #tpu.memory_space<vmem>>, vector<576x128xbf16>
    %cst = arith.constant dense<0.000000e+00> : vector<8x128xf32>
    %2 = tpu.matmul %0, %1, %cst {dimension_numbers = #tpu.dot_dimension_numbers<[1], [0], [0], [1], [0, 0, 1, 1], [], []>} : vector<8x576xbf16>, vector<576x128xbf16>, vector<8x128xf32> -> vector<8x128xf32>
    %c0_3 = arith.constant 0 : index
    %c0_4 = arith.constant 0 : index
    %3 = vector.load %arg3[%c0_3, %c0_4] : memref<1x128xf32, #tpu.memory_space<vmem>>, vector<1x128xf32>
    %4 = vector.broadcast %3 : vector<1x128xf32> to vector<8x128xf32>
    %5 = arith.addf %2, %4 : vector<8x128xf32>
    %cst_5 = arith.constant 0.000000e+00 : f32
    %6 = vector.broadcast %cst_5 : f32 to vector<8x128xf32>
    %7 = arith.maximumf %5, %6 : vector<8x128xf32>
    %8 = arith.truncf %7 : vector<8x128xf32> to vector<8x128xbf16>
    %c0_6 = arith.constant 0 : index
    %c0_7 = arith.constant 0 : index
    %9 = vector.load %arg4[%c0_6, %c0_7] : memref<8x128xbf16, #tpu.memory_space<vmem>>, vector<8x128xbf16>
    tpu.vector_store %arg4[%c0_6, %c0_7], %8 {strides = array<i32>} : memref<8x128xbf16, #tpu.memory_space<vmem>>, vector<8x128xbf16>,
    return
  }
  func.func @transform_0(%arg0: i32) -> (i32, i32) {
    %c0_i32 = arith.constant 0 : i32
    %c0_i32_0 = arith.constant 0 : i32
    return %arg0, %c0_i32 : i32, i32
  }
  func.func @transform_1(%arg0: i32) -> (i32, i32) {
    %c0_i32 = arith.constant 0 : i32
    %c0_i32_0 = arith.constant 0 : i32
    %c0_i32_1 = arith.constant 0 : i32
    return %c0_i32, %c0_i32_0 : i32, i32
  }
  func.func @transform_2(%arg0: i32) -> (i32, i32) {
    %c0_i32 = arith.constant 0 : i32
    %c0_i32_0 = arith.constant 0 : i32
    %c0_i32_1 = arith.constant 0 : i32
    return %c0_i32, %c0_i32_0 : i32, i32
  }
  func.func @transform_3(%arg0: i32) -> (i32, i32) {
    %c0_i32 = arith.constant 0 : i32
    %c0_i32_0 = arith.constant 0 : i32
    return %arg0, %c0_i32 : i32, i32
  }
}

module attributes {stable_mosaic.version = 11 : i64} {
  func.func @_fused_matmul_kernel(%arg0: i32, %arg1: memref<8x1152xbf16, #tpu.memory_space<vmem>>, %arg2: memref<1152x128xbf16, #tpu.memory_space<vmem>>, %arg3: memref<1x128xf32, #tpu.memory_space<vmem>>, %arg4: memref<8x128xbf16, #tpu.memory_space<vmem>>) attributes {dimension_semantics = [#tpu.dimension_semantics<parallel>], iteration_bounds = array<i64: 1>, scalar_prefetch = 0 : i64, scratch_operands = 0 : i64, tpu.core_type = #tpu.core_type<tc>, window_params = [{transform_indices = @transform_0, window_bounds = array<i64: 8, 1152>}, {pipeline_mode = #tpu.pipeline_mode<synchronous>, transform_indices = @transform_1, window_bounds = array<i64: 1152, 128>}, {pipeline_mode = #tpu.pipeline_mode<synchronous>, transform_indices = @transform_2, window_bounds = array<i64: 1, 128>}, {transform_indices = @transform_3, window_bounds = array<i64: 8, 128>}]} {
    %c0 = arith.constant 0 : index
    %c0_0 = arith.constant 0 : index
    %0 = vector.load %arg1[%c0, %c0_0] : memref<8x1152xbf16, #tpu.memory_space<vmem>>, vector<8x1152xbf16>
    %c0_1 = arith.constant 0 : index
    %c0_2 = arith.constant 0 : index
    %1 = vector.load %arg2[%c0_1, %c0_2] : memref<1152x128xbf16, #tpu.memory_space<vmem>>, vector<1152x128xbf16>
    %cst = arith.constant dense<0.000000e+00> : vector<8x128xf32>
    %2 = tpu.matmul %0, %1, %cst {dimension_numbers = #tpu.dot_dimension_numbers<[1], [0], [0], [1], [0, 0, 1, 1], [], []>} : vector<8x1152xbf16>, vector<1152x128xbf16>, vector<8x128xf32> -> vector<8x128xf32>
    %c0_3 = arith.constant 0 : index
    %c0_4 = arith.constant 0 : index
    %3 = vector.load %arg3[%c0_3, %c0_4] : memref<1x128xf32, #tpu.memory_space<vmem>>, vector<1x128xf32>
    %4 = vector.broadcast %3 : vector<1x128xf32> to vector<8x128xf32>
    %5 = arith.addf %2, %4 : vector<8x128xf32>
    %cst_5 = arith.constant 0.000000e+00 : f32
    %6 = vector.broadcast %cst_5 : f32 to vector<8x128xf32>
    %7 = arith.maximumf %5, %6 : vector<8x128xf32>
    %8 = arith.truncf %7 : vector<8x128xf32> to vector<8x128xbf16>
    %c0_6 = arith.constant 0 : index
    %c0_7 = arith.constant 0 : index
    %9 = vector.load %arg4[%c0_6, %c0_7] : memref<8x128xbf16, #tpu.memory_space<vmem>>, vector<8x128xbf16>
    tpu.vector_store %arg4[%c0_6, %c0_7], %8 {strides = array<i32>} : memref<8x128xbf16, #tpu.memory_space<vmem>>, vector<8x128xbf16>,
    return
  }
  func.func @transform_0(%arg0: i32) -> (i32, i32) {
    %c0_i32 = arith.constant 0 : i32
    %c0_i32_0 = arith.constant 0 : i32
    return %arg0, %c0_i32 : i32, i32
  }
  func.func @transform_1(%arg0: i32) -> (i32, i32) {
    %c0_i32 = arith.constant 0 : i32
    %c0_i32_0 = arith.constant 0 : i32
    %c0_i32_1 = arith.constant 0 : i32
    return %c0_i32, %c0_i32_0 : i32, i32
  }
  func.func @transform_2(%arg0: i32) -> (i32, i32) {
    %c0_i32 = arith.constant 0 : i32
    %c0_i32_0 = arith.constant 0 : i32
    %c0_i32_1 = arith.constant 0 : i32
    return %c0_i32, %c0_i32_0 : i32, i32
  }
  func.func @transform_3(%arg0: i32) -> (i32, i32) {
    %c0_i32 = arith.constant 0 : i32
    %c0_i32_0 = arith.constant 0 : i32
    return %arg0, %c0_i32 : i32, i32
  }
}

module attributes {stable_mosaic.version = 11 : i64} {
  func.func @_fused_matmul_kernel(%arg0: i32, %arg1: memref<2x1152xbf16, #tpu.memory_space<vmem>>, %arg2: memref<1152x256xbf16, #tpu.memory_space<vmem>>, %arg3: memref<1x256xf32, #tpu.memory_space<vmem>>, %arg4: memref<2x256xbf16, #tpu.memory_space<vmem>>) attributes {dimension_semantics = [#tpu.dimension_semantics<parallel>], iteration_bounds = array<i64: 1>, scalar_prefetch = 0 : i64, scratch_operands = 0 : i64, tpu.core_type = #tpu.core_type<tc>, window_params = [{transform_indices = @transform_0, window_bounds = array<i64: 2, 1152>}, {pipeline_mode = #tpu.pipeline_mode<synchronous>, transform_indices = @transform_1, window_bounds = array<i64: 1152, 256>}, {pipeline_mode = #tpu.pipeline_mode<synchronous>, transform_indices = @transform_2, window_bounds = array<i64: 1, 256>}, {transform_indices = @transform_3, window_bounds = array<i64: 2, 256>}]} {
    %c0 = arith.constant 0 : index
    %c0_0 = arith.constant 0 : index
    %0 = vector.load %arg1[%c0, %c0_0] : memref<2x1152xbf16, #tpu.memory_space<vmem>>, vector<2x1152xbf16>
    %c0_1 = arith.constant 0 : index
    %c0_2 = arith.constant 0 : index
    %1 = vector.load %arg2[%c0_1, %c0_2] : memref<1152x256xbf16, #tpu.memory_space<vmem>>, vector<1152x256xbf16>
    %cst = arith.constant dense<0.000000e+00> : vector<2x256xf32>
    %2 = tpu.matmul %0, %1, %cst {dimension_numbers = #tpu.dot_dimension_numbers<[1], [0], [0], [1], [0, 0, 1, 1], [], []>} : vector<2x1152xbf16>, vector<1152x256xbf16>, vector<2x256xf32> -> vector<2x256xf32>
    %c0_3 = arith.constant 0 : index
    %c0_4 = arith.constant 0 : index
    %3 = vector.load %arg3[%c0_3, %c0_4] : memref<1x256xf32, #tpu.memory_space<vmem>>, vector<1x256xf32>
    %4 = vector.broadcast %3 : vector<1x256xf32> to vector<2x256xf32>
    %5 = arith.addf %2, %4 : vector<2x256xf32>
    %cst_5 = arith.constant 0.000000e+00 : f32
    %6 = vector.broadcast %cst_5 : f32 to vector<2x256xf32>
    %7 = arith.maximumf %5, %6 : vector<2x256xf32>
    %8 = arith.truncf %7 : vector<2x256xf32> to vector<2x256xbf16>
    %c0_6 = arith.constant 0 : index
    %c0_7 = arith.constant 0 : index
    %9 = vector.load %arg4[%c0_6, %c0_7] : memref<2x256xbf16, #tpu.memory_space<vmem>>, vector<2x256xbf16>
    tpu.vector_store %arg4[%c0_6, %c0_7], %8 {strides = array<i32>} : memref<2x256xbf16, #tpu.memory_space<vmem>>, vector<2x256xbf16>,
    return
  }
  func.func @transform_0(%arg0: i32) -> (i32, i32) {
    %c0_i32 = arith.constant 0 : i32
    %c0_i32_0 = arith.constant 0 : i32
    return %arg0, %c0_i32 : i32, i32
  }
  func.func @transform_1(%arg0: i32) -> (i32, i32) {
    %c0_i32 = arith.constant 0 : i32
    %c0_i32_0 = arith.constant 0 : i32
    %c0_i32_1 = arith.constant 0 : i32
    return %c0_i32, %c0_i32_0 : i32, i32
  }
  func.func @transform_2(%arg0: i32) -> (i32, i32) {
    %c0_i32 = arith.constant 0 : i32
    %c0_i32_0 = arith.constant 0 : i32
    %c0_i32_1 = arith.constant 0 : i32
    return %c0_i32, %c0_i32_0 : i32, i32
  }
  func.func @transform_3(%arg0: i32) -> (i32, i32) {
    %c0_i32 = arith.constant 0 : i32
    %c0_i32_0 = arith.constant 0 : i32
    return %arg0, %c0_i32 : i32, i32
  }
}

module attributes {stable_mosaic.version = 11 : i64} {
  func.func @_fused_matmul_kernel(%arg0: i32, %arg1: memref<2x2304xbf16, #tpu.memory_space<vmem>>, %arg2: memref<2304x256xbf16, #tpu.memory_space<vmem>>, %arg3: memref<1x256xf32, #tpu.memory_space<vmem>>, %arg4: memref<2x256xbf16, #tpu.memory_space<vmem>>) attributes {dimension_semantics = [#tpu.dimension_semantics<parallel>], iteration_bounds = array<i64: 1>, scalar_prefetch = 0 : i64, scratch_operands = 0 : i64, tpu.core_type = #tpu.core_type<tc>, window_params = [{transform_indices = @transform_0, window_bounds = array<i64: 2, 2304>}, {pipeline_mode = #tpu.pipeline_mode<synchronous>, transform_indices = @transform_1, window_bounds = array<i64: 2304, 256>}, {pipeline_mode = #tpu.pipeline_mode<synchronous>, transform_indices = @transform_2, window_bounds = array<i64: 1, 256>}, {transform_indices = @transform_3, window_bounds = array<i64: 2, 256>}]} {
    %c0 = arith.constant 0 : index
    %c0_0 = arith.constant 0 : index
    %0 = vector.load %arg1[%c0, %c0_0] : memref<2x2304xbf16, #tpu.memory_space<vmem>>, vector<2x2304xbf16>
    %c0_1 = arith.constant 0 : index
    %c0_2 = arith.constant 0 : index
    %1 = vector.load %arg2[%c0_1, %c0_2] : memref<2304x256xbf16, #tpu.memory_space<vmem>>, vector<2304x256xbf16>
    %cst = arith.constant dense<0.000000e+00> : vector<2x256xf32>
    %2 = tpu.matmul %0, %1, %cst {dimension_numbers = #tpu.dot_dimension_numbers<[1], [0], [0], [1], [0, 0, 1, 1], [], []>} : vector<2x2304xbf16>, vector<2304x256xbf16>, vector<2x256xf32> -> vector<2x256xf32>
    %c0_3 = arith.constant 0 : index
    %c0_4 = arith.constant 0 : index
    %3 = vector.load %arg3[%c0_3, %c0_4] : memref<1x256xf32, #tpu.memory_space<vmem>>, vector<1x256xf32>
    %4 = vector.broadcast %3 : vector<1x256xf32> to vector<2x256xf32>
    %5 = arith.addf %2, %4 : vector<2x256xf32>
    %cst_5 = arith.constant 0.000000e+00 : f32
    %6 = vector.broadcast %cst_5 : f32 to vector<2x256xf32>
    %7 = arith.maximumf %5, %6 : vector<2x256xf32>
    %8 = arith.truncf %7 : vector<2x256xf32> to vector<2x256xbf16>
    %c0_6 = arith.constant 0 : index
    %c0_7 = arith.constant 0 : index
    %9 = vector.load %arg4[%c0_6, %c0_7] : memref<2x256xbf16, #tpu.memory_space<vmem>>, vector<2x256xbf16>
    tpu.vector_store %arg4[%c0_6, %c0_7], %8 {strides = array<i32>} : memref<2x256xbf16, #tpu.memory_space<vmem>>, vector<2x256xbf16>,
    return
  }
  func.func @transform_0(%arg0: i32) -> (i32, i32) {
    %c0_i32 = arith.constant 0 : i32
    %c0_i32_0 = arith.constant 0 : i32
    return %arg0, %c0_i32 : i32, i32
  }
  func.func @transform_1(%arg0: i32) -> (i32, i32) {
    %c0_i32 = arith.constant 0 : i32
    %c0_i32_0 = arith.constant 0 : i32
    %c0_i32_1 = arith.constant 0 : i32
    return %c0_i32, %c0_i32_0 : i32, i32
  }
  func.func @transform_2(%arg0: i32) -> (i32, i32) {
    %c0_i32 = arith.constant 0 : i32
    %c0_i32_0 = arith.constant 0 : i32
    %c0_i32_1 = arith.constant 0 : i32
    return %c0_i32, %c0_i32_0 : i32, i32
  }
  func.func @transform_3(%arg0: i32) -> (i32, i32) {
    %c0_i32 = arith.constant 0 : i32
    %c0_i32_0 = arith.constant 0 : i32
    return %arg0, %c0_i32 : i32, i32
  }
}

module attributes {stable_mosaic.version = 11 : i64} {
  func.func @_fused_matmul_kernel(%arg0: i32, %arg1: memref<2x256xbf16, #tpu.memory_space<vmem>>, %arg2: memref<256x512xbf16, #tpu.memory_space<vmem>>, %arg3: memref<1x512xf32, #tpu.memory_space<vmem>>, %arg4: memref<2x512xbf16, #tpu.memory_space<vmem>>) attributes {dimension_semantics = [#tpu.dimension_semantics<parallel>], iteration_bounds = array<i64: 1>, scalar_prefetch = 0 : i64, scratch_operands = 0 : i64, tpu.core_type = #tpu.core_type<tc>, window_params = [{transform_indices = @transform_0, window_bounds = array<i64: 2, 256>}, {pipeline_mode = #tpu.pipeline_mode<synchronous>, transform_indices = @transform_1, window_bounds = array<i64: 256, 512>}, {pipeline_mode = #tpu.pipeline_mode<synchronous>, transform_indices = @transform_2, window_bounds = array<i64: 1, 512>}, {transform_indices = @transform_3, window_bounds = array<i64: 2, 512>}]} {
    %c0 = arith.constant 0 : index
    %c0_0 = arith.constant 0 : index
    %0 = vector.load %arg1[%c0, %c0_0] : memref<2x256xbf16, #tpu.memory_space<vmem>>, vector<2x256xbf16>
    %c0_1 = arith.constant 0 : index
    %c0_2 = arith.constant 0 : index
    %1 = vector.load %arg2[%c0_1, %c0_2] : memref<256x512xbf16, #tpu.memory_space<vmem>>, vector<256x512xbf16>
    %cst = arith.constant dense<0.000000e+00> : vector<2x512xf32>
    %2 = tpu.matmul %0, %1, %cst {dimension_numbers = #tpu.dot_dimension_numbers<[1], [0], [0], [1], [0, 0, 1, 1], [], []>} : vector<2x256xbf16>, vector<256x512xbf16>, vector<2x512xf32> -> vector<2x512xf32>
    %c0_3 = arith.constant 0 : index
    %c0_4 = arith.constant 0 : index
    %3 = vector.load %arg3[%c0_3, %c0_4] : memref<1x512xf32, #tpu.memory_space<vmem>>, vector<1x512xf32>
    %4 = vector.broadcast %3 : vector<1x512xf32> to vector<2x512xf32>
    %5 = arith.addf %2, %4 : vector<2x512xf32>
    %6 = arith.truncf %5 : vector<2x512xf32> to vector<2x512xbf16>
    %c0_5 = arith.constant 0 : index
    %c0_6 = arith.constant 0 : index
    %7 = vector.load %arg4[%c0_5, %c0_6] : memref<2x512xbf16, #tpu.memory_space<vmem>>, vector<2x512xbf16>
    tpu.vector_store %arg4[%c0_5, %c0_6], %6 {strides = array<i32>} : memref<2x512xbf16, #tpu.memory_space<vmem>>, vector<2x512xbf16>,
    return
  }
  func.func @transform_0(%arg0: i32) -> (i32, i32) {
    %c0_i32 = arith.constant 0 : i32
    %c0_i32_0 = arith.constant 0 : i32
    return %arg0, %c0_i32 : i32, i32
  }
  func.func @transform_1(%arg0: i32) -> (i32, i32) {
    %c0_i32 = arith.constant 0 : i32
    %c0_i32_0 = arith.constant 0 : i32
    %c0_i32_1 = arith.constant 0 : i32
    return %c0_i32, %c0_i32_0 : i32, i32
  }
  func.func @transform_2(%arg0: i32) -> (i32, i32) {
    %c0_i32 = arith.constant 0 : i32
    %c0_i32_0 = arith.constant 0 : i32
    %c0_i32_1 = arith.constant 0 : i32
    return %c0_i32, %c0_i32_0 : i32, i32
  }
  func.func @transform_3(%arg0: i32) -> (i32, i32) {
    %c0_i32 = arith.constant 0 : i32
    %c0_i32_0 = arith.constant 0 : i32
    return %arg0, %c0_i32 : i32, i32
  }
}

module attributes {stable_mosaic.version = 11 : i64} {
  func.func @_fused_matmul_kernel(%arg0: i32, %arg1: memref<8x128xbf16, #tpu.memory_space<vmem>>, %arg2: memref<128x256xbf16, #tpu.memory_space<vmem>>, %arg3: memref<1x256xf32, #tpu.memory_space<vmem>>, %arg4: memref<8x256xbf16, #tpu.memory_space<vmem>>) attributes {dimension_semantics = [#tpu.dimension_semantics<parallel>], iteration_bounds = array<i64: 1>, scalar_prefetch = 0 : i64, scratch_operands = 0 : i64, tpu.core_type = #tpu.core_type<tc>, window_params = [{transform_indices = @transform_0, window_bounds = array<i64: 8, 128>}, {pipeline_mode = #tpu.pipeline_mode<synchronous>, transform_indices = @transform_1, window_bounds = array<i64: 128, 256>}, {pipeline_mode = #tpu.pipeline_mode<synchronous>, transform_indices = @transform_2, window_bounds = array<i64: 1, 256>}, {transform_indices = @transform_3, window_bounds = array<i64: 8, 256>}]} {
    %c0 = arith.constant 0 : index
    %c0_0 = arith.constant 0 : index
    %0 = vector.load %arg1[%c0, %c0_0] : memref<8x128xbf16, #tpu.memory_space<vmem>>, vector<8x128xbf16>
    %c0_1 = arith.constant 0 : index
    %c0_2 = arith.constant 0 : index
    %1 = vector.load %arg2[%c0_1, %c0_2] : memref<128x256xbf16, #tpu.memory_space<vmem>>, vector<128x256xbf16>
    %cst = arith.constant dense<0.000000e+00> : vector<8x256xf32>
    %2 = tpu.matmul %0, %1, %cst {dimension_numbers = #tpu.dot_dimension_numbers<[1], [0], [0], [1], [0, 0, 1, 1], [], []>} : vector<8x128xbf16>, vector<128x256xbf16>, vector<8x256xf32> -> vector<8x256xf32>
    %c0_3 = arith.constant 0 : index
    %c0_4 = arith.constant 0 : index
    %3 = vector.load %arg3[%c0_3, %c0_4] : memref<1x256xf32, #tpu.memory_space<vmem>>, vector<1x256xf32>
    %4 = vector.broadcast %3 : vector<1x256xf32> to vector<8x256xf32>
    %5 = arith.addf %2, %4 : vector<8x256xf32>
    %6 = arith.truncf %5 : vector<8x256xf32> to vector<8x256xbf16>
    %c0_5 = arith.constant 0 : index
    %c0_6 = arith.constant 0 : index
    %7 = vector.load %arg4[%c0_5, %c0_6] : memref<8x256xbf16, #tpu.memory_space<vmem>>, vector<8x256xbf16>
    tpu.vector_store %arg4[%c0_5, %c0_6], %6 {strides = array<i32>} : memref<8x256xbf16, #tpu.memory_space<vmem>>, vector<8x256xbf16>,
    return
  }
  func.func @transform_0(%arg0: i32) -> (i32, i32) {
    %c0_i32 = arith.constant 0 : i32
    %c0_i32_0 = arith.constant 0 : i32
    return %arg0, %c0_i32 : i32, i32
  }
  func.func @transform_1(%arg0: i32) -> (i32, i32) {
    %c0_i32 = arith.constant 0 : i32
    %c0_i32_0 = arith.constant 0 : i32
    %c0_i32_1 = arith.constant 0 : i32
    return %c0_i32, %c0_i32_0 : i32, i32
  }
  func.func @transform_2(%arg0: i32) -> (i32, i32) {
    %c0_i32 = arith.constant 0 : i32
    %c0_i32_0 = arith.constant 0 : i32
    %c0_i32_1 = arith.constant 0 : i32
    return %c0_i32, %c0_i32_0 : i32, i32
  }
  func.func @transform_3(%arg0: i32) -> (i32, i32) {
    %c0_i32 = arith.constant 0 : i32
    %c0_i32_0 = arith.constant 0 : i32
    return %arg0, %c0_i32 : i32, i32
  }
}

module attributes {stable_mosaic.version = 11 : i64} {
  func.func @_fused_matmul_kernel(%arg0: i32, %arg1: memref<32x576xbf16, #tpu.memory_space<vmem>>, %arg2: memref<576x128xbf16, #tpu.memory_space<vmem>>, %arg3: memref<1x128xf32, #tpu.memory_space<vmem>>, %arg4: memref<32x128xbf16, #tpu.memory_space<vmem>>) attributes {dimension_semantics = [#tpu.dimension_semantics<parallel>], iteration_bounds = array<i64: 1>, scalar_prefetch = 0 : i64, scratch_operands = 0 : i64, tpu.core_type = #tpu.core_type<tc>, window_params = [{transform_indices = @transform_0, window_bounds = array<i64: 32, 576>}, {pipeline_mode = #tpu.pipeline_mode<synchronous>, transform_indices = @transform_1, window_bounds = array<i64: 576, 128>}, {pipeline_mode = #tpu.pipeline_mode<synchronous>, transform_indices = @transform_2, window_bounds = array<i64: 1, 128>}, {transform_indices = @transform_3, window_bounds = array<i64: 32, 128>}]} {
    %c0 = arith.constant 0 : index
    %c0_0 = arith.constant 0 : index
    %0 = vector.load %arg1[%c0, %c0_0] : memref<32x576xbf16, #tpu.memory_space<vmem>>, vector<32x576xbf16>
    %c0_1 = arith.constant 0 : index
    %c0_2 = arith.constant 0 : index
    %1 = vector.load %arg2[%c0_1, %c0_2] : memref<576x128xbf16, #tpu.memory_space<vmem>>, vector<576x128xbf16>
    %cst = arith.constant dense<0.000000e+00> : vector<32x128xf32>
    %2 = tpu.matmul %0, %1, %cst {dimension_numbers = #tpu.dot_dimension_numbers<[1], [0], [0], [1], [0, 0, 1, 1], [], []>} : vector<32x576xbf16>, vector<576x128xbf16>, vector<32x128xf32> -> vector<32x128xf32>
    %c0_3 = arith.constant 0 : index
    %c0_4 = arith.constant 0 : index
    %3 = vector.load %arg3[%c0_3, %c0_4] : memref<1x128xf32, #tpu.memory_space<vmem>>, vector<1x128xf32>
    %4 = vector.broadcast %3 : vector<1x128xf32> to vector<32x128xf32>
    %5 = arith.addf %2, %4 : vector<32x128xf32>
    %cst_5 = arith.constant 0.000000e+00 : f32
    %6 = vector.broadcast %cst_5 : f32 to vector<32x128xf32>
    %7 = arith.maximumf %5, %6 : vector<32x128xf32>
    %8 = arith.truncf %7 : vector<32x128xf32> to vector<32x128xbf16>
    %c0_6 = arith.constant 0 : index
    %c0_7 = arith.constant 0 : index
    %9 = vector.load %arg4[%c0_6, %c0_7] : memref<32x128xbf16, #tpu.memory_space<vmem>>, vector<32x128xbf16>
    tpu.vector_store %arg4[%c0_6, %c0_7], %8 {strides = array<i32>} : memref<32x128xbf16, #tpu.memory_space<vmem>>, vector<32x128xbf16>,
    return
  }
  func.func @transform_0(%arg0: i32) -> (i32, i32) {
    %c0_i32 = arith.constant 0 : i32
    %c0_i32_0 = arith.constant 0 : i32
    return %arg0, %c0_i32 : i32, i32
  }
  func.func @transform_1(%arg0: i32) -> (i32, i32) {
    %c0_i32 = arith.constant 0 : i32
    %c0_i32_0 = arith.constant 0 : i32
    %c0_i32_1 = arith.constant 0 : i32
    return %c0_i32, %c0_i32_0 : i32, i32
  }
  func.func @transform_2(%arg0: i32) -> (i32, i32) {
    %c0_i32 = arith.constant 0 : i32
    %c0_i32_0 = arith.constant 0 : i32
    %c0_i32_1 = arith.constant 0 : i32
    return %c0_i32, %c0_i32_0 : i32, i32
  }
  func.func @transform_3(%arg0: i32) -> (i32, i32) {
    %c0_i32 = arith.constant 0 : i32
    %c0_i32_0 = arith.constant 0 : i32
    return %arg0, %c0_i32 : i32, i32
  }
}

module attributes {stable_mosaic.version = 11 : i64} {
  func.func @_fused_matmul_kernel(%arg0: i32, %arg1: memref<32x64xbf16, #tpu.memory_space<vmem>>, %arg2: memref<64x128xbf16, #tpu.memory_space<vmem>>, %arg3: memref<1x128xf32, #tpu.memory_space<vmem>>, %arg4: memref<32x128xbf16, #tpu.memory_space<vmem>>) attributes {dimension_semantics = [#tpu.dimension_semantics<parallel>], iteration_bounds = array<i64: 1>, scalar_prefetch = 0 : i64, scratch_operands = 0 : i64, tpu.core_type = #tpu.core_type<tc>, window_params = [{transform_indices = @transform_0, window_bounds = array<i64: 32, 64>}, {pipeline_mode = #tpu.pipeline_mode<synchronous>, transform_indices = @transform_1, window_bounds = array<i64: 64, 128>}, {pipeline_mode = #tpu.pipeline_mode<synchronous>, transform_indices = @transform_2, window_bounds = array<i64: 1, 128>}, {transform_indices = @transform_3, window_bounds = array<i64: 32, 128>}]} {
    %c0 = arith.constant 0 : index
    %c0_0 = arith.constant 0 : index
    %0 = vector.load %arg1[%c0, %c0_0] : memref<32x64xbf16, #tpu.memory_space<vmem>>, vector<32x64xbf16>
    %c0_1 = arith.constant 0 : index
    %c0_2 = arith.constant 0 : index
    %1 = vector.load %arg2[%c0_1, %c0_2] : memref<64x128xbf16, #tpu.memory_space<vmem>>, vector<64x128xbf16>
    %cst = arith.constant dense<0.000000e+00> : vector<32x128xf32>
    %2 = tpu.matmul %0, %1, %cst {dimension_numbers = #tpu.dot_dimension_numbers<[1], [0], [0], [1], [0, 0, 1, 1], [], []>} : vector<32x64xbf16>, vector<64x128xbf16>, vector<32x128xf32> -> vector<32x128xf32>
    %c0_3 = arith.constant 0 : index
    %c0_4 = arith.constant 0 : index
    %3 = vector.load %arg3[%c0_3, %c0_4] : memref<1x128xf32, #tpu.memory_space<vmem>>, vector<1x128xf32>
    %4 = vector.broadcast %3 : vector<1x128xf32> to vector<32x128xf32>
    %5 = arith.addf %2, %4 : vector<32x128xf32>
    %6 = arith.truncf %5 : vector<32x128xf32> to vector<32x128xbf16>
    %c0_5 = arith.constant 0 : index
    %c0_6 = arith.constant 0 : index
    %7 = vector.load %arg4[%c0_5, %c0_6] : memref<32x128xbf16, #tpu.memory_space<vmem>>, vector<32x128xbf16>
    tpu.vector_store %arg4[%c0_5, %c0_6], %6 {strides = array<i32>} : memref<32x128xbf16, #tpu.memory_space<vmem>>, vector<32x128xbf16>,
    return
  }
  func.func @transform_0(%arg0: i32) -> (i32, i32) {
    %c0_i32 = arith.constant 0 : i32
    %c0_i32_0 = arith.constant 0 : i32
    return %arg0, %c0_i32 : i32, i32
  }
  func.func @transform_1(%arg0: i32) -> (i32, i32) {
    %c0_i32 = arith.constant 0 : i32
    %c0_i32_0 = arith.constant 0 : i32
    %c0_i32_1 = arith.constant 0 : i32
    return %c0_i32, %c0_i32_0 : i32, i32
  }
  func.func @transform_2(%arg0: i32) -> (i32, i32) {
    %c0_i32 = arith.constant 0 : i32
    %c0_i32_0 = arith.constant 0 : i32
    %c0_i32_1 = arith.constant 0 : i32
    return %c0_i32, %c0_i32_0 : i32, i32
  }
  func.func @transform_3(%arg0: i32) -> (i32, i32) {
    %c0_i32 = arith.constant 0 : i32
    %c0_i32_0 = arith.constant 0 : i32
    return %arg0, %c0_i32 : i32, i32
  }
}

module attributes {stable_mosaic.version = 11 : i64} {
  func.func @_fused_matmul_kernel(%arg0: i32, %arg1: memref<128x32xbf16, #tpu.memory_space<vmem>>, %arg2: memref<32x128xbf16, #tpu.memory_space<vmem>>, %arg3: memref<1x128xf32, #tpu.memory_space<vmem>>, %arg4: memref<128x128xbf16, #tpu.memory_space<vmem>>) attributes {dimension_semantics = [#tpu.dimension_semantics<parallel>], iteration_bounds = array<i64: 1>, scalar_prefetch = 0 : i64, scratch_operands = 0 : i64, tpu.core_type = #tpu.core_type<tc>, window_params = [{transform_indices = @transform_0, window_bounds = array<i64: 128, 32>}, {pipeline_mode = #tpu.pipeline_mode<synchronous>, transform_indices = @transform_1, window_bounds = array<i64: 32, 128>}, {pipeline_mode = #tpu.pipeline_mode<synchronous>, transform_indices = @transform_2, window_bounds = array<i64: 1, 128>}, {transform_indices = @transform_3, window_bounds = array<i64: 128, 128>}]} {
    %c0 = arith.constant 0 : index
    %c0_0 = arith.constant 0 : index
    %0 = vector.load %arg1[%c0, %c0_0] : memref<128x32xbf16, #tpu.memory_space<vmem>>, vector<128x32xbf16>
    %c0_1 = arith.constant 0 : index
    %c0_2 = arith.constant 0 : index
    %1 = vector.load %arg2[%c0_1, %c0_2] : memref<32x128xbf16, #tpu.memory_space<vmem>>, vector<32x128xbf16>
    %cst = arith.constant dense<0.000000e+00> : vector<128x128xf32>
    %2 = tpu.matmul %0, %1, %cst {dimension_numbers = #tpu.dot_dimension_numbers<[1], [0], [0], [1], [0, 0, 1, 1], [], []>} : vector<128x32xbf16>, vector<32x128xbf16>, vector<128x128xf32> -> vector<128x128xf32>
    %c0_3 = arith.constant 0 : index
    %c0_4 = arith.constant 0 : index
    %3 = vector.load %arg3[%c0_3, %c0_4] : memref<1x128xf32, #tpu.memory_space<vmem>>, vector<1x128xf32>
    %4 = vector.broadcast %3 : vector<1x128xf32> to vector<128x128xf32>
    %5 = arith.addf %2, %4 : vector<128x128xf32>
    %6 = arith.truncf %5 : vector<128x128xf32> to vector<128x128xbf16>
    %c0_5 = arith.constant 0 : index
    %c0_6 = arith.constant 0 : index
    %7 = vector.load %arg4[%c0_5, %c0_6] : memref<128x128xbf16, #tpu.memory_space<vmem>>, vector<128x128xbf16>
    tpu.vector_store %arg4[%c0_5, %c0_6], %6 {strides = array<i32>} : memref<128x128xbf16, #tpu.memory_space<vmem>>, vector<128x128xbf16>,
    return
  }
  func.func @transform_0(%arg0: i32) -> (i32, i32) {
    %c0_i32 = arith.constant 0 : i32
    %c0_i32_0 = arith.constant 0 : i32
    return %arg0, %c0_i32 : i32, i32
  }
  func.func @transform_1(%arg0: i32) -> (i32, i32) {
    %c0_i32 = arith.constant 0 : i32
    %c0_i32_0 = arith.constant 0 : i32
    %c0_i32_1 = arith.constant 0 : i32
    return %c0_i32, %c0_i32_0 : i32, i32
  }
  func.func @transform_2(%arg0: i32) -> (i32, i32) {
    %c0_i32 = arith.constant 0 : i32
    %c0_i32_0 = arith.constant 0 : i32
    %c0_i32_1 = arith.constant 0 : i32
    return %c0_i32, %c0_i32_0 : i32, i32
  }
  func.func @transform_3(%arg0: i32) -> (i32, i32) {
    %c0_i32 = arith.constant 0 : i32
    %c0_i32_0 = arith.constant 0 : i32
    return %arg0, %c0_i32 : i32, i32
  }
}

module attributes {stable_mosaic.version = 11 : i64} {
  func.func @_fused_matmul_kernel(%arg0: i32, %arg1: memref<256x288xbf16, #tpu.memory_space<vmem>>, %arg2: memref<288x128xbf16, #tpu.memory_space<vmem>>, %arg3: memref<1x128xf32, #tpu.memory_space<vmem>>, %arg4: memref<256x128xbf16, #tpu.memory_space<vmem>>) attributes {dimension_semantics = [#tpu.dimension_semantics<parallel>], iteration_bounds = array<i64: 2>, scalar_prefetch = 0 : i64, scratch_operands = 0 : i64, tpu.core_type = #tpu.core_type<tc>, window_params = [{transform_indices = @transform_0, window_bounds = array<i64: 256, 288>}, {pipeline_mode = #tpu.pipeline_mode<synchronous>, transform_indices = @transform_1, window_bounds = array<i64: 288, 128>}, {pipeline_mode = #tpu.pipeline_mode<synchronous>, transform_indices = @transform_2, window_bounds = array<i64: 1, 128>}, {transform_indices = @transform_3, window_bounds = array<i64: 256, 128>}]} {
    %c0 = arith.constant 0 : index
    %c0_0 = arith.constant 0 : index
    %0 = vector.load %arg1[%c0, %c0_0] : memref<256x288xbf16, #tpu.memory_space<vmem>>, vector<256x288xbf16>
    %c0_1 = arith.constant 0 : index
    %c0_2 = arith.constant 0 : index
    %1 = vector.load %arg2[%c0_1, %c0_2] : memref<288x128xbf16, #tpu.memory_space<vmem>>, vector<288x128xbf16>
    %cst = arith.constant dense<0.000000e+00> : vector<256x128xf32>
    %2 = tpu.matmul %0, %1, %cst {dimension_numbers = #tpu.dot_dimension_numbers<[1], [0], [0], [1], [0, 0, 1, 1], [], []>} : vector<256x288xbf16>, vector<288x128xbf16>, vector<256x128xf32> -> vector<256x128xf32>
    %c0_3 = arith.constant 0 : index
    %c0_4 = arith.constant 0 : index
    %3 = vector.load %arg3[%c0_3, %c0_4] : memref<1x128xf32, #tpu.memory_space<vmem>>, vector<1x128xf32>
    %4 = vector.broadcast %3 : vector<1x128xf32> to vector<256x128xf32>
    %5 = arith.addf %2, %4 : vector<256x128xf32>
    %cst_5 = arith.constant 0.000000e+00 : f32
    %6 = vector.broadcast %cst_5 : f32 to vector<256x128xf32>
    %7 = arith.maximumf %5, %6 : vector<256x128xf32>
    %8 = arith.truncf %7 : vector<256x128xf32> to vector<256x128xbf16>
    %c0_6 = arith.constant 0 : index
    %c0_7 = arith.constant 0 : index
    %9 = vector.load %arg4[%c0_6, %c0_7] : memref<256x128xbf16, #tpu.memory_space<vmem>>, vector<256x128xbf16>
    tpu.vector_store %arg4[%c0_6, %c0_7], %8 {strides = array<i32>} : memref<256x128xbf16, #tpu.memory_space<vmem>>, vector<256x128xbf16>,
    return
  }
  func.func @transform_0(%arg0: i32) -> (i32, i32) {
    %c0_i32 = arith.constant 0 : i32
    %c0_i32_0 = arith.constant 0 : i32
    return %arg0, %c0_i32 : i32, i32
  }
  func.func @transform_1(%arg0: i32) -> (i32, i32) {
    %c0_i32 = arith.constant 0 : i32
    %c0_i32_0 = arith.constant 0 : i32
    %c0_i32_1 = arith.constant 0 : i32
    return %c0_i32, %c0_i32_0 : i32, i32
  }
  func.func @transform_2(%arg0: i32) -> (i32, i32) {
    %c0_i32 = arith.constant 0 : i32
    %c0_i32_0 = arith.constant 0 : i32
    %c0_i32_1 = arith.constant 0 : i32
    return %c0_i32, %c0_i32_0 : i32, i32
  }
  func.func @transform_3(%arg0: i32) -> (i32, i32) {
    %c0_i32 = arith.constant 0 : i32
    %c0_i32_0 = arith.constant 0 : i32
    return %arg0, %c0_i32 : i32, i32
  }
}

module attributes {stable_mosaic.version = 11 : i64} {
  func.func @_fused_matmul_kernel(%arg0: i32, %arg1: memref<256x288xbf16, #tpu.memory_space<vmem>>, %arg2: memref<288x128xbf16, #tpu.memory_space<vmem>>, %arg3: memref<1x128xf32, #tpu.memory_space<vmem>>, %arg4: memref<256x128xf32, #tpu.memory_space<vmem>>) attributes {dimension_semantics = [#tpu.dimension_semantics<parallel>], iteration_bounds = array<i64: 2>, scalar_prefetch = 0 : i64, scratch_operands = 0 : i64, tpu.core_type = #tpu.core_type<tc>, window_params = [{transform_indices = @transform_0, window_bounds = array<i64: 256, 288>}, {pipeline_mode = #tpu.pipeline_mode<synchronous>, transform_indices = @transform_1, window_bounds = array<i64: 288, 128>}, {pipeline_mode = #tpu.pipeline_mode<synchronous>, transform_indices = @transform_2, window_bounds = array<i64: 1, 128>}, {transform_indices = @transform_3, window_bounds = array<i64: 256, 128>}]} {
    %c0 = arith.constant 0 : index
    %c0_0 = arith.constant 0 : index
    %0 = vector.load %arg1[%c0, %c0_0] : memref<256x288xbf16, #tpu.memory_space<vmem>>, vector<256x288xbf16>
    %c0_1 = arith.constant 0 : index
    %c0_2 = arith.constant 0 : index
    %1 = vector.load %arg2[%c0_1, %c0_2] : memref<288x128xbf16, #tpu.memory_space<vmem>>, vector<288x128xbf16>
    %cst = arith.constant dense<0.000000e+00> : vector<256x128xf32>
    %2 = tpu.matmul %0, %1, %cst {dimension_numbers = #tpu.dot_dimension_numbers<[1], [0], [0], [1], [0, 0, 1, 1], [], []>} : vector<256x288xbf16>, vector<288x128xbf16>, vector<256x128xf32> -> vector<256x128xf32>
    %c0_3 = arith.constant 0 : index
    %c0_4 = arith.constant 0 : index
    %3 = vector.load %arg3[%c0_3, %c0_4] : memref<1x128xf32, #tpu.memory_space<vmem>>, vector<1x128xf32>
    %4 = vector.broadcast %3 : vector<1x128xf32> to vector<256x128xf32>
    %5 = arith.addf %2, %4 : vector<256x128xf32>
    %c0_5 = arith.constant 0 : index
    %c0_6 = arith.constant 0 : index
    %6 = vector.load %arg4[%c0_5, %c0_6] : memref<256x128xf32, #tpu.memory_space<vmem>>, vector<256x128xf32>
    tpu.vector_store %arg4[%c0_5, %c0_6], %5 {strides = array<i32>} : memref<256x128xf32, #tpu.memory_space<vmem>>, vector<256x128xf32>,
    return
  }
  func.func @transform_0(%arg0: i32) -> (i32, i32) {
    %c0_i32 = arith.constant 0 : i32
    %c0_i32_0 = arith.constant 0 : i32
    return %arg0, %c0_i32 : i32, i32
  }
  func.func @transform_1(%arg0: i32) -> (i32, i32) {
    %c0_i32 = arith.constant 0 : i32
    %c0_i32_0 = arith.constant 0 : i32
    %c0_i32_1 = arith.constant 0 : i32
    return %c0_i32, %c0_i32_0 : i32, i32
  }
  func.func @transform_2(%arg0: i32) -> (i32, i32) {
    %c0_i32 = arith.constant 0 : i32
    %c0_i32_0 = arith.constant 0 : i32
    %c0_i32_1 = arith.constant 0 : i32
    return %c0_i32, %c0_i32_0 : i32, i32
  }
  func.func @transform_3(%arg0: i32) -> (i32, i32) {
    %c0_i32 = arith.constant 0 : i32
    %c0_i32_0 = arith.constant 0 : i32
    return %arg0, %c0_i32 : i32, i32
  }
}

</mosaic_0001>

<bundles_post_ra>
// kernel: unet_forward.17
= control target key start
LH: loop header
LB: loop body
LE: loop exit
PB: predicated region body
PF: predicated region fallthrough
CT: control target
= control target key end

     0   :  { %8 = vsyncpa [#allocation3], 0  ;;  %s511_s0 = inlined_call_operand.vmem [shape: bf16[128,27], index: 0, kind: input, shape index: {}]   ;;  %s512_s1 = inlined_call_operand.hbm [shape: bf16[27,128], index: 1, kind: input, shape index: {}]   ;;  %s513_s2 = inlined_call_operand.hbm [shape: f32[1,128], index: 2, kind: input, shape index: {}]   ;;  %s514_s3 = inlined_call_operand.vmem [shape: bf16[128,128], index: 3, kind: output, shape index: {}]  }
   0x1   :  { %s16_s14 = sshll.u32 %s512_s1, 4  ;;  %s17_s14 = int_to_ptr.hbm [resolvable:$true] %s16_s14 }
   0x2   :  { %9 = vsyncpa [#allocation5], 0  ;;  %s424_s15 = smov [#allocation2]   ;;  %s30_s19 = sshll.u32 %s513_s2, 4  ;;  %s31_s19 = int_to_ptr.hbm [resolvable:$true] %s30_s19 }
   0x3   :  { %s18_s16 = sshll.u32 %s424_s15, 4  ;;  %s425_s20 = smov 64   ;;  %s19_s16 = int_to_ptr.vmem [resolvable:$true] %s18_s16 }
   0x4   :  { %s426_s21 = smov 4   ;;  %s427_s22 = smov [#allocation4]  }
   0x5   :  { %24 = dma.hbm_to_vmem [thread:$0]  %s17_s14, 256, %s19_s16, [#allocation3], %s425_s20, %s425_s20, %s426_s21  }
   0x6   :  { %s32_s23 = sshll.u32 %s427_s22, 4  ;;  %s33_s23 = int_to_ptr.vmem [resolvable:$true] %s32_s23 }
   0x7   :  { %35 = dma.hbm_to_vmem [thread:$0]  %s31_s19, 16, %s33_s23, [#allocation5]  }
   0x8   :  { %420 = dma.done.wait [#allocation3], 256  }
   0x9   :  { %421 = vsyncadd [#allocation3], 4294967040 }
   0xa   :  { %422 = dma.done.wait [#allocation5], 16  }
   0xb   :  { %423 = vsyncadd [#allocation5], 4294967280  ;;  %vm145_vm0 = vcmask 1044480   ;;  %vm146_vm1 = vcmask 1045504   ;;  %v428_v0 = vmov 65535   ;;  %v311_v7 = vld [vmem:[#allocation2] sm:$0xff] }
   0xc   :  { %v147_v1 = vsel %vm145_vm0, 4294967295, %v428_v0  ;;  %v293_v2 = vld [vmem:[#allocation2 + $0x8] sm:$0xf]  ;;  %v312_v3 = vld [vmem:[#allocation2 + $0x8] sm:$0x30]  ;;  %v303_v8 = vld [vmem:[%s511_s0] sm:$0xff] }
   0xd   :  { %v148_v4 = vsel %vm146_vm1, %v147_v1, 0  ;;  %v294_v5 = vor.u32 %v312_v3, %v293_v2  ;;  %v305_v9 = vld [vmem:[%s511_s0 + $0x10] sm:$0xff]  ;;  %vm120_vm2 = vcmask 220160   ;;  %v307_v10 = vld [vmem:[%s511_s0 + $0x20] sm:$0xff]  ;;  %v304_v12 = vld [vmem:[%s511_s0 + $0x8] sm:$0xff] }
   0xe   :  { %v309_v11 = vld [vmem:[%s511_s0 + $0x30] sm:$0xff]  ;;  %v306_v13 = vld [vmem:[%s511_s0 + $0x18] sm:$0xff]  ;;  %v308_v14 = vld [vmem:[%s511_s0 + $0x28] sm:$0xff] }
   0xf   :  { %v150_v6 = vand.u32 %v294_v5, %v148_v4  ;;  %v310_v15 = vld [vmem:[%s511_s0 + $0x38] sm:$0xff]  ;;  %v371_v18 = vld [vmem:[#allocation4] ss:$0 sm:$0xff] }
  0x11   :  { %158 = vmatpush.bf16.msra.mxu0 %v150_v6  ;;  %360 = vmatpush.bf16.msra.mxu1 %v150_v6 }
  0x12   :  { %361 = vmatpush.bf16.msra.mxu2 %v150_v6  ;;  %362 = vmatpush.bf16.msra.mxu3 %v150_v6 }
  0x15   :  { %159 = vmatpush.bf16.msra.mxu0 %v311_v7  ;;  %363 = vmatpush.bf16.msra.mxu1 %v311_v7 }
  0x16   :  { %364 = vmatpush.bf16.msra.mxu2 %v311_v7  ;;  %365 = vmatpush.bf16.msra.mxu3 %v311_v7 }
  0x18   :  { %295 = vmatmul.msk.bf16.vlgmr.msra.gmra.mxu0 %vm120_vm2, %v303_v8  ;;  %297 = vmatmul.msk.bf16.vlgmr.msra.gmra.mxu1 %vm120_vm2, %v305_v9 }
  0x19   :  { %299 = vmatmul.msk.bf16.vlgmr.msra.gmra.mxu2 %vm120_vm2, %v307_v10  ;;  %301 = vmatmul.msk.bf16.vlgmr.msra.gmra.mxu3 %vm120_vm2, %v309_v11 }
  0x28   :  { %296 = vmatmul.msk.bf16.gmra.mxu0 %vm120_vm2, %v304_v12  ;;  %298 = vmatmul.msk.bf16.gmra.mxu1 %vm120_vm2, %v306_v13 }
  0x29   :  { %300 = vmatmul.msk.bf16.gmra.mxu2 %vm120_vm2, %v308_v14  ;;  %302 = vmatmul.msk.bf16.gmra.mxu3 %vm120_vm2, %v310_v15 }
  0x95   :  { %v161_v16 = vpop.f32.mrf.mxu0  ;;  %v171_v17 = vpop.f32.mrf.mxu1 }
  0x96   :  { %v162_v19 = vadd.f32 %v371_v18, %v161_v16  ;;  %v172_v20 = vadd.f32 %v371_v18, %v171_v17 }
  0x98   :  { %v201_v27 = vmax.f32 %v162_v19, 0.0  ;;  %v205_v28 = vmax.f32 %v172_v20, 0.0 }
  0x9c   :  { %v181_v21 = vpop.f32.mrf.mxu2  ;;  %v191_v22 = vpop.f32.mrf.mxu3 }
  0x9d   :  { %v163_v23 = vpop.f32.mrf.mxu0  ;;  %v173_v24 = vpop.f32.mrf.mxu1  ;;  %v182_v33 = vadd.f32 %v371_v18, %v181_v21  ;;  %v192_v34 = vadd.f32 %v371_v18, %v191_v22 }
  0x9e   :  { %v164_v25 = vadd.f32 %v371_v18, %v163_v23  ;;  %v174_v26 = vadd.f32 %v371_v18, %v173_v24 }
  0x9f   :  { %v209_v41 = vmax.f32 %v182_v33, 0.0  ;;  %v213_v42 = vmax.f32 %v192_v34, 0.0 }
  0xa0   :  { %v202_v29 = vmax.f32 %v164_v25, 0.0  ;;  %v206_v30 = vmax.f32 %v174_v26, 0.0 }
  0xa2   :  { %v316_v31 = vpack.c.bf16 %v202_v29, %v201_v27  ;;  %v326_v32 = vpack.c.bf16 %v206_v30, %v205_v28 }
  0xa4   :  { %317 = vst [vmem:[%s514_s3] sm:$0xff] %v316_v31   ;;  %v183_v35 = vpop.f32.mrf.mxu2  ;;  %v193_v36 = vpop.f32.mrf.mxu3 }
  0xa5   :  { %354 = vst [vmem:[%s514_s3 + $0x10] sm:$0xff] %v326_v32   ;;  %v184_v37 = vadd.f32 %v371_v18, %v183_v35  ;;  %v194_v38 = vadd.f32 %v371_v18, %v193_v36  ;;  %v166_v39 = vpop.f32.mrf.mxu0  ;;  %v176_v40 = vpop.f32.mrf.mxu1 }
  0xa6   :  { %v167_v47 = vadd.f32 %v371_v18, %v166_v39  ;;  %v177_v48 = vadd.f32 %v371_v18, %v176_v40 }
  0xa7   :  { %v210_v43 = vmax.f32 %v184_v37, 0.0  ;;  %v214_v44 = vmax.f32 %v194_v38, 0.0 }
  0xa8   :  { %v203_v55 = vmax.f32 %v167_v47, 0.0  ;;  %v207_v56 = vmax.f32 %v177_v48, 0.0 }
  0xa9   :  { %v336_v45 = vpack.c.bf16 %v210_v43, %v209_v41  ;;  %v346_v46 = vpack.c.bf16 %v214_v44, %v213_v42 }
  0xab   :  { %356 = vst [vmem:[%s514_s3 + $0x20] sm:$0xff] %v336_v45  }
  0xac   :  { %358 = vst [vmem:[%s514_s3 + $0x30] sm:$0xff] %v346_v46   ;;  %v186_v49 = vpop.f32.mrf.mxu2  ;;  %v196_v50 = vpop.f32.mrf.mxu3 }
  0xad   :  { %v168_v51 = vpop.f32.mrf.mxu0  ;;  %v178_v52 = vpop.f32.mrf.mxu1  ;;  %v187_v61 = vadd.f32 %v371_v18, %v186_v49  ;;  %v197_v62 = vadd.f32 %v371_v18, %v196_v50 }
  0xae   :  { %v169_v53 = vadd.f32 %v371_v18, %v168_v51  ;;  %v179_v54 = vadd.f32 %v371_v18, %v178_v52 }
  0xaf   :  { %v211_v3 = vmax.f32 %v187_v61, 0.0  ;;  %v215_v4 = vmax.f32 %v197_v62, 0.0 }
  0xb0   :  { %v204_v57 = vmax.f32 %v169_v53, 0.0  ;;  %v208_v58 = vmax.f32 %v179_v54, 0.0 }
  0xb2   :  { %v321_v59 = vpack.c.bf16 %v204_v57, %v203_v55  ;;  %v331_v60 = vpack.c.bf16 %v208_v58, %v207_v56 }
  0xb4   :  { %353 = vst [vmem:[%s514_s3 + $0x8] sm:$0xff] %v321_v59   ;;  %v188_v63 = vpop.f32.mrf.mxu2  ;;  %v198_v0 = vpop.f32.mrf.mxu3 }
  0xb5   :  { %355 = vst [vmem:[%s514_s3 + $0x18] sm:$0xff] %v331_v60   ;;  %v189_v1 = vadd.f32 %v371_v18, %v188_v63  ;;  %v199_v2 = vadd.f32 %v371_v18, %v198_v0 }
  0xb7   :  { %v212_v5 = vmax.f32 %v189_v1, 0.0  ;;  %v216_v6 = vmax.f32 %v199_v2, 0.0 }
  0xb9   :  { %v341_v7 = vpack.c.bf16 %v212_v5, %v211_v3  ;;  %v351_v8 = vpack.c.bf16 %v216_v6, %v215_v4 }
  0xbb   :  { %357 = vst [vmem:[%s514_s3 + $0x28] sm:$0xff] %v341_v7  }
  0xbc   :  { %359 = vst [vmem:[%s514_s3 + $0x38] sm:$0xff] %v351_v8  }
  0xbd   :  { %253 = vsyncpa [#allocation3], 1 }
  0xbe   :  { %254 = vsyncpa [#allocation5], 1 }

// kernel: unet_forward.18
= control target key start
LH: loop header
LB: loop body
LE: loop exit
PB: predicated region body
PF: predicated region fallthrough
CT: control target
= control target key end

     0   :  { %vm315_vm0 = vcmask 261120   ;;  %s1092_s1 = inlined_call_operand.vmem [shape: bf16[288,128], index: 1, kind: input, shape index: {}]   ;;  %s1093_s0 = inlined_call_operand.vmem [shape: bf16[128,288], index: 0, kind: input, shape index: {}]   ;;  %s1094_s2 = inlined_call_operand.vmem [shape: f32[1,128], index: 2, kind: input, shape index: {}]   ;;  %s1095_s3 = inlined_call_operand.vmem [shape: bf16[128,128], index: 3, kind: output, shape index: {}]  }
   0x1   :  { %v746_v0 = vld [vmem:[%s1092_s1 + $0x38] sm:$0xff]  ;;  %v756_v1 = vld [vmem:[%s1092_s1 + $0x88] sm:$0xff]  ;;  %v745_v3 = vld [vmem:[%s1092_s1 + $0x30] sm:$0xff] }
   0x2   :  { %v754_v2 = vld [vmem:[%s1092_s1 + $0x78] sm:$0xff]  ;;  %340 = vmatpush.bf16.msra.mxu0 %v746_v0  ;;  %804 = vmatpush.bf16.msra.mxu3 %v746_v0  ;;  %v755_v4 = vld [vmem:[%s1092_s1 + $0x80] sm:$0xff]  ;;  %v753_v5 = vld [vmem:[%s1092_s1 + $0x70] sm:$0xff] }
   0x3   :  { %444 = vmatpush.bf16.msra.mxu2 %v756_v1  ;;  %389 = vmatpush.bf16.msra.mxu1 %v754_v2  ;;  %v549_v6 = vld [vmem:[%s1093_s0 + $0x8] sm:$0xf]  ;;  %v717_v7 = vld [vmem:[%s1093_s0 + $0x10] sm:$0xf0]  ;;  %v743_v11 = vld [vmem:[%s1092_s1 + $0x20] sm:$0xff] }
   0x4   :  { %v550_v8 = vor.u32 %v717_v7, %v549_v6  ;;  %v744_v9 = vld [vmem:[%s1092_s1 + $0x28] sm:$0xff]  ;;  %v751_v12 = vld [vmem:[%s1092_s1 + $0x60] sm:$0xff]  ;;  %v742_v13 = vld [vmem:[%s1092_s1 + $0x18] sm:$0xff] }
   0x5   :  { %v752_v10 = vld [vmem:[%s1092_s1 + $0x68] sm:$0xff]  ;;  %v750_v14 = vld [vmem:[%s1092_s1 + $0x58] sm:$0xff]  ;;  %v741_v15 = vld [vmem:[%s1092_s1 + $0x10] sm:$0xff] }
   0x6   :  { %341 = vmatpush.bf16.msra.mxu0 %v745_v3  ;;  %805 = vmatpush.bf16.msra.mxu3 %v745_v3  ;;  %v749_v16 = vld [vmem:[%s1092_s1 + $0x50] sm:$0xff]  ;;  %v561_v17 = vld [vmem:[%s1093_s0 + $0x20] sm:$0xf]  ;;  %v720_v18 = vld [vmem:[%s1093_s0 + $0x28] sm:$0xf0] }
   0x7   :  { %445 = vmatpush.bf16.msra.mxu2 %v755_v4  ;;  %390 = vmatpush.bf16.msra.mxu1 %v753_v5  ;;  %v562_v19 = vor.u32 %v720_v18, %v561_v17  ;;  %v740_v20 = vld [vmem:[%s1092_s1 + $0x8] sm:$0xff]  ;;  %v739_v22 = vld [vmem:[%s1092_s1] sm:$0xff]  ;;  %v613_v26 = vld [vmem:[%s1093_s0 + $0x90] sm:$0xf] }
   0x8   :  { %v748_v21 = vld [vmem:[%s1092_s1 + $0x48] sm:$0xff]  ;;  %v747_v23 = vld [vmem:[%s1092_s1 + $0x40] sm:$0xff]  ;;  %v734_v27 = vld [vmem:[%s1093_s0 + $0x98] sm:$0xf0] }
   0x9   :  { %v541_v24 = vld [vmem:[%s1093_s0] sm:$0xf]  ;;  %v716_v25 = vld [vmem:[%s1093_s0 + $0x8] sm:$0xf0]  ;;  %v715_v28 = vld [vmem:[%s1093_s0 + $0x4] sm:$0xf]  ;;  %v614_v31 = vor.u32 %v734_v27, %v613_v26 }
   0xa   :  { %707 = vmatmul.msk.bf16.vlgmr.msra.gmra.mxu2 %vm315_vm0, %v550_v8  ;;  %342 = vmatpush.bf16.msra.mxu0 %v744_v9  ;;  %v543_v29 = vld [vmem:[%s1093_s0 + $0xc] sm:$0xf0]  ;;  %v542_v30 = vor.u32 %v716_v25, %v541_v24  ;;  %v573_v33 = vld [vmem:[%s1093_s0 + $0x38] sm:$0xf]  ;;  %v723_v34 = vld [vmem:[%s1093_s0 + $0x40] sm:$0xf0] }
   0xb   :  { %806 = vmatpush.bf16.msra.mxu3 %v744_v9  ;;  %391 = vmatpush.bf16.msra.mxu1 %v752_v10  ;;  %v546_v32 = vor.u32 %v715_v28, %v543_v29  ;;  %v574_v35 = vor.u32 %v723_v34, %v573_v33  ;;  %v553_v36 = vld [vmem:[%s1093_s0 + $0x18] sm:$0xf]  ;;  %v719_v37 = vld [vmem:[%s1093_s0 + $0x20] sm:$0xf0]  ;;  %v625_v38 = vld [vmem:[%s1093_s0 + $0xa8] sm:$0xf] }
   0xc   :  { %v737_v39 = vld [vmem:[%s1093_s0 + $0xb0] sm:$0xf0]  ;;  %v718_v40 = vld [vmem:[%s1093_s0 + $0x1c] sm:$0xf]  ;;  %v555_v41 = vld [vmem:[%s1093_s0 + $0x24] sm:$0xf0]  ;;  %v554_v42 = vor.u32 %v719_v37, %v553_v36 }
   0xd   :  { %v626_v43 = vor.u32 %v737_v39, %v625_v38  ;;  %v558_v44 = vor.u32 %v718_v40, %v555_v41  ;;  %v585_v45 = vld [vmem:[%s1093_s0 + $0x50] sm:$0xf]  ;;  %v726_v46 = vld [vmem:[%s1093_s0 + $0x58] sm:$0xf0]  ;;  %v733_v50 = vld [vmem:[%s1093_s0 + $0x94] sm:$0xf] }
   0xe   :  { %343 = vmatpush.bf16.msra.mxu0 %v743_v11  ;;  %v586_v47 = vor.u32 %v726_v46, %v585_v45  ;;  %v565_v48 = vld [vmem:[%s1093_s0 + $0x30] sm:$0xf]  ;;  %v722_v49 = vld [vmem:[%s1093_s0 + $0x38] sm:$0xf0]  ;;  %v615_v51 = vld [vmem:[%s1093_s0 + $0x9c] sm:$0xf0] }
   0xf   :  { %807 = vmatpush.bf16.msra.mxu3 %v743_v11  ;;  %392 = vmatpush.bf16.msra.mxu1 %v751_v12  ;;  %v721_v52 = vld [vmem:[%s1093_s0 + $0x34] sm:$0xf]  ;;  %v567_v53 = vld [vmem:[%s1093_s0 + $0x3c] sm:$0xf0]  ;;  %v566_v54 = vor.u32 %v722_v49, %v565_v48  ;;  %v618_v55 = vor.u32 %v733_v50, %v615_v51  ;;  %v597_v57 = vld [vmem:[%s1093_s0 + $0x68] sm:$0xf] }
  0x10   :  { %v570_v56 = vor.u32 %v721_v52, %v567_v53  ;;  %v729_v58 = vld [vmem:[%s1093_s0 + $0x70] sm:$0xf0]  ;;  %v577_v60 = vld [vmem:[%s1093_s0 + $0x48] sm:$0xf]  ;;  %v736_v62 = vld [vmem:[%s1093_s0 + $0xac] sm:$0xf] }
  0x11   :  { %v598_v59 = vor.u32 %v729_v58, %v597_v57  ;;  %v725_v61 = vld [vmem:[%s1093_s0 + $0x50] sm:$0xf0]  ;;  %v627_v63 = vld [vmem:[%s1093_s0 + $0xb4] sm:$0xf0]  ;;  %v724_v0 = vld [vmem:[%s1093_s0 + $0x4c] sm:$0xf] }
  0x12   :  { %344 = vmatpush.bf16.msra.mxu0 %v742_v13  ;;  %v579_v1 = vld [vmem:[%s1093_s0 + $0x54] sm:$0xf0]  ;;  %v630_v3 = vor.u32 %v736_v62, %v627_v63  ;;  %v732_v6 = vld [vmem:[%s1093_s0 + $0x88] sm:$0xf0]  ;;  %v589_v8 = vld [vmem:[%s1093_s0 + $0x60] sm:$0xf] }
  0x13   :  { %808 = vmatpush.bf16.msra.mxu3 %v742_v13  ;;  %393 = vmatpush.bf16.msra.mxu1 %v750_v14  ;;  %v582_v4 = vor.u32 %v724_v0, %v579_v1  ;;  %v728_v9 = vld [vmem:[%s1093_s0 + $0x68] sm:$0xf0]  ;;  %v591_v11 = vld [vmem:[%s1093_s0 + $0x6c] sm:$0xf0]  ;;  %v601_v17 = vld [vmem:[%s1093_s0 + $0x78] sm:$0xf] }
  0x14   :  { %v731_v18 = vld [vmem:[%s1093_s0 + $0x80] sm:$0xf0]  ;;  %v738_v24 = vld [vmem:[%s1093_s0 + $0xb8] sm:$0xf0]  ;;  %v1050_v29 = vld [vmem:[%s1094_s2] ss:$0 sm:$0xff] }
  0x16   :  { %345 = vmatpush.bf16.msra.mxu0 %v741_v15 }
  0x17   :  { %809 = vmatpush.bf16.msra.mxu3 %v741_v15  ;;  %394 = vmatpush.bf16.msra.mxu1 %v749_v16  ;;  %v735_v15 = vld [vmem:[%s1093_s0 + $0xa0] sm:$0xf0] }
  0x1a   :  { %708 = vmatmul.msk.bf16.gmra.mxu2 %vm315_vm0, %v562_v19  ;;  %346 = vmatpush.bf16.msra.mxu0 %v740_v20  ;;  %v730_v19 = vld [vmem:[%s1093_s0 + $0x7c] sm:$0xf] }
  0x1b   :  { %810 = vmatpush.bf16.msra.mxu3 %v740_v20  ;;  %395 = vmatpush.bf16.msra.mxu1 %v748_v21  ;;  %v603_v20 = vld [vmem:[%s1093_s0 + $0x84] sm:$0xf0] }
  0x1e   :  { %347 = vmatpush.bf16.msra.mxu0 %v739_v22 }
  0x1f   :  { %811 = vmatpush.bf16.msra.mxu3 %v739_v22  ;;  %396 = vmatpush.bf16.msra.mxu1 %v747_v23  ;;  %v606_v22 = vor.u32 %v730_v19, %v603_v20 }
  0x21   :  { %348 = vmatmul.bf16.vlgmr.msra.gmra.mxu0 %v542_v30 }
  0x22   :  { %378 = vmatmul.bf16.vlgmr.msra.gmra.mxu3 %v614_v31  ;;  %397 = vmatmul.bf16.vlgmr.msra.gmra.mxu1 %v546_v32 }
  0x23   :  { %812 = vmatpush.bf16.msrb.mxu3 %v754_v2  ;;  %v578_v2 = vor.u32 %v725_v61, %v577_v60 }
  0x27   :  { %813 = vmatpush.bf16.msrb.mxu3 %v753_v5  ;;  %v609_v5 = vld [vmem:[%s1093_s0 + $0x80] sm:$0xf] }
  0x28   :  { %v610_v7 = vor.u32 %v732_v6, %v609_v5 }
  0x2a   :  { %709 = vmatmul.msk.bf16.gmra.mxu2 %vm315_vm0, %v574_v35 }
  0x2b   :  { %814 = vmatpush.bf16.msrb.mxu3 %v752_v10  ;;  %v727_v10 = vld [vmem:[%s1093_s0 + $0x64] sm:$0xf] }
  0x2c   :  { %v594_v13 = vor.u32 %v727_v10, %v591_v11 }
  0x2f   :  { %815 = vmatpush.bf16.msrb.mxu3 %v751_v12  ;;  %v590_v12 = vor.u32 %v728_v9, %v589_v8 }
  0x31   :  { %353 = vmatmul.bf16.gmra.mxu0 %v554_v42 }
  0x32   :  { %383 = vmatmul.bf16.gmra.mxu3 %v626_v43  ;;  %402 = vmatmul.bf16.gmra.mxu1 %v558_v44 }
  0x33   :  { %816 = vmatpush.bf16.msrb.mxu3 %v750_v14  ;;  %v621_v14 = vld [vmem:[%s1093_s0 + $0x98] sm:$0xf] }
  0x37   :  { %817 = vmatpush.bf16.msrb.mxu3 %v749_v16  ;;  %v622_v16 = vor.u32 %v735_v15, %v621_v14 }
  0x3a   :  { %710 = vmatmul.msk.bf16.gmra.mxu2 %vm315_vm0, %v586_v47 }
  0x3b   :  { %818 = vmatpush.bf16.msrb.mxu3 %v748_v21  ;;  %v602_v21 = vor.u32 %v731_v18, %v601_v17 }
  0x3f   :  { %819 = vmatpush.bf16.msrb.mxu3 %v747_v23  ;;  %v633_v23 = vld [vmem:[%s1093_s0 + $0xb0] sm:$0xf] }
  0x40   :  { %v634_v25 = vor.u32 %v738_v24, %v633_v23 }
  0x41   :  { %358 = vmatmul.bf16.gmra.mxu0 %v566_v54 }
  0x42   :  { %427 = vmatmul.bf16.vlgmr.msrb.gmra.mxu3 %v618_v55  ;;  %407 = vmatmul.bf16.gmra.mxu1 %v570_v56 }
  0x4a   :  { %711 = vmatmul.msk.bf16.gmra.mxu2 %vm315_vm0, %v598_v59 }
  0x51   :  { %363 = vmatmul.bf16.gmra.mxu0 %v578_v2 }
  0x52   :  { %432 = vmatmul.bf16.gmra.mxu3 %v630_v3  ;;  %412 = vmatmul.bf16.gmra.mxu1 %v582_v4 }
  0x5a   :  { %712 = vmatmul.msk.bf16.gmra.mxu2 %vm315_vm0, %v610_v7 }
  0x61   :  { %368 = vmatmul.bf16.gmra.mxu0 %v590_v12 }
  0x62   :  { %417 = vmatmul.bf16.gmra.mxu1 %v594_v13 }
  0x6a   :  { %713 = vmatmul.msk.bf16.gmra.mxu2 %vm315_vm0, %v622_v16 }
  0x71   :  { %373 = vmatmul.bf16.gmra.mxu0 %v602_v21 }
  0x72   :  { %422 = vmatmul.bf16.gmra.mxu1 %v606_v22 }
  0x7a   :  { %714 = vmatmul.msk.bf16.gmra.mxu2 %vm315_vm0, %v634_v25 }
  0x8d   :  { %v447_v26 = vpop.f32.mrf.mxu2 }
  0x95   :  { %v449_v27 = vpop.f32.mrf.mxu2 }
  0x9d   :  { %v452_v28 = vpop.f32.mrf.mxu2 }
  0x9e   :  { %v349_v30 = vpop.f32.mrf.mxu0 }
  0x9f   :  { %v398_v31 = vpop.f32.mrf.mxu1  ;;  %v350_v32 = vadd.f32 %v1050_v29, %v349_v30 }
  0xa1   :  { %v399_v33 = vadd.f32 %v398_v31, %v350_v32 }
  0xa3   :  { %v448_v38 = vadd.f32 %v447_v26, %v399_v33 }
  0xa5   :  { %v454_v34 = vpop.f32.mrf.mxu2  ;;  %v487_v41 = vmax.f32 %v448_v38, 0.0  ;;  %v379_v55 = vpop.f32.mrf.mxu3 }
  0xa6   :  { %v351_v35 = vpop.f32.mrf.mxu0 }
  0xa7   :  { %v352_v36 = vadd.f32 %v1050_v29, %v351_v35  ;;  %v400_v37 = vpop.f32.mrf.mxu1 }
  0xa9   :  { %v401_v39 = vadd.f32 %v400_v37, %v352_v36 }
  0xab   :  { %v450_v40 = vadd.f32 %v449_v27, %v401_v39 }
  0xad   :  { %v488_v42 = vmax.f32 %v450_v40, 0.0  ;;  %v457_v43 = vpop.f32.mrf.mxu2  ;;  %v381_v0 = vpop.f32.mrf.mxu3 }
  0xae   :  { %v354_v44 = vpop.f32.mrf.mxu0 }
  0xaf   :  { %v760_v45 = vpack.c.bf16 %v488_v42, %v487_v41  ;;  %v403_v46 = vpop.f32.mrf.mxu1  ;;  %v355_v47 = vadd.f32 %v1050_v29, %v354_v44 }
  0xb1   :  { %761 = vst [vmem:[%s1095_s3] sm:$0xff] %v760_v45   ;;  %v404_v48 = vadd.f32 %v403_v46, %v355_v47  ;;  %v380_v47 = vadd.f32 %v1050_v29, %v379_v55 }
  0xb3   :  { %v453_v53 = vadd.f32 %v452_v28, %v404_v48 }
  0xb5   :  { %v459_v49 = vpop.f32.mrf.mxu2  ;;  %v489_v57 = vmax.f32 %v453_v53, 0.0  ;;  %v384_v13 = vpop.f32.mrf.mxu3 }
  0xb6   :  { %v356_v50 = vpop.f32.mrf.mxu0 }
  0xb7   :  { %v357_v51 = vadd.f32 %v1050_v29, %v356_v50  ;;  %v405_v52 = vpop.f32.mrf.mxu1 }
  0xb9   :  { %v406_v54 = vadd.f32 %v405_v52, %v357_v51  ;;  %v382_v51 = vadd.f32 %v1050_v29, %v381_v0 }
  0xbb   :  { %v455_v56 = vadd.f32 %v454_v34, %v406_v54 }
  0xbd   :  { %v490_v58 = vmax.f32 %v455_v56, 0.0  ;;  %v462_v59 = vpop.f32.mrf.mxu2  ;;  %v386_v22 = vpop.f32.mrf.mxu3 }
  0xbe   :  { %v359_v60 = vpop.f32.mrf.mxu0 }
  0xbf   :  { %v765_v61 = vpack.c.bf16 %v490_v58, %v489_v57  ;;  %v408_v62 = vpop.f32.mrf.mxu1  ;;  %v360_v63 = vadd.f32 %v1050_v29, %v359_v60 }
  0xc1   :  { %797 = vst [vmem:[%s1095_s3 + $0x8] sm:$0xff] %v765_v61   ;;  %v409_v1 = vadd.f32 %v408_v62, %v360_v63 }
  0xc3   :  { %v458_v6 = vadd.f32 %v457_v43, %v409_v1 }
  0xc5   :  { %v464_v2 = vpop.f32.mrf.mxu2  ;;  %v491_v9 = vmax.f32 %v458_v6, 0.0  ;;  %v428_v34 = vpop.f32.mrf.mxu3 }
  0xc6   :  { %v361_v3 = vpop.f32.mrf.mxu0  ;;  %v429_v53 = vadd.f32 %v428_v34, %v380_v47 }
  0xc7   :  { %v362_v4 = vadd.f32 %v1050_v29, %v361_v3  ;;  %v410_v5 = vpop.f32.mrf.mxu1 }
  0xc9   :  { %v411_v7 = vadd.f32 %v410_v5, %v362_v4 }
  0xcb   :  { %v460_v8 = vadd.f32 %v459_v49, %v411_v7 }
  0xcd   :  { %v492_v10 = vmax.f32 %v460_v8, 0.0  ;;  %v467_v11 = vpop.f32.mrf.mxu2  ;;  %v430_v43 = vpop.f32.mrf.mxu3  ;;  %v385_v8 = vadd.f32 %v1050_v29, %v384_v13 }
  0xce   :  { %v364_v12 = vpop.f32.mrf.mxu0  ;;  %v431_v54 = vadd.f32 %v430_v43, %v382_v51 }
  0xcf   :  { %v770_v14 = vpack.c.bf16 %v492_v10, %v491_v9  ;;  %v413_v15 = vpop.f32.mrf.mxu1  ;;  %v365_v16 = vadd.f32 %v1050_v29, %v364_v12  ;;  %v387_v10 = vadd.f32 %v1050_v29, %v386_v22 }
  0xd1   :  { %798 = vst [vmem:[%s1095_s3 + $0x10] sm:$0xff] %v770_v14   ;;  %v414_v17 = vadd.f32 %v413_v15, %v365_v16 }
  0xd3   :  { %v463_v23 = vadd.f32 %v462_v59, %v414_v17 }
  0xd5   :  { %v469_v18 = vpop.f32.mrf.mxu2  ;;  %v493_v26 = vmax.f32 %v463_v23, 0.0  ;;  %v433_v61 = vpop.f32.mrf.mxu3 }
  0xd6   :  { %v366_v19 = vpop.f32.mrf.mxu0  ;;  %v434_v12 = vadd.f32 %v433_v61, %v385_v8 }
  0xd7   :  { %v367_v20 = vadd.f32 %v1050_v29, %v366_v19  ;;  %v415_v21 = vpop.f32.mrf.mxu1 }
  0xd9   :  { %v416_v24 = vadd.f32 %v415_v21, %v367_v20 }
  0xdb   :  { %v465_v25 = vadd.f32 %v464_v2, %v416_v24 }
  0xdd   :  { %v494_v27 = vmax.f32 %v465_v25, 0.0  ;;  %v472_v28 = vpop.f32.mrf.mxu2 }
  0xde   :  { %v369_v30 = vpop.f32.mrf.mxu0 }
  0xdf   :  { %v775_v31 = vpack.c.bf16 %v494_v27, %v493_v26  ;;  %v418_v32 = vpop.f32.mrf.mxu1  ;;  %v370_v33 = vadd.f32 %v1050_v29, %v369_v30 }
  0xe1   :  { %799 = vst [vmem:[%s1095_s3 + $0x18] sm:$0xff] %v775_v31   ;;  %v419_v35 = vadd.f32 %v418_v32, %v370_v33 }
  0xe3   :  { %v468_v40 = vadd.f32 %v467_v11, %v419_v35  ;;  %v435_v11 = vpop.f32.mrf.mxu3 }
  0xe4   :  { %v436_v14 = vadd.f32 %v435_v11, %v387_v10 }
  0xe5   :  { %v474_v36 = vpop.f32.mrf.mxu2  ;;  %v495_v44 = vmax.f32 %v468_v40, 0.0 }
  0xe6   :  { %v371_v37 = vpop.f32.mrf.mxu0 }
  0xe7   :  { %v372_v38 = vadd.f32 %v1050_v29, %v371_v37  ;;  %v420_v39 = vpop.f32.mrf.mxu1 }
  0xe9   :  { %v421_v41 = vadd.f32 %v420_v39, %v372_v38 }
  0xeb   :  { %v470_v42 = vadd.f32 %v469_v18, %v421_v41 }
  0xed   :  { %v496_v45 = vmax.f32 %v470_v42, 0.0  ;;  %v477_v46 = vpop.f32.mrf.mxu2 }
  0xee   :  { %v374_v48 = vpop.f32.mrf.mxu0  ;;  %v478_v56 = vadd.f32 %v477_v46, %v429_v53 }
  0xef   :  { %v780_v49 = vpack.c.bf16 %v496_v45, %v495_v44  ;;  %v423_v50 = vpop.f32.mrf.mxu1  ;;  %v375_v52 = vadd.f32 %v1050_v29, %v374_v48 }
  0xf0   :  { %v499_v63 = vmax.f32 %v478_v56, 0.0 }
  0xf1   :  { %800 = vst [vmem:[%s1095_s3 + $0x20] sm:$0xff] %v780_v49   ;;  %v424_v57 = vadd.f32 %v423_v50, %v375_v52 }
  0xf3   :  { %v473_v0 = vadd.f32 %v472_v28, %v424_v57 }
  0xf5   :  { %v479_v58 = vpop.f32.mrf.mxu2  ;;  %v497_v5 = vmax.f32 %v473_v0, 0.0 }
  0xf6   :  { %v480_v59 = vadd.f32 %v479_v58, %v431_v54  ;;  %v376_v60 = vpop.f32.mrf.mxu0 }
  0xf7   :  { %v377_v55 = vadd.f32 %v1050_v29, %v376_v60  ;;  %v425_v62 = vpop.f32.mrf.mxu1 }
  0xf8   :  { %v500_v1 = vmax.f32 %v480_v59, 0.0 }
  0xf9   :  { %v426_v2 = vadd.f32 %v425_v62, %v377_v55 }
  0xfa   :  { %v790_v3 = vpack.c.bf16 %v500_v1, %v499_v63 }
  0xfb   :  { %v475_v4 = vadd.f32 %v474_v36, %v426_v2 }
  0xfc   :  { %802 = vst [vmem:[%s1095_s3 + $0x30] sm:$0xff] %v790_v3  }
  0xfd   :  { %v498_v6 = vmax.f32 %v475_v4, 0.0  ;;  %v482_v7 = vpop.f32.mrf.mxu2 }
  0xfe   :  { %v483_v15 = vadd.f32 %v482_v7, %v434_v12 }
  0xff   :  { %v785_v9 = vpack.c.bf16 %v498_v6, %v497_v5 }
 0x100   :  { %v501_v18 = vmax.f32 %v483_v15, 0.0 }
 0x101   :  { %801 = vst [vmem:[%s1095_s3 + $0x28] sm:$0xff] %v785_v9  }
 0x105   :  { %v484_v16 = vpop.f32.mrf.mxu2 }
 0x106   :  { %v485_v17 = vadd.f32 %v484_v16, %v436_v14 }
 0x108   :  { %v502_v19 = vmax.f32 %v485_v17, 0.0 }
 0x10a   :  { %v795_v20 = vpack.c.bf16 %v502_v19, %v501_v18 }
 0x10c   :  { %803 = vst [vmem:[%s1095_s3 + $0x38] sm:$0xff] %v795_v20  }

// kernel: unet_forward.19
= control target key start
LH: loop header
LB: loop body
LE: loop exit
PB: predicated region body
PF: predicated region fallthrough
CT: control target
= control target key end

     0   :  { %8 = vsyncpa [#allocation3], 0  ;;  %s469_s15 = smov [#allocation2]   ;;  %s470_s17 = smov 64   ;;  %s542_s0 = inlined_call_operand.vmem [shape: bf16[32,288], index: 0, kind: input, shape index: {}]   ;;  %s543_s1 = inlined_call_operand.hbm [shape: bf16[288,128], index: 1, kind: input, shape index: {}]   ;;  %s544_s2 = inlined_call_operand.vmem [shape: f32[1,128], index: 2, kind: input, shape index: {}]   ;;  %s545_s3 = inlined_call_operand.vmem [shape: bf16[32,128], index: 3, kind: output, shape index: {}]  }
   0x1   :  { %s15_s14 = sshll.u32 %s543_s1, 4  ;;  %s17_s16 = sshll.u32 %s469_s15, 4  ;;  %s16_s14 = int_to_ptr.hbm [resolvable:$true] %s15_s14  ;;  %s18_s16 = int_to_ptr.vmem [resolvable:$true] %s17_s16 }
   0x2   :  { %s471_s18 = smov 4  }
   0x3   :  { %23 = dma.hbm_to_vmem [thread:$0]  %s16_s14, 2304, %s18_s16, [#allocation3], %s470_s17, %s470_s17, %s471_s18  }
   0x4   :  { %467 = dma.done.wait [#allocation3], 2304  }
   0x5   :  { %468 = vsyncadd [#allocation3], 4294964992  ;;  %v409_v0 = vld [vmem:[#allocation2 + $0x38] sm:$0xff]  ;;  %v408_v2 = vld [vmem:[#allocation2 + $0x30] sm:$0xff]  ;;  %vm217_vm0 = vcmask 261120  }
   0x6   :  { %v417_v1 = vld [vmem:[#allocation2 + $0x78] sm:$0xff]  ;;  %224 = vmatpush.bf16.msra.mxu0 %v409_v0  ;;  %431 = vmatpush.bf16.msra.mxu3 %v409_v0  ;;  %v419_v3 = vld [vmem:[#allocation2 + $0x88] sm:$0xff]  ;;  %v416_v4 = vld [vmem:[#allocation2 + $0x70] sm:$0xff] }
   0x7   :  { %243 = vmatpush.bf16.msra.mxu1 %v417_v1  ;;  %268 = vmatpush.bf16.msra.mxu2 %v419_v3  ;;  %v418_v5 = vld [vmem:[#allocation2 + $0x80] sm:$0xff]  ;;  %v308_v6 = vld [vmem:[%s542_s0 + $0x8] sm:$0xf]  ;;  %v398_v7 = vld [vmem:[%s542_s0 + $0x10] sm:$0xf0] }
   0x8   :  { %v407_v8 = vld [vmem:[#allocation2 + $0x28] sm:$0xff]  ;;  %v309_v10 = vor.u32 %v398_v7, %v308_v6  ;;  %v406_v11 = vld [vmem:[#allocation2 + $0x20] sm:$0xff]  ;;  %v405_v13 = vld [vmem:[#allocation2 + $0x18] sm:$0xff] }
   0x9   :  { %v415_v9 = vld [vmem:[#allocation2 + $0x68] sm:$0xff]  ;;  %v414_v12 = vld [vmem:[#allocation2 + $0x60] sm:$0xff]  ;;  %v413_v14 = vld [vmem:[#allocation2 + $0x58] sm:$0xff] }
   0xa   :  { %225 = vmatpush.bf16.msra.mxu0 %v408_v2  ;;  %432 = vmatpush.bf16.msra.mxu3 %v408_v2  ;;  %v404_v15 = vld [vmem:[#allocation2 + $0x10] sm:$0xff]  ;;  %v320_v17 = vld [vmem:[%s542_s0 + $0x20] sm:$0xf]  ;;  %v401_v18 = vld [vmem:[%s542_s0 + $0x28] sm:$0xf0] }
   0xb   :  { %244 = vmatpush.bf16.msra.mxu1 %v416_v4  ;;  %269 = vmatpush.bf16.msra.mxu2 %v418_v5  ;;  %v412_v16 = vld [vmem:[#allocation2 + $0x50] sm:$0xff]  ;;  %v403_v19 = vld [vmem:[#allocation2 + $0x8] sm:$0xff]  ;;  %v321_v21 = vor.u32 %v401_v18, %v320_v17  ;;  %v402_v22 = vld [vmem:[#allocation2] sm:$0xff] }
   0xc   :  { %v411_v20 = vld [vmem:[#allocation2 + $0x48] sm:$0xff]  ;;  %v300_v23 = vld [vmem:[%s542_s0] sm:$0xf]  ;;  %v312_v25 = vld [vmem:[%s542_s0 + $0x18] sm:$0xf] }
   0xd   :  { %v397_v24 = vld [vmem:[%s542_s0 + $0x8] sm:$0xf0]  ;;  %v400_v26 = vld [vmem:[%s542_s0 + $0x20] sm:$0xf0]  ;;  %v302_v29 = vld [vmem:[%s542_s0 + $0xc] sm:$0xf0] }
   0xe   :  { %226 = vmatpush.bf16.msra.mxu0 %v407_v8  ;;  %433 = vmatpush.bf16.msra.mxu3 %v407_v8  ;;  %v410_v27 = vld [vmem:[#allocation2 + $0x40] sm:$0xff]  ;;  %v301_v30 = vor.u32 %v397_v24, %v300_v23  ;;  %v313_v31 = vor.u32 %v400_v26, %v312_v25  ;;  %v399_v33 = vld [vmem:[%s542_s0 + $0x1c] sm:$0xf]  ;;  %v314_v34 = vld [vmem:[%s542_s0 + $0x24] sm:$0xf0] }
   0xf   :  { %245 = vmatpush.bf16.msra.mxu1 %v415_v9  ;;  %394 = vmatmul.msk.bf16.vlgmr.msra.gmra.mxu2 %vm217_vm0, %v309_v10  ;;  %v396_v28 = vld [vmem:[%s542_s0 + $0x4] sm:$0xf]  ;;  %v317_v35 = vor.u32 %v399_v33, %v314_v34  ;;  %v442_v37 = vld [vmem:[%s544_s2] ss:$0 sm:$0xff] }
  0x10   :  { %v305_v32 = vor.u32 %v396_v28, %v302_v29 }
  0x12   :  { %227 = vmatpush.bf16.msra.mxu0 %v406_v11  ;;  %434 = vmatpush.bf16.msra.mxu3 %v406_v11 }
  0x13   :  { %246 = vmatpush.bf16.msra.mxu1 %v414_v12 }
  0x16   :  { %228 = vmatpush.bf16.msra.mxu0 %v405_v13  ;;  %435 = vmatpush.bf16.msra.mxu3 %v405_v13 }
  0x17   :  { %247 = vmatpush.bf16.msra.mxu1 %v413_v14 }
  0x1a   :  { %229 = vmatpush.bf16.msra.mxu0 %v404_v15  ;;  %436 = vmatpush.bf16.msra.mxu3 %v404_v15 }
  0x1b   :  { %248 = vmatpush.bf16.msra.mxu1 %v412_v16 }
  0x1e   :  { %230 = vmatpush.bf16.msra.mxu0 %v403_v19  ;;  %437 = vmatpush.bf16.msra.mxu3 %v403_v19 }
  0x1f   :  { %249 = vmatpush.bf16.msra.mxu1 %v411_v20  ;;  %395 = vmatmul.msk.bf16.gmra.mxu2 %vm217_vm0, %v321_v21 }
  0x22   :  { %231 = vmatpush.bf16.msra.mxu0 %v402_v22  ;;  %438 = vmatpush.bf16.msra.mxu3 %v402_v22 }
  0x23   :  { %250 = vmatpush.bf16.msra.mxu1 %v410_v27 }
  0x25   :  { %232 = vmatmul.bf16.vlgmr.msra.gmra.mxu0 %v301_v30  ;;  %237 = vmatmul.bf16.vlgmr.msra.gmra.mxu3 %v313_v31 }
  0x26   :  { %251 = vmatmul.bf16.vlgmr.msra.gmra.mxu1 %v305_v32 }
  0x36   :  { %256 = vmatmul.bf16.gmra.mxu1 %v317_v35 }
  0x92   :  { %v271_v36 = vpop.f32.mrf.mxu2 }
  0x9a   :  { %v273_v42 = vpop.f32.mrf.mxu2 }
  0xa2   :  { %v233_v38 = vpop.f32.mrf.mxu0  ;;  %v276_v53 = vpop.f32.mrf.mxu2 }
  0xa3   :  { %v252_v39 = vpop.f32.mrf.mxu1  ;;  %v234_v40 = vadd.f32 %v442_v37, %v233_v38 }
  0xa5   :  { %v253_v41 = vadd.f32 %v252_v39, %v234_v40 }
  0xa7   :  { %v272_v46 = vadd.f32 %v271_v36, %v253_v41 }
  0xa8   :  { %v238_v47 = vpop.f32.mrf.mxu3 }
  0xa9   :  { %v281_v50 = vmax.f32 %v272_v46, 0.0  ;;  %v239_v55 = vadd.f32 %v442_v37, %v238_v47 }
  0xaa   :  { %v235_v43 = vpop.f32.mrf.mxu0  ;;  %v278_v62 = vpop.f32.mrf.mxu2 }
  0xab   :  { %v236_v44 = vadd.f32 %v442_v37, %v235_v43  ;;  %v254_v45 = vpop.f32.mrf.mxu1 }
  0xad   :  { %v255_v48 = vadd.f32 %v254_v45, %v236_v44 }
  0xaf   :  { %v274_v49 = vadd.f32 %v273_v42, %v255_v48 }
  0xb0   :  { %v240_v56 = vpop.f32.mrf.mxu3 }
  0xb1   :  { %v282_v51 = vmax.f32 %v274_v49, 0.0  ;;  %v241_v58 = vadd.f32 %v442_v37, %v240_v56 }
  0xb3   :  { %v423_v52 = vpack.c.bf16 %v282_v51, %v281_v50  ;;  %v257_v54 = vpop.f32.mrf.mxu1 }
  0xb4   :  { %v258_v57 = vadd.f32 %v257_v54, %v239_v55 }
  0xb5   :  { %424 = vst [vmem:[%s545_s3] sm:$0xff] %v423_v52  }
  0xb6   :  { %v277_v60 = vadd.f32 %v276_v53, %v258_v57 }
  0xb8   :  { %v283_v0 = vmax.f32 %v277_v60, 0.0 }
  0xbb   :  { %v259_v59 = vpop.f32.mrf.mxu1 }
  0xbc   :  { %v260_v61 = vadd.f32 %v259_v59, %v241_v58 }
  0xbe   :  { %v279_v63 = vadd.f32 %v278_v62, %v260_v61 }
  0xc0   :  { %v284_v1 = vmax.f32 %v279_v63, 0.0 }
  0xc2   :  { %v428_v2 = vpack.c.bf16 %v284_v1, %v283_v0 }
  0xc4   :  { %430 = vst [vmem:[%s545_s3 + $0x8] sm:$0xff] %v428_v2  }
  0xc5   :  { %297 = vsyncpa [#allocation3], 1 }

// kernel: unet_forward.20
= control target key start
LH: loop header
LB: loop body
LE: loop exit
PB: predicated region body
PF: predicated region fallthrough
CT: control target
= control target key end

     0   :  { %vm369_vm0 = vcmask 523264   ;;  %s932_s1 = inlined_call_operand.vmem [shape: bf16[576,128], index: 1, kind: input, shape index: {}]   ;;  %s933_s2 = inlined_call_operand.vmem [shape: f32[1,128], index: 2, kind: input, shape index: {}]   ;;  %s934_s0 = inlined_call_operand.vmem [shape: bf16[32,576], index: 0, kind: input, shape index: {}]   ;;  %s935_s3 = inlined_call_operand.vmem [shape: bf16[32,128], index: 3, kind: output, shape index: {}]  }
   0x1   :  { %v690_v0 = vld [vmem:[%s932_s1 + $0x38] sm:$0xff]  ;;  %v689_v4 = vld [vmem:[%s932_s1 + $0x30] sm:$0xff]  ;;  %v688_v8 = vld [vmem:[%s932_s1 + $0x28] sm:$0xff] }
   0x2   :  { %v698_v1 = vld [vmem:[%s932_s1 + $0x78] sm:$0xff]  ;;  %376 = vmatpush.bf16.msra.mxu0 %v690_v0  ;;  %v697_v5 = vld [vmem:[%s932_s1 + $0x70] sm:$0xff]  ;;  %v696_v9 = vld [vmem:[%s932_s1 + $0x68] sm:$0xff] }
   0x3   :  { %v706_v2 = vld [vmem:[%s932_s1 + $0xb8] sm:$0xff]  ;;  %395 = vmatpush.bf16.msra.mxu1 %v698_v1  ;;  %v705_v6 = vld [vmem:[%s932_s1 + $0xb0] sm:$0xff]  ;;  %v704_v10 = vld [vmem:[%s932_s1 + $0xa8] sm:$0xff] }
   0x4   :  { %v714_v3 = vld [vmem:[%s932_s1 + $0xf8] sm:$0xff]  ;;  %414 = vmatpush.bf16.msra.mxu2 %v706_v2  ;;  %v713_v7 = vld [vmem:[%s932_s1 + $0xf0] sm:$0xff]  ;;  %v712_v11 = vld [vmem:[%s932_s1 + $0xe8] sm:$0xff] }
   0x5   :  { %433 = vmatpush.bf16.msra.mxu3 %v714_v3  ;;  %v687_v12 = vld [vmem:[%s932_s1 + $0x20] sm:$0xff]  ;;  %v686_v16 = vld [vmem:[%s932_s1 + $0x18] sm:$0xff]  ;;  %v685_v20 = vld [vmem:[%s932_s1 + $0x10] sm:$0xff] }
   0x6   :  { %377 = vmatpush.bf16.msra.mxu0 %v689_v4  ;;  %v695_v13 = vld [vmem:[%s932_s1 + $0x60] sm:$0xff]  ;;  %v694_v17 = vld [vmem:[%s932_s1 + $0x58] sm:$0xff]  ;;  %v693_v21 = vld [vmem:[%s932_s1 + $0x50] sm:$0xff] }
   0x7   :  { %396 = vmatpush.bf16.msra.mxu1 %v697_v5  ;;  %v703_v14 = vld [vmem:[%s932_s1 + $0xa0] sm:$0xff]  ;;  %v702_v18 = vld [vmem:[%s932_s1 + $0x98] sm:$0xff]  ;;  %v701_v22 = vld [vmem:[%s932_s1 + $0x90] sm:$0xff] }
   0x8   :  { %415 = vmatpush.bf16.msra.mxu2 %v705_v6  ;;  %v711_v15 = vld [vmem:[%s932_s1 + $0xe0] sm:$0xff]  ;;  %v710_v19 = vld [vmem:[%s932_s1 + $0xd8] sm:$0xff]  ;;  %v709_v23 = vld [vmem:[%s932_s1 + $0xd0] sm:$0xff] }
   0x9   :  { %434 = vmatpush.bf16.msra.mxu3 %v713_v7  ;;  %v684_v24 = vld [vmem:[%s932_s1 + $0x8] sm:$0xff]  ;;  %v683_v28 = vld [vmem:[%s932_s1] sm:$0xff]  ;;  %v675_v33 = vld [vmem:[%s934_s0 + $0x10] sm:$0xf0] }
   0xa   :  { %378 = vmatpush.bf16.msra.mxu0 %v688_v8  ;;  %v692_v25 = vld [vmem:[%s932_s1 + $0x48] sm:$0xff]  ;;  %v691_v29 = vld [vmem:[%s932_s1 + $0x40] sm:$0xff]  ;;  %v491_v35 = vld [vmem:[%s934_s0 + $0x14] sm:$0xf0] }
   0xb   :  { %397 = vmatpush.bf16.msra.mxu1 %v696_v9  ;;  %v700_v26 = vld [vmem:[%s932_s1 + $0x88] sm:$0xff]  ;;  %v699_v30 = vld [vmem:[%s932_s1 + $0x80] sm:$0xff]  ;;  %v676_v37 = vld [vmem:[%s934_s0 + $0x18] sm:$0xf0] }
   0xc   :  { %416 = vmatpush.bf16.msra.mxu2 %v704_v10  ;;  %v708_v27 = vld [vmem:[%s932_s1 + $0xc8] sm:$0xff]  ;;  %v707_v31 = vld [vmem:[%s932_s1 + $0xc0] sm:$0xff]  ;;  %v718_v40 = vld [vmem:[%s932_s1 + $0x118] sm:$0xff] }
   0xd   :  { %435 = vmatpush.bf16.msra.mxu3 %v712_v11  ;;  %v489_v32 = vld [vmem:[%s934_s0] sm:$0xf]  ;;  %v673_v34 = vld [vmem:[%s934_s0 + $0x4] sm:$0xf]  ;;  %v497_v36 = vld [vmem:[%s934_s0 + $0x8] sm:$0xf] }
   0xe   :  { %379 = vmatpush.bf16.msra.mxu0 %v687_v12  ;;  %v674_v38 = vld [vmem:[%s934_s0 + $0xc] sm:$0xf]  ;;  %v499_v39 = vld [vmem:[%s934_s0 + $0x1c] sm:$0xf0]  ;;  %v490_v41 = vor.u32 %v675_v33, %v489_v32  ;;  %v494_v42 = vor.u32 %v673_v34, %v491_v35  ;;  %v498_v43 = vor.u32 %v676_v37, %v497_v36  ;;  %v717_v45 = vld [vmem:[%s932_s1 + $0x110] sm:$0xff] }
   0xf   :  { %398 = vmatpush.bf16.msra.mxu1 %v695_v13  ;;  %v502_v44 = vor.u32 %v674_v38, %v499_v39  ;;  %v716_v46 = vld [vmem:[%s932_s1 + $0x108] sm:$0xff]  ;;  %v715_v47 = vld [vmem:[%s932_s1 + $0x100] sm:$0xff]  ;;  %v680_v49 = vld [vmem:[%s934_s0 + $0x38] sm:$0xf0] }
  0x10   :  { %417 = vmatpush.bf16.msra.mxu2 %v703_v14  ;;  %v509_v48 = vld [vmem:[%s934_s0 + $0x28] sm:$0xf]  ;;  %v678_v50 = vld [vmem:[%s934_s0 + $0x2c] sm:$0xf]  ;;  %v511_v51 = vld [vmem:[%s934_s0 + $0x3c] sm:$0xf0] }
  0x11   :  { %436 = vmatpush.bf16.msra.mxu3 %v711_v15  ;;  %v517_v52 = vld [vmem:[%s934_s0 + $0x30] sm:$0xf]  ;;  %v681_v53 = vld [vmem:[%s934_s0 + $0x40] sm:$0xf0]  ;;  %v679_v54 = vld [vmem:[%s934_s0 + $0x34] sm:$0xf]  ;;  %v510_v56 = vor.u32 %v680_v49, %v509_v48  ;;  %v514_v57 = vor.u32 %v678_v50, %v511_v51 }
  0x12   :  { %380 = vmatpush.bf16.msra.mxu0 %v686_v16  ;;  %v519_v55 = vld [vmem:[%s934_s0 + $0x44] sm:$0xf0]  ;;  %v518_v58 = vor.u32 %v681_v53, %v517_v52  ;;  %v505_v60 = vld [vmem:[%s934_s0 + $0x10] sm:$0xf]  ;;  %v677_v61 = vld [vmem:[%s934_s0 + $0x20] sm:$0xf0] }
  0x13   :  { %399 = vmatpush.bf16.msra.mxu1 %v694_v17  ;;  %v522_v59 = vor.u32 %v679_v54, %v519_v55  ;;  %v525_v62 = vld [vmem:[%s934_s0 + $0x38] sm:$0xf]  ;;  %v682_v63 = vld [vmem:[%s934_s0 + $0x48] sm:$0xf0]  ;;  %v506_v0 = vor.u32 %v677_v61, %v505_v60  ;;  %v734_v12 = vld [vmem:[%s933_s2] ss:$0 sm:$0xff] }
  0x14   :  { %418 = vmatpush.bf16.msra.mxu2 %v702_v18  ;;  %v526_v1 = vor.u32 %v682_v63, %v525_v62 }
  0x15   :  { %437 = vmatpush.bf16.msra.mxu3 %v710_v19 }
  0x16   :  { %381 = vmatpush.bf16.msra.mxu0 %v685_v20 }
  0x17   :  { %400 = vmatpush.bf16.msra.mxu1 %v693_v21 }
  0x18   :  { %419 = vmatpush.bf16.msra.mxu2 %v701_v22 }
  0x19   :  { %438 = vmatpush.bf16.msra.mxu3 %v709_v23 }
  0x1a   :  { %382 = vmatpush.bf16.msra.mxu0 %v684_v24 }
  0x1b   :  { %401 = vmatpush.bf16.msra.mxu1 %v692_v25 }
  0x1c   :  { %420 = vmatpush.bf16.msra.mxu2 %v700_v26 }
  0x1d   :  { %439 = vmatpush.bf16.msra.mxu3 %v708_v27 }
  0x1e   :  { %383 = vmatpush.bf16.msra.mxu0 %v683_v28 }
  0x1f   :  { %402 = vmatpush.bf16.msra.mxu1 %v691_v29 }
  0x20   :  { %421 = vmatpush.bf16.msra.mxu2 %v699_v30 }
  0x21   :  { %440 = vmatpush.bf16.msra.mxu3 %v707_v31  ;;  %384 = vmatmul.bf16.vlgmr.msra.gmra.mxu0 %v490_v41 }
  0x22   :  { %456 = vmatpush.bf16.msrb.mxu0 %v718_v40  ;;  %403 = vmatmul.bf16.vlgmr.msra.gmra.mxu1 %v494_v42 }
  0x23   :  { %730 = vmatpush.bf16.msrb.mxu1 %v718_v40  ;;  %422 = vmatmul.bf16.vlgmr.msra.gmra.mxu2 %v498_v43 }
  0x24   :  { %441 = vmatmul.bf16.vlgmr.msra.gmra.mxu3 %v502_v44 }
  0x26   :  { %457 = vmatpush.bf16.msrb.mxu0 %v717_v45 }
  0x27   :  { %731 = vmatpush.bf16.msrb.mxu1 %v717_v45 }
  0x2a   :  { %458 = vmatpush.bf16.msrb.mxu0 %v716_v46 }
  0x2b   :  { %732 = vmatpush.bf16.msrb.mxu1 %v716_v46 }
  0x2e   :  { %459 = vmatpush.bf16.msrb.mxu0 %v715_v47 }
  0x2f   :  { %733 = vmatpush.bf16.msrb.mxu1 %v715_v47 }
  0x31   :  { %389 = vmatmul.bf16.gmra.mxu0 %v510_v56 }
  0x32   :  { %408 = vmatmul.bf16.gmra.mxu1 %v514_v57 }
  0x33   :  { %427 = vmatmul.bf16.gmra.mxu2 %v518_v58 }
  0x34   :  { %446 = vmatmul.bf16.gmra.mxu3 %v522_v59 }
  0x41   :  { %671 = vmatmul.msk.bf16.vlgmr.msrb.gmra.mxu0 %vm369_vm0, %v506_v0 }
  0x42   :  { %672 = vmatmul.msk.bf16.vlgmr.msrb.gmra.mxu1 %vm369_vm0, %v526_v1 }
  0x9e   :  { %v385_v2 = vpop.f32.mrf.mxu0 }
  0x9f   :  { %v404_v3 = vpop.f32.mrf.mxu1  ;;  %v386_v16 = vadd.f32 %v734_v12, %v385_v2 }
  0xa1   :  { %v405_v21 = vadd.f32 %v404_v3, %v386_v16 }
  0xa6   :  { %v423_v4 = vpop.f32.mrf.mxu2  ;;  %v387_v6 = vpop.f32.mrf.mxu0 }
  0xa7   :  { %v442_v5 = vpop.f32.mrf.mxu3  ;;  %v406_v7 = vpop.f32.mrf.mxu1  ;;  %v388_v19 = vadd.f32 %v734_v12, %v387_v6  ;;  %v424_v26 = vadd.f32 %v423_v4, %v405_v21 }
  0xa9   :  { %v407_v27 = vadd.f32 %v406_v7, %v388_v19  ;;  %v443_v32 = vadd.f32 %v442_v5, %v424_v26 }
  0xae   :  { %v425_v8 = vpop.f32.mrf.mxu2  ;;  %v390_v9 = vpop.f32.mrf.mxu0 }
  0xaf   :  { %v409_v10 = vpop.f32.mrf.mxu1  ;;  %v444_v11 = vpop.f32.mrf.mxu3  ;;  %v391_v17 = vadd.f32 %v734_v12, %v390_v9  ;;  %v426_v30 = vadd.f32 %v425_v8, %v407_v27 }
  0xb1   :  { %v410_v22 = vadd.f32 %v409_v10, %v391_v17  ;;  %v445_v35 = vadd.f32 %v444_v11, %v426_v30 }
  0xb6   :  { %v428_v13 = vpop.f32.mrf.mxu2  ;;  %v392_v14 = vpop.f32.mrf.mxu0 }
  0xb7   :  { %v411_v15 = vpop.f32.mrf.mxu1  ;;  %v447_v18 = vpop.f32.mrf.mxu3  ;;  %v393_v20 = vadd.f32 %v734_v12, %v392_v14  ;;  %v429_v28 = vadd.f32 %v428_v13, %v410_v22 }
  0xb9   :  { %v412_v29 = vadd.f32 %v411_v15, %v393_v20  ;;  %v448_v33 = vadd.f32 %v447_v18, %v429_v28 }
  0xbe   :  { %v430_v23 = vpop.f32.mrf.mxu2  ;;  %v461_v24 = vpop.f32.mrf.mxu0 }
  0xbf   :  { %v466_v25 = vpop.f32.mrf.mxu1  ;;  %v431_v31 = vadd.f32 %v430_v23, %v412_v29  ;;  %v449_v34 = vpop.f32.mrf.mxu3  ;;  %v462_v37 = vadd.f32 %v461_v24, %v443_v32 }
  0xc0   :  { %v467_v38 = vadd.f32 %v466_v25, %v448_v33 }
  0xc1   :  { %v450_v36 = vadd.f32 %v449_v34, %v431_v31  ;;  %v471_v43 = vmax.f32 %v462_v37, 0.0 }
  0xc2   :  { %v473_v44 = vmax.f32 %v467_v38, 0.0 }
  0xc6   :  { %v463_v39 = vpop.f32.mrf.mxu0 }
  0xc7   :  { %v468_v40 = vpop.f32.mrf.mxu1  ;;  %v464_v41 = vadd.f32 %v463_v39, %v445_v35 }
  0xc8   :  { %v469_v42 = vadd.f32 %v468_v40, %v450_v36 }
  0xc9   :  { %v472_v45 = vmax.f32 %v464_v41, 0.0 }
  0xca   :  { %v474_v46 = vmax.f32 %v469_v42, 0.0 }
  0xcb   :  { %v722_v47 = vpack.c.bf16 %v472_v45, %v471_v43 }
  0xcc   :  { %v727_v48 = vpack.c.bf16 %v474_v46, %v473_v44 }
  0xcd   :  { %723 = vst [vmem:[%s935_s3] sm:$0xff] %v722_v47  }
  0xce   :  { %729 = vst [vmem:[%s935_s3 + $0x8] sm:$0xff] %v727_v48  }

// kernel: unet_forward.21
= control target key start
LH: loop header
LB: loop body
LE: loop exit
PB: predicated region body
PF: predicated region fallthrough
CT: control target
= control target key end

     0   :  { %8 = vsyncpa [#allocation3], 0  ;;  %s631_s15 = smov [#allocation2]   ;;  %s632_s17 = smov 64   ;;  %s672_s0 = inlined_call_operand.vmem [shape: bf16[8,576], index: 0, kind: input, shape index: {}]   ;;  %s673_s1 = inlined_call_operand.hbm [shape: bf16[576,128], index: 1, kind: input, shape index: {}]   ;;  %s674_s2 = inlined_call_operand.vmem [shape: f32[1,128], index: 2, kind: input, shape index: {}]   ;;  %s675_s3 = inlined_call_operand.vmem [shape: bf16[8,128], index: 3, kind: output, shape index: {}]  }
   0x1   :  { %s15_s14 = sshll.u32 %s673_s1, 4  ;;  %s17_s16 = sshll.u32 %s631_s15, 4  ;;  %s16_s14 = int_to_ptr.hbm [resolvable:$true] %s15_s14  ;;  %s18_s16 = int_to_ptr.vmem [resolvable:$true] %s17_s16 }
   0x2   :  { %s633_s18 = smov 4  }
   0x3   :  { %23 = dma.hbm_to_vmem [thread:$0]  %s16_s14, 4608, %s18_s16, [#allocation3], %s632_s17, %s632_s17, %s633_s18  }
   0x4   :  { %629 = dma.done.wait [#allocation3], 4608  }
   0x5   :  { %630 = vsyncadd [#allocation3], 4294962688  ;;  %v572_v0 = vld [vmem:[#allocation2 + $0x38] sm:$0xff]  ;;  %v571_v4 = vld [vmem:[#allocation2 + $0x30] sm:$0xff]  ;;  %vm343_vm0 = vcmask 523264  }
   0x6   :  { %v588_v1 = vld [vmem:[#allocation2 + $0xb8] sm:$0xff]  ;;  %347 = vmatpush.bf16.msra.mxu0 %v572_v0  ;;  %v587_v5 = vld [vmem:[#allocation2 + $0xb0] sm:$0xff]  ;;  %v570_v8 = vld [vmem:[#allocation2 + $0x28] sm:$0xff] }
   0x7   :  { %v596_v2 = vld [vmem:[#allocation2 + $0xf8] sm:$0xff]  ;;  %373 = vmatpush.bf16.msra.mxu2 %v588_v1  ;;  %v595_v6 = vld [vmem:[#allocation2 + $0xf0] sm:$0xff]  ;;  %v586_v9 = vld [vmem:[#allocation2 + $0xa8] sm:$0xff] }
   0x8   :  { %v580_v3 = vld [vmem:[#allocation2 + $0x78] sm:$0xff]  ;;  %386 = vmatpush.bf16.msra.mxu3 %v596_v2  ;;  %v579_v7 = vld [vmem:[#allocation2 + $0x70] sm:$0xff]  ;;  %v594_v10 = vld [vmem:[#allocation2 + $0xe8] sm:$0xff] }
   0x9   :  { %360 = vmatpush.bf16.msra.mxu1 %v580_v3  ;;  %v578_v11 = vld [vmem:[#allocation2 + $0x68] sm:$0xff]  ;;  %v569_v12 = vld [vmem:[#allocation2 + $0x20] sm:$0xff]  ;;  %v568_v16 = vld [vmem:[#allocation2 + $0x18] sm:$0xff] }
   0xa   :  { %348 = vmatpush.bf16.msra.mxu0 %v571_v4  ;;  %v585_v13 = vld [vmem:[#allocation2 + $0xa0] sm:$0xff]  ;;  %v584_v17 = vld [vmem:[#allocation2 + $0x98] sm:$0xff]  ;;  %v567_v20 = vld [vmem:[#allocation2 + $0x10] sm:$0xff] }
   0xb   :  { %374 = vmatpush.bf16.msra.mxu2 %v587_v5  ;;  %v593_v14 = vld [vmem:[#allocation2 + $0xe0] sm:$0xff]  ;;  %v592_v18 = vld [vmem:[#allocation2 + $0xd8] sm:$0xff]  ;;  %v583_v21 = vld [vmem:[#allocation2 + $0x90] sm:$0xff] }
   0xc   :  { %387 = vmatpush.bf16.msra.mxu3 %v595_v6  ;;  %v577_v15 = vld [vmem:[#allocation2 + $0x60] sm:$0xff]  ;;  %v576_v19 = vld [vmem:[#allocation2 + $0x58] sm:$0xff]  ;;  %v591_v22 = vld [vmem:[#allocation2 + $0xd0] sm:$0xff] }
   0xd   :  { %361 = vmatpush.bf16.msra.mxu1 %v579_v7  ;;  %v575_v23 = vld [vmem:[#allocation2 + $0x50] sm:$0xff]  ;;  %v566_v24 = vld [vmem:[#allocation2 + $0x8] sm:$0xff]  ;;  %v31_v26 = vld [vmem:[%s672_s0] sm:$0xff] }
   0xe   :  { %349 = vmatpush.bf16.msra.mxu0 %v570_v8  ;;  %v582_v25 = vld [vmem:[#allocation2 + $0x88] sm:$0xff]  ;;  %v113_v30 = vunpack.c.l.b16 %v31_v26  ;;  %v565_v32 = vld [vmem:[#allocation2] sm:$0xff]  ;;  %v114_v35 = vunpack.c.h.b16 %v31_v26  ;;  %v600_v38 = vld [vmem:[#allocation2 + $0x118] sm:$0xff] }
   0xf   :  { %375 = vmatpush.bf16.msra.mxu2 %v586_v9  ;;  %v32_v27 = vld [vmem:[%s672_s0 + $0x8] sm:$0xff]  ;;  %v581_v33 = vld [vmem:[#allocation2 + $0x80] sm:$0xff]  ;;  %v599_v43 = vld [vmem:[#allocation2 + $0x110] sm:$0xff] }
  0x10   :  { %388 = vmatpush.bf16.msra.mxu3 %v594_v10  ;;  %v590_v28 = vld [vmem:[#allocation2 + $0xc8] sm:$0xff]  ;;  %v115_v31 = vunpack.c.l.b16 %v32_v27  ;;  %v116_v34 = vunpack.c.h.b16 %v32_v27  ;;  %v589_v36 = vld [vmem:[#allocation2 + $0xc0] sm:$0xff]  ;;  %v118_v39 = vpack.c.b16 %v113_v30, %v113_v30  ;;  %v119_v42 = vpack.c.b16 %v114_v35, %v114_v35  ;;  %v33_v45 = vld [vmem:[%s672_s0 + $0x10] sm:$0xf] }
  0x11   :  { %362 = vmatpush.bf16.msra.mxu1 %v578_v11  ;;  %v574_v29 = vld [vmem:[#allocation2 + $0x48] sm:$0xff]  ;;  %v573_v37 = vld [vmem:[#allocation2 + $0x40] sm:$0xff]  ;;  %v117_v47 = vunpack.c.l.b16 %v33_v45 }
  0x12   :  { %350 = vmatpush.bf16.msra.mxu0 %v569_v12  ;;  %v120_v40 = vpack.c.b16 %v115_v31, %v115_v31  ;;  %v121_v41 = vpack.c.b16 %v116_v34, %v116_v34  ;;  %v598_v44 = vld [vmem:[#allocation2 + $0x108] sm:$0xff]  ;;  %v597_v46 = vld [vmem:[#allocation2 + $0x100] sm:$0xff] }
  0x13   :  { %376 = vmatpush.bf16.msra.mxu2 %v585_v13  ;;  %v122_v48 = vpack.c.b16 %v117_v47, %v117_v47  ;;  %v604_v50 = vld [vmem:[%s674_s2] ss:$0 sm:$0xff] }
  0x14   :  { %389 = vmatpush.bf16.msra.mxu3 %v593_v14 }
  0x15   :  { %363 = vmatpush.bf16.msra.mxu1 %v577_v15 }
  0x16   :  { %351 = vmatpush.bf16.msra.mxu0 %v568_v16 }
  0x17   :  { %377 = vmatpush.bf16.msra.mxu2 %v584_v17 }
  0x18   :  { %390 = vmatpush.bf16.msra.mxu3 %v592_v18 }
  0x19   :  { %364 = vmatpush.bf16.msra.mxu1 %v576_v19 }
  0x1a   :  { %352 = vmatpush.bf16.msra.mxu0 %v567_v20 }
  0x1b   :  { %378 = vmatpush.bf16.msra.mxu2 %v583_v21 }
  0x1c   :  { %391 = vmatpush.bf16.msra.mxu3 %v591_v22 }
  0x1d   :  { %365 = vmatpush.bf16.msra.mxu1 %v575_v23 }
  0x1e   :  { %353 = vmatpush.bf16.msra.mxu0 %v566_v24 }
  0x1f   :  { %379 = vmatpush.bf16.msra.mxu2 %v582_v25 }
  0x20   :  { %392 = vmatpush.bf16.msra.mxu3 %v590_v28 }
  0x21   :  { %366 = vmatpush.bf16.msra.mxu1 %v574_v29 }
  0x22   :  { %354 = vmatpush.bf16.msra.mxu0 %v565_v32 }
  0x23   :  { %380 = vmatpush.bf16.msra.mxu2 %v581_v33 }
  0x24   :  { %393 = vmatpush.bf16.msra.mxu3 %v589_v36 }
  0x25   :  { %367 = vmatpush.bf16.msra.mxu1 %v573_v37  ;;  %355 = vmatmul.bf16.vlgmr.msra.gmra.mxu0 %v118_v39 }
  0x26   :  { %403 = vmatpush.bf16.msrb.mxu0 %v600_v38  ;;  %381 = vmatmul.bf16.vlgmr.msra.gmra.mxu2 %v120_v40 }
  0x27   :  { %394 = vmatmul.bf16.vlgmr.msra.gmra.mxu3 %v121_v41 }
  0x28   :  { %368 = vmatmul.bf16.vlgmr.msra.gmra.mxu1 %v119_v42 }
  0x2a   :  { %404 = vmatpush.bf16.msrb.mxu0 %v599_v43 }
  0x2e   :  { %405 = vmatpush.bf16.msrb.mxu0 %v598_v44 }
  0x32   :  { %406 = vmatpush.bf16.msrb.mxu0 %v597_v46 }
  0x35   :  { %564 = vmatmul.msk.bf16.vlgmr.msrb.gmra.mxu0 %vm343_vm0, %v122_v48 }
  0xa2   :  { %v356_v49 = vpop.f32.mrf.mxu0 }
  0xa3   :  { %v357_v52 = vadd.f32 %v604_v50, %v356_v49 }
  0xa5   :  { %v369_v51 = vpop.f32.mrf.mxu1 }
  0xa6   :  { %v370_v56 = vadd.f32 %v369_v51, %v357_v52 }
  0xa9   :  { %v382_v53 = vpop.f32.mrf.mxu2 }
  0xaa   :  { %v395_v54 = vpop.f32.mrf.mxu3  ;;  %v358_v55 = vpop.f32.mrf.mxu0  ;;  %v383_v58 = vadd.f32 %v382_v53, %v370_v56 }
  0xac   :  { %v396_v60 = vadd.f32 %v395_v54, %v383_v58 }
  0xad   :  { %v371_v57 = vpop.f32.mrf.mxu1 }
  0xb1   :  { %v384_v59 = vpop.f32.mrf.mxu2 }
  0xb2   :  { %v397_v61 = vpop.f32.mrf.mxu3  ;;  %v408_v62 = vpop.f32.mrf.mxu0 }
  0xb3   :  { %v409_v63 = vadd.f32 %v408_v62, %v396_v60 }
  0xb5   :  { %v412_v0 = vmax.f32 %v409_v63, 0.0 }
  0xb7   :  { %v413_v1 = vpack.c.bf16 %v412_v0, %v412_v0 }
  0xb9   :  { %414 = vst [vmem:[%s675_s3] sm:$0xf] %v413_v1 }
  0xba   :  { %v410_v2 = vpop.f32.mrf.mxu0 }
  0xbb   :  { %419 = vsyncpa [#allocation3], 1 }

// kernel: unet_forward.22
= control target key start
LH: loop header
LB: loop body
LE: loop exit
PB: predicated region body
PF: predicated region fallthrough
CT: control target
= control target key end

     0   :  { %s1373_s1 = inlined_call_operand.vmem [shape: bf16[1152,128], index: 1, kind: input, shape index: {}]   ;;  %s1374_s2 = inlined_call_operand.vmem [shape: f32[1,128], index: 2, kind: input, shape index: {}]   ;;  %s1375_s0 = inlined_call_operand.vmem [shape: bf16[8,1152], index: 0, kind: input, shape index: {}]   ;;  %s1376_s3 = inlined_call_operand.vmem [shape: bf16[8,128], index: 3, kind: output, shape index: {}]  }
   0x1   :  { %v1050_v0 = vld [vmem:[%s1373_s1 + $0x38] sm:$0xff]  ;;  %v1049_v4 = vld [vmem:[%s1373_s1 + $0x30] sm:$0xff]  ;;  %v1048_v8 = vld [vmem:[%s1373_s1 + $0x28] sm:$0xff] }
   0x2   :  { %v1066_v1 = vld [vmem:[%s1373_s1 + $0xb8] sm:$0xff]  ;;  %631 = vmatpush.bf16.msra.mxu0 %v1050_v0  ;;  %v1065_v5 = vld [vmem:[%s1373_s1 + $0xb0] sm:$0xff]  ;;  %v1064_v9 = vld [vmem:[%s1373_s1 + $0xa8] sm:$0xff] }
   0x3   :  { %v1074_v2 = vld [vmem:[%s1373_s1 + $0xf8] sm:$0xff]  ;;  %657 = vmatpush.bf16.msra.mxu2 %v1066_v1  ;;  %v1073_v6 = vld [vmem:[%s1373_s1 + $0xf0] sm:$0xff]  ;;  %v1072_v10 = vld [vmem:[%s1373_s1 + $0xe8] sm:$0xff] }
   0x4   :  { %v1058_v3 = vld [vmem:[%s1373_s1 + $0x78] sm:$0xff]  ;;  %670 = vmatpush.bf16.msra.mxu3 %v1074_v2  ;;  %v1057_v7 = vld [vmem:[%s1373_s1 + $0x70] sm:$0xff]  ;;  %v1056_v11 = vld [vmem:[%s1373_s1 + $0x68] sm:$0xff] }
   0x5   :  { %644 = vmatpush.bf16.msra.mxu1 %v1058_v3  ;;  %v1047_v12 = vld [vmem:[%s1373_s1 + $0x20] sm:$0xff]  ;;  %v1046_v16 = vld [vmem:[%s1373_s1 + $0x18] sm:$0xff]  ;;  %v1045_v20 = vld [vmem:[%s1373_s1 + $0x10] sm:$0xff] }
   0x6   :  { %632 = vmatpush.bf16.msra.mxu0 %v1049_v4  ;;  %v1063_v13 = vld [vmem:[%s1373_s1 + $0xa0] sm:$0xff]  ;;  %v1062_v17 = vld [vmem:[%s1373_s1 + $0x98] sm:$0xff]  ;;  %v1061_v21 = vld [vmem:[%s1373_s1 + $0x90] sm:$0xff] }
   0x7   :  { %658 = vmatpush.bf16.msra.mxu2 %v1065_v5  ;;  %v1071_v14 = vld [vmem:[%s1373_s1 + $0xe0] sm:$0xff]  ;;  %v1070_v18 = vld [vmem:[%s1373_s1 + $0xd8] sm:$0xff]  ;;  %v1069_v22 = vld [vmem:[%s1373_s1 + $0xd0] sm:$0xff] }
   0x8   :  { %671 = vmatpush.bf16.msra.mxu3 %v1073_v6  ;;  %v1055_v15 = vld [vmem:[%s1373_s1 + $0x60] sm:$0xff]  ;;  %v1054_v19 = vld [vmem:[%s1373_s1 + $0x58] sm:$0xff]  ;;  %v1053_v23 = vld [vmem:[%s1373_s1 + $0x50] sm:$0xff] }
   0x9   :  { %645 = vmatpush.bf16.msra.mxu1 %v1057_v7  ;;  %v1044_v24 = vld [vmem:[%s1373_s1 + $0x8] sm:$0xff]  ;;  %v14_v29 = vld [vmem:[%s1375_s0] sm:$0xff]  ;;  %v1082_v34 = vld [vmem:[%s1373_s1 + $0x138] sm:$0xff] }
   0xa   :  { %633 = vmatpush.bf16.msra.mxu0 %v1048_v8  ;;  %v1060_v25 = vld [vmem:[%s1373_s1 + $0x88] sm:$0xff]  ;;  %v1043_v30 = vld [vmem:[%s1373_s1] sm:$0xff]  ;;  %v172_v33 = vunpack.c.l.b16 %v14_v29  ;;  %v1098_v35 = vld [vmem:[%s1373_s1 + $0x1b8] sm:$0xff]  ;;  %v173_v39 = vunpack.c.h.b16 %v14_v29 }
   0xb   :  { %659 = vmatpush.bf16.msra.mxu2 %v1064_v9  ;;  %v1068_v26 = vld [vmem:[%s1373_s1 + $0xc8] sm:$0xff]  ;;  %v1059_v31 = vld [vmem:[%s1373_s1 + $0x80] sm:$0xff]  ;;  %v1106_v40 = vld [vmem:[%s1373_s1 + $0x1f8] sm:$0xff] }
   0xc   :  { %672 = vmatpush.bf16.msra.mxu3 %v1072_v10  ;;  %v1052_v27 = vld [vmem:[%s1373_s1 + $0x48] sm:$0xff]  ;;  %v1067_v36 = vld [vmem:[%s1373_s1 + $0xc0] sm:$0xff]  ;;  %v1090_v41 = vld [vmem:[%s1373_s1 + $0x178] sm:$0xff]  ;;  %v181_v43 = vpack.c.b16 %v172_v33, %v172_v33  ;;  %v182_v47 = vpack.c.b16 %v173_v39, %v173_v39 }
   0xd   :  { %646 = vmatpush.bf16.msra.mxu1 %v1056_v11  ;;  %v15_v28 = vld [vmem:[%s1375_s0 + $0x8] sm:$0xff]  ;;  %v1051_v37 = vld [vmem:[%s1373_s1 + $0x40] sm:$0xff]  ;;  %v1081_v44 = vld [vmem:[%s1373_s1 + $0x130] sm:$0xff] }
   0xe   :  { %634 = vmatpush.bf16.msra.mxu0 %v1047_v12  ;;  %v174_v32 = vunpack.c.l.b16 %v15_v28  ;;  %v175_v38 = vunpack.c.h.b16 %v15_v28  ;;  %v1097_v45 = vld [vmem:[%s1373_s1 + $0x1b0] sm:$0xff]  ;;  %v1080_v50 = vld [vmem:[%s1373_s1 + $0x128] sm:$0xff]  ;;  %v1079_v54 = vld [vmem:[%s1373_s1 + $0x120] sm:$0xff] }
   0xf   :  { %660 = vmatpush.bf16.msra.mxu2 %v1063_v13  ;;  %v1105_v48 = vld [vmem:[%s1373_s1 + $0x1f0] sm:$0xff]  ;;  %v1096_v51 = vld [vmem:[%s1373_s1 + $0x1a8] sm:$0xff]  ;;  %v1095_v55 = vld [vmem:[%s1373_s1 + $0x1a0] sm:$0xff] }
  0x10   :  { %673 = vmatpush.bf16.msra.mxu3 %v1071_v14  ;;  %v183_v42 = vpack.c.b16 %v174_v32, %v174_v32  ;;  %v184_v46 = vpack.c.b16 %v175_v38, %v175_v38  ;;  %v1089_v49 = vld [vmem:[%s1373_s1 + $0x170] sm:$0xff]  ;;  %v1104_v52 = vld [vmem:[%s1373_s1 + $0x1e8] sm:$0xff]  ;;  %v1103_v56 = vld [vmem:[%s1373_s1 + $0x1e0] sm:$0xff] }
  0x11   :  { %647 = vmatpush.bf16.msra.mxu1 %v1055_v15  ;;  %v1088_v53 = vld [vmem:[%s1373_s1 + $0x168] sm:$0xff]  ;;  %v1087_v57 = vld [vmem:[%s1373_s1 + $0x160] sm:$0xff]  ;;  %v1078_v58 = vld [vmem:[%s1373_s1 + $0x118] sm:$0xff] }
  0x12   :  { %635 = vmatpush.bf16.msra.mxu0 %v1046_v16  ;;  %v1094_v59 = vld [vmem:[%s1373_s1 + $0x198] sm:$0xff]  ;;  %v1077_v62 = vld [vmem:[%s1373_s1 + $0x110] sm:$0xff]  ;;  %v1076_v2 = vld [vmem:[%s1373_s1 + $0x108] sm:$0xff] }
  0x13   :  { %661 = vmatpush.bf16.msra.mxu2 %v1062_v17  ;;  %v1102_v60 = vld [vmem:[%s1373_s1 + $0x1d8] sm:$0xff]  ;;  %v1093_v63 = vld [vmem:[%s1373_s1 + $0x190] sm:$0xff]  ;;  %v1092_v3 = vld [vmem:[%s1373_s1 + $0x188] sm:$0xff] }
  0x14   :  { %674 = vmatpush.bf16.msra.mxu3 %v1070_v18  ;;  %v1086_v61 = vld [vmem:[%s1373_s1 + $0x158] sm:$0xff]  ;;  %v1101_v0 = vld [vmem:[%s1373_s1 + $0x1d0] sm:$0xff]  ;;  %v1100_v6 = vld [vmem:[%s1373_s1 + $0x1c8] sm:$0xff] }
  0x15   :  { %648 = vmatpush.bf16.msra.mxu1 %v1054_v19  ;;  %v1085_v1 = vld [vmem:[%s1373_s1 + $0x150] sm:$0xff]  ;;  %v17_v4 = vld [vmem:[%s1375_s0 + $0x18] sm:$0xff]  ;;  %v1084_v7 = vld [vmem:[%s1373_s1 + $0x148] sm:$0xff] }
  0x16   :  { %636 = vmatpush.bf16.msra.mxu0 %v1045_v20  ;;  %v16_v5 = vld [vmem:[%s1375_s0 + $0x10] sm:$0xff]  ;;  %v178_v8 = vunpack.c.l.b16 %v17_v4  ;;  %v1075_v10 = vld [vmem:[%s1373_s1 + $0x100] sm:$0xff]  ;;  %v1114_v12 = vld [vmem:[%s1373_s1 + $0x238] sm:$0xff]  ;;  %v179_v13 = vunpack.c.h.b16 %v17_v4 }
  0x17   :  { %662 = vmatpush.bf16.msra.mxu2 %v1061_v21  ;;  %v176_v9 = vunpack.c.l.b16 %v16_v5  ;;  %v1091_v11 = vld [vmem:[%s1373_s1 + $0x180] sm:$0xff]  ;;  %v177_v16 = vunpack.c.h.b16 %v16_v5  ;;  %v1113_v19 = vld [vmem:[%s1373_s1 + $0x230] sm:$0xff] }
  0x18   :  { %675 = vmatpush.bf16.msra.mxu3 %v1069_v22  ;;  %v1099_v14 = vld [vmem:[%s1373_s1 + $0x1c0] sm:$0xff]  ;;  %v187_v17 = vpack.c.b16 %v178_v8, %v178_v8  ;;  %v188_v20 = vpack.c.b16 %v179_v13, %v179_v13  ;;  %v1112_v22 = vld [vmem:[%s1373_s1 + $0x228] sm:$0xff] }
  0x19   :  { %649 = vmatpush.bf16.msra.mxu1 %v1053_v23  ;;  %v1083_v15 = vld [vmem:[%s1373_s1 + $0x140] sm:$0xff]  ;;  %v185_v18 = vpack.c.b16 %v176_v9, %v176_v9  ;;  %v186_v21 = vpack.c.b16 %v177_v16, %v177_v16 }
  0x1a   :  { %637 = vmatpush.bf16.msra.mxu0 %v1044_v24  ;;  %v1111_v23 = vld [vmem:[%s1373_s1 + $0x220] sm:$0xff]  ;;  %v1110_v24 = vld [vmem:[%s1373_s1 + $0x218] sm:$0xff] }
  0x1b   :  { %663 = vmatpush.bf16.msra.mxu2 %v1060_v25  ;;  %v1109_v25 = vld [vmem:[%s1373_s1 + $0x210] sm:$0xff]  ;;  %v1107_v29 = vld [vmem:[%s1373_s1 + $0x200] sm:$0xff] }
  0x1c   :  { %676 = vmatpush.bf16.msra.mxu3 %v1068_v26  ;;  %v1108_v26 = vld [vmem:[%s1373_s1 + $0x208] sm:$0xff]  ;;  %v1115_v39 = vld [vmem:[%s1374_s2] ss:$0 sm:$0xff] }
  0x1d   :  { %650 = vmatpush.bf16.msra.mxu1 %v1052_v27  ;;  %v18_v27 = vld [vmem:[%s1375_s0 + $0x20] sm:$0xf] }
  0x1e   :  { %638 = vmatpush.bf16.msra.mxu0 %v1043_v30  ;;  %v180_v28 = vunpack.c.l.b16 %v18_v27 }
  0x1f   :  { %664 = vmatpush.bf16.msra.mxu2 %v1059_v31 }
  0x20   :  { %677 = vmatpush.bf16.msra.mxu3 %v1067_v36  ;;  %v189_v30 = vpack.c.b16 %v180_v28, %v180_v28 }
  0x21   :  { %651 = vmatpush.bf16.msra.mxu1 %v1051_v37  ;;  %639 = vmatmul.bf16.vlgmr.msra.gmra.mxu0 %v181_v43 }
  0x22   :  { %683 = vmatpush.bf16.msrb.mxu0 %v1082_v34  ;;  %665 = vmatmul.bf16.vlgmr.msra.gmra.mxu2 %v183_v42 }
  0x23   :  { %709 = vmatpush.bf16.msrb.mxu2 %v1098_v35  ;;  %678 = vmatmul.bf16.vlgmr.msra.gmra.mxu3 %v184_v46 }
  0x24   :  { %722 = vmatpush.bf16.msrb.mxu3 %v1106_v40  ;;  %652 = vmatmul.bf16.vlgmr.msra.gmra.mxu1 %v182_v47 }
  0x25   :  { %696 = vmatpush.bf16.msrb.mxu1 %v1090_v41 }
  0x26   :  { %684 = vmatpush.bf16.msrb.mxu0 %v1081_v44 }
  0x27   :  { %710 = vmatpush.bf16.msrb.mxu2 %v1097_v45 }
  0x28   :  { %723 = vmatpush.bf16.msrb.mxu3 %v1105_v48 }
  0x29   :  { %697 = vmatpush.bf16.msrb.mxu1 %v1089_v49 }
  0x2a   :  { %685 = vmatpush.bf16.msrb.mxu0 %v1080_v50 }
  0x2b   :  { %711 = vmatpush.bf16.msrb.mxu2 %v1096_v51 }
  0x2c   :  { %724 = vmatpush.bf16.msrb.mxu3 %v1104_v52 }
  0x2d   :  { %698 = vmatpush.bf16.msrb.mxu1 %v1088_v53 }
  0x2e   :  { %686 = vmatpush.bf16.msrb.mxu0 %v1079_v54 }
  0x2f   :  { %712 = vmatpush.bf16.msrb.mxu2 %v1095_v55 }
  0x30   :  { %725 = vmatpush.bf16.msrb.mxu3 %v1103_v56 }
  0x31   :  { %699 = vmatpush.bf16.msrb.mxu1 %v1087_v57 }
  0x32   :  { %687 = vmatpush.bf16.msrb.mxu0 %v1078_v58 }
  0x33   :  { %713 = vmatpush.bf16.msrb.mxu2 %v1094_v59 }
  0x34   :  { %726 = vmatpush.bf16.msrb.mxu3 %v1102_v60 }
  0x35   :  { %700 = vmatpush.bf16.msrb.mxu1 %v1086_v61 }
  0x36   :  { %688 = vmatpush.bf16.msrb.mxu0 %v1077_v62 }
  0x37   :  { %714 = vmatpush.bf16.msrb.mxu2 %v1093_v63 }
  0x38   :  { %727 = vmatpush.bf16.msrb.mxu3 %v1101_v0 }
  0x39   :  { %701 = vmatpush.bf16.msrb.mxu1 %v1085_v1 }
  0x3a   :  { %689 = vmatpush.bf16.msrb.mxu0 %v1076_v2 }
  0x3b   :  { %715 = vmatpush.bf16.msrb.mxu2 %v1092_v3 }
  0x3c   :  { %728 = vmatpush.bf16.msrb.mxu3 %v1100_v6 }
  0x3d   :  { %702 = vmatpush.bf16.msrb.mxu1 %v1084_v7 }
  0x3e   :  { %690 = vmatpush.bf16.msrb.mxu0 %v1075_v10 }
  0x3f   :  { %716 = vmatpush.bf16.msrb.mxu2 %v1091_v11 }
  0x40   :  { %729 = vmatpush.bf16.msrb.mxu3 %v1099_v14 }
  0x41   :  { %703 = vmatpush.bf16.msrb.mxu1 %v1083_v15  ;;  %691 = vmatmul.bf16.vlgmr.msrb.gmra.mxu0 %v185_v18 }
  0x42   :  { %735 = vmatpush.bf16.msra.mxu0 %v1114_v12  ;;  %717 = vmatmul.bf16.vlgmr.msrb.gmra.mxu2 %v187_v17 }
  0x43   :  { %730 = vmatmul.bf16.vlgmr.msrb.gmra.mxu3 %v188_v20 }
  0x44   :  { %704 = vmatmul.bf16.vlgmr.msrb.gmra.mxu1 %v186_v21 }
  0x46   :  { %736 = vmatpush.bf16.msra.mxu0 %v1113_v19 }
  0x4a   :  { %737 = vmatpush.bf16.msra.mxu0 %v1112_v22 }
  0x4e   :  { %738 = vmatpush.bf16.msra.mxu0 %v1111_v23 }
  0x52   :  { %739 = vmatpush.bf16.msra.mxu0 %v1110_v24 }
  0x56   :  { %740 = vmatpush.bf16.msra.mxu0 %v1109_v25 }
  0x5a   :  { %741 = vmatpush.bf16.msra.mxu0 %v1108_v26 }
  0x5e   :  { %742 = vmatpush.bf16.msra.mxu0 %v1107_v29 }
  0x61   :  { %743 = vmatmul.bf16.vlgmr.msra.gmra.mxu0 %v189_v30 }
  0x9e   :  { %v640_v31 = vpop.f32.mrf.mxu0 }
  0x9f   :  { %v641_v40 = vadd.f32 %v1115_v39, %v640_v31 }
  0xa1   :  { %v653_v32 = vpop.f32.mrf.mxu1 }
  0xa2   :  { %v654_v43 = vadd.f32 %v653_v32, %v641_v40 }
  0xa5   :  { %v666_v33 = vpop.f32.mrf.mxu2 }
  0xa6   :  { %v679_v34 = vpop.f32.mrf.mxu3  ;;  %v642_v35 = vpop.f32.mrf.mxu0  ;;  %v667_v45 = vadd.f32 %v666_v33, %v654_v43 }
  0xa8   :  { %v680_v49 = vadd.f32 %v679_v34, %v667_v45 }
  0xa9   :  { %v655_v36 = vpop.f32.mrf.mxu1 }
  0xad   :  { %v668_v37 = vpop.f32.mrf.mxu2 }
  0xae   :  { %v681_v38 = vpop.f32.mrf.mxu3 }
  0xbe   :  { %v692_v41 = vpop.f32.mrf.mxu0 }
  0xbf   :  { %v693_v51 = vadd.f32 %v692_v41, %v680_v49 }
  0xc1   :  { %v705_v42 = vpop.f32.mrf.mxu1 }
  0xc2   :  { %v706_v53 = vadd.f32 %v705_v42, %v693_v51 }
  0xc5   :  { %v718_v44 = vpop.f32.mrf.mxu2 }
  0xc6   :  { %v731_v46 = vpop.f32.mrf.mxu3  ;;  %v694_v47 = vpop.f32.mrf.mxu0  ;;  %v719_v54 = vadd.f32 %v718_v44, %v706_v53 }
  0xc8   :  { %v732_v55 = vadd.f32 %v731_v46, %v719_v54 }
  0xc9   :  { %v707_v48 = vpop.f32.mrf.mxu1 }
  0xcd   :  { %v720_v50 = vpop.f32.mrf.mxu2 }
  0xce   :  { %v733_v52 = vpop.f32.mrf.mxu3 }
  0xde   :  { %v744_v56 = vpop.f32.mrf.mxu0 }
  0xdf   :  { %v745_v57 = vadd.f32 %v744_v56, %v732_v55 }
  0xe1   :  { %v748_v58 = vmax.f32 %v745_v57, 0.0 }
  0xe3   :  { %v749_v59 = vpack.c.bf16 %v748_v58, %v748_v58 }
  0xe5   :  { %750 = vst [vmem:[%s1376_s3] sm:$0xf] %v749_v59 }
  0xe6   :  { %v746_v60 = vpop.f32.mrf.mxu0 }

// kernel: unet_forward.23
= control target key start
LH: loop header
LB: loop body
LE: loop exit
PB: predicated region body
PF: predicated region fallthrough
CT: control target
= control target key end

     0   :  { %vm1147_vm0 = vcmask 1040384   ;;  %s2809_s1 = inlined_call_operand.vmem [shape: bf16[1152,256], index: 1, kind: input, shape index: {}]   ;;  %s2810_s0 = inlined_call_operand.vmem [shape: bf16[2,1152], index: 0, kind: input, shape index: {}]   ;;  %s2811_s2 = inlined_call_operand.vmem [shape: f32[1,256], index: 2, kind: input, shape index: {}]   ;;  %s2812_s3 = inlined_call_operand.vmem [shape: bf16[2,256], index: 3, kind: output, shape index: {}]  }
   0x1   :  { %v1215_v0 = vld [vmem:[%s2809_s1 + $0x70] sm:$0xf]  ;;  %v1748_v1 = vld [vmem:[%s2809_s1 + $0x74] sm:$0xf0]  ;;  %v1207_v9 = vld [vmem:[%s2809_s1 + $0x60] sm:$0xf] }
   0x2   :  { %v1279_v2 = vld [vmem:[%s2809_s1 + $0xf0] sm:$0xf]  ;;  %v1216_v3 = vor.u32 %v1748_v1, %v1215_v0  ;;  %v1764_v4 = vld [vmem:[%s2809_s1 + $0xf4] sm:$0xf0]  ;;  %v1746_v10 = vld [vmem:[%s2809_s1 + $0x64] sm:$0xf0] }
   0x3   :  { %v1343_v5 = vld [vmem:[%s2809_s1 + $0x170] sm:$0xf]  ;;  %v1780_v6 = vld [vmem:[%s2809_s1 + $0x174] sm:$0xf0]  ;;  %v1280_v7 = vor.u32 %v1764_v4, %v1279_v2  ;;  %v1271_v11 = vld [vmem:[%s2809_s1 + $0xe0] sm:$0xf]  ;;  %v1208_v12 = vor.u32 %v1746_v10, %v1207_v9 }
   0x4   :  { %v1344_v8 = vor.u32 %v1780_v6, %v1343_v5  ;;  %908 = vmatpush.bf16.msra.mxu0 %v1216_v3  ;;  %v1762_v13 = vld [vmem:[%s2809_s1 + $0xe4] sm:$0xf0]  ;;  %v1407_v14 = vld [vmem:[%s2809_s1 + $0x1f0] sm:$0xf]  ;;  %v1796_v15 = vld [vmem:[%s2809_s1 + $0x1f4] sm:$0xf0] }
   0x5   :  { %921 = vmatpush.bf16.msra.mxu1 %v1280_v7  ;;  %v1272_v16 = vor.u32 %v1762_v13, %v1271_v11  ;;  %v1408_v17 = vor.u32 %v1796_v15, %v1407_v14  ;;  %v1335_v18 = vld [vmem:[%s2809_s1 + $0x160] sm:$0xf]  ;;  %v1778_v19 = vld [vmem:[%s2809_s1 + $0x164] sm:$0xf0]  ;;  %v1199_v20 = vld [vmem:[%s2809_s1 + $0x50] sm:$0xf] }
   0x6   :  { %934 = vmatpush.bf16.msra.mxu2 %v1344_v8  ;;  %v1336_v21 = vor.u32 %v1778_v19, %v1335_v18  ;;  %v1744_v22 = vld [vmem:[%s2809_s1 + $0x54] sm:$0xf0]  ;;  %v1263_v23 = vld [vmem:[%s2809_s1 + $0xd0] sm:$0xf]  ;;  %v1399_v25 = vld [vmem:[%s2809_s1 + $0x1e0] sm:$0xf] }
   0x7   :  { %v1760_v24 = vld [vmem:[%s2809_s1 + $0xd4] sm:$0xf0]  ;;  %947 = vmatpush.bf16.msra.mxu3 %v1408_v17  ;;  %v1794_v26 = vld [vmem:[%s2809_s1 + $0x1e4] sm:$0xf0]  ;;  %v1327_v27 = vld [vmem:[%s2809_s1 + $0x150] sm:$0xf]  ;;  %v1200_v28 = vor.u32 %v1744_v22, %v1199_v20 }
   0x8   :  { %909 = vmatpush.bf16.msra.mxu0 %v1208_v12  ;;  %v1400_v29 = vor.u32 %v1794_v26, %v1399_v25  ;;  %v1776_v30 = vld [vmem:[%s2809_s1 + $0x154] sm:$0xf0]  ;;  %v1191_v31 = vld [vmem:[%s2809_s1 + $0x40] sm:$0xf]  ;;  %v1742_v32 = vld [vmem:[%s2809_s1 + $0x44] sm:$0xf0]  ;;  %v1264_v33 = vor.u32 %v1760_v24, %v1263_v23 }
   0x9   :  { %922 = vmatpush.bf16.msra.mxu1 %v1272_v16  ;;  %v1328_v34 = vor.u32 %v1776_v30, %v1327_v27  ;;  %v1255_v35 = vld [vmem:[%s2809_s1 + $0xc0] sm:$0xf]  ;;  %v1758_v36 = vld [vmem:[%s2809_s1 + $0xc4] sm:$0xf0]  ;;  %v1391_v37 = vld [vmem:[%s2809_s1 + $0x1d0] sm:$0xf]  ;;  %v1192_v42 = vor.u32 %v1742_v32, %v1191_v31 }
   0xa   :  { %935 = vmatpush.bf16.msra.mxu2 %v1336_v21  ;;  %v1792_v38 = vld [vmem:[%s2809_s1 + $0x1d4] sm:$0xf0]  ;;  %v1319_v39 = vld [vmem:[%s2809_s1 + $0x140] sm:$0xf]  ;;  %v1774_v40 = vld [vmem:[%s2809_s1 + $0x144] sm:$0xf0]  ;;  %v1256_v45 = vor.u32 %v1758_v36, %v1255_v35 }
   0xb   :  { %948 = vmatpush.bf16.msra.mxu3 %v1400_v29  ;;  %v1392_v41 = vor.u32 %v1792_v38, %v1391_v37  ;;  %v1383_v43 = vld [vmem:[%s2809_s1 + $0x1c0] sm:$0xf]  ;;  %v1790_v44 = vld [vmem:[%s2809_s1 + $0x1c4] sm:$0xf0]  ;;  %v1320_v46 = vor.u32 %v1774_v40, %v1319_v39  ;;  %v1183_v47 = vld [vmem:[%s2809_s1 + $0x30] sm:$0xf] }
   0xc   :  { %910 = vmatpush.bf16.msra.mxu0 %v1200_v28  ;;  %v1740_v48 = vld [vmem:[%s2809_s1 + $0x34] sm:$0xf0]  ;;  %v1247_v49 = vld [vmem:[%s2809_s1 + $0xb0] sm:$0xf]  ;;  %v1384_v53 = vor.u32 %v1790_v44, %v1383_v43  ;;  %v1175_v59 = vld [vmem:[%s2809_s1 + $0x20] sm:$0xf] }
   0xd   :  { %923 = vmatpush.bf16.msra.mxu1 %v1264_v33  ;;  %v1756_v50 = vld [vmem:[%s2809_s1 + $0xb4] sm:$0xf0]  ;;  %v1311_v51 = vld [vmem:[%s2809_s1 + $0x130] sm:$0xf]  ;;  %v1184_v54 = vor.u32 %v1740_v48, %v1183_v47  ;;  %v1738_v60 = vld [vmem:[%s2809_s1 + $0x24] sm:$0xf0] }
   0xe   :  { %936 = vmatpush.bf16.msra.mxu2 %v1328_v34  ;;  %v1772_v52 = vld [vmem:[%s2809_s1 + $0x134] sm:$0xf0]  ;;  %v1375_v55 = vld [vmem:[%s2809_s1 + $0x1b0] sm:$0xf]  ;;  %v1248_v57 = vor.u32 %v1756_v50, %v1247_v49  ;;  %v1239_v61 = vld [vmem:[%s2809_s1 + $0xa0] sm:$0xf]  ;;  %v1176_v2 = vor.u32 %v1738_v60, %v1175_v59 }
   0xf   :  { %949 = vmatpush.bf16.msra.mxu3 %v1392_v41  ;;  %v1788_v56 = vld [vmem:[%s2809_s1 + $0x1b4] sm:$0xf0]  ;;  %v1312_v58 = vor.u32 %v1772_v52, %v1311_v51  ;;  %v1754_v62 = vld [vmem:[%s2809_s1 + $0xa4] sm:$0xf0]  ;;  %v1303_v63 = vld [vmem:[%s2809_s1 + $0x120] sm:$0xf] }
  0x10   :  { %911 = vmatpush.bf16.msra.mxu0 %v1192_v42  ;;  %v1770_v0 = vld [vmem:[%s2809_s1 + $0x124] sm:$0xf0]  ;;  %v1376_v1 = vor.u32 %v1788_v56, %v1375_v55  ;;  %v1367_v3 = vld [vmem:[%s2809_s1 + $0x1a0] sm:$0xf]  ;;  %v1240_v5 = vor.u32 %v1754_v62, %v1239_v61  ;;  %v1167_v7 = vld [vmem:[%s2809_s1 + $0x10] sm:$0xf] }
  0x11   :  { %924 = vmatpush.bf16.msra.mxu1 %v1256_v45  ;;  %v1786_v4 = vld [vmem:[%s2809_s1 + $0x1a4] sm:$0xf0]  ;;  %v1304_v6 = vor.u32 %v1770_v0, %v1303_v63  ;;  %v1736_v8 = vld [vmem:[%s2809_s1 + $0x14] sm:$0xf0]  ;;  %v1231_v9 = vld [vmem:[%s2809_s1 + $0x90] sm:$0xf] }
  0x12   :  { %937 = vmatpush.bf16.msra.mxu2 %v1320_v46  ;;  %v1752_v10 = vld [vmem:[%s2809_s1 + $0x94] sm:$0xf0]  ;;  %v1295_v11 = vld [vmem:[%s2809_s1 + $0x110] sm:$0xf]  ;;  %v1368_v13 = vor.u32 %v1786_v4, %v1367_v3  ;;  %v1159_v14 = vld [vmem:[%s2809_s1] sm:$0xf]  ;;  %v1168_v15 = vor.u32 %v1736_v8, %v1167_v7 }
  0x13   :  { %950 = vmatpush.bf16.msra.mxu3 %v1384_v53  ;;  %v1768_v12 = vld [vmem:[%s2809_s1 + $0x114] sm:$0xf0]  ;;  %v1734_v16 = vld [vmem:[%s2809_s1 + $0x4] sm:$0xf0]  ;;  %v1359_v17 = vld [vmem:[%s2809_s1 + $0x190] sm:$0xf]  ;;  %v1232_v19 = vor.u32 %v1752_v10, %v1231_v9 }
  0x14   :  { %912 = vmatpush.bf16.msra.mxu0 %v1184_v54  ;;  %v1784_v18 = vld [vmem:[%s2809_s1 + $0x194] sm:$0xf0]  ;;  %v1296_v20 = vor.u32 %v1768_v12, %v1295_v11  ;;  %v1223_v21 = vld [vmem:[%s2809_s1 + $0x80] sm:$0xf]  ;;  %v1750_v22 = vld [vmem:[%s2809_s1 + $0x84] sm:$0xf0]  ;;  %v1160_v31 = vor.u32 %v1734_v16, %v1159_v14 }
  0x15   :  { %925 = vmatpush.bf16.msra.mxu1 %v1248_v57  ;;  %v1471_v23 = vld [vmem:[%s2809_s1 + $0x270] sm:$0xf]  ;;  %v1812_v24 = vld [vmem:[%s2809_s1 + $0x274] sm:$0xf0]  ;;  %v1360_v27 = vor.u32 %v1784_v18, %v1359_v17  ;;  %v1287_v28 = vld [vmem:[%s2809_s1 + $0x100] sm:$0xf]  ;;  %v1224_v35 = vor.u32 %v1750_v22, %v1223_v21 }
  0x16   :  { %938 = vmatpush.bf16.msra.mxu2 %v1312_v58  ;;  %v1535_v25 = vld [vmem:[%s2809_s1 + $0x2f0] sm:$0xf]  ;;  %v1828_v26 = vld [vmem:[%s2809_s1 + $0x2f4] sm:$0xf0]  ;;  %v1766_v29 = vld [vmem:[%s2809_s1 + $0x104] sm:$0xf0]  ;;  %v1472_v36 = vor.u32 %v1812_v24, %v1471_v23 }
  0x17   :  { %951 = vmatpush.bf16.msra.mxu3 %v1376_v1  ;;  %v1599_v30 = vld [vmem:[%s2809_s1 + $0x370] sm:$0xf]  ;;  %v1844_v32 = vld [vmem:[%s2809_s1 + $0x374] sm:$0xf0]  ;;  %v1351_v33 = vld [vmem:[%s2809_s1 + $0x180] sm:$0xf]  ;;  %v1536_v39 = vor.u32 %v1828_v26, %v1535_v25  ;;  %v1288_v40 = vor.u32 %v1766_v29, %v1287_v28 }
  0x18   :  { %913 = vmatpush.bf16.msra.mxu0 %v1176_v2  ;;  %v1782_v34 = vld [vmem:[%s2809_s1 + $0x184] sm:$0xf0]  ;;  %v1663_v37 = vld [vmem:[%s2809_s1 + $0x3f0] sm:$0xf]  ;;  %v1860_v38 = vld [vmem:[%s2809_s1 + $0x3f4] sm:$0xf0]  ;;  %v1600_v43 = vor.u32 %v1844_v32, %v1599_v30 }
  0x19   :  { %926 = vmatpush.bf16.msra.mxu1 %v1240_v5  ;;  %v1463_v41 = vld [vmem:[%s2809_s1 + $0x260] sm:$0xf]  ;;  %v1810_v42 = vld [vmem:[%s2809_s1 + $0x264] sm:$0xf0]  ;;  %v1352_v44 = vor.u32 %v1782_v34, %v1351_v33  ;;  %v1664_v47 = vor.u32 %v1860_v38, %v1663_v37  ;;  %v1455_v54 = vld [vmem:[%s2809_s1 + $0x250] sm:$0xf] }
  0x1a   :  { %939 = vmatpush.bf16.msra.mxu2 %v1304_v6  ;;  %v1527_v45 = vld [vmem:[%s2809_s1 + $0x2e0] sm:$0xf]  ;;  %v1826_v46 = vld [vmem:[%s2809_s1 + $0x2e4] sm:$0xf0]  ;;  %v1464_v50 = vor.u32 %v1810_v42, %v1463_v41  ;;  %v1808_v55 = vld [vmem:[%s2809_s1 + $0x254] sm:$0xf0] }
  0x1b   :  { %952 = vmatpush.bf16.msra.mxu3 %v1368_v13  ;;  %v1591_v48 = vld [vmem:[%s2809_s1 + $0x360] sm:$0xf]  ;;  %v1842_v49 = vld [vmem:[%s2809_s1 + $0x364] sm:$0xf0]  ;;  %v1528_v53 = vor.u32 %v1826_v46, %v1527_v45  ;;  %v1519_v58 = vld [vmem:[%s2809_s1 + $0x2d0] sm:$0xf]  ;;  %v1456_v63 = vor.u32 %v1808_v55, %v1455_v54 }
  0x1c   :  { %914 = vmatpush.bf16.msra.mxu0 %v1168_v15  ;;  %v1655_v51 = vld [vmem:[%s2809_s1 + $0x3e0] sm:$0xf]  ;;  %v1858_v52 = vld [vmem:[%s2809_s1 + $0x3e4] sm:$0xf0]  ;;  %v1592_v57 = vor.u32 %v1842_v49, %v1591_v48  ;;  %v1824_v59 = vld [vmem:[%s2809_s1 + $0x2d4] sm:$0xf0] }
  0x1d   :  { %927 = vmatpush.bf16.msra.mxu1 %v1232_v19  ;;  %v14_v56 = vld [vmem:[%s2810_s0] sm:$0xff]  ;;  %v1656_v60 = vor.u32 %v1858_v52, %v1655_v51  ;;  %v1583_v61 = vld [vmem:[%s2809_s1 + $0x350] sm:$0xf]  ;;  %v1840_v62 = vld [vmem:[%s2809_s1 + $0x354] sm:$0xf0]  ;;  %v1520_v2 = vor.u32 %v1824_v59, %v1519_v58 }
  0x1e   :  { %940 = vmatpush.bf16.msra.mxu2 %v1296_v20  ;;  %167 = vst [vmem:[#allocation1] ss:$9 sm:$0xff] %v14_v56  ;;  %v1647_v0 = vld [vmem:[%s2809_s1 + $0x3d0] sm:$0xf]  ;;  %v1856_v1 = vld [vmem:[%s2809_s1 + $0x3d4] sm:$0xf0]  ;;  %v1584_v5 = vor.u32 %v1840_v62, %v1583_v61 }
  0x1f   :  { %953 = vmatpush.bf16.msra.mxu3 %v1360_v27  ;;  %v1447_v3 = vld [vmem:[%s2809_s1 + $0x240] sm:$0xf]  ;;  %v1806_v4 = vld [vmem:[%s2809_s1 + $0x244] sm:$0xf0]  ;;  %v1648_v8 = vor.u32 %v1856_v1, %v1647_v0  ;;  %v1439_v11 = vld [vmem:[%s2809_s1 + $0x230] sm:$0xf] }
  0x20   :  { %915 = vmatpush.bf16.msra.mxu0 %v1160_v31  ;;  %v1511_v6 = vld [vmem:[%s2809_s1 + $0x2c0] sm:$0xf]  ;;  %v1822_v7 = vld [vmem:[%s2809_s1 + $0x2c4] sm:$0xf0]  ;;  %v1448_v12 = vor.u32 %v1806_v4, %v1447_v3  ;;  %v1804_v13 = vld [vmem:[%s2809_s1 + $0x234] sm:$0xf0] }
  0x21   :  { %928 = vmatpush.bf16.msra.mxu1 %v1224_v35  ;;  %v1575_v9 = vld [vmem:[%s2809_s1 + $0x340] sm:$0xf]  ;;  %v1838_v10 = vld [vmem:[%s2809_s1 + $0x344] sm:$0xf0]  ;;  %v1512_v16 = vor.u32 %v1822_v7, %v1511_v6  ;;  %v1503_v21 = vld [vmem:[%s2809_s1 + $0x2b0] sm:$0xf]  ;;  %v1440_v27 = vor.u32 %v1804_v13, %v1439_v11 }
  0x22   :  { %941 = vmatpush.bf16.msra.mxu2 %v1288_v40  ;;  %v1639_v14 = vld [vmem:[%s2809_s1 + $0x3c0] sm:$0xf]  ;;  %v1854_v15 = vld [vmem:[%s2809_s1 + $0x3c4] sm:$0xf0]  ;;  %v1576_v20 = vor.u32 %v1838_v10, %v1575_v9  ;;  %v1820_v22 = vld [vmem:[%s2809_s1 + $0x2b4] sm:$0xf0] }
  0x23   :  { %954 = vmatpush.bf16.msra.mxu3 %v1352_v44  ;;  %v1640_v23 = vor.u32 %v1854_v15, %v1639_v14  ;;  %v1567_v24 = vld [vmem:[%s2809_s1 + $0x330] sm:$0xf]  ;;  %v1836_v25 = vld [vmem:[%s2809_s1 + $0x334] sm:$0xf0]  ;;  %v1504_v30 = vor.u32 %v1820_v22, %v1503_v21  ;;  %v1431_v31 = vld [vmem:[%s2809_s1 + $0x220] sm:$0xf] }
  0x24   :  { %960 = vmatpush.bf16.msrb.mxu0 %v1472_v36  ;;  %v1631_v28 = vld [vmem:[%s2809_s1 + $0x3b0] sm:$0xf]  ;;  %v1852_v29 = vld [vmem:[%s2809_s1 + $0x3b4] sm:$0xf0]  ;;  %v1802_v32 = vld [vmem:[%s2809_s1 + $0x224] sm:$0xf0]  ;;  %v1568_v33 = vor.u32 %v1836_v25, %v1567_v24 }
  0x25   :  { %973 = vmatpush.bf16.msrb.mxu1 %v1536_v39  ;;  %v2194_v17 = vld [vmem:[#allocation1 + $0x12] sm:$0xff]  ;;  %v2196_v18 = vld [vmem:[#allocation1] sm:$0xff]  ;;  %v2214_v26 = vld [vmem:[#allocation1 + $0x9] sm:$0xff]  ;;  %v1632_v36 = vor.u32 %v1852_v29, %v1631_v28  ;;  %v1432_v40 = vor.u32 %v1802_v32, %v1431_v31 }
  0x26   :  { %986 = vmatpush.bf16.msrb.mxu2 %v1600_v43  ;;  %v2198_v19 = vld [vmem:[#allocation1 + $0x1b] sm:$0xff]  ;;  %916 = vmatmul.bf16.vlgmr.msra.gmra.mxu0 %v2196_v18  ;;  %v1818_v35 = vld [vmem:[%s2809_s1 + $0x2a4] sm:$0xf0]  ;;  %v1423_v44 = vld [vmem:[%s2809_s1 + $0x210] sm:$0xf] }
  0x27   :  { %999 = vmatpush.bf16.msrb.mxu3 %v1664_v47  ;;  %942 = vmatmul.bf16.vlgmr.msra.gmra.mxu2 %v2194_v17  ;;  %v1495_v34 = vld [vmem:[%s2809_s1 + $0x2a0] sm:$0xf]  ;;  %v1834_v38 = vld [vmem:[%s2809_s1 + $0x324] sm:$0xf0]  ;;  %v1800_v45 = vld [vmem:[%s2809_s1 + $0x214] sm:$0xf0] }
  0x28   :  { %961 = vmatpush.bf16.msrb.mxu0 %v1464_v50  ;;  %955 = vmatmul.bf16.vlgmr.msra.gmra.mxu3 %v2198_v19  ;;  %v1559_v37 = vld [vmem:[%s2809_s1 + $0x320] sm:$0xf]  ;;  %v15_v39 = vld [vmem:[%s2810_s0 + $0x8] sm:$0x1]  ;;  %v1496_v43 = vor.u32 %v1818_v35, %v1495_v34  ;;  %v1487_v46 = vld [vmem:[%s2809_s1 + $0x290] sm:$0xf] }
  0x29   :  { %974 = vmatpush.bf16.msrb.mxu1 %v1528_v53  ;;  %v1623_v41 = vld [vmem:[%s2809_s1 + $0x3a0] sm:$0xf]  ;;  %v1850_v42 = vld [vmem:[%s2809_s1 + $0x3a4] sm:$0xf0]  ;;  %v1560_v47 = vor.u32 %v1834_v38, %v1559_v37  ;;  %v1816_v48 = vld [vmem:[%s2809_s1 + $0x294] sm:$0xf0] }
  0x2a   :  { %987 = vmatpush.bf16.msrb.mxu2 %v1592_v57  ;;  %929 = vmatmul.bf16.vlgmr.msra.gmra.mxu1 %v2214_v26  ;;  %v1551_v49 = vld [vmem:[%s2809_s1 + $0x310] sm:$0xf]  ;;  %v1832_v50 = vld [vmem:[%s2809_s1 + $0x314] sm:$0xf0]  ;;  %v1624_v51 = vor.u32 %v1850_v42, %v1623_v41  ;;  %v1415_v52 = vld [vmem:[%s2809_s1 + $0x200] sm:$0xf]  ;;  %v1424_v57 = vor.u32 %v1800_v45, %v1423_v44  ;;  %v1488_v62 = vor.u32 %v1816_v48, %v1487_v46 }
  0x2b   :  { %1000 = vmatpush.bf16.msrb.mxu3 %v1656_v60  ;;  %v1798_v53 = vld [vmem:[%s2809_s1 + $0x204] sm:$0xf0]  ;;  %v1615_v54 = vld [vmem:[%s2809_s1 + $0x390] sm:$0xf]  ;;  %v1848_v55 = vld [vmem:[%s2809_s1 + $0x394] sm:$0xf0]  ;;  %v1552_v1 = vor.u32 %v1832_v50, %v1551_v49 }
  0x2c   :  { %962 = vmatpush.bf16.msrb.mxu0 %v1456_v63  ;;  %v2281_v56 = vld [vmem:[#allocation1 + $0x36] sm:$0xff]  ;;  %v1479_v58 = vld [vmem:[%s2809_s1 + $0x280] sm:$0xf]  ;;  %v2286_v59 = vld [vmem:[#allocation1 + $0x24] sm:$0xff]  ;;  %v1416_v9 = vor.u32 %v1798_v53, %v1415_v52 }
  0x2d   :  { %975 = vmatpush.bf16.msrb.mxu1 %v1520_v2  ;;  %v2288_v60 = vld [vmem:[#allocation1 + $0x3f] sm:$0xff]  ;;  %v2290_v61 = vld [vmem:[#allocation1 + $0x2d] sm:$0xff]  ;;  %v1814_v63 = vld [vmem:[%s2809_s1 + $0x284] sm:$0xf0] }
  0x2e   :  { %988 = vmatpush.bf16.msrb.mxu2 %v1584_v5  ;;  %v1727_v0 = vld [vmem:[%s2809_s1 + $0x470] sm:$0xf]  ;;  %177 = vst [vmem:[#allocation1] ss:$9 sm:$0xff] %v15_v39  ;;  %v1876_v2 = vld [vmem:[%s2809_s1 + $0x474] sm:$0xf0]  ;;  %v1616_v5 = vor.u32 %v1848_v55, %v1615_v54  ;;  %v1480_v13 = vor.u32 %v1814_v63, %v1479_v58 }
  0x2f   :  { %1001 = vmatpush.bf16.msrb.mxu3 %v1648_v8  ;;  %v1747_v3 = vld [vmem:[%s2809_s1 + $0x74] sm:$0xf]  ;;  %v1217_v4 = vld [vmem:[%s2809_s1 + $0x78] sm:$0xf0]  ;;  %v1543_v6 = vld [vmem:[%s2809_s1 + $0x300] sm:$0xf]  ;;  %v1728_v14 = vor.u32 %v1876_v2, %v1727_v0 }
  0x30   :  { %963 = vmatpush.bf16.msrb.mxu0 %v1448_v12  ;;  %v1830_v7 = vld [vmem:[%s2809_s1 + $0x304] sm:$0xf0]  ;;  %v1763_v8 = vld [vmem:[%s2809_s1 + $0xf4] sm:$0xf]  ;;  %v1281_v10 = vld [vmem:[%s2809_s1 + $0xf8] sm:$0xf0] }
  0x31   :  { %976 = vmatpush.bf16.msrb.mxu1 %v1512_v16  ;;  %v1607_v11 = vld [vmem:[%s2809_s1 + $0x380] sm:$0xf]  ;;  %v1846_v12 = vld [vmem:[%s2809_s1 + $0x384] sm:$0xf0]  ;;  %v1779_v15 = vld [vmem:[%s2809_s1 + $0x174] sm:$0xf]  ;;  %v1544_v21 = vor.u32 %v1830_v7, %v1543_v6  ;;  %v1284_v24 = vor.u32 %v1763_v8, %v1281_v10 }
  0x32   :  { %989 = vmatpush.bf16.msrb.mxu2 %v1576_v20  ;;  %v1345_v16 = vld [vmem:[%s2809_s1 + $0x178] sm:$0xf0]  ;;  %v1220_v20 = vor.u32 %v1747_v3, %v1217_v4  ;;  %v1719_v22 = vld [vmem:[%s2809_s1 + $0x460] sm:$0xf]  ;;  %v1608_v25 = vor.u32 %v1846_v12, %v1607_v11  ;;  %v1209_v28 = vld [vmem:[%s2809_s1 + $0x68] sm:$0xf0] }
  0x33   :  { %1002 = vmatpush.bf16.msrb.mxu3 %v1640_v23  ;;  %v1874_v23 = vld [vmem:[%s2809_s1 + $0x464] sm:$0xf0]  ;;  %v1348_v29 = vor.u32 %v1779_v15, %v1345_v16  ;;  %v1273_v31 = vld [vmem:[%s2809_s1 + $0xe8] sm:$0xf0]  ;;  %v1872_v37 = vld [vmem:[%s2809_s1 + $0x454] sm:$0xf0] }
  0x34   :  { %964 = vmatpush.bf16.msrb.mxu0 %v1440_v27  ;;  %v1745_v27 = vld [vmem:[%s2809_s1 + $0x64] sm:$0xf]  ;;  %v1720_v32 = vor.u32 %v1874_v23, %v1719_v22  ;;  %v1337_v34 = vld [vmem:[%s2809_s1 + $0x168] sm:$0xf0]  ;;  %v1743_v39 = vld [vmem:[%s2809_s1 + $0x54] sm:$0xf] }
  0x35   :  { %977 = vmatpush.bf16.msrb.mxu1 %v1504_v30  ;;  %v1761_v30 = vld [vmem:[%s2809_s1 + $0xe4] sm:$0xf]  ;;  %v1212_v35 = vor.u32 %v1745_v27, %v1209_v28  ;;  %v1759_v42 = vld [vmem:[%s2809_s1 + $0xd4] sm:$0xf]  ;;  %v1329_v46 = vld [vmem:[%s2809_s1 + $0x158] sm:$0xf0] }
  0x36   :  { %990 = vmatpush.bf16.msrb.mxu2 %v1568_v33  ;;  %v1777_v33 = vld [vmem:[%s2809_s1 + $0x164] sm:$0xf]  ;;  %v1276_v38 = vor.u32 %v1761_v30, %v1273_v31  ;;  %v1775_v45 = vld [vmem:[%s2809_s1 + $0x154] sm:$0xf]  ;;  %v1703_v48 = vld [vmem:[%s2809_s1 + $0x440] sm:$0xf] }
  0x37   :  { %1003 = vmatpush.bf16.msrb.mxu3 %v1632_v36  ;;  %v1711_v36 = vld [vmem:[%s2809_s1 + $0x450] sm:$0xf]  ;;  %v1340_v41 = vor.u32 %v1777_v33, %v1337_v34  ;;  %v1870_v49 = vld [vmem:[%s2809_s1 + $0x444] sm:$0xf0]  ;;  %v1193_v52 = vld [vmem:[%s2809_s1 + $0x48] sm:$0xf0]  ;;  %v1332_v53 = vor.u32 %v1775_v45, %v1329_v46 }
  0x38   :  { %965 = vmatpush.bf16.msrb.mxu0 %v1432_v40  ;;  %v1201_v40 = vld [vmem:[%s2809_s1 + $0x58] sm:$0xf0]  ;;  %v1712_v44 = vor.u32 %v1872_v37, %v1711_v36  ;;  %v1757_v54 = vld [vmem:[%s2809_s1 + $0xc4] sm:$0xf]  ;;  %v1257_v55 = vld [vmem:[%s2809_s1 + $0xc8] sm:$0xf0] }
  0x39   :  { %978 = vmatpush.bf16.msrb.mxu1 %v1496_v43  ;;  %v1265_v43 = vld [vmem:[%s2809_s1 + $0xd8] sm:$0xf0]  ;;  %v1773_v58 = vld [vmem:[%s2809_s1 + $0x144] sm:$0xf]  ;;  %v1695_v0 = vld [vmem:[%s2809_s1 + $0x430] sm:$0xf]  ;;  %v1260_v2 = vor.u32 %v1757_v54, %v1257_v55 }
  0x3a   :  { %991 = vmatpush.bf16.msrb.mxu2 %v1560_v47  ;;  %v1204_v47 = vor.u32 %v1743_v39, %v1201_v40  ;;  %v1268_v50 = vor.u32 %v1759_v42, %v1265_v43  ;;  %v1739_v3 = vld [vmem:[%s2809_s1 + $0x34] sm:$0xf]  ;;  %v1185_v4 = vld [vmem:[%s2809_s1 + $0x38] sm:$0xf0]  ;;  %v1687_v12 = vld [vmem:[%s2809_s1 + $0x420] sm:$0xf] }
  0x3b   :  { %1004 = vmatpush.bf16.msrb.mxu3 %v1624_v51  ;;  %v1741_v51 = vld [vmem:[%s2809_s1 + $0x44] sm:$0xf]  ;;  %v1755_v6 = vld [vmem:[%s2809_s1 + $0xb4] sm:$0xf]  ;;  %v1249_v7 = vld [vmem:[%s2809_s1 + $0xb8] sm:$0xf0]  ;;  %v1188_v11 = vor.u32 %v1739_v3, %v1185_v4 }
  0x3c   :  { %966 = vmatpush.bf16.msrb.mxu0 %v1424_v57  ;;  %v1704_v57 = vor.u32 %v1870_v49, %v1703_v48  ;;  %v1196_v63 = vor.u32 %v1741_v51, %v1193_v52  ;;  %v1313_v10 = vld [vmem:[%s2809_s1 + $0x138] sm:$0xf0]  ;;  %v1737_v15 = vld [vmem:[%s2809_s1 + $0x24] sm:$0xf]  ;;  %v1177_v16 = vld [vmem:[%s2809_s1 + $0x28] sm:$0xf0] }
  0x3d   :  { %979 = vmatpush.bf16.msrb.mxu1 %v1488_v62  ;;  %v1321_v62 = vld [vmem:[%s2809_s1 + $0x148] sm:$0xf0]  ;;  %v1180_v27 = vor.u32 %v1737_v15, %v1177_v16  ;;  %v1679_v28 = vld [vmem:[%s2809_s1 + $0x410] sm:$0xf]  ;;  %v1735_v31 = vld [vmem:[%s2809_s1 + $0x14] sm:$0xf] }
  0x3e   :  { %992 = vmatpush.bf16.msrb.mxu2 %v1552_v1  ;;  %v1868_v1 = vld [vmem:[%s2809_s1 + $0x434] sm:$0xf0]  ;;  %v1241_v22 = vld [vmem:[%s2809_s1 + $0xa8] sm:$0xf0]  ;;  %v1751_v34 = vld [vmem:[%s2809_s1 + $0x94] sm:$0xf] }
  0x3f   :  { %1005 = vmatpush.bf16.msrb.mxu3 %v1616_v5  ;;  %v1324_v5 = vor.u32 %v1773_v58, %v1321_v62  ;;  %v1696_v8 = vor.u32 %v1868_v1, %v1695_v0  ;;  %v1671_v37 = vld [vmem:[%s2809_s1 + $0x400] sm:$0xf]  ;;  %v1297_v39 = vld [vmem:[%s2809_s1 + $0x118] sm:$0xf0]  ;;  %v1733_v42 = vld [vmem:[%s2809_s1 + $0x4] sm:$0xf] }
  0x40   :  { %967 = vmatpush.bf16.msrb.mxu0 %v1416_v9  ;;  %v1771_v9 = vld [vmem:[%s2809_s1 + $0x134] sm:$0xf]  ;;  %v1161_v43 = vld [vmem:[%s2809_s1 + $0x8] sm:$0xf0]  ;;  %v1409_v46 = vld [vmem:[%s2809_s1 + $0x1f8] sm:$0xf0] }
  0x41   :  { %980 = vmatpush.bf16.msrb.mxu1 %v1480_v13  ;;  %v1866_v13 = vld [vmem:[%s2809_s1 + $0x424] sm:$0xf0]  ;;  %v1795_v45 = vld [vmem:[%s2809_s1 + $0x1f4] sm:$0xf]  ;;  %v1473_v49 = vld [vmem:[%s2809_s1 + $0x278] sm:$0xf0]  ;;  %v1164_v55 = vor.u32 %v1733_v42, %v1161_v43 }
  0x42   :  { %993 = vmatpush.bf16.msrb.mxu2 %v1544_v21  ;;  %v1753_v21 = vld [vmem:[%s2809_s1 + $0xa4] sm:$0xf]  ;;  %v1688_v23 = vor.u32 %v1866_v13, %v1687_v12  ;;  %v1225_v51 = vld [vmem:[%s2809_s1 + $0x88] sm:$0xf0]  ;;  %v1537_v54 = vld [vmem:[%s2809_s1 + $0x2f8] sm:$0xf0] }
  0x43   :  { %1006 = vmatpush.bf16.msrb.mxu3 %v1608_v25  ;;  %968 = vmatmul.bf16.vlgmr.msrb.gmra.mxu0 %v2286_v59  ;;  %v1305_v25 = vld [vmem:[%s2809_s1 + $0x128] sm:$0xf0]  ;;  %v1244_v30 = vor.u32 %v1753_v21, %v1241_v22  ;;  %v1765_v58 = vld [vmem:[%s2809_s1 + $0x104] sm:$0xf]  ;;  %v1843_v3 = vld [vmem:[%s2809_s1 + $0x374] sm:$0xf] }
  0x44   :  { %1012 = vmatpush.bf16.msra.mxu0 %v1728_v14  ;;  %981 = vmatmul.bf16.vlgmr.msrb.gmra.mxu1 %v2290_v61  ;;  %v1252_v14 = vor.u32 %v1755_v6, %v1249_v7  ;;  %v1289_v62 = vld [vmem:[%s2809_s1 + $0x108] sm:$0xf0]  ;;  %v1601_v4 = vld [vmem:[%s2809_s1 + $0x378] sm:$0xf0]  ;;  %v1809_v6 = vld [vmem:[%s2809_s1 + $0x264] sm:$0xf] }
  0x45   :  { %1025 = vmatpush.bf16.msra.mxu1 %v1220_v20  ;;  %994 = vmatmul.bf16.vlgmr.msrb.gmra.mxu2 %v2281_v56  ;;  %v1316_v20 = vor.u32 %v1771_v9, %v1313_v10  ;;  %v1465_v7 = vld [vmem:[%s2809_s1 + $0x268] sm:$0xf0]  ;;  %v1292_v9 = vor.u32 %v1765_v58, %v1289_v62  ;;  %v1825_v10 = vld [vmem:[%s2809_s1 + $0x2e4] sm:$0xf]  ;;  %v1604_v13 = vor.u32 %v1843_v3, %v1601_v4  ;;  %v1393_v16 = vld [vmem:[%s2809_s1 + $0x1d8] sm:$0xf0] }
  0x46   :  { %1038 = vmatpush.bf16.msra.mxu2 %v1284_v24  ;;  %1007 = vmatmul.bf16.vlgmr.msrb.gmra.mxu3 %v2288_v60  ;;  %v1769_v24 = vld [vmem:[%s2809_s1 + $0x124] sm:$0xf]  ;;  %v1468_v15 = vor.u32 %v1809_v6, %v1465_v7  ;;  %v1593_v21 = vld [vmem:[%s2809_s1 + $0x368] sm:$0xf0]  ;;  %v1783_v3 = vld [vmem:[%s2809_s1 + $0x194] sm:$0xf] }
  0x47   :  { %1051 = vmatpush.bf16.msra.mxu3 %v1348_v29  ;;  %v1864_v29 = vld [vmem:[%s2809_s1 + $0x414] sm:$0xf0]  ;;  %v1308_v33 = vor.u32 %v1769_v24, %v1305_v25  ;;  %v1457_v24 = vld [vmem:[%s2809_s1 + $0x258] sm:$0xf0]  ;;  %v1823_v25 = vld [vmem:[%s2809_s1 + $0x2d4] sm:$0xf] }
  0x48   :  { %1013 = vmatpush.bf16.msra.mxu0 %v1720_v32  ;;  %v1169_v32 = vld [vmem:[%s2809_s1 + $0x18] sm:$0xf0]  ;;  %v1680_v36 = vor.u32 %v1864_v29, %v1679_v28  ;;  %v1837_v42 = vld [vmem:[%s2809_s1 + $0x344] sm:$0xf]  ;;  %v1577_v43 = vld [vmem:[%s2809_s1 + $0x348] sm:$0xf0] }
  0x49   :  { %1026 = vmatpush.bf16.msra.mxu1 %v1212_v35  ;;  %v1233_v35 = vld [vmem:[%s2809_s1 + $0x98] sm:$0xf0]  ;;  %v1172_v40 = vor.u32 %v1735_v31, %v1169_v32  ;;  %v1385_v32 = vld [vmem:[%s2809_s1 + $0x1c8] sm:$0xf0]  ;;  %v1801_v58 = vld [vmem:[%s2809_s1 + $0x224] sm:$0xf] }
  0x4a   :  { %1039 = vmatpush.bf16.msra.mxu2 %v1276_v38  ;;  %v1767_v38 = vld [vmem:[%s2809_s1 + $0x114] sm:$0xf]  ;;  %v1433_v62 = vld [vmem:[%s2809_s1 + $0x228] sm:$0xf0]  ;;  %v1833_v6 = vld [vmem:[%s2809_s1 + $0x324] sm:$0xf] }
  0x4b   :  { %1052 = vmatpush.bf16.msra.mxu3 %v1340_v41  ;;  %v1862_v41 = vld [vmem:[%s2809_s1 + $0x404] sm:$0xf0]  ;;  %v1300_v48 = vor.u32 %v1767_v38, %v1297_v39  ;;  %v1436_v4 = vor.u32 %v1801_v58, %v1433_v62  ;;  %v1561_v7 = vld [vmem:[%s2809_s1 + $0x328] sm:$0xf0]  ;;  %v1697_v58 = vld [vmem:[%s2809_s1 + $0x438] sm:$0xf0] }
  0x4c   :  { %1014 = vmatpush.bf16.msra.mxu0 %v1712_v44  ;;  %v1236_v44 = vor.u32 %v1751_v34, %v1233_v35  ;;  %v1672_v52 = vor.u32 %v1862_v41, %v1671_v37  ;;  %v1805_v35 = vld [vmem:[%s2809_s1 + $0x244] sm:$0xf] }
  0x4d   :  { %1027 = vmatpush.bf16.msra.mxu1 %v1204_v47  ;;  %v1811_v47 = vld [vmem:[%s2809_s1 + $0x274] sm:$0xf]  ;;  %v1821_v37 = vld [vmem:[%s2809_s1 + $0x2c4] sm:$0xf] }
  0x4e   :  { %1040 = vmatpush.bf16.msra.mxu2 %v1268_v50  ;;  %v1749_v50 = vld [vmem:[%s2809_s1 + $0x84] sm:$0xf]  ;;  %v1476_v0 = vor.u32 %v1811_v47, %v1473_v49  ;;  %v1819_v47 = vld [vmem:[%s2809_s1 + $0x2b4] sm:$0xf] }
  0x4f   :  { %1053 = vmatpush.bf16.msra.mxu3 %v1332_v53  ;;  %v1827_v53 = vld [vmem:[%s2809_s1 + $0x2f4] sm:$0xf]  ;;  %v1228_v1 = vor.u32 %v1749_v50, %v1225_v51  ;;  %v1580_v50 = vor.u32 %v1837_v42, %v1577_v43  ;;  %v1785_v51 = vld [vmem:[%s2809_s1 + $0x1a4] sm:$0xf]  ;;  %v1721_v42 = vld [vmem:[%s2809_s1 + $0x468] sm:$0xf0] }
  0x50   :  { %1015 = vmatpush.bf16.msra.mxu0 %v1704_v57  ;;  %v1412_v57 = vor.u32 %v1795_v45, %v1409_v46  ;;  %v1803_v45 = vld [vmem:[%s2809_s1 + $0x234] sm:$0xf]  ;;  %v1441_v46 = vld [vmem:[%s2809_s1 + $0x238] sm:$0xf0] }
  0x51   :  { %1028 = vmatpush.bf16.msra.mxu1 %v1196_v63  ;;  %v1793_v63 = vld [vmem:[%s2809_s1 + $0x1e4] sm:$0xf] }
  0x52   :  { %1041 = vmatpush.bf16.msra.mxu2 %v1260_v2  ;;  %v1401_v2 = vld [vmem:[%s2809_s1 + $0x1e8] sm:$0xf0] }
  0x53   :  { %1054 = vmatpush.bf16.msra.mxu3 %v1324_v5  ;;  %v1540_v5 = vor.u32 %v1827_v53, %v1537_v54  ;;  %v1404_v12 = vor.u32 %v1793_v63, %v1401_v2  ;;  %v1369_v53 = vld [vmem:[%s2809_s1 + $0x1a8] sm:$0xf0]  ;;  %v1835_v54 = vld [vmem:[%s2809_s1 + $0x334] sm:$0xf]  ;;  %v1817_v63 = vld [vmem:[%s2809_s1 + $0x2a4] sm:$0xf] }
  0x54   :  { %1016 = vmatpush.bf16.msra.mxu0 %v1696_v8  ;;  %v2539_v8 = vld [vmem:[#allocation1] sm:$0xff] }
  0x55   :  { %1029 = vmatpush.bf16.msra.mxu1 %v1188_v11  ;;  %v1529_v11 = vld [vmem:[%s2809_s1 + $0x2e8] sm:$0xf0] }
  0x56   :  { %1042 = vmatpush.bf16.msra.mxu2 %v1252_v14  ;;  %v1791_v14 = vld [vmem:[%s2809_s1 + $0x1d4] sm:$0xf]  ;;  %v1532_v22 = vor.u32 %v1825_v10, %v1529_v11  ;;  %v1425_v11 = vld [vmem:[%s2809_s1 + $0x218] sm:$0xf0] }
  0x57   :  { %1055 = vmatpush.bf16.msra.mxu3 %v1316_v20  ;;  %v1841_v20 = vld [vmem:[%s2809_s1 + $0x364] sm:$0xf]  ;;  %v1396_v28 = vor.u32 %v1791_v14, %v1393_v16  ;;  %v1799_v10 = vld [vmem:[%s2809_s1 + $0x214] sm:$0xf] }
  0x58   :  { %1017 = vmatpush.bf16.msra.mxu0 %v1688_v23  ;;  %v1807_v23 = vld [vmem:[%s2809_s1 + $0x254] sm:$0xf]  ;;  %v1596_v29 = vor.u32 %v1841_v20, %v1593_v21  ;;  %v1781_v16 = vld [vmem:[%s2809_s1 + $0x184] sm:$0xf]  ;;  %v1353_v20 = vld [vmem:[%s2809_s1 + $0x188] sm:$0xf0] }
  0x59   :  { %1030 = vmatpush.bf16.msra.mxu1 %v1180_v27  ;;  %v1521_v27 = vld [vmem:[%s2809_s1 + $0x2d8] sm:$0xf0]  ;;  %v1460_v31 = vor.u32 %v1807_v23, %v1457_v24  ;;  %v1797_v21 = vld [vmem:[%s2809_s1 + $0x204] sm:$0xf]  ;;  %v1417_v23 = vld [vmem:[%s2809_s1 + $0x208] sm:$0xf0] }
  0x5a   :  { %1043 = vmatpush.bf16.msra.mxu2 %v1244_v30  ;;  %v1789_v30 = vld [vmem:[%s2809_s1 + $0x1c4] sm:$0xf]  ;;  %v1524_v34 = vor.u32 %v1823_v25, %v1521_v27  ;;  %v1831_v24 = vld [vmem:[%s2809_s1 + $0x314] sm:$0xf]  ;;  %v1553_v25 = vld [vmem:[%s2809_s1 + $0x318] sm:$0xf0] }
  0x5b   :  { %1056 = vmatpush.bf16.msra.mxu3 %v1308_v33  ;;  %v1839_v33 = vld [vmem:[%s2809_s1 + $0x354] sm:$0xf]  ;;  %v1388_v38 = vor.u32 %v1789_v30, %v1385_v32  ;;  %v1813_v32 = vld [vmem:[%s2809_s1 + $0x284] sm:$0xf] }
  0x5c   :  { %1018 = vmatpush.bf16.msra.mxu0 %v1680_v36  ;;  %v1449_v36 = vld [vmem:[%s2809_s1 + $0x248] sm:$0xf0]  ;;  %v1875_v30 = vld [vmem:[%s2809_s1 + $0x474] sm:$0xf] }
  0x5d   :  { %1031 = vmatpush.bf16.msra.mxu1 %v1172_v40  ;;  %v1787_v40 = vld [vmem:[%s2809_s1 + $0x1b4] sm:$0xf]  ;;  %v1452_v41 = vor.u32 %v1805_v35, %v1449_v36  ;;  %v1420_v35 = vor.u32 %v1797_v21, %v1417_v23 }
  0x5e   :  { %1044 = vmatpush.bf16.msra.mxu2 %v1236_v44 }
  0x5f   :  { %1057 = vmatpush.bf16.msra.mxu3 %v1300_v48  ;;  %v1505_v48 = vld [vmem:[%s2809_s1 + $0x2b8] sm:$0xf0] }
  0x60   :  { %1019 = vmatpush.bf16.msra.mxu0 %v1672_v52  ;;  %v1444_v52 = vor.u32 %v1803_v45, %v1441_v46  ;;  %v1855_v46 = vld [vmem:[%s2809_s1 + $0x3d4] sm:$0xf] }
  0x61   :  { %1032 = vmatpush.bf16.msra.mxu1 %v1164_v55  ;;  %v1569_v55 = vld [vmem:[%s2809_s1 + $0x338] sm:$0xf0] }
  0x62   :  { %1045 = vmatpush.bf16.msra.mxu2 %v1228_v1  ;;  %v1372_v1 = vor.u32 %v1785_v51, %v1369_v53  ;;  %v1572_v2 = vor.u32 %v1835_v54, %v1569_v55  ;;  %v1851_v55 = vld [vmem:[%s2809_s1 + $0x3b4] sm:$0xf] }
  0x63   :  { %1020 = vmatmul.bf16.vlgmr.msra.gmra.mxu0 %v2539_v8  ;;  %1058 = vmatpush.bf16.msra.mxu3 %v1292_v9 }
  0x64   :  { %1064 = vmatpush.bf16.msrb.mxu0 %v1412_v57  ;;  %1033 = vmatmul.bf16.vlgmr.msra.gmra.mxu1 %v2196_v18  ;;  %v1585_v18 = vld [vmem:[%s2809_s1 + $0x358] sm:$0xf0]  ;;  %v1508_v57 = vor.u32 %v1819_v47, %v1505_v48  ;;  %v1871_v48 = vld [vmem:[%s2809_s1 + $0x454] sm:$0xf] }
  0x65   :  { %1077 = vmatpush.bf16.msrb.mxu1 %v1476_v0  ;;  %1046 = vmatmul.bf16.vlgmr.msra.gmra.mxu2 %v2214_v26  ;;  %v1513_v26 = vld [vmem:[%s2809_s1 + $0x2c8] sm:$0xf0]  ;;  %v1588_v39 = vor.u32 %v1839_v33, %v1585_v18  ;;  %v1356_v18 = vor.u32 %v1781_v16, %v1353_v20  ;;  %v1649_v47 = vld [vmem:[%s2809_s1 + $0x3d8] sm:$0xf0] }
  0x66   :  { %1090 = vmatpush.bf16.msrb.mxu2 %v1540_v5  ;;  %1059 = vmatmul.bf16.vlgmr.msra.gmra.mxu3 %v2194_v17  ;;  %v1377_v17 = vld [vmem:[%s2809_s1 + $0x1b8] sm:$0xf0]  ;;  %v1516_v44 = vor.u32 %v1821_v37, %v1513_v26  ;;  %v1497_v0 = vld [vmem:[%s2809_s1 + $0x2a8] sm:$0xf0]  ;;  %v1829_v37 = vld [vmem:[%s2809_s1 + $0x304] sm:$0xf] }
  0x67   :  { %1103 = vmatpush.bf16.msrb.mxu3 %v1604_v13  ;;  %v1380_v49 = vor.u32 %v1787_v40, %v1377_v17  ;;  %v1361_v5 = vld [vmem:[%s2809_s1 + $0x198] sm:$0xf0]  ;;  %v1500_v9 = vor.u32 %v1817_v63, %v1497_v0  ;;  %v1481_v33 = vld [vmem:[%s2809_s1 + $0x288] sm:$0xf0]  ;;  %v1857_v40 = vld [vmem:[%s2809_s1 + $0x3e4] sm:$0xf] }
  0x68   :  { %1065 = vmatpush.bf16.msrb.mxu0 %v1404_v12  ;;  %v1815_v12 = vld [vmem:[%s2809_s1 + $0x294] sm:$0xf]  ;;  %v1489_v13 = vld [vmem:[%s2809_s1 + $0x298] sm:$0xf0]  ;;  %v1364_v14 = vor.u32 %v1783_v3, %v1361_v5  ;;  %v1545_v26 = vld [vmem:[%s2809_s1 + $0x308] sm:$0xf0] }
  0x69   :  { %1078 = vmatpush.bf16.msrb.mxu1 %v1468_v15  ;;  %v1564_v15 = vor.u32 %v1833_v6, %v1561_v7  ;;  %v1492_v27 = vor.u32 %v1815_v12, %v1489_v13  ;;  %v1873_v17 = vld [vmem:[%s2809_s1 + $0x464] sm:$0xf]  ;;  %v1548_v43 = vor.u32 %v1829_v37, %v1545_v26  ;;  %v1689_v3 = vld [vmem:[%s2809_s1 + $0x428] sm:$0xf0]  ;;  %v1847_v6 = vld [vmem:[%s2809_s1 + $0x394] sm:$0xf] }
  0x6a   :  { %1091 = vmatpush.bf16.msrb.mxu2 %v1532_v22  ;;  %v1428_v22 = vor.u32 %v1799_v10, %v1425_v11  ;;  %v1724_v45 = vor.u32 %v1873_v17, %v1721_v42  ;;  %v1849_v0 = vld [vmem:[%s2809_s1 + $0x3a4] sm:$0xf]  ;;  %v1617_v7 = vld [vmem:[%s2809_s1 + $0x398] sm:$0xf0]  ;;  %v1673_v16 = vld [vmem:[%s2809_s1 + $0x408] sm:$0xf0] }
  0x6b   :  { %1104 = vmatpush.bf16.msrb.mxu3 %v1596_v29  ;;  %v1665_v29 = vld [vmem:[%s2809_s1 + $0x3f8] sm:$0xf0]  ;;  %v1620_v11 = vor.u32 %v1847_v6, %v1617_v7  ;;  %v1845_v13 = vld [vmem:[%s2809_s1 + $0x384] sm:$0xf] }
  0x6c   :  { %1066 = vmatpush.bf16.msrb.mxu0 %v1396_v28  ;;  %v1859_v28 = vld [vmem:[%s2809_s1 + $0x3f4] sm:$0xf]  ;;  %v1681_v10 = vld [vmem:[%s2809_s1 + $0x418] sm:$0xf0] }
  0x6d   :  { %1079 = vmatpush.bf16.msrb.mxu1 %v1460_v31  ;;  %v1729_v31 = vld [vmem:[%s2809_s1 + $0x478] sm:$0xf0]  ;;  %v1668_v36 = vor.u32 %v1859_v28, %v1665_v29 }
  0x6e   :  { %1092 = vmatpush.bf16.msrb.mxu2 %v1524_v34  ;;  %v1556_v34 = vor.u32 %v1831_v24, %v1553_v25 }
  0x6f   :  { %1105 = vmatpush.bf16.msrb.mxu3 %v1588_v39  ;;  %v1484_v39 = vor.u32 %v1813_v32, %v1481_v33 }
  0x70   :  { %1067 = vmatpush.bf16.msrb.mxu0 %v1388_v38  ;;  %v1732_v38 = vor.u32 %v1875_v30, %v1729_v31 }
  0x71   :  { %1080 = vmatpush.bf16.msrb.mxu1 %v1452_v41  ;;  %v1657_v41 = vld [vmem:[%s2809_s1 + $0x3e8] sm:$0xf0] }
  0x72   :  { %1093 = vmatpush.bf16.msrb.mxu2 %v1516_v44  ;;  %v1660_v44 = vor.u32 %v1857_v40, %v1657_v41 }
  0x73   :  { %1106 = vmatpush.bf16.msrb.mxu3 %v1580_v50  ;;  %v1652_v50 = vor.u32 %v1855_v46, %v1649_v47 }
  0x74   :  { %1068 = vmatpush.bf16.msrb.mxu0 %v1380_v49  ;;  %v1713_v49 = vld [vmem:[%s2809_s1 + $0x458] sm:$0xf0] }
  0x75   :  { %1081 = vmatpush.bf16.msrb.mxu1 %v1444_v52  ;;  %v1716_v51 = vor.u32 %v1871_v48, %v1713_v49  ;;  %v1641_v52 = vld [vmem:[%s2809_s1 + $0x3c8] sm:$0xf0] }
  0x76   :  { %1094 = vmatpush.bf16.msrb.mxu2 %v1508_v57  ;;  %v1867_v57 = vld [vmem:[%s2809_s1 + $0x434] sm:$0xf] }
  0x77   :  { %1107 = vmatpush.bf16.msrb.mxu3 %v1572_v2  ;;  %v1700_v63 = vor.u32 %v1867_v57, %v1697_v58  ;;  %v1865_v2 = vld [vmem:[%s2809_s1 + $0x424] sm:$0xf] }
  0x78   :  { %1069 = vmatpush.bf16.msrb.mxu0 %v1372_v1  ;;  %v1625_v1 = vld [vmem:[%s2809_s1 + $0x3a8] sm:$0xf0]  ;;  %v1692_v5 = vor.u32 %v1865_v2, %v1689_v3 }
  0x79   :  { %1082 = vmatpush.bf16.msrb.mxu1 %v1436_v4  ;;  %v1628_v4 = vor.u32 %v1849_v0, %v1625_v1 }
  0x7a   :  { %1095 = vmatpush.bf16.msrb.mxu2 %v1500_v9  ;;  %v1863_v9 = vld [vmem:[%s2809_s1 + $0x414] sm:$0xf] }
  0x7b   :  { %1108 = vmatpush.bf16.msrb.mxu3 %v1564_v15  ;;  %v1684_v12 = vor.u32 %v1863_v9, %v1681_v10  ;;  %v1861_v15 = vld [vmem:[%s2809_s1 + $0x404] sm:$0xf] }
  0x7c   :  { %1070 = vmatpush.bf16.msrb.mxu0 %v1364_v14  ;;  %v1609_v14 = vld [vmem:[%s2809_s1 + $0x388] sm:$0xf0]  ;;  %v1676_v21 = vor.u32 %v1861_v15, %v1673_v16 }
  0x7d   :  { %1083 = vmatpush.bf16.msrb.mxu1 %v1428_v22  ;;  %v1612_v20 = vor.u32 %v1845_v13, %v1609_v14  ;;  %v160_v22 = vld [vmem:[%s2811_s2] sm:$0x3] }
  0x7e   :  { %1096 = vmatpush.bf16.msrb.mxu2 %v1492_v27  ;;  %v162_v23 = vperm.slane %v160_v22, 0 }
  0x7f   :  { %1109 = vmatpush.bf16.msrb.mxu3 %v1556_v34 }
  0x80   :  { %1071 = vmatpush.bf16.msrb.mxu0 %v1356_v18 }
  0x81   :  { %1084 = vmatpush.bf16.msrb.mxu1 %v1420_v35 }
  0x82   :  { %1097 = vmatpush.bf16.msrb.mxu2 %v1484_v39 }
  0x83   :  { %1072 = vmatmul.bf16.vlgmr.msrb.gmra.mxu0 %v2198_v19  ;;  %1110 = vmatpush.bf16.msrb.mxu3 %v1548_v43  ;;  %v1853_v19 = vld [vmem:[%s2809_s1 + $0x3c4] sm:$0xf] }
  0x84   :  { %1116 = vmatpush.bf16.msra.mxu0 %v1668_v36  ;;  %1085 = vmatmul.bf16.vlgmr.msrb.gmra.mxu1 %v2286_v59  ;;  %v1869_v59 = vld [vmem:[%s2809_s1 + $0x444] sm:$0xf]  ;;  %v1644_v53 = vor.u32 %v1853_v19, %v1641_v52  ;;  %v163_v19 = vperm.slane %v160_v22, 1 }
  0x85   :  { %1129 = vmatpush.bf16.msra.mxu1 %v1732_v38  ;;  %1098 = vmatmul.bf16.vlgmr.msrb.gmra.mxu2 %v2290_v61  ;;  %v1705_v61 = vld [vmem:[%s2809_s1 + $0x448] sm:$0xf0] }
  0x86   :  { %1111 = vmatmul.bf16.vlgmr.msrb.gmra.mxu3 %v2281_v56  ;;  %v1708_v54 = vor.u32 %v1869_v59, %v1705_v61  ;;  %v1633_v56 = vld [vmem:[%s2809_s1 + $0x3b8] sm:$0xf0] }
  0x87   :  { %v1636_v62 = vor.u32 %v1851_v55, %v1633_v56 }
  0x88   :  { %1117 = vmatpush.bf16.msra.mxu0 %v1660_v44 }
  0x89   :  { %1130 = vmatpush.bf16.msra.mxu1 %v1724_v45 }
  0x8c   :  { %1118 = vmatpush.bf16.msra.mxu0 %v1652_v50 }
  0x8d   :  { %1131 = vmatpush.bf16.msra.mxu1 %v1716_v51 }
  0x90   :  { %1119 = vmatpush.bf16.msra.mxu0 %v1644_v53 }
  0x91   :  { %1132 = vmatpush.bf16.msra.mxu1 %v1708_v54 }
  0x94   :  { %1120 = vmatpush.bf16.msra.mxu0 %v1636_v62 }
  0x95   :  { %1133 = vmatpush.bf16.msra.mxu1 %v1700_v63 }
  0x98   :  { %1121 = vmatpush.bf16.msra.mxu0 %v1628_v4 }
  0x99   :  { %1134 = vmatpush.bf16.msra.mxu1 %v1692_v5 }
  0x9c   :  { %1122 = vmatpush.bf16.msra.mxu0 %v1620_v11 }
  0x9d   :  { %1135 = vmatpush.bf16.msra.mxu1 %v1684_v12 }
  0xa0   :  { %1123 = vmatpush.bf16.msra.mxu0 %v1612_v20 }
  0xa1   :  { %1136 = vmatpush.bf16.msra.mxu1 %v1676_v21 }
  0xa3   :  { %1124 = vmatmul.bf16.vlgmr.msra.gmra.mxu0 %v2288_v60  ;;  %v917_v24 = vpop.f32.mrf.mxu0 }
  0xa4   :  { %1137 = vmatmul.bf16.vlgmr.msra.gmra.mxu1 %v2539_v8  ;;  %v918_v25 = vadd.f32 %v917_v24, %v162_v23 }
  0xa7   :  { %v930_v27 = vpop.f32.mrf.mxu1 }
  0xa8   :  { %v931_v28 = vadd.f32 %v930_v27, %v918_v25 }
  0xaa   :  { %v943_v29 = vpop.f32.mrf.mxu2 }
  0xab   :  { %v944_v30 = vadd.f32 %v943_v29, %v931_v28  ;;  %v956_v31 = vpop.f32.mrf.mxu3  ;;  %v919_v32 = vpop.f32.mrf.mxu0 }
  0xad   :  { %v957_v33 = vadd.f32 %v956_v31, %v944_v30 }
  0xaf   :  { %v932_v18 = vpop.f32.mrf.mxu1 }
  0xb2   :  { %v945_v34 = vpop.f32.mrf.mxu2 }
  0xb3   :  { %v958_v35 = vpop.f32.mrf.mxu3 }
  0xc0   :  { %v969_v60 = vpop.f32.mrf.mxu0 }
  0xc1   :  { %v970_v36 = vadd.f32 %v969_v60, %v957_v33  ;;  %v982_v8 = vpop.f32.mrf.mxu1 }
  0xc3   :  { %v983_v37 = vadd.f32 %v982_v8, %v970_v36 }
  0xc8   :  { %v995_v26 = vpop.f32.mrf.mxu2  ;;  %v971_v40 = vpop.f32.mrf.mxu0 }
  0xc9   :  { %v996_v38 = vadd.f32 %v995_v26, %v983_v37  ;;  %v1008_v39 = vpop.f32.mrf.mxu3  ;;  %v984_v17 = vpop.f32.mrf.mxu1 }
  0xcb   :  { %v1009_v41 = vadd.f32 %v1008_v39, %v996_v38 }
  0xd0   :  { %v997_v42 = vpop.f32.mrf.mxu2 }
  0xd1   :  { %v1010_v43 = vpop.f32.mrf.mxu3 }
  0xe0   :  { %v1021_v44 = vpop.f32.mrf.mxu0 }
  0xe1   :  { %v1034_v45 = vpop.f32.mrf.mxu1  ;;  %v1022_v5 = vadd.f32 %v1021_v44, %v1009_v41 }
  0xe2   :  { %v1035_v61 = vadd.f32 %v1034_v45, %v163_v19 }
  0xe3   :  { %v1142_v10 = vmax.f32 %v1022_v5, 0.0 }
  0xe8   :  { %v1023_v46 = vpop.f32.mrf.mxu0  ;;  %v1047_v47 = vpop.f32.mrf.mxu2 }
  0xe9   :  { %v1036_v48 = vpop.f32.mrf.mxu1  ;;  %v1060_v49 = vpop.f32.mrf.mxu3  ;;  %v1048_v53 = vadd.f32 %v1047_v47, %v1035_v61 }
  0xeb   :  { %v1061_v58 = vadd.f32 %v1060_v49, %v1048_v53 }
  0xf0   :  { %v1049_v50 = vpop.f32.mrf.mxu2 }
  0xf1   :  { %v1062_v51 = vpop.f32.mrf.mxu3 }
 0x100   :  { %v1073_v52 = vpop.f32.mrf.mxu0 }
 0x101   :  { %v1086_v59 = vpop.f32.mrf.mxu1  ;;  %v1074_v62 = vadd.f32 %v1073_v52, %v1061_v58 }
 0x103   :  { %v1087_v1 = vadd.f32 %v1086_v59, %v1074_v62 }
 0x108   :  { %v1099_v54 = vpop.f32.mrf.mxu2  ;;  %v1075_v55 = vpop.f32.mrf.mxu0 }
 0x109   :  { %v1088_v56 = vpop.f32.mrf.mxu1  ;;  %v1112_v57 = vpop.f32.mrf.mxu3  ;;  %v1100_v2 = vadd.f32 %v1099_v54, %v1087_v1 }
 0x10b   :  { %v1113_v3 = vadd.f32 %v1112_v57, %v1100_v2 }
 0x110   :  { %v1101_v63 = vpop.f32.mrf.mxu2 }
 0x111   :  { %v1114_v0 = vpop.f32.mrf.mxu3 }
 0x120   :  { %v1125_v4 = vpop.f32.mrf.mxu0 }
 0x121   :  { %v1126_v6 = vadd.f32 %v1125_v4, %v1113_v3  ;;  %v1138_v7 = vpop.f32.mrf.mxu1 }
 0x123   :  { %v1139_v9 = vadd.f32 %v1138_v7, %v1126_v6 }
 0x125   :  { %v1143_v11 = vmax.f32 %v1139_v9, 0.0 }
 0x127   :  { %v1144_v12 = vpack.c.bf16 %v1143_v11, %v1142_v10 }
 0x128   :  { %v1127_v13 = vpop.f32.mrf.mxu0 }
 0x129   :  { %v1146_v14 = vrot.slane %v1144_v12, 3  ;;  %v1140_v15 = vpop.f32.mrf.mxu1 }
 0x12b   :  { %v1150_v16 = vsel %vm1147_vm0, %v1144_v12, %v1146_v14 }
 0x12c   :  { %1152 = vst [vmem:[%s2812_s3] sm:$0x3] %v1150_v16 }

// kernel: unet_forward.27
= control target key start
LH: loop header
LB: loop body
LE: loop exit
PB: predicated region body
PF: predicated region fallthrough
CT: control target
= control target key end

     0   :  { %8 = vsyncpa [#allocation3], 0  ;;  %s275_s15 = smov [#allocation2]   ;;  %s276_s17 = smov 128   ;;  %s310_s0 = inlined_call_operand.vmem [shape: bf16[8,128], index: 0, kind: input, shape index: {}]   ;;  %s311_s1 = inlined_call_operand.hbm [shape: bf16[128,256], index: 1, kind: input, shape index: {}]   ;;  %s312_s2 = inlined_call_operand.vmem [shape: f32[1,256], index: 2, kind: input, shape index: {}]   ;;  %s313_s3 = inlined_call_operand.vmem [shape: bf16[8,256], index: 3, kind: output, shape index: {}]  }
   0x1   :  { %s15_s14 = sshll.u32 %s311_s1, 4  ;;  %s17_s16 = sshll.u32 %s275_s15, 4  ;;  %s16_s14 = int_to_ptr.hbm [resolvable:$true] %s15_s14  ;;  %s18_s16 = int_to_ptr.vmem [resolvable:$true] %s17_s16 }
   0x2   :  { %s277_s18 = smov 8  }
   0x3   :  { %23 = dma.hbm_to_vmem [thread:$0]  %s16_s14, 2048, %s18_s16, [#allocation3], %s276_s17, %s276_s17, %s277_s18  }
   0x4   :  { %273 = dma.done.wait [#allocation3], 2048  }
   0x5   :  { %274 = vsyncadd [#allocation3], 4294965248  ;;  %v224_v0 = vld [vmem:[#allocation2 + $0x70] sm:$0xf]  ;;  %v245_v1 = vld [vmem:[#allocation2 + $0x74] sm:$0xf0] }
   0x6   :  { %v244_v2 = vld [vmem:[#allocation2 + $0x74] sm:$0xf]  ;;  %v225_v3 = vor.u32 %v245_v1, %v224_v0  ;;  %v226_v4 = vld [vmem:[#allocation2 + $0x78] sm:$0xf0]  ;;  %v216_v5 = vld [vmem:[#allocation2 + $0x60] sm:$0xf] }
   0x7   :  { %v243_v6 = vld [vmem:[#allocation2 + $0x64] sm:$0xf0]  ;;  %v229_v7 = vor.u32 %v244_v2, %v226_v4  ;;  %v242_v8 = vld [vmem:[#allocation2 + $0x64] sm:$0xf]  ;;  %v218_v9 = vld [vmem:[#allocation2 + $0x68] sm:$0xf0] }
   0x8   :  { %133 = vmatpush.bf16.msra.mxu0 %v225_v3  ;;  %v217_v10 = vor.u32 %v243_v6, %v216_v5  ;;  %v221_v11 = vor.u32 %v242_v8, %v218_v9  ;;  %v208_v12 = vld [vmem:[#allocation2 + $0x50] sm:$0xf]  ;;  %v241_v13 = vld [vmem:[#allocation2 + $0x54] sm:$0xf0]  ;;  %v240_v14 = vld [vmem:[#allocation2 + $0x54] sm:$0xf] }
   0x9   :  { %146 = vmatpush.bf16.msra.mxu1 %v229_v7  ;;  %v210_v15 = vld [vmem:[#allocation2 + $0x58] sm:$0xf0]  ;;  %v209_v16 = vor.u32 %v241_v13, %v208_v12  ;;  %v200_v18 = vld [vmem:[#allocation2 + $0x40] sm:$0xf]  ;;  %v239_v19 = vld [vmem:[#allocation2 + $0x44] sm:$0xf0] }
   0xa   :  { %v213_v17 = vor.u32 %v240_v14, %v210_v15  ;;  %v238_v20 = vld [vmem:[#allocation2 + $0x44] sm:$0xf]  ;;  %v202_v21 = vld [vmem:[#allocation2 + $0x48] sm:$0xf0]  ;;  %v201_v22 = vor.u32 %v239_v19, %v200_v18  ;;  %v192_v24 = vld [vmem:[#allocation2 + $0x30] sm:$0xf] }
   0xb   :  { %v205_v23 = vor.u32 %v238_v20, %v202_v21  ;;  %v237_v25 = vld [vmem:[#allocation2 + $0x34] sm:$0xf0]  ;;  %v236_v26 = vld [vmem:[#allocation2 + $0x34] sm:$0xf]  ;;  %v194_v27 = vld [vmem:[#allocation2 + $0x38] sm:$0xf0] }
   0xc   :  { %134 = vmatpush.bf16.msra.mxu0 %v217_v10  ;;  %v193_v28 = vor.u32 %v237_v25, %v192_v24  ;;  %v197_v29 = vor.u32 %v236_v26, %v194_v27  ;;  %v184_v30 = vld [vmem:[#allocation2 + $0x20] sm:$0xf]  ;;  %v235_v31 = vld [vmem:[#allocation2 + $0x24] sm:$0xf0]  ;;  %v234_v32 = vld [vmem:[#allocation2 + $0x24] sm:$0xf] }
   0xd   :  { %147 = vmatpush.bf16.msra.mxu1 %v221_v11  ;;  %v186_v33 = vld [vmem:[#allocation2 + $0x28] sm:$0xf0]  ;;  %v185_v34 = vor.u32 %v235_v31, %v184_v30  ;;  %v176_v36 = vld [vmem:[#allocation2 + $0x10] sm:$0xf]  ;;  %v233_v37 = vld [vmem:[#allocation2 + $0x14] sm:$0xf0] }
   0xe   :  { %v189_v35 = vor.u32 %v234_v32, %v186_v33  ;;  %v232_v38 = vld [vmem:[#allocation2 + $0x14] sm:$0xf]  ;;  %v178_v39 = vld [vmem:[#allocation2 + $0x18] sm:$0xf0]  ;;  %v177_v40 = vor.u32 %v233_v37, %v176_v36  ;;  %v168_v42 = vld [vmem:[#allocation2] sm:$0xf] }
   0xf   :  { %v181_v41 = vor.u32 %v232_v38, %v178_v39  ;;  %v231_v43 = vld [vmem:[#allocation2 + $0x4] sm:$0xf0]  ;;  %v230_v44 = vld [vmem:[#allocation2 + $0x4] sm:$0xf]  ;;  %v170_v45 = vld [vmem:[#allocation2 + $0x8] sm:$0xf0] }
  0x10   :  { %135 = vmatpush.bf16.msra.mxu0 %v209_v16  ;;  %v169_v46 = vor.u32 %v231_v43, %v168_v42  ;;  %v173_v47 = vor.u32 %v230_v44, %v170_v45  ;;  %v30_v48 = vld [vmem:[%s310_s0] sm:$0xf] }
  0x11   :  { %148 = vmatpush.bf16.msra.mxu1 %v213_v17  ;;  %v47_v49 = vld [vmem:[%s312_s2] sm:$0x3] }
  0x12   :  { %v49_v50 = vperm.slane %v47_v49, 0  ;;  %v50_v51 = vperm.slane %v47_v49, 1 }
  0x14   :  { %136 = vmatpush.bf16.msra.mxu0 %v201_v22 }
  0x15   :  { %149 = vmatpush.bf16.msra.mxu1 %v205_v23 }
  0x18   :  { %137 = vmatpush.bf16.msra.mxu0 %v193_v28 }
  0x19   :  { %150 = vmatpush.bf16.msra.mxu1 %v197_v29 }
  0x1c   :  { %138 = vmatpush.bf16.msra.mxu0 %v185_v34 }
  0x1d   :  { %151 = vmatpush.bf16.msra.mxu1 %v189_v35 }
  0x20   :  { %139 = vmatpush.bf16.msra.mxu0 %v177_v40 }
  0x21   :  { %152 = vmatpush.bf16.msra.mxu1 %v181_v41 }
  0x24   :  { %140 = vmatpush.bf16.msra.mxu0 %v169_v46 }
  0x25   :  { %153 = vmatpush.bf16.msra.mxu1 %v173_v47 }
  0x27   :  { %141 = vmatmul.bf16.vlgmr.msra.gmra.mxu0 %v30_v48 }
  0x28   :  { %154 = vmatmul.bf16.vlgmr.msra.gmra.mxu1 %v30_v48 }
  0xa4   :  { %v142_v52 = vpop.f32.mrf.mxu0 }
  0xa5   :  { %v143_v53 = vadd.f32 %v142_v52, %v49_v50  ;;  %v155_v54 = vpop.f32.mrf.mxu1 }
  0xa6   :  { %v156_v55 = vadd.f32 %v155_v54, %v50_v51 }
  0xa8   :  { %v159_v56 = vpack.c.bf16 %v156_v55, %v143_v53 }
  0xaa   :  { %160 = vst [vmem:[%s313_s3] sm:$0xff] %v159_v56 }
  0xac   :  { %v144_v57 = vpop.f32.mrf.mxu0 }
  0xad   :  { %v157_v58 = vpop.f32.mrf.mxu1 }
  0xae   :  { %165 = vsyncpa [#allocation3], 1 }

// kernel: unet_forward.25
= control target key start
LH: loop header
LB: loop body
LE: loop exit
PB: predicated region body
PF: predicated region fallthrough
CT: control target
= control target key end

     0   :  { %8 = vsyncpa [#allocation3], 0  ;;  %s908_s15 = smov [#allocation2]   ;;  %s909_s17 = smov 256   ;;  %s955_s0 = inlined_call_operand.vmem [shape: bf16[2,256], index: 0, kind: input, shape index: {}]   ;;  %s956_s1 = inlined_call_operand.hbm [shape: bf16[256,512], index: 1, kind: input, shape index: {}]   ;;  %s957_s2 = inlined_call_operand.vmem [shape: f32[1,512], index: 2, kind: input, shape index: {}]   ;;  %s958_s3 = inlined_call_operand.vmem [shape: bf16[2,512], index: 3, kind: output, shape index: {}]  }
   0x1   :  { %s15_s14 = sshll.u32 %s956_s1, 4  ;;  %s17_s16 = sshll.u32 %s908_s15, 4  ;;  %s16_s14 = int_to_ptr.hbm [resolvable:$true] %s15_s14  ;;  %s18_s16 = int_to_ptr.vmem [resolvable:$true] %s17_s16 }
   0x2   :  { %s910_s18 = smov 16  }
   0x3   :  { %23 = dma.hbm_to_vmem [thread:$0]  %s16_s14, 8192, %s18_s16, [#allocation3], %s909_s17, %s909_s17, %s910_s18  }
   0x4   :  { %906 = dma.done.wait [#allocation3], 8192  }
   0x5   :  { %907 = vsyncadd [#allocation3], 4294959104  ;;  %v673_v0 = vld [vmem:[#allocation2 + $0xe0] sm:$0xf]  ;;  %v845_v1 = vld [vmem:[#allocation2 + $0xec] sm:$0xf0] }
   0x6   :  { %v801_v2 = vld [vmem:[#allocation2 + $0x1e0] sm:$0xf]  ;;  %v674_v3 = vor.u32 %v845_v1, %v673_v0  ;;  %v877_v4 = vld [vmem:[#allocation2 + $0x1ec] sm:$0xf0]  ;;  %v843_v5 = vld [vmem:[#allocation2 + $0xe4] sm:$0xf] }
   0x7   :  { %v675_v6 = vld [vmem:[#allocation2 + $0xf0] sm:$0xf0]  ;;  %v802_v7 = vor.u32 %v877_v4, %v801_v2  ;;  %v875_v9 = vld [vmem:[#allocation2 + $0x1e4] sm:$0xf]  ;;  %v657_v11 = vld [vmem:[#allocation2 + $0xc0] sm:$0xf] }
   0x8   :  { %v678_v8 = vor.u32 %v843_v5, %v675_v6  ;;  %v803_v10 = vld [vmem:[#allocation2 + $0x1f0] sm:$0xf0]  ;;  %431 = vmatpush.bf16.msra.mxu0 %v674_v3  ;;  %v841_v13 = vld [vmem:[#allocation2 + $0xcc] sm:$0xf0]  ;;  %v785_v14 = vld [vmem:[#allocation2 + $0x1c0] sm:$0xf] }
   0x9   :  { %v806_v12 = vor.u32 %v875_v9, %v803_v10  ;;  %v873_v15 = vld [vmem:[#allocation2 + $0x1cc] sm:$0xf0]  ;;  %444 = vmatpush.bf16.msra.mxu1 %v802_v7  ;;  %v658_v16 = vor.u32 %v841_v13, %v657_v11  ;;  %v839_v18 = vld [vmem:[#allocation2 + $0xc4] sm:$0xf]  ;;  %v659_v19 = vld [vmem:[#allocation2 + $0xd0] sm:$0xf0] }
   0xa   :  { %457 = vmatpush.bf16.msra.mxu2 %v678_v8  ;;  %v786_v17 = vor.u32 %v873_v15, %v785_v14  ;;  %v871_v20 = vld [vmem:[#allocation2 + $0x1c4] sm:$0xf]  ;;  %v662_v21 = vor.u32 %v839_v18, %v659_v19  ;;  %v787_v22 = vld [vmem:[#allocation2 + $0x1d0] sm:$0xf0]  ;;  %v641_v23 = vld [vmem:[#allocation2 + $0xa0] sm:$0xf] }
   0xb   :  { %470 = vmatpush.bf16.msra.mxu3 %v806_v12  ;;  %v837_v24 = vld [vmem:[#allocation2 + $0xac] sm:$0xf0]  ;;  %v790_v25 = vor.u32 %v871_v20, %v787_v22  ;;  %v769_v26 = vld [vmem:[#allocation2 + $0x1a0] sm:$0xf]  ;;  %v835_v28 = vld [vmem:[#allocation2 + $0xa4] sm:$0xf] }
   0xc   :  { %v869_v27 = vld [vmem:[#allocation2 + $0x1ac] sm:$0xf0]  ;;  %432 = vmatpush.bf16.msra.mxu0 %v658_v16  ;;  %v642_v29 = vor.u32 %v837_v24, %v641_v23  ;;  %v643_v30 = vld [vmem:[#allocation2 + $0xb0] sm:$0xf0]  ;;  %v867_v31 = vld [vmem:[#allocation2 + $0x1a4] sm:$0xf] }
   0xd   :  { %v771_v32 = vld [vmem:[#allocation2 + $0x1b0] sm:$0xf0]  ;;  %445 = vmatpush.bf16.msra.mxu1 %v786_v17  ;;  %v770_v33 = vor.u32 %v869_v27, %v769_v26  ;;  %v646_v34 = vor.u32 %v835_v28, %v643_v30  ;;  %v625_v35 = vld [vmem:[#allocation2 + $0x80] sm:$0xf]  ;;  %v833_v36 = vld [vmem:[#allocation2 + $0x8c] sm:$0xf0] }
   0xe   :  { %458 = vmatpush.bf16.msra.mxu2 %v662_v21  ;;  %v753_v37 = vld [vmem:[#allocation2 + $0x180] sm:$0xf]  ;;  %v774_v38 = vor.u32 %v867_v31, %v771_v32  ;;  %v865_v39 = vld [vmem:[#allocation2 + $0x18c] sm:$0xf0]  ;;  %v831_v40 = vld [vmem:[#allocation2 + $0x84] sm:$0xf]  ;;  %v626_v44 = vor.u32 %v833_v36, %v625_v35 }
   0xf   :  { %471 = vmatpush.bf16.msra.mxu3 %v790_v25  ;;  %v627_v41 = vld [vmem:[#allocation2 + $0x90] sm:$0xf0]  ;;  %v863_v42 = vld [vmem:[#allocation2 + $0x184] sm:$0xf]  ;;  %v754_v45 = vor.u32 %v865_v39, %v753_v37  ;;  %v609_v47 = vld [vmem:[#allocation2 + $0x60] sm:$0xf] }
  0x10   :  { %v755_v43 = vld [vmem:[#allocation2 + $0x190] sm:$0xf0]  ;;  %433 = vmatpush.bf16.msra.mxu0 %v642_v29  ;;  %v630_v46 = vor.u32 %v831_v40, %v627_v41  ;;  %v829_v48 = vld [vmem:[#allocation2 + $0x6c] sm:$0xf0]  ;;  %v737_v49 = vld [vmem:[#allocation2 + $0x160] sm:$0xf] }
  0x11   :  { %446 = vmatpush.bf16.msra.mxu1 %v770_v33  ;;  %v758_v50 = vor.u32 %v863_v42, %v755_v43  ;;  %v861_v51 = vld [vmem:[#allocation2 + $0x16c] sm:$0xf0]  ;;  %v827_v52 = vld [vmem:[#allocation2 + $0x64] sm:$0xf]  ;;  %v611_v53 = vld [vmem:[#allocation2 + $0x70] sm:$0xf0]  ;;  %v610_v56 = vor.u32 %v829_v48, %v609_v47 }
  0x12   :  { %459 = vmatpush.bf16.msra.mxu2 %v646_v34  ;;  %v859_v54 = vld [vmem:[#allocation2 + $0x164] sm:$0xf]  ;;  %v739_v55 = vld [vmem:[#allocation2 + $0x170] sm:$0xf0]  ;;  %v738_v57 = vor.u32 %v861_v51, %v737_v49  ;;  %v614_v58 = vor.u32 %v827_v52, %v611_v53  ;;  %v593_v59 = vld [vmem:[#allocation2 + $0x40] sm:$0xf] }
  0x13   :  { %472 = vmatpush.bf16.msra.mxu3 %v774_v38  ;;  %v825_v60 = vld [vmem:[#allocation2 + $0x4c] sm:$0xf0]  ;;  %v721_v61 = vld [vmem:[#allocation2 + $0x140] sm:$0xf]  ;;  %v742_v62 = vor.u32 %v859_v54, %v739_v55  ;;  %v823_v0 = vld [vmem:[#allocation2 + $0x44] sm:$0xf] }
  0x14   :  { %434 = vmatpush.bf16.msra.mxu0 %v626_v44  ;;  %v857_v63 = vld [vmem:[#allocation2 + $0x14c] sm:$0xf0]  ;;  %v595_v1 = vld [vmem:[#allocation2 + $0x50] sm:$0xf0]  ;;  %v855_v2 = vld [vmem:[#allocation2 + $0x144] sm:$0xf]  ;;  %v594_v4 = vor.u32 %v825_v60, %v593_v59 }
  0x15   :  { %447 = vmatpush.bf16.msra.mxu1 %v754_v45  ;;  %v723_v3 = vld [vmem:[#allocation2 + $0x150] sm:$0xf0]  ;;  %v722_v5 = vor.u32 %v857_v63, %v721_v61  ;;  %v598_v6 = vor.u32 %v823_v0, %v595_v1  ;;  %v577_v7 = vld [vmem:[#allocation2 + $0x20] sm:$0xf]  ;;  %v821_v8 = vld [vmem:[#allocation2 + $0x2c] sm:$0xf0] }
  0x16   :  { %460 = vmatpush.bf16.msra.mxu2 %v630_v46  ;;  %v705_v9 = vld [vmem:[#allocation2 + $0x120] sm:$0xf]  ;;  %v726_v10 = vor.u32 %v855_v2, %v723_v3  ;;  %v853_v11 = vld [vmem:[#allocation2 + $0x12c] sm:$0xf0]  ;;  %v819_v12 = vld [vmem:[#allocation2 + $0x24] sm:$0xf]  ;;  %v578_v17 = vor.u32 %v821_v8, %v577_v7 }
  0x17   :  { %473 = vmatpush.bf16.msra.mxu3 %v758_v50  ;;  %v579_v13 = vld [vmem:[#allocation2 + $0x30] sm:$0xf0]  ;;  %v851_v14 = vld [vmem:[#allocation2 + $0x124] sm:$0xf]  ;;  %v561_v16 = vld [vmem:[#allocation2] sm:$0xf]  ;;  %v706_v21 = vor.u32 %v853_v11, %v705_v9 }
  0x18   :  { %435 = vmatpush.bf16.msra.mxu0 %v610_v56  ;;  %v707_v15 = vld [vmem:[#allocation2 + $0x130] sm:$0xf0]  ;;  %v817_v18 = vld [vmem:[#allocation2 + $0xc] sm:$0xf0]  ;;  %v689_v19 = vld [vmem:[#allocation2 + $0x100] sm:$0xf]  ;;  %v582_v22 = vor.u32 %v819_v12, %v579_v13 }
  0x19   :  { %448 = vmatpush.bf16.msra.mxu1 %v738_v57  ;;  %v849_v20 = vld [vmem:[#allocation2 + $0x10c] sm:$0xf0]  ;;  %v815_v23 = vld [vmem:[#allocation2 + $0x4] sm:$0xf]  ;;  %v563_v24 = vld [vmem:[#allocation2 + $0x10] sm:$0xf0]  ;;  %v710_v26 = vor.u32 %v851_v14, %v707_v15  ;;  %v562_v33 = vor.u32 %v817_v18, %v561_v16 }
  0x1a   :  { %461 = vmatpush.bf16.msra.mxu2 %v614_v58  ;;  %v847_v25 = vld [vmem:[#allocation2 + $0x104] sm:$0xf]  ;;  %v691_v27 = vld [vmem:[#allocation2 + $0x110] sm:$0xf0]  ;;  %v681_v28 = vld [vmem:[#allocation2 + $0xe8] sm:$0xf]  ;;  %v690_v36 = vor.u32 %v849_v20, %v689_v19  ;;  %v566_v37 = vor.u32 %v815_v23, %v563_v24 }
  0x1b   :  { %474 = vmatpush.bf16.msra.mxu3 %v742_v62  ;;  %v846_v29 = vld [vmem:[#allocation2 + $0xf4] sm:$0xf0]  ;;  %v809_v30 = vld [vmem:[#allocation2 + $0x1e8] sm:$0xf]  ;;  %v844_v34 = vld [vmem:[#allocation2 + $0xec] sm:$0xf]  ;;  %v694_v40 = vor.u32 %v847_v25, %v691_v27 }
  0x1c   :  { %436 = vmatpush.bf16.msra.mxu0 %v594_v4  ;;  %v878_v31 = vld [vmem:[#allocation2 + $0x1f4] sm:$0xf0]  ;;  %v683_v35 = vld [vmem:[#allocation2 + $0xf8] sm:$0xf0]  ;;  %v876_v38 = vld [vmem:[#allocation2 + $0x1ec] sm:$0xf]  ;;  %v682_v41 = vor.u32 %v846_v29, %v681_v28 }
  0x1d   :  { %449 = vmatpush.bf16.msra.mxu1 %v722_v5  ;;  %v30_v32 = vld [vmem:[%s955_s0] sm:$0x3]  ;;  %v811_v39 = vld [vmem:[#allocation2 + $0x1f8] sm:$0xf0]  ;;  %v810_v42 = vor.u32 %v878_v31, %v809_v30  ;;  %v686_v43 = vor.u32 %v844_v34, %v683_v35  ;;  %v665_v44 = vld [vmem:[#allocation2 + $0xc8] sm:$0xf] }
  0x1e   :  { %462 = vmatpush.bf16.msra.mxu2 %v598_v6  ;;  %106 = vst [vmem:[#allocation1] ss:$9 sm:$0xff] %v30_v32  ;;  %v842_v45 = vld [vmem:[#allocation2 + $0xd4] sm:$0xf0]  ;;  %v793_v46 = vld [vmem:[#allocation2 + $0x1c8] sm:$0xf]  ;;  %v814_v47 = vor.u32 %v876_v38, %v811_v39 }
  0x1f   :  { %475 = vmatpush.bf16.msra.mxu3 %v726_v10  ;;  %v874_v48 = vld [vmem:[#allocation2 + $0x1d4] sm:$0xf0]  ;;  %v840_v49 = vld [vmem:[#allocation2 + $0xcc] sm:$0xf]  ;;  %v667_v50 = vld [vmem:[#allocation2 + $0xd8] sm:$0xf0]  ;;  %v666_v53 = vor.u32 %v842_v45, %v665_v44 }
  0x20   :  { %437 = vmatpush.bf16.msra.mxu0 %v578_v17  ;;  %v872_v51 = vld [vmem:[#allocation2 + $0x1cc] sm:$0xf]  ;;  %v795_v52 = vld [vmem:[#allocation2 + $0x1d8] sm:$0xf0]  ;;  %v649_v54 = vld [vmem:[#allocation2 + $0xa8] sm:$0xf]  ;;  %v794_v56 = vor.u32 %v874_v48, %v793_v46  ;;  %v670_v57 = vor.u32 %v840_v49, %v667_v50 }
  0x21   :  { %450 = vmatpush.bf16.msra.mxu1 %v706_v21  ;;  %v838_v55 = vld [vmem:[#allocation2 + $0xb4] sm:$0xf0]  ;;  %v777_v59 = vld [vmem:[#allocation2 + $0x1a8] sm:$0xf]  ;;  %v798_v61 = vor.u32 %v872_v51, %v795_v52  ;;  %v836_v63 = vld [vmem:[#allocation2 + $0xac] sm:$0xf] }
  0x22   :  { %463 = vmatpush.bf16.msra.mxu2 %v582_v22  ;;  %v870_v62 = vld [vmem:[#allocation2 + $0x1b4] sm:$0xf0]  ;;  %v651_v0 = vld [vmem:[#allocation2 + $0xb8] sm:$0xf0]  ;;  %v868_v1 = vld [vmem:[#allocation2 + $0x1ac] sm:$0xf]  ;;  %v650_v3 = vor.u32 %v838_v55, %v649_v54 }
  0x23   :  { %476 = vmatpush.bf16.msra.mxu3 %v710_v26  ;;  %v779_v2 = vld [vmem:[#allocation2 + $0x1b8] sm:$0xf0]  ;;  %v778_v4 = vor.u32 %v870_v62, %v777_v59  ;;  %v654_v5 = vor.u32 %v836_v63, %v651_v0  ;;  %v633_v6 = vld [vmem:[#allocation2 + $0x88] sm:$0xf]  ;;  %v834_v7 = vld [vmem:[#allocation2 + $0x94] sm:$0xf0] }
  0x24   :  { %438 = vmatpush.bf16.msra.mxu0 %v562_v33  ;;  %v761_v8 = vld [vmem:[#allocation2 + $0x188] sm:$0xf]  ;;  %v782_v9 = vor.u32 %v868_v1, %v779_v2  ;;  %v866_v10 = vld [vmem:[#allocation2 + $0x194] sm:$0xf0]  ;;  %v832_v11 = vld [vmem:[#allocation2 + $0x8c] sm:$0xf]  ;;  %v634_v15 = vor.u32 %v834_v7, %v633_v6 }
  0x25   :  { %451 = vmatpush.bf16.msra.mxu1 %v690_v36  ;;  %v937_v58 = vld [vmem:[#allocation1] sm:$0xff]  ;;  %v939_v60 = vld [vmem:[#allocation1 + $0x9] sm:$0xff]  ;;  %v864_v13 = vld [vmem:[#allocation2 + $0x18c] sm:$0xf]  ;;  %v762_v16 = vor.u32 %v866_v10, %v761_v8  ;;  %vm542_vm0 = vcmask 1040384   ;;  %vm546_vm1 = vcmask 1042434  }
  0x26   :  { %464 = vmatpush.bf16.msra.mxu2 %v566_v37  ;;  %v635_v12 = vld [vmem:[#allocation2 + $0x98] sm:$0xf0]  ;;  %v617_v18 = vld [vmem:[#allocation2 + $0x68] sm:$0xf]  ;;  %v830_v19 = vld [vmem:[#allocation2 + $0x74] sm:$0xf0] }
  0x27   :  { %477 = vmatpush.bf16.msra.mxu3 %v694_v40  ;;  %439 = vmatmul.bf16.vlgmr.msra.gmra.mxu0 %v937_v58  ;;  %v763_v14 = vld [vmem:[#allocation2 + $0x198] sm:$0xf0]  ;;  %v638_v17 = vor.u32 %v832_v11, %v635_v12  ;;  %v745_v20 = vld [vmem:[#allocation2 + $0x168] sm:$0xf]  ;;  %v862_v22 = vld [vmem:[#allocation2 + $0x174] sm:$0xf0]  ;;  %v618_v27 = vor.u32 %v830_v19, %v617_v18 }
  0x28   :  { %483 = vmatpush.bf16.msrb.mxu0 %v682_v41  ;;  %452 = vmatmul.bf16.vlgmr.msra.gmra.mxu1 %v939_v60  ;;  %v766_v21 = vor.u32 %v864_v13, %v763_v14  ;;  %v828_v23 = vld [vmem:[#allocation2 + $0x6c] sm:$0xf]  ;;  %v619_v24 = vld [vmem:[#allocation2 + $0x78] sm:$0xf0]  ;;  %v746_v28 = vor.u32 %v862_v22, %v745_v20  ;;  %v601_v30 = vld [vmem:[#allocation2 + $0x48] sm:$0xf] }
  0x29   :  { %496 = vmatpush.bf16.msrb.mxu1 %v810_v42  ;;  %465 = vmatmul.bf16.vlgmr.msra.gmra.mxu2 %v937_v58  ;;  %v860_v25 = vld [vmem:[#allocation2 + $0x16c] sm:$0xf]  ;;  %v747_v26 = vld [vmem:[#allocation2 + $0x178] sm:$0xf0]  ;;  %v622_v29 = vor.u32 %v828_v23, %v619_v24  ;;  %v826_v31 = vld [vmem:[#allocation2 + $0x54] sm:$0xf0] }
  0x2a   :  { %509 = vmatpush.bf16.msrb.mxu2 %v686_v43  ;;  %478 = vmatmul.bf16.vlgmr.msra.gmra.mxu3 %v939_v60  ;;  %v729_v32 = vld [vmem:[#allocation2 + $0x148] sm:$0xf]  ;;  %v750_v33 = vor.u32 %v860_v25, %v747_v26  ;;  %v858_v34 = vld [vmem:[#allocation2 + $0x154] sm:$0xf0]  ;;  %v824_v35 = vld [vmem:[#allocation2 + $0x4c] sm:$0xf]  ;;  %v602_v39 = vor.u32 %v826_v31, %v601_v30 }
  0x2b   :  { %522 = vmatpush.bf16.msrb.mxu3 %v814_v47  ;;  %v603_v36 = vld [vmem:[#allocation2 + $0x58] sm:$0xf0]  ;;  %v856_v37 = vld [vmem:[#allocation2 + $0x14c] sm:$0xf]  ;;  %v730_v40 = vor.u32 %v858_v34, %v729_v32  ;;  %v585_v42 = vld [vmem:[#allocation2 + $0x28] sm:$0xf] }
  0x2c   :  { %484 = vmatpush.bf16.msrb.mxu0 %v666_v53  ;;  %v731_v38 = vld [vmem:[#allocation2 + $0x158] sm:$0xf0]  ;;  %v606_v41 = vor.u32 %v824_v35, %v603_v36  ;;  %v822_v43 = vld [vmem:[#allocation2 + $0x34] sm:$0xf0]  ;;  %v713_v44 = vld [vmem:[#allocation2 + $0x128] sm:$0xf] }
  0x2d   :  { %497 = vmatpush.bf16.msrb.mxu1 %v794_v56  ;;  %v734_v45 = vor.u32 %v856_v37, %v731_v38  ;;  %v854_v46 = vld [vmem:[#allocation2 + $0x134] sm:$0xf0]  ;;  %v820_v47 = vld [vmem:[#allocation2 + $0x2c] sm:$0xf]  ;;  %v587_v48 = vld [vmem:[#allocation2 + $0x38] sm:$0xf0]  ;;  %v586_v51 = vor.u32 %v822_v43, %v585_v42 }
  0x2e   :  { %510 = vmatpush.bf16.msrb.mxu2 %v670_v57  ;;  %v852_v49 = vld [vmem:[#allocation2 + $0x12c] sm:$0xf]  ;;  %v715_v50 = vld [vmem:[#allocation2 + $0x138] sm:$0xf0]  ;;  %v714_v52 = vor.u32 %v854_v46, %v713_v44  ;;  %v590_v53 = vor.u32 %v820_v47, %v587_v48  ;;  %v569_v54 = vld [vmem:[#allocation2 + $0x8] sm:$0xf] }
  0x2f   :  { %523 = vmatpush.bf16.msrb.mxu3 %v798_v61  ;;  %v818_v55 = vld [vmem:[#allocation2 + $0x14] sm:$0xf0]  ;;  %v697_v56 = vld [vmem:[#allocation2 + $0x108] sm:$0xf]  ;;  %v718_v57 = vor.u32 %v852_v49, %v715_v50  ;;  %v816_v61 = vld [vmem:[#allocation2 + $0xc] sm:$0xf] }
  0x30   :  { %485 = vmatpush.bf16.msrb.mxu0 %v650_v3  ;;  %v850_v59 = vld [vmem:[#allocation2 + $0x114] sm:$0xf0]  ;;  %v571_v62 = vld [vmem:[#allocation2 + $0x18] sm:$0xf0]  ;;  %v848_v63 = vld [vmem:[#allocation2 + $0x10c] sm:$0xf]  ;;  %v570_v1 = vor.u32 %v818_v55, %v569_v54 }
  0x31   :  { %498 = vmatpush.bf16.msrb.mxu1 %v778_v4  ;;  %v699_v0 = vld [vmem:[#allocation2 + $0x118] sm:$0xf0]  ;;  %v698_v2 = vor.u32 %v850_v59, %v697_v56  ;;  %v574_v3 = vor.u32 %v816_v61, %v571_v62  ;;  %v95_v13 = vld [vmem:[%s957_s2] sm:$0xf]  ;;  %vm550_vm2 = vcmask 1041408  }
  0x32   :  { %511 = vmatpush.bf16.msrb.mxu2 %v654_v5  ;;  %v702_v4 = vor.u32 %v848_v63, %v699_v0  ;;  %v97_v14 = vperm.slane %v95_v13, 0  ;;  %v99_v18 = vperm.slane %v95_v13, 2  ;;  %v100_v22 = vperm.slane %v95_v13, 3 }
  0x33   :  { %524 = vmatpush.bf16.msrb.mxu3 %v782_v9 }
  0x34   :  { %486 = vmatpush.bf16.msrb.mxu0 %v634_v15  ;;  %v98_v15 = vperm.slane %v95_v13, 1 }
  0x35   :  { %499 = vmatpush.bf16.msrb.mxu1 %v762_v16 }
  0x36   :  { %512 = vmatpush.bf16.msrb.mxu2 %v638_v17 }
  0x37   :  { %525 = vmatpush.bf16.msrb.mxu3 %v766_v21 }
  0x38   :  { %487 = vmatpush.bf16.msrb.mxu0 %v618_v27 }
  0x39   :  { %500 = vmatpush.bf16.msrb.mxu1 %v746_v28 }
  0x3a   :  { %513 = vmatpush.bf16.msrb.mxu2 %v622_v29 }
  0x3b   :  { %526 = vmatpush.bf16.msrb.mxu3 %v750_v33 }
  0x3c   :  { %488 = vmatpush.bf16.msrb.mxu0 %v602_v39 }
  0x3d   :  { %501 = vmatpush.bf16.msrb.mxu1 %v730_v40 }
  0x3e   :  { %514 = vmatpush.bf16.msrb.mxu2 %v606_v41 }
  0x3f   :  { %527 = vmatpush.bf16.msrb.mxu3 %v734_v45 }
  0x40   :  { %489 = vmatpush.bf16.msrb.mxu0 %v586_v51 }
  0x41   :  { %502 = vmatpush.bf16.msrb.mxu1 %v714_v52 }
  0x42   :  { %515 = vmatpush.bf16.msrb.mxu2 %v590_v53 }
  0x43   :  { %528 = vmatpush.bf16.msrb.mxu3 %v718_v57 }
  0x44   :  { %490 = vmatpush.bf16.msrb.mxu0 %v570_v1 }
  0x45   :  { %503 = vmatpush.bf16.msrb.mxu1 %v698_v2 }
  0x46   :  { %516 = vmatpush.bf16.msrb.mxu2 %v574_v3 }
  0x47   :  { %529 = vmatpush.bf16.msrb.mxu3 %v702_v4  ;;  %491 = vmatmul.bf16.vlgmr.msrb.gmra.mxu0 %v937_v58 }
  0x48   :  { %504 = vmatmul.bf16.vlgmr.msrb.gmra.mxu1 %v939_v60 }
  0x49   :  { %517 = vmatmul.bf16.vlgmr.msrb.gmra.mxu2 %v937_v58 }
  0x4a   :  { %530 = vmatmul.bf16.vlgmr.msrb.gmra.mxu3 %v939_v60 }
  0xa4   :  { %v440_v5 = vpop.f32.mrf.mxu0 }
  0xa5   :  { %v453_v6 = vpop.f32.mrf.mxu1  ;;  %v441_v16 = vadd.f32 %v440_v5, %v97_v14 }
  0xa7   :  { %v454_v60 = vadd.f32 %v453_v6, %v441_v16 }
  0xac   :  { %v466_v7 = vpop.f32.mrf.mxu2  ;;  %v442_v9 = vpop.f32.mrf.mxu0 }
  0xad   :  { %v479_v8 = vpop.f32.mrf.mxu3  ;;  %v455_v10 = vpop.f32.mrf.mxu1  ;;  %v467_v17 = vadd.f32 %v466_v7, %v98_v15 }
  0xaf   :  { %v480_v20 = vadd.f32 %v479_v8, %v467_v17 }
  0xb1   :  { %v535_v24 = vpack.c.bf16 %v480_v20, %v454_v60 }
  0xb3   :  { %v539_v31 = vrot.slane %v535_v24, 3 }
  0xb4   :  { %v468_v11 = vpop.f32.mrf.mxu2 }
  0xb5   :  { %v481_v12 = vpop.f32.mrf.mxu3  ;;  %v545_v36 = vsel %vm542_vm0, %v535_v24, %v539_v31 }
  0xc4   :  { %v492_v58 = vpop.f32.mrf.mxu0 }
  0xc5   :  { %v505_v19 = vpop.f32.mrf.mxu1  ;;  %v493_v21 = vadd.f32 %v492_v58, %v99_v18 }
  0xc7   :  { %v506_v25 = vadd.f32 %v505_v19, %v493_v21 }
  0xcc   :  { %v518_v23 = vpop.f32.mrf.mxu2  ;;  %v494_v28 = vpop.f32.mrf.mxu0 }
  0xcd   :  { %v519_v26 = vadd.f32 %v518_v23, %v100_v22  ;;  %v531_v27 = vpop.f32.mrf.mxu3  ;;  %v507_v29 = vpop.f32.mrf.mxu1 }
  0xcf   :  { %v532_v30 = vadd.f32 %v531_v27, %v519_v26 }
  0xd1   :  { %v536_v32 = vpack.c.bf16 %v532_v30, %v506_v25 }
  0xd3   :  { %v540_v33 = vrot.slane %v536_v32, 6  ;;  %v541_v34 = vrot.slane %v536_v32, 1 }
  0xd4   :  { %v520_v35 = vpop.f32.mrf.mxu2 }
  0xd5   :  { %v549_v37 = vsel %vm546_vm1, %v540_v33, %v541_v34  ;;  %v533_v38 = vpop.f32.mrf.mxu3 }
  0xd6   :  { %v551_v39 = vsel %vm550_vm2, %v545_v36, %v549_v37 }
  0xd7   :  { %553 = vst [vmem:[%s958_s3] sm:$0xf] %v551_v39 }
  0xd8   :  { %558 = vsyncpa [#allocation3], 1 }

// kernel: unet_forward.28
= control target key start
LH: loop header
LB: loop body
LE: loop exit
PB: predicated region body
PF: predicated region fallthrough
CT: control target
= control target key end

     0   :  { %8 = vsyncpa [#allocation3], 0  ;;  %s781_s15 = smov [#allocation2]   ;;  %s782_s17 = smov 64   ;;  %s876_s0 = inlined_call_operand.vmem [shape: bf16[32,576], index: 0, kind: input, shape index: {}]   ;;  %s877_s1 = inlined_call_operand.hbm [shape: bf16[576,128], index: 1, kind: input, shape index: {}]   ;;  %s878_s2 = inlined_call_operand.vmem [shape: f32[1,128], index: 2, kind: input, shape index: {}]   ;;  %s879_s3 = inlined_call_operand.vmem [shape: bf16[32,128], index: 3, kind: output, shape index: {}]  }
   0x1   :  { %s15_s14 = sshll.u32 %s877_s1, 4  ;;  %s17_s16 = sshll.u32 %s781_s15, 4  ;;  %s16_s14 = int_to_ptr.hbm [resolvable:$true] %s15_s14  ;;  %s18_s16 = int_to_ptr.vmem [resolvable:$true] %s17_s16 }
   0x2   :  { %s783_s18 = smov 4  }
   0x3   :  { %23 = dma.hbm_to_vmem [thread:$0]  %s16_s14, 4608, %s18_s16, [#allocation3], %s782_s17, %s782_s17, %s783_s18  }
   0x4   :  { %779 = dma.done.wait [#allocation3], 4608  }
   0x5   :  { %780 = vsyncadd [#allocation3], 4294962688  ;;  %v707_v0 = vld [vmem:[#allocation2 + $0x38] sm:$0xff]  ;;  %v706_v4 = vld [vmem:[#allocation2 + $0x30] sm:$0xff]  ;;  %vm385_vm0 = vcmask 523264  }
   0x6   :  { %v715_v1 = vld [vmem:[#allocation2 + $0x78] sm:$0xff]  ;;  %392 = vmatpush.bf16.msra.mxu0 %v707_v0  ;;  %v714_v5 = vld [vmem:[#allocation2 + $0x70] sm:$0xff]  ;;  %v705_v8 = vld [vmem:[#allocation2 + $0x28] sm:$0xff] }
   0x7   :  { %v723_v2 = vld [vmem:[#allocation2 + $0xb8] sm:$0xff]  ;;  %411 = vmatpush.bf16.msra.mxu1 %v715_v1  ;;  %v722_v6 = vld [vmem:[#allocation2 + $0xb0] sm:$0xff]  ;;  %v713_v9 = vld [vmem:[#allocation2 + $0x68] sm:$0xff] }
   0x8   :  { %v731_v3 = vld [vmem:[#allocation2 + $0xf8] sm:$0xff]  ;;  %430 = vmatpush.bf16.msra.mxu2 %v723_v2  ;;  %v730_v7 = vld [vmem:[#allocation2 + $0xf0] sm:$0xff]  ;;  %v721_v10 = vld [vmem:[#allocation2 + $0xa8] sm:$0xff] }
   0x9   :  { %449 = vmatpush.bf16.msra.mxu3 %v731_v3  ;;  %v729_v11 = vld [vmem:[#allocation2 + $0xe8] sm:$0xff]  ;;  %v704_v12 = vld [vmem:[#allocation2 + $0x20] sm:$0xff]  ;;  %v703_v16 = vld [vmem:[#allocation2 + $0x18] sm:$0xff] }
   0xa   :  { %393 = vmatpush.bf16.msra.mxu0 %v706_v4  ;;  %v712_v13 = vld [vmem:[#allocation2 + $0x60] sm:$0xff]  ;;  %v711_v17 = vld [vmem:[#allocation2 + $0x58] sm:$0xff]  ;;  %v702_v20 = vld [vmem:[#allocation2 + $0x10] sm:$0xff] }
   0xb   :  { %412 = vmatpush.bf16.msra.mxu1 %v714_v5  ;;  %v720_v14 = vld [vmem:[#allocation2 + $0xa0] sm:$0xff]  ;;  %v719_v18 = vld [vmem:[#allocation2 + $0x98] sm:$0xff]  ;;  %v710_v21 = vld [vmem:[#allocation2 + $0x50] sm:$0xff] }
   0xc   :  { %431 = vmatpush.bf16.msra.mxu2 %v722_v6  ;;  %v728_v15 = vld [vmem:[#allocation2 + $0xe0] sm:$0xff]  ;;  %v727_v19 = vld [vmem:[#allocation2 + $0xd8] sm:$0xff]  ;;  %v718_v22 = vld [vmem:[#allocation2 + $0x90] sm:$0xff] }
   0xd   :  { %450 = vmatpush.bf16.msra.mxu3 %v730_v7  ;;  %v726_v23 = vld [vmem:[#allocation2 + $0xd0] sm:$0xff]  ;;  %v701_v24 = vld [vmem:[#allocation2 + $0x8] sm:$0xff]  ;;  %v700_v28 = vld [vmem:[#allocation2] sm:$0xff] }
   0xe   :  { %394 = vmatpush.bf16.msra.mxu0 %v705_v8  ;;  %v709_v25 = vld [vmem:[#allocation2 + $0x48] sm:$0xff]  ;;  %v708_v29 = vld [vmem:[#allocation2 + $0x40] sm:$0xff]  ;;  %v692_v33 = vld [vmem:[%s876_s0 + $0x10] sm:$0xf0] }
   0xf   :  { %413 = vmatpush.bf16.msra.mxu1 %v713_v9  ;;  %v717_v26 = vld [vmem:[#allocation2 + $0x88] sm:$0xff]  ;;  %v716_v30 = vld [vmem:[#allocation2 + $0x80] sm:$0xff]  ;;  %v508_v35 = vld [vmem:[%s876_s0 + $0x14] sm:$0xf0] }
  0x10   :  { %432 = vmatpush.bf16.msra.mxu2 %v721_v10  ;;  %v725_v27 = vld [vmem:[#allocation2 + $0xc8] sm:$0xff]  ;;  %v724_v31 = vld [vmem:[#allocation2 + $0xc0] sm:$0xff]  ;;  %v693_v37 = vld [vmem:[%s876_s0 + $0x18] sm:$0xf0] }
  0x11   :  { %451 = vmatpush.bf16.msra.mxu3 %v729_v11  ;;  %v506_v32 = vld [vmem:[%s876_s0] sm:$0xf]  ;;  %v690_v34 = vld [vmem:[%s876_s0 + $0x4] sm:$0xf]  ;;  %v514_v36 = vld [vmem:[%s876_s0 + $0x8] sm:$0xf] }
  0x12   :  { %395 = vmatpush.bf16.msra.mxu0 %v704_v12  ;;  %v691_v38 = vld [vmem:[%s876_s0 + $0xc] sm:$0xf]  ;;  %v516_v39 = vld [vmem:[%s876_s0 + $0x1c] sm:$0xf0]  ;;  %v735_v40 = vld [vmem:[#allocation2 + $0x118] sm:$0xff]  ;;  %v507_v41 = vor.u32 %v692_v33, %v506_v32  ;;  %v511_v42 = vor.u32 %v690_v34, %v508_v35  ;;  %v515_v43 = vor.u32 %v693_v37, %v514_v36 }
  0x13   :  { %414 = vmatpush.bf16.msra.mxu1 %v712_v13  ;;  %v519_v44 = vor.u32 %v691_v38, %v516_v39  ;;  %v734_v45 = vld [vmem:[#allocation2 + $0x110] sm:$0xff]  ;;  %v733_v46 = vld [vmem:[#allocation2 + $0x108] sm:$0xff]  ;;  %v732_v47 = vld [vmem:[#allocation2 + $0x100] sm:$0xff] }
  0x14   :  { %433 = vmatpush.bf16.msra.mxu2 %v720_v14  ;;  %v526_v48 = vld [vmem:[%s876_s0 + $0x28] sm:$0xf]  ;;  %v697_v49 = vld [vmem:[%s876_s0 + $0x38] sm:$0xf0]  ;;  %v695_v50 = vld [vmem:[%s876_s0 + $0x2c] sm:$0xf] }
  0x15   :  { %452 = vmatpush.bf16.msra.mxu3 %v728_v15  ;;  %v528_v51 = vld [vmem:[%s876_s0 + $0x3c] sm:$0xf0]  ;;  %v534_v52 = vld [vmem:[%s876_s0 + $0x30] sm:$0xf]  ;;  %v698_v53 = vld [vmem:[%s876_s0 + $0x40] sm:$0xf0]  ;;  %v527_v56 = vor.u32 %v697_v49, %v526_v48 }
  0x16   :  { %396 = vmatpush.bf16.msra.mxu0 %v703_v16  ;;  %v696_v54 = vld [vmem:[%s876_s0 + $0x34] sm:$0xf]  ;;  %v536_v55 = vld [vmem:[%s876_s0 + $0x44] sm:$0xf0]  ;;  %v531_v57 = vor.u32 %v695_v50, %v528_v51  ;;  %v535_v58 = vor.u32 %v698_v53, %v534_v52  ;;  %v522_v60 = vld [vmem:[%s876_s0 + $0x10] sm:$0xf] }
  0x17   :  { %415 = vmatpush.bf16.msra.mxu1 %v711_v17  ;;  %v539_v59 = vor.u32 %v696_v54, %v536_v55  ;;  %v694_v61 = vld [vmem:[%s876_s0 + $0x20] sm:$0xf0]  ;;  %v542_v62 = vld [vmem:[%s876_s0 + $0x38] sm:$0xf]  ;;  %v699_v63 = vld [vmem:[%s876_s0 + $0x48] sm:$0xf0] }
  0x18   :  { %434 = vmatpush.bf16.msra.mxu2 %v719_v18  ;;  %v523_v0 = vor.u32 %v694_v61, %v522_v60  ;;  %v543_v1 = vor.u32 %v699_v63, %v542_v62  ;;  %v754_v12 = vld [vmem:[%s878_s2] ss:$0 sm:$0xff] }
  0x19   :  { %453 = vmatpush.bf16.msra.mxu3 %v727_v19 }
  0x1a   :  { %397 = vmatpush.bf16.msra.mxu0 %v702_v20 }
  0x1b   :  { %416 = vmatpush.bf16.msra.mxu1 %v710_v21 }
  0x1c   :  { %435 = vmatpush.bf16.msra.mxu2 %v718_v22 }
  0x1d   :  { %454 = vmatpush.bf16.msra.mxu3 %v726_v23 }
  0x1e   :  { %398 = vmatpush.bf16.msra.mxu0 %v701_v24 }
  0x1f   :  { %417 = vmatpush.bf16.msra.mxu1 %v709_v25 }
  0x20   :  { %436 = vmatpush.bf16.msra.mxu2 %v717_v26 }
  0x21   :  { %455 = vmatpush.bf16.msra.mxu3 %v725_v27 }
  0x22   :  { %399 = vmatpush.bf16.msra.mxu0 %v700_v28 }
  0x23   :  { %418 = vmatpush.bf16.msra.mxu1 %v708_v29 }
  0x24   :  { %437 = vmatpush.bf16.msra.mxu2 %v716_v30 }
  0x25   :  { %456 = vmatpush.bf16.msra.mxu3 %v724_v31  ;;  %400 = vmatmul.bf16.vlgmr.msra.gmra.mxu0 %v507_v41 }
  0x26   :  { %472 = vmatpush.bf16.msrb.mxu0 %v735_v40  ;;  %419 = vmatmul.bf16.vlgmr.msra.gmra.mxu1 %v511_v42 }
  0x27   :  { %747 = vmatpush.bf16.msrb.mxu1 %v735_v40  ;;  %438 = vmatmul.bf16.vlgmr.msra.gmra.mxu2 %v515_v43 }
  0x28   :  { %457 = vmatmul.bf16.vlgmr.msra.gmra.mxu3 %v519_v44 }
  0x2a   :  { %473 = vmatpush.bf16.msrb.mxu0 %v734_v45 }
  0x2b   :  { %748 = vmatpush.bf16.msrb.mxu1 %v734_v45 }
  0x2e   :  { %474 = vmatpush.bf16.msrb.mxu0 %v733_v46 }
  0x2f   :  { %749 = vmatpush.bf16.msrb.mxu1 %v733_v46 }
  0x32   :  { %475 = vmatpush.bf16.msrb.mxu0 %v732_v47 }
  0x33   :  { %750 = vmatpush.bf16.msrb.mxu1 %v732_v47 }
  0x35   :  { %405 = vmatmul.bf16.gmra.mxu0 %v527_v56 }
  0x36   :  { %424 = vmatmul.bf16.gmra.mxu1 %v531_v57 }
  0x37   :  { %443 = vmatmul.bf16.gmra.mxu2 %v535_v58 }
  0x38   :  { %462 = vmatmul.bf16.gmra.mxu3 %v539_v59 }
  0x45   :  { %688 = vmatmul.msk.bf16.vlgmr.msrb.gmra.mxu0 %vm385_vm0, %v523_v0 }
  0x46   :  { %689 = vmatmul.msk.bf16.vlgmr.msrb.gmra.mxu1 %vm385_vm0, %v543_v1 }
  0xa2   :  { %v401_v2 = vpop.f32.mrf.mxu0 }
  0xa3   :  { %v420_v3 = vpop.f32.mrf.mxu1  ;;  %v402_v16 = vadd.f32 %v754_v12, %v401_v2 }
  0xa5   :  { %v421_v21 = vadd.f32 %v420_v3, %v402_v16 }
  0xaa   :  { %v439_v4 = vpop.f32.mrf.mxu2  ;;  %v403_v6 = vpop.f32.mrf.mxu0 }
  0xab   :  { %v458_v5 = vpop.f32.mrf.mxu3  ;;  %v422_v7 = vpop.f32.mrf.mxu1  ;;  %v404_v19 = vadd.f32 %v754_v12, %v403_v6  ;;  %v440_v26 = vadd.f32 %v439_v4, %v421_v21 }
  0xad   :  { %v423_v27 = vadd.f32 %v422_v7, %v404_v19  ;;  %v459_v32 = vadd.f32 %v458_v5, %v440_v26 }
  0xb2   :  { %v441_v8 = vpop.f32.mrf.mxu2  ;;  %v406_v9 = vpop.f32.mrf.mxu0 }
  0xb3   :  { %v425_v10 = vpop.f32.mrf.mxu1  ;;  %v460_v11 = vpop.f32.mrf.mxu3  ;;  %v407_v17 = vadd.f32 %v754_v12, %v406_v9  ;;  %v442_v30 = vadd.f32 %v441_v8, %v423_v27 }
  0xb5   :  { %v426_v22 = vadd.f32 %v425_v10, %v407_v17  ;;  %v461_v35 = vadd.f32 %v460_v11, %v442_v30 }
  0xba   :  { %v444_v13 = vpop.f32.mrf.mxu2  ;;  %v408_v14 = vpop.f32.mrf.mxu0 }
  0xbb   :  { %v427_v15 = vpop.f32.mrf.mxu1  ;;  %v463_v18 = vpop.f32.mrf.mxu3  ;;  %v409_v20 = vadd.f32 %v754_v12, %v408_v14  ;;  %v445_v28 = vadd.f32 %v444_v13, %v426_v22 }
  0xbd   :  { %v428_v29 = vadd.f32 %v427_v15, %v409_v20  ;;  %v464_v33 = vadd.f32 %v463_v18, %v445_v28 }
  0xc2   :  { %v446_v23 = vpop.f32.mrf.mxu2  ;;  %v477_v24 = vpop.f32.mrf.mxu0 }
  0xc3   :  { %v482_v25 = vpop.f32.mrf.mxu1  ;;  %v447_v31 = vadd.f32 %v446_v23, %v428_v29  ;;  %v465_v34 = vpop.f32.mrf.mxu3  ;;  %v478_v37 = vadd.f32 %v477_v24, %v459_v32 }
  0xc4   :  { %v483_v38 = vadd.f32 %v482_v25, %v464_v33 }
  0xc5   :  { %v466_v36 = vadd.f32 %v465_v34, %v447_v31  ;;  %v487_v43 = vmax.f32 %v478_v37, 0.0 }
  0xc6   :  { %v489_v44 = vmax.f32 %v483_v38, 0.0 }
  0xca   :  { %v479_v39 = vpop.f32.mrf.mxu0 }
  0xcb   :  { %v484_v40 = vpop.f32.mrf.mxu1  ;;  %v480_v41 = vadd.f32 %v479_v39, %v461_v35 }
  0xcc   :  { %v485_v42 = vadd.f32 %v484_v40, %v466_v36 }
  0xcd   :  { %v488_v45 = vmax.f32 %v480_v41, 0.0 }
  0xce   :  { %v490_v46 = vmax.f32 %v485_v42, 0.0 }
  0xcf   :  { %v739_v47 = vpack.c.bf16 %v488_v45, %v487_v43 }
  0xd0   :  { %v744_v48 = vpack.c.bf16 %v490_v46, %v489_v44 }
  0xd1   :  { %740 = vst [vmem:[%s879_s3] sm:$0xff] %v739_v47  }
  0xd2   :  { %746 = vst [vmem:[%s879_s3 + $0x8] sm:$0xff] %v744_v48  }
  0xd3   :  { %503 = vsyncpa [#allocation3], 1 }

// kernel: unet_forward.29
= control target key start
LH: loop header
LB: loop body
LE: loop exit
PB: predicated region body
PF: predicated region fallthrough
CT: control target
= control target key end

     0   :  { %vm65_vm0 = vcmask 523264   ;;  %s198_s1 = inlined_call_operand.vmem [shape: bf16[64,128], index: 1, kind: input, shape index: {}]   ;;  %s199_s2 = inlined_call_operand.vmem [shape: f32[1,128], index: 2, kind: input, shape index: {}]   ;;  %s200_s0 = inlined_call_operand.vmem [shape: bf16[32,64], index: 0, kind: input, shape index: {}]   ;;  %s201_s3 = inlined_call_operand.vmem [shape: bf16[32,128], index: 3, kind: output, shape index: {}]  }
   0x1   :  { %v134_v0 = vld [vmem:[%s198_s1 + $0x18] sm:$0xff]  ;;  %v133_v1 = vld [vmem:[%s198_s1 + $0x10] sm:$0xff]  ;;  %v132_v2 = vld [vmem:[%s198_s1 + $0x8] sm:$0xff] }
   0x2   :  { %76 = vmatpush.bf16.msra.mxu0 %v134_v0  ;;  %146 = vmatpush.bf16.msra.mxu1 %v134_v0  ;;  %v131_v3 = vld [vmem:[%s198_s1] sm:$0xff]  ;;  %v130_v5 = vld [vmem:[%s200_s0 + $0x8] sm:$0xff] }
   0x3   :  { %v129_v4 = vld [vmem:[%s200_s0] sm:$0xff] }
   0x4   :  { %v150_v8 = vld [vmem:[%s199_s2] ss:$0 sm:$0xff] }
   0x6   :  { %77 = vmatpush.bf16.msra.mxu0 %v133_v1  ;;  %147 = vmatpush.bf16.msra.mxu1 %v133_v1 }
   0xa   :  { %78 = vmatpush.bf16.msra.mxu0 %v132_v2  ;;  %148 = vmatpush.bf16.msra.mxu1 %v132_v2 }
   0xe   :  { %79 = vmatpush.bf16.msra.mxu0 %v131_v3  ;;  %149 = vmatpush.bf16.msra.mxu1 %v131_v3 }
  0x11   :  { %127 = vmatmul.msk.bf16.vlgmr.msra.gmra.mxu0 %vm65_vm0, %v129_v4  ;;  %128 = vmatmul.msk.bf16.vlgmr.msra.gmra.mxu1 %vm65_vm0, %v130_v5 }
  0x8e   :  { %v81_v6 = vpop.f32.mrf.mxu0  ;;  %v86_v7 = vpop.f32.mrf.mxu1 }
  0x8f   :  { %v82_v11 = vadd.f32 %v150_v8, %v81_v6  ;;  %v87_v12 = vadd.f32 %v150_v8, %v86_v7 }
  0x96   :  { %v83_v9 = vpop.f32.mrf.mxu0  ;;  %v88_v10 = vpop.f32.mrf.mxu1 }
  0x97   :  { %v84_v13 = vadd.f32 %v150_v8, %v83_v9  ;;  %v89_v14 = vadd.f32 %v150_v8, %v88_v10 }
  0x99   :  { %v138_v15 = vpack.c.bf16 %v84_v13, %v82_v11  ;;  %v143_v16 = vpack.c.bf16 %v89_v14, %v87_v12 }
  0x9b   :  { %139 = vst [vmem:[%s201_s3] sm:$0xff] %v138_v15  }
  0x9c   :  { %145 = vst [vmem:[%s201_s3 + $0x8] sm:$0xff] %v143_v16  }

// kernel: unet_forward.24
= control target key start
LH: loop header
LB: loop body
LE: loop exit
PB: predicated region body
PF: predicated region fallthrough
CT: control target
= control target key end

     0   :  { %vm2266_vm0 = vcmask 1040384   ;;  %s5555_s1 = inlined_call_operand.vmem [shape: bf16[2304,256], index: 1, kind: input, shape index: {}]   ;;  %s5556_s0 = inlined_call_operand.vmem [shape: bf16[2,2304], index: 0, kind: input, shape index: {}]   ;;  %s5557_s2 = inlined_call_operand.vmem [shape: f32[1,256], index: 2, kind: input, shape index: {}]   ;;  %s5558_s3 = inlined_call_operand.vmem [shape: bf16[2,256], index: 3, kind: output, shape index: {}]  }
   0x1   :  { %v2334_v0 = vld [vmem:[%s5555_s1 + $0x70] sm:$0xf]  ;;  %v3443_v1 = vld [vmem:[%s5555_s1 + $0x74] sm:$0xf0]  ;;  %v2326_v11 = vld [vmem:[%s5555_s1 + $0x60] sm:$0xf] }
   0x2   :  { %v2398_v2 = vld [vmem:[%s5555_s1 + $0xf0] sm:$0xf]  ;;  %v2335_v3 = vor.u32 %v3443_v1, %v2334_v0  ;;  %v3459_v4 = vld [vmem:[%s5555_s1 + $0xf4] sm:$0xf0]  ;;  %v3441_v13 = vld [vmem:[%s5555_s1 + $0x64] sm:$0xf0] }
   0x3   :  { %v2462_v5 = vld [vmem:[%s5555_s1 + $0x170] sm:$0xf]  ;;  %v3475_v6 = vld [vmem:[%s5555_s1 + $0x174] sm:$0xf0]  ;;  %v2399_v7 = vor.u32 %v3459_v4, %v2398_v2  ;;  %v2390_v14 = vld [vmem:[%s5555_s1 + $0xe0] sm:$0xf]  ;;  %v2327_v16 = vor.u32 %v3441_v13, %v2326_v11 }
   0x4   :  { %v2463_v8 = vor.u32 %v3475_v6, %v2462_v5  ;;  %v2526_v9 = vld [vmem:[%s5555_s1 + $0x1f0] sm:$0xf]  ;;  %v3491_v10 = vld [vmem:[%s5555_s1 + $0x1f4] sm:$0xf0]  ;;  %1793 = vmatpush.bf16.msra.mxu0 %v2335_v3  ;;  %v3457_v15 = vld [vmem:[%s5555_s1 + $0xe4] sm:$0xf0] }
   0x5   :  { %v2527_v12 = vor.u32 %v3491_v10, %v2526_v9  ;;  %1806 = vmatpush.bf16.msra.mxu1 %v2399_v7  ;;  %v2391_v17 = vor.u32 %v3457_v15, %v2390_v14  ;;  %v2454_v18 = vld [vmem:[%s5555_s1 + $0x160] sm:$0xf]  ;;  %v3473_v19 = vld [vmem:[%s5555_s1 + $0x164] sm:$0xf0]  ;;  %v2318_v23 = vld [vmem:[%s5555_s1 + $0x50] sm:$0xf] }
   0x6   :  { %1819 = vmatpush.bf16.msra.mxu2 %v2463_v8  ;;  %v2518_v20 = vld [vmem:[%s5555_s1 + $0x1e0] sm:$0xf]  ;;  %v2455_v21 = vor.u32 %v3473_v19, %v2454_v18  ;;  %v3489_v22 = vld [vmem:[%s5555_s1 + $0x1e4] sm:$0xf0]  ;;  %v3439_v24 = vld [vmem:[%s5555_s1 + $0x54] sm:$0xf0] }
   0x7   :  { %1832 = vmatpush.bf16.msra.mxu3 %v2527_v12  ;;  %v2519_v25 = vor.u32 %v3489_v22, %v2518_v20  ;;  %v2382_v26 = vld [vmem:[%s5555_s1 + $0xd0] sm:$0xf]  ;;  %v3455_v27 = vld [vmem:[%s5555_s1 + $0xd4] sm:$0xf0]  ;;  %v2319_v29 = vor.u32 %v3439_v24, %v2318_v23  ;;  %v2310_v35 = vld [vmem:[%s5555_s1 + $0x40] sm:$0xf] }
   0x8   :  { %v2446_v28 = vld [vmem:[%s5555_s1 + $0x150] sm:$0xf]  ;;  %1794 = vmatpush.bf16.msra.mxu0 %v2327_v16  ;;  %v3471_v30 = vld [vmem:[%s5555_s1 + $0x154] sm:$0xf0]  ;;  %v2383_v33 = vor.u32 %v3455_v27, %v2382_v26  ;;  %v3437_v36 = vld [vmem:[%s5555_s1 + $0x44] sm:$0xf0] }
   0x9   :  { %v2510_v31 = vld [vmem:[%s5555_s1 + $0x1d0] sm:$0xf]  ;;  %v3487_v32 = vld [vmem:[%s5555_s1 + $0x1d4] sm:$0xf0]  ;;  %1807 = vmatpush.bf16.msra.mxu1 %v2391_v17  ;;  %v2447_v34 = vor.u32 %v3471_v30, %v2446_v28  ;;  %v2374_v37 = vld [vmem:[%s5555_s1 + $0xc0] sm:$0xf]  ;;  %v2311_v44 = vor.u32 %v3437_v36, %v2310_v35 }
   0xa   :  { %1820 = vmatpush.bf16.msra.mxu2 %v2455_v21  ;;  %v2511_v38 = vor.u32 %v3487_v32, %v2510_v31  ;;  %v3453_v39 = vld [vmem:[%s5555_s1 + $0xc4] sm:$0xf0]  ;;  %v2438_v40 = vld [vmem:[%s5555_s1 + $0x140] sm:$0xf]  ;;  %v2302_v47 = vld [vmem:[%s5555_s1 + $0x30] sm:$0xf] }
   0xb   :  { %1833 = vmatpush.bf16.msra.mxu3 %v2519_v25  ;;  %v3469_v41 = vld [vmem:[%s5555_s1 + $0x144] sm:$0xf0]  ;;  %v2502_v42 = vld [vmem:[%s5555_s1 + $0x1c0] sm:$0xf]  ;;  %v2375_v45 = vor.u32 %v3453_v39, %v2374_v37  ;;  %v3435_v48 = vld [vmem:[%s5555_s1 + $0x34] sm:$0xf0] }
   0xc   :  { %v3485_v43 = vld [vmem:[%s5555_s1 + $0x1c4] sm:$0xf0]  ;;  %1795 = vmatpush.bf16.msra.mxu0 %v2319_v29  ;;  %v2439_v46 = vor.u32 %v3469_v41, %v2438_v40  ;;  %v2366_v49 = vld [vmem:[%s5555_s1 + $0xb0] sm:$0xf]  ;;  %v3451_v51 = vld [vmem:[%s5555_s1 + $0xb4] sm:$0xf0]  ;;  %v2303_v56 = vor.u32 %v3435_v48, %v2302_v47 }
   0xd   :  { %1808 = vmatpush.bf16.msra.mxu1 %v2383_v33  ;;  %v2503_v50 = vor.u32 %v3485_v43, %v2502_v42  ;;  %v2430_v52 = vld [vmem:[%s5555_s1 + $0x130] sm:$0xf]  ;;  %v3467_v53 = vld [vmem:[%s5555_s1 + $0x134] sm:$0xf0]  ;;  %v2367_v57 = vor.u32 %v3451_v51, %v2366_v49  ;;  %v2294_v59 = vld [vmem:[%s5555_s1 + $0x20] sm:$0xf] }
   0xe   :  { %1821 = vmatpush.bf16.msra.mxu2 %v2447_v34  ;;  %v2494_v54 = vld [vmem:[%s5555_s1 + $0x1b0] sm:$0xf]  ;;  %v3483_v55 = vld [vmem:[%s5555_s1 + $0x1b4] sm:$0xf0]  ;;  %v2431_v58 = vor.u32 %v3467_v53, %v2430_v52  ;;  %v3433_v60 = vld [vmem:[%s5555_s1 + $0x24] sm:$0xf0] }
   0xf   :  { %1834 = vmatpush.bf16.msra.mxu3 %v2511_v38  ;;  %v2358_v61 = vld [vmem:[%s5555_s1 + $0xa0] sm:$0xf]  ;;  %v2495_v62 = vor.u32 %v3483_v55, %v2494_v54  ;;  %v3449_v63 = vld [vmem:[%s5555_s1 + $0xa4] sm:$0xf0]  ;;  %v2295_v4 = vor.u32 %v3433_v60, %v2294_v59  ;;  %v2286_v7 = vld [vmem:[%s5555_s1 + $0x10] sm:$0xf] }
  0x10   :  { %1796 = vmatpush.bf16.msra.mxu0 %v2311_v44  ;;  %v2422_v0 = vld [vmem:[%s5555_s1 + $0x120] sm:$0xf]  ;;  %v3465_v1 = vld [vmem:[%s5555_s1 + $0x124] sm:$0xf0]  ;;  %v2359_v5 = vor.u32 %v3449_v63, %v2358_v61  ;;  %v3431_v8 = vld [vmem:[%s5555_s1 + $0x14] sm:$0xf0] }
  0x11   :  { %1809 = vmatpush.bf16.msra.mxu1 %v2375_v45  ;;  %v2486_v2 = vld [vmem:[%s5555_s1 + $0x1a0] sm:$0xf]  ;;  %v3481_v3 = vld [vmem:[%s5555_s1 + $0x1a4] sm:$0xf0]  ;;  %v2423_v6 = vor.u32 %v3465_v1, %v2422_v0  ;;  %v2350_v9 = vld [vmem:[%s5555_s1 + $0x90] sm:$0xf]  ;;  %v2287_v16 = vor.u32 %v3431_v8, %v2286_v7 }
  0x12   :  { %1822 = vmatpush.bf16.msra.mxu2 %v2439_v46  ;;  %v2487_v10 = vor.u32 %v3481_v3, %v2486_v2  ;;  %v3447_v11 = vld [vmem:[%s5555_s1 + $0x94] sm:$0xf0]  ;;  %v2414_v12 = vld [vmem:[%s5555_s1 + $0x110] sm:$0xf]  ;;  %v2278_v17 = vld [vmem:[%s5555_s1] sm:$0xf] }
  0x13   :  { %1835 = vmatpush.bf16.msra.mxu3 %v2503_v50  ;;  %v3463_v13 = vld [vmem:[%s5555_s1 + $0x114] sm:$0xf0]  ;;  %v2478_v14 = vld [vmem:[%s5555_s1 + $0x190] sm:$0xf]  ;;  %v3429_v18 = vld [vmem:[%s5555_s1 + $0x4] sm:$0xf0]  ;;  %v2351_v19 = vor.u32 %v3447_v11, %v2350_v9 }
  0x14   :  { %1797 = vmatpush.bf16.msra.mxu0 %v2303_v56  ;;  %v3479_v15 = vld [vmem:[%s5555_s1 + $0x194] sm:$0xf0]  ;;  %v2415_v20 = vor.u32 %v3463_v13, %v2414_v12  ;;  %v2342_v21 = vld [vmem:[%s5555_s1 + $0x80] sm:$0xf]  ;;  %v3445_v22 = vld [vmem:[%s5555_s1 + $0x84] sm:$0xf0]  ;;  %v2279_v31 = vor.u32 %v3429_v18, %v2278_v17 }
  0x15   :  { %1810 = vmatpush.bf16.msra.mxu1 %v2367_v57  ;;  %v2406_v23 = vld [vmem:[%s5555_s1 + $0x100] sm:$0xf]  ;;  %v2479_v24 = vor.u32 %v3479_v15, %v2478_v14  ;;  %v3461_v25 = vld [vmem:[%s5555_s1 + $0x104] sm:$0xf0]  ;;  %v2590_v28 = vld [vmem:[%s5555_s1 + $0x270] sm:$0xf]  ;;  %v2343_v35 = vor.u32 %v3445_v22, %v2342_v21 }
  0x16   :  { %1823 = vmatpush.bf16.msra.mxu2 %v2431_v58  ;;  %v2470_v26 = vld [vmem:[%s5555_s1 + $0x180] sm:$0xf]  ;;  %v3477_v27 = vld [vmem:[%s5555_s1 + $0x184] sm:$0xf0]  ;;  %v3507_v29 = vld [vmem:[%s5555_s1 + $0x274] sm:$0xf0]  ;;  %v2407_v36 = vor.u32 %v3461_v25, %v2406_v23 }
  0x17   :  { %1836 = vmatpush.bf16.msra.mxu3 %v2495_v62  ;;  %v2654_v30 = vld [vmem:[%s5555_s1 + $0x2f0] sm:$0xf]  ;;  %v3523_v32 = vld [vmem:[%s5555_s1 + $0x2f4] sm:$0xf0]  ;;  %v2471_v39 = vor.u32 %v3477_v27, %v2470_v26  ;;  %v2591_v40 = vor.u32 %v3507_v29, %v2590_v28  ;;  %v2582_v43 = vld [vmem:[%s5555_s1 + $0x260] sm:$0xf] }
  0x18   :  { %1798 = vmatpush.bf16.msra.mxu0 %v2295_v4  ;;  %v2718_v33 = vld [vmem:[%s5555_s1 + $0x370] sm:$0xf]  ;;  %v3539_v34 = vld [vmem:[%s5555_s1 + $0x374] sm:$0xf0]  ;;  %v2655_v41 = vor.u32 %v3523_v32, %v2654_v30  ;;  %v3505_v44 = vld [vmem:[%s5555_s1 + $0x264] sm:$0xf0] }
  0x19   :  { %1811 = vmatpush.bf16.msra.mxu1 %v2359_v5  ;;  %v2782_v37 = vld [vmem:[%s5555_s1 + $0x3f0] sm:$0xf]  ;;  %v3555_v38 = vld [vmem:[%s5555_s1 + $0x3f4] sm:$0xf0]  ;;  %v2719_v42 = vor.u32 %v3539_v34, %v2718_v33  ;;  %v2646_v45 = vld [vmem:[%s5555_s1 + $0x2e0] sm:$0xf]  ;;  %v2583_v52 = vor.u32 %v3505_v44, %v2582_v43 }
  0x1a   :  { %1824 = vmatpush.bf16.msra.mxu2 %v2423_v6  ;;  %v2783_v46 = vor.u32 %v3555_v38, %v2782_v37  ;;  %v3521_v47 = vld [vmem:[%s5555_s1 + $0x2e4] sm:$0xf0]  ;;  %v2710_v48 = vld [vmem:[%s5555_s1 + $0x360] sm:$0xf]  ;;  %v2574_v55 = vld [vmem:[%s5555_s1 + $0x250] sm:$0xf] }
  0x1b   :  { %1837 = vmatpush.bf16.msra.mxu3 %v2487_v10  ;;  %v3537_v49 = vld [vmem:[%s5555_s1 + $0x364] sm:$0xf0]  ;;  %v2774_v50 = vld [vmem:[%s5555_s1 + $0x3e0] sm:$0xf]  ;;  %v2647_v53 = vor.u32 %v3521_v47, %v2646_v45  ;;  %v3503_v56 = vld [vmem:[%s5555_s1 + $0x254] sm:$0xf0] }
  0x1c   :  { %1799 = vmatpush.bf16.msra.mxu0 %v2287_v16  ;;  %v3553_v51 = vld [vmem:[%s5555_s1 + $0x3e4] sm:$0xf0]  ;;  %v2711_v54 = vor.u32 %v3537_v49, %v2710_v48  ;;  %v2638_v57 = vld [vmem:[%s5555_s1 + $0x2d0] sm:$0xf]  ;;  %v3519_v59 = vld [vmem:[%s5555_s1 + $0x2d4] sm:$0xf0]  ;;  %v2575_v0 = vor.u32 %v3503_v56, %v2574_v55 }
  0x1d   :  { %1812 = vmatpush.bf16.msra.mxu1 %v2351_v19  ;;  %v2775_v58 = vor.u32 %v3553_v51, %v2774_v50  ;;  %v2702_v60 = vld [vmem:[%s5555_s1 + $0x350] sm:$0xf]  ;;  %v3535_v61 = vld [vmem:[%s5555_s1 + $0x354] sm:$0xf0]  ;;  %v2566_v1 = vld [vmem:[%s5555_s1 + $0x240] sm:$0xf]  ;;  %v2639_v3 = vor.u32 %v3519_v59, %v2638_v57 }
  0x1e   :  { %1825 = vmatpush.bf16.msra.mxu2 %v2415_v20  ;;  %v2766_v62 = vld [vmem:[%s5555_s1 + $0x3d0] sm:$0xf]  ;;  %v3551_v63 = vld [vmem:[%s5555_s1 + $0x3d4] sm:$0xf0]  ;;  %v14_v2 = vld [vmem:[%s5556_s0] sm:$0xff]  ;;  %v2703_v4 = vor.u32 %v3535_v61, %v2702_v60 }
  0x1f   :  { %1838 = vmatpush.bf16.msra.mxu3 %v2479_v24  ;;  %v3501_v5 = vld [vmem:[%s5555_s1 + $0x244] sm:$0xf0]  ;;  %v2630_v6 = vld [vmem:[%s5555_s1 + $0x2c0] sm:$0xf]  ;;  %312 = vst [vmem:[#allocation1] ss:$9 sm:$0xff] %v14_v2  ;;  %v2767_v7 = vor.u32 %v3551_v63, %v2766_v62 }
  0x20   :  { %1800 = vmatpush.bf16.msra.mxu0 %v2279_v31  ;;  %v3517_v8 = vld [vmem:[%s5555_s1 + $0x2c4] sm:$0xf0]  ;;  %v2694_v9 = vld [vmem:[%s5555_s1 + $0x340] sm:$0xf]  ;;  %v2567_v13 = vor.u32 %v3501_v5, %v2566_v1  ;;  %v2558_v16 = vld [vmem:[%s5555_s1 + $0x230] sm:$0xf] }
  0x21   :  { %1813 = vmatpush.bf16.msra.mxu1 %v2343_v35  ;;  %v3533_v10 = vld [vmem:[%s5555_s1 + $0x344] sm:$0xf0]  ;;  %v2758_v11 = vld [vmem:[%s5555_s1 + $0x3c0] sm:$0xf]  ;;  %v2631_v14 = vor.u32 %v3517_v8, %v2630_v6  ;;  %v3499_v17 = vld [vmem:[%s5555_s1 + $0x234] sm:$0xf0] }
  0x22   :  { %1826 = vmatpush.bf16.msra.mxu2 %v2407_v36  ;;  %v3549_v12 = vld [vmem:[%s5555_s1 + $0x3c4] sm:$0xf0]  ;;  %v2695_v15 = vor.u32 %v3533_v10, %v2694_v9  ;;  %v2622_v18 = vld [vmem:[%s5555_s1 + $0x2b0] sm:$0xf]  ;;  %v3515_v20 = vld [vmem:[%s5555_s1 + $0x2b4] sm:$0xf0]  ;;  %v2559_v26 = vor.u32 %v3499_v17, %v2558_v16 }
  0x23   :  { %1839 = vmatpush.bf16.msra.mxu3 %v2471_v39  ;;  %v2759_v19 = vor.u32 %v3549_v12, %v2758_v11  ;;  %v2686_v21 = vld [vmem:[%s5555_s1 + $0x330] sm:$0xf]  ;;  %v3531_v22 = vld [vmem:[%s5555_s1 + $0x334] sm:$0xf0]  ;;  %v2550_v25 = vld [vmem:[%s5555_s1 + $0x220] sm:$0xf]  ;;  %v2623_v30 = vor.u32 %v3515_v20, %v2622_v18 }
  0x24   :  { %1845 = vmatpush.bf16.msrb.mxu0 %v2591_v40  ;;  %v2750_v23 = vld [vmem:[%s5555_s1 + $0x3b0] sm:$0xf]  ;;  %v3547_v24 = vld [vmem:[%s5555_s1 + $0x3b4] sm:$0xf0]  ;;  %v2687_v31 = vor.u32 %v3531_v22, %v2686_v21  ;;  %v3497_v32 = vld [vmem:[%s5555_s1 + $0x224] sm:$0xf0] }
  0x25   :  { %1858 = vmatpush.bf16.msrb.mxu1 %v2655_v41  ;;  %v2614_v33 = vld [vmem:[%s5555_s1 + $0x2a0] sm:$0xf]  ;;  %v2751_v35 = vor.u32 %v3547_v24, %v2750_v23  ;;  %v3513_v36 = vld [vmem:[%s5555_s1 + $0x2a4] sm:$0xf0]  ;;  %v2551_v41 = vor.u32 %v3497_v32, %v2550_v25  ;;  %v2606_v47 = vld [vmem:[%s5555_s1 + $0x290] sm:$0xf] }
  0x26   :  { %1871 = vmatpush.bf16.msrb.mxu2 %v2719_v42  ;;  %v4056_v27 = vld [vmem:[#allocation1 + $0x12] sm:$0xff]  ;;  %v4058_v28 = vld [vmem:[#allocation1] sm:$0xff]  ;;  %v4068_v34 = vld [vmem:[#allocation1 + $0x9] sm:$0xff]  ;;  %v2615_v43 = vor.u32 %v3513_v36, %v2614_v33 }
  0x27   :  { %1884 = vmatpush.bf16.msrb.mxu3 %v2783_v46  ;;  %v4060_v29 = vld [vmem:[#allocation1 + $0x1b] sm:$0xff]  ;;  %v3529_v38 = vld [vmem:[%s5555_s1 + $0x324] sm:$0xf0]  ;;  %1827 = vmatmul.bf16.vlgmr.msra.gmra.mxu2 %v4056_v27  ;;  %v2542_v42 = vld [vmem:[%s5555_s1 + $0x210] sm:$0xf] }
  0x28   :  { %1846 = vmatpush.bf16.msrb.mxu0 %v2583_v52  ;;  %v2678_v37 = vld [vmem:[%s5555_s1 + $0x320] sm:$0xf]  ;;  %v3545_v40 = vld [vmem:[%s5555_s1 + $0x3a4] sm:$0xf0]  ;;  %1840 = vmatmul.bf16.vlgmr.msra.gmra.mxu3 %v4060_v29  ;;  %v3495_v46 = vld [vmem:[%s5555_s1 + $0x214] sm:$0xf0] }
  0x29   :  { %1859 = vmatpush.bf16.msrb.mxu1 %v2647_v53  ;;  %v2742_v39 = vld [vmem:[%s5555_s1 + $0x3a0] sm:$0xf]  ;;  %1801 = vmatmul.bf16.vlgmr.msra.gmra.mxu0 %v4058_v28  ;;  %v2679_v44 = vor.u32 %v3529_v38, %v2678_v37  ;;  %v15_v45 = vld [vmem:[%s5556_s0 + $0x8] sm:$0xff]  ;;  %v3511_v48 = vld [vmem:[%s5555_s1 + $0x294] sm:$0xf0]  ;;  %v2543_v56 = vor.u32 %v3495_v46, %v2542_v42 }
  0x2a   :  { %1872 = vmatpush.bf16.msrb.mxu2 %v2711_v54  ;;  %1814 = vmatmul.bf16.vlgmr.msra.gmra.mxu1 %v4068_v34  ;;  %v2743_v49 = vor.u32 %v3545_v40, %v2742_v39  ;;  %v2670_v50 = vld [vmem:[%s5555_s1 + $0x310] sm:$0xf]  ;;  %v3527_v51 = vld [vmem:[%s5555_s1 + $0x314] sm:$0xf0]  ;;  %v2534_v54 = vld [vmem:[%s5555_s1 + $0x200] sm:$0xf]  ;;  %v2607_v62 = vor.u32 %v3511_v48, %v2606_v47 }
  0x2b   :  { %1885 = vmatpush.bf16.msrb.mxu3 %v2775_v58  ;;  %v2734_v52 = vld [vmem:[%s5555_s1 + $0x390] sm:$0xf]  ;;  %v3543_v53 = vld [vmem:[%s5555_s1 + $0x394] sm:$0xf0]  ;;  %v3493_v55 = vld [vmem:[%s5555_s1 + $0x204] sm:$0xf0]  ;;  %v2671_v63 = vor.u32 %v3527_v51, %v2670_v50 }
  0x2c   :  { %1847 = vmatpush.bf16.msrb.mxu0 %v2575_v0  ;;  %v2598_v57 = vld [vmem:[%s5555_s1 + $0x280] sm:$0xf]  ;;  %v3509_v58 = vld [vmem:[%s5555_s1 + $0x284] sm:$0xf0]  ;;  %v4134_v61 = vld [vmem:[#allocation1 + $0x36] sm:$0xff]  ;;  %v2535_v9 = vor.u32 %v3493_v55, %v2534_v54 }
  0x2d   :  { %1860 = vmatpush.bf16.msrb.mxu1 %v2639_v3  ;;  %v2662_v59 = vld [vmem:[%s5555_s1 + $0x300] sm:$0xf]  ;;  %v3525_v60 = vld [vmem:[%s5555_s1 + $0x304] sm:$0xf0]  ;;  %v4140_v2 = vld [vmem:[#allocation1 + $0x2d] sm:$0xff]  ;;  %v2735_v3 = vor.u32 %v3543_v53, %v2734_v52 }
  0x2e   :  { %1873 = vmatpush.bf16.msrb.mxu2 %v2703_v4  ;;  %v4136_v0 = vld [vmem:[#allocation1 + $0x24] sm:$0xff]  ;;  %v2726_v4 = vld [vmem:[%s5555_s1 + $0x380] sm:$0xf]  ;;  %v2846_v6 = vld [vmem:[%s5555_s1 + $0x470] sm:$0xf] }
  0x2f   :  { %1886 = vmatpush.bf16.msrb.mxu3 %v2767_v7  ;;  %v4138_v1 = vld [vmem:[#allocation1 + $0x3f] sm:$0xff]  ;;  %v3541_v5 = vld [vmem:[%s5555_s1 + $0x384] sm:$0xf0]  ;;  %v3571_v7 = vld [vmem:[%s5555_s1 + $0x474] sm:$0xf0] }
  0x30   :  { %1848 = vmatpush.bf16.msrb.mxu0 %v2567_v13  ;;  %322 = vst [vmem:[#allocation1] ss:$9 sm:$0xff] %v15_v45  ;;  %v2910_v8 = vld [vmem:[%s5555_s1 + $0x4f0] sm:$0xf]  ;;  %v3587_v10 = vld [vmem:[%s5555_s1 + $0x4f4] sm:$0xf0]  ;;  %v2599_v13 = vor.u32 %v3509_v58, %v2598_v57  ;;  %v2727_v17 = vor.u32 %v3541_v5, %v2726_v4  ;;  %v2847_v18 = vor.u32 %v3571_v7, %v2846_v6 }
  0x31   :  { %1861 = vmatpush.bf16.msrb.mxu1 %v2631_v14  ;;  %v2974_v11 = vld [vmem:[%s5555_s1 + $0x570] sm:$0xf]  ;;  %v3603_v12 = vld [vmem:[%s5555_s1 + $0x574] sm:$0xf0]  ;;  %v2663_v14 = vor.u32 %v3525_v60, %v2662_v59  ;;  %v2838_v21 = vld [vmem:[%s5555_s1 + $0x460] sm:$0xf] }
  0x32   :  { %1874 = vmatpush.bf16.msrb.mxu2 %v2695_v15  ;;  %v3038_v15 = vld [vmem:[%s5555_s1 + $0x5f0] sm:$0xf]  ;;  %v3619_v16 = vld [vmem:[%s5555_s1 + $0x5f4] sm:$0xf0]  ;;  %v2975_v20 = vor.u32 %v3603_v12, %v2974_v11  ;;  %v3569_v22 = vld [vmem:[%s5555_s1 + $0x464] sm:$0xf0] }
  0x33   :  { %1887 = vmatpush.bf16.msrb.mxu3 %v2759_v19  ;;  %v2911_v19 = vor.u32 %v3587_v10, %v2910_v8  ;;  %v2902_v23 = vld [vmem:[%s5555_s1 + $0x4e0] sm:$0xf]  ;;  %v3039_v24 = vor.u32 %v3619_v16, %v3038_v15  ;;  %v3585_v25 = vld [vmem:[%s5555_s1 + $0x4e4] sm:$0xf0]  ;;  %v2839_v33 = vor.u32 %v3569_v22, %v2838_v21  ;;  %v2830_v37 = vld [vmem:[%s5555_s1 + $0x450] sm:$0xf] }
  0x34   :  { %1849 = vmatpush.bf16.msrb.mxu0 %v2559_v26  ;;  %v2966_v26 = vld [vmem:[%s5555_s1 + $0x560] sm:$0xf]  ;;  %v3617_v32 = vld [vmem:[%s5555_s1 + $0x5e4] sm:$0xf0]  ;;  %v3567_v38 = vld [vmem:[%s5555_s1 + $0x454] sm:$0xf0] }
  0x35   :  { %1862 = vmatpush.bf16.msrb.mxu1 %v2623_v30  ;;  %v3601_v30 = vld [vmem:[%s5555_s1 + $0x564] sm:$0xf0]  ;;  %v2894_v39 = vld [vmem:[%s5555_s1 + $0x4d0] sm:$0xf]  ;;  %v3615_v45 = vld [vmem:[%s5555_s1 + $0x5d4] sm:$0xf0]  ;;  %v2831_v46 = vor.u32 %v3567_v38, %v2830_v37 }
  0x36   :  { %1875 = vmatpush.bf16.msrb.mxu2 %v2687_v31  ;;  %v3030_v31 = vld [vmem:[%s5555_s1 + $0x5e0] sm:$0xf]  ;;  %v2967_v36 = vor.u32 %v3601_v30, %v2966_v26  ;;  %v2958_v42 = vld [vmem:[%s5555_s1 + $0x550] sm:$0xf]  ;;  %v3565_v50 = vld [vmem:[%s5555_s1 + $0x444] sm:$0xf0] }
  0x37   :  { %1888 = vmatpush.bf16.msrb.mxu3 %v2751_v35  ;;  %v2903_v35 = vor.u32 %v3585_v25, %v2902_v23  ;;  %v3031_v40 = vor.u32 %v3617_v32, %v3030_v31  ;;  %v2886_v51 = vld [vmem:[%s5555_s1 + $0x4c0] sm:$0xf]  ;;  %v3581_v53 = vld [vmem:[%s5555_s1 + $0x4c4] sm:$0xf0]  ;;  %v3579_v5 = vld [vmem:[%s5555_s1 + $0x4b4] sm:$0xf0] }
  0x38   :  { %1850 = vmatpush.bf16.msrb.mxu0 %v2551_v41  ;;  %v3583_v41 = vld [vmem:[%s5555_s1 + $0x4d4] sm:$0xf0]  ;;  %v2950_v54 = vld [vmem:[%s5555_s1 + $0x540] sm:$0xf]  ;;  %v3597_v55 = vld [vmem:[%s5555_s1 + $0x544] sm:$0xf0]  ;;  %v2887_v59 = vor.u32 %v3581_v53, %v2886_v51 }
  0x39   :  { %1863 = vmatpush.bf16.msrb.mxu1 %v2615_v43  ;;  %v3599_v43 = vld [vmem:[%s5555_s1 + $0x554] sm:$0xf0]  ;;  %v2895_v47 = vor.u32 %v3583_v41, %v2894_v39  ;;  %v3613_v57 = vld [vmem:[%s5555_s1 + $0x5c4] sm:$0xf0]  ;;  %v2951_v60 = vor.u32 %v3597_v55, %v2950_v54  ;;  %v2942_v6 = vld [vmem:[%s5555_s1 + $0x530] sm:$0xf] }
  0x3a   :  { %1876 = vmatpush.bf16.msrb.mxu2 %v2679_v44  ;;  %v3022_v44 = vld [vmem:[%s5555_s1 + $0x5d0] sm:$0xf]  ;;  %v2959_v48 = vor.u32 %v3599_v43, %v2958_v42  ;;  %v3595_v7 = vld [vmem:[%s5555_s1 + $0x534] sm:$0xf0]  ;;  %v2870_v15 = vld [vmem:[%s5555_s1 + $0x4a0] sm:$0xf] }
  0x3b   :  { %1889 = vmatpush.bf16.msrb.mxu3 %v2743_v49  ;;  %v2822_v49 = vld [vmem:[%s5555_s1 + $0x440] sm:$0xf]  ;;  %v3023_v52 = vor.u32 %v3615_v45, %v3022_v44  ;;  %v3006_v8 = vld [vmem:[%s5555_s1 + $0x5b0] sm:$0xf]  ;;  %v2943_v12 = vor.u32 %v3595_v7, %v2942_v6  ;;  %v3609_v21 = vld [vmem:[%s5555_s1 + $0x5a4] sm:$0xf0] }
  0x3c   :  { %1851 = vmatpush.bf16.msrb.mxu0 %v2543_v56  ;;  %v3014_v56 = vld [vmem:[%s5555_s1 + $0x5c0] sm:$0xf]  ;;  %v2823_v58 = vor.u32 %v3565_v50, %v2822_v49  ;;  %v2798_v25 = vld [vmem:[%s5555_s1 + $0x410] sm:$0xf]  ;;  %v3559_v26 = vld [vmem:[%s5555_s1 + $0x414] sm:$0xf0] }
  0x3d   :  { %1864 = vmatpush.bf16.msrb.mxu1 %v2607_v62  ;;  %v2814_v62 = vld [vmem:[%s5555_s1 + $0x430] sm:$0xf]  ;;  %v3015_v4 = vor.u32 %v3613_v57, %v3014_v56  ;;  %v3575_v32 = vld [vmem:[%s5555_s1 + $0x494] sm:$0xf0]  ;;  %v2799_v38 = vor.u32 %v3559_v26, %v2798_v25  ;;  %v2790_v39 = vld [vmem:[%s5555_s1 + $0x400] sm:$0xf] }
  0x3e   :  { %1877 = vmatpush.bf16.msrb.mxu2 %v2671_v63  ;;  %v3563_v63 = vld [vmem:[%s5555_s1 + $0x434] sm:$0xf0]  ;;  %v2862_v30 = vld [vmem:[%s5555_s1 + $0x490] sm:$0xf]  ;;  %v2854_v43 = vld [vmem:[%s5555_s1 + $0x480] sm:$0xf] }
  0x3f   :  { %1890 = vmatpush.bf16.msrb.mxu3 %v2735_v3  ;;  %v2878_v3 = vld [vmem:[%s5555_s1 + $0x4b0] sm:$0xf]  ;;  %v2815_v10 = vor.u32 %v3563_v63, %v2814_v62  ;;  %v3607_v37 = vld [vmem:[%s5555_s1 + $0x594] sm:$0xf0]  ;;  %v2863_v41 = vor.u32 %v3575_v32, %v2862_v30  ;;  %v3573_v44 = vld [vmem:[%s5555_s1 + $0x484] sm:$0xf0] }
  0x40   :  { %1852 = vmatpush.bf16.msrb.mxu0 %v2535_v9  ;;  %v3611_v9 = vld [vmem:[%s5555_s1 + $0x5b4] sm:$0xf0]  ;;  %v2879_v11 = vor.u32 %v3579_v5, %v2878_v3  ;;  %v2918_v45 = vld [vmem:[%s5555_s1 + $0x500] sm:$0xf]  ;;  %v3605_v49 = vld [vmem:[%s5555_s1 + $0x584] sm:$0xf0]  ;;  %v2855_v57 = vor.u32 %v3573_v44, %v2854_v43 }
  0x41   :  { %1865 = vmatpush.bf16.msrb.mxu1 %v2599_v13  ;;  %v2806_v13 = vld [vmem:[%s5555_s1 + $0x420] sm:$0xf]  ;;  %v3007_v16 = vor.u32 %v3611_v9, %v3006_v8  ;;  %v3102_v50 = vld [vmem:[%s5555_s1 + $0x670] sm:$0xf]  ;;  %v3635_v51 = vld [vmem:[%s5555_s1 + $0x674] sm:$0xf0] }
  0x42   :  { %1878 = vmatpush.bf16.msrb.mxu2 %v2663_v14  ;;  %v3561_v14 = vld [vmem:[%s5555_s1 + $0x424] sm:$0xf0]  ;;  %v3651_v54 = vld [vmem:[%s5555_s1 + $0x6f4] sm:$0xf0]  ;;  %v3230_v55 = vld [vmem:[%s5555_s1 + $0x770] sm:$0xf]  ;;  %v3103_v63 = vor.u32 %v3635_v51, %v3102_v50 }
  0x43   :  { %1891 = vmatpush.bf16.msrb.mxu3 %v2727_v17  ;;  %1853 = vmatmul.bf16.vlgmr.msrb.gmra.mxu0 %v4136_v0  ;;  %v3577_v17 = vld [vmem:[%s5555_s1 + $0x4a4] sm:$0xf0]  ;;  %v2807_v22 = vor.u32 %v3561_v14, %v2806_v13  ;;  %v3667_v56 = vld [vmem:[%s5555_s1 + $0x774] sm:$0xf0]  ;;  %v3094_v3 = vld [vmem:[%s5555_s1 + $0x660] sm:$0xf] }
  0x44   :  { %1897 = vmatpush.bf16.msra.mxu0 %v2847_v18  ;;  %1866 = vmatmul.bf16.vlgmr.msrb.gmra.mxu1 %v4140_v2  ;;  %v2934_v18 = vld [vmem:[%s5555_s1 + $0x520] sm:$0xf]  ;;  %v2871_v23 = vor.u32 %v3577_v17, %v2870_v15  ;;  %v3231_v6 = vor.u32 %v3667_v56, %v3230_v55  ;;  %v3633_v8 = vld [vmem:[%s5555_s1 + $0x664] sm:$0xf0]  ;;  %v4417_v30 = vld [vmem:[#allocation1 + $0x36] sm:$0xff] }
  0x45   :  { %1910 = vmatpush.bf16.msra.mxu1 %v2911_v19  ;;  %1879 = vmatmul.bf16.vlgmr.msrb.gmra.mxu2 %v4134_v61  ;;  %v3593_v19 = vld [vmem:[%s5555_s1 + $0x524] sm:$0xf0]  ;;  %v4374_v7 = vld [vmem:[#allocation1] sm:$0xff]  ;;  %v3627_v55 = vld [vmem:[%s5555_s1 + $0x634] sm:$0xf0] }
  0x46   :  { %1923 = vmatpush.bf16.msra.mxu2 %v2975_v20  ;;  %1892 = vmatmul.bf16.vlgmr.msrb.gmra.mxu3 %v4138_v1  ;;  %v2998_v20 = vld [vmem:[%s5555_s1 + $0x5a0] sm:$0xf]  ;;  %v4387_v13 = vld [vmem:[#allocation1 + $0x9] sm:$0xff] }
  0x47   :  { %1936 = vmatpush.bf16.msra.mxu3 %v3039_v24  ;;  %v2935_v24 = vor.u32 %v3593_v19, %v2934_v18  ;;  %v2999_v31 = vor.u32 %v3609_v21, %v2998_v20  ;;  %v3158_v9 = vld [vmem:[%s5555_s1 + $0x6e0] sm:$0xf]  ;;  %v3665_v15 = vld [vmem:[%s5555_s1 + $0x764] sm:$0xf0]  ;;  %v3086_v19 = vld [vmem:[%s5555_s1 + $0x650] sm:$0xf]  ;;  %v3095_v21 = vor.u32 %v3633_v8, %v3094_v3 }
  0x48   :  { %1898 = vmatpush.bf16.msra.mxu0 %v2839_v33  ;;  %v2926_v33 = vld [vmem:[%s5555_s1 + $0x510] sm:$0xf]  ;;  %v3222_v14 = vld [vmem:[%s5555_s1 + $0x760] sm:$0xf]  ;;  %v3681_v18 = vld [vmem:[%s5555_s1 + $0x7e4] sm:$0xf0] }
  0x49   :  { %1911 = vmatpush.bf16.msra.mxu1 %v2903_v35  ;;  %v3591_v35 = vld [vmem:[%s5555_s1 + $0x514] sm:$0xf0]  ;;  %v3223_v26 = vor.u32 %v3665_v15, %v3222_v14  ;;  %v4421_v32 = vld [vmem:[#allocation1 + $0x3f] sm:$0xff]  ;;  %v3629_v43 = vld [vmem:[%s5555_s1 + $0x644] sm:$0xf0] }
  0x4a   :  { %1924 = vmatpush.bf16.msra.mxu2 %v2967_v36  ;;  %v2990_v36 = vld [vmem:[%s5555_s1 + $0x590] sm:$0xf]  ;;  %v2927_v42 = vor.u32 %v3591_v35, %v2926_v33  ;;  %v4398_v17 = vld [vmem:[#allocation1 + $0x1b] sm:$0xff]  ;;  %v3677_v50 = vld [vmem:[%s5555_s1 + $0x7c4] sm:$0xf0] }
  0x4b   :  { %1937 = vmatpush.bf16.msra.mxu3 %v3031_v40  ;;  %v3557_v40 = vld [vmem:[%s5555_s1 + $0x404] sm:$0xf0]  ;;  %v3631_v20 = vld [vmem:[%s5555_s1 + $0x654] sm:$0xf0]  ;;  %v3214_v35 = vld [vmem:[%s5555_s1 + $0x750] sm:$0xf] }
  0x4c   :  { %1899 = vmatpush.bf16.msra.mxu0 %v2831_v46  ;;  %v2991_v46 = vor.u32 %v3607_v37, %v2990_v36  ;;  %v2791_v53 = vor.u32 %v3557_v40, %v2790_v39  ;;  %v3663_v36 = vld [vmem:[%s5555_s1 + $0x754] sm:$0xf0]  ;;  %v3278_v37 = vld [vmem:[%s5555_s1 + $0x7d0] sm:$0xf]  ;;  %v3087_v39 = vor.u32 %v3631_v20, %v3086_v19  ;;  %v3142_v44 = vld [vmem:[%s5555_s1 + $0x6c0] sm:$0xf] }
  0x4d   :  { %1912 = vmatpush.bf16.msra.mxu1 %v2895_v47  ;;  %v3589_v47 = vld [vmem:[%s5555_s1 + $0x504] sm:$0xf0]  ;;  %v3134_v56 = vld [vmem:[%s5555_s1 + $0x6b0] sm:$0xf]  ;;  %v3190_v14 = vld [vmem:[%s5555_s1 + $0x720] sm:$0xf] }
  0x4e   :  { %1925 = vmatpush.bf16.msra.mxu2 %v2959_v48  ;;  %v2982_v48 = vld [vmem:[%s5555_s1 + $0x580] sm:$0xf]  ;;  %v3625_v8 = vld [vmem:[%s5555_s1 + $0x624] sm:$0xf0] }
  0x4f   :  { %1938 = vmatpush.bf16.msra.mxu3 %v3023_v52  ;;  %v3166_v52 = vld [vmem:[%s5555_s1 + $0x6f0] sm:$0xf]  ;;  %v2983_v62 = vor.u32 %v3605_v49, %v2982_v48  ;;  %v3661_v48 = vld [vmem:[%s5555_s1 + $0x744] sm:$0xf0]  ;;  %v3270_v49 = vld [vmem:[%s5555_s1 + $0x7c0] sm:$0xf] }
  0x50   :  { %1900 = vmatpush.bf16.msra.mxu0 %v2823_v58  ;;  %v2919_v58 = vor.u32 %v3589_v47, %v2918_v45  ;;  %v3167_v5 = vor.u32 %v3651_v54, %v3166_v52  ;;  %v3206_v47 = vld [vmem:[%s5555_s1 + $0x740] sm:$0xf]  ;;  %v3070_v54 = vld [vmem:[%s5555_s1 + $0x630] sm:$0xf]  ;;  %v3657_v15 = vld [vmem:[%s5555_s1 + $0x724] sm:$0xf0] }
  0x51   :  { %1913 = vmatpush.bf16.msra.mxu1 %v2887_v59  ;;  %v3294_v59 = vld [vmem:[%s5555_s1 + $0x7f0] sm:$0xf]  ;;  %v3071_v3 = vor.u32 %v3627_v55, %v3070_v54  ;;  %v3715_v55 = vld [vmem:[%s5555_s1 + $0x8f4] sm:$0xf0] }
  0x52   :  { %1926 = vmatpush.bf16.msra.mxu2 %v2951_v60  ;;  %v3683_v60 = vld [vmem:[%s5555_s1 + $0x7f4] sm:$0xf0] }
  0x53   :  { %1939 = vmatpush.bf16.msra.mxu3 %v3015_v4  ;;  %v16_v4 = vld [vmem:[%s5556_s0 + $0x10] sm:$0x3] }
  0x54   :  { %1901 = vmatpush.bf16.msra.mxu0 %v2815_v10  ;;  %v3649_v10 = vld [vmem:[%s5555_s1 + $0x6e4] sm:$0xf0] }
  0x55   :  { %1914 = vmatpush.bf16.msra.mxu1 %v2879_v11  ;;  %v3295_v11 = vor.u32 %v3683_v60, %v3294_v59  ;;  %v3159_v25 = vor.u32 %v3649_v10, %v3158_v9  ;;  %v3198_v59 = vld [vmem:[%s5555_s1 + $0x730] sm:$0xf]  ;;  %v3659_v60 = vld [vmem:[%s5555_s1 + $0x734] sm:$0xf0]  ;;  %v3126_v9 = vld [vmem:[%s5555_s1 + $0x6a0] sm:$0xf] }
  0x56   :  { %1927 = vmatpush.bf16.msra.mxu2 %v2943_v12  ;;  %v4385_v12 = vld [vmem:[#allocation1 + $0x12] sm:$0xff] }
  0x57   :  { %1940 = vmatpush.bf16.msra.mxu3 %v3007_v16  ;;  %v3286_v16 = vld [vmem:[%s5555_s1 + $0x7e0] sm:$0xf] }
  0x58   :  { %1902 = vmatpush.bf16.msra.mxu0 %v2807_v22  ;;  %v3150_v22 = vld [vmem:[%s5555_s1 + $0x6d0] sm:$0xf]  ;;  %v3287_v33 = vor.u32 %v3681_v18, %v3286_v16  ;;  %v3254_v16 = vld [vmem:[%s5555_s1 + $0x7a0] sm:$0xf]  ;;  %v3673_v18 = vld [vmem:[%s5555_s1 + $0x7a4] sm:$0xf0] }
  0x59   :  { %1915 = vmatpush.bf16.msra.mxu1 %v2871_v23  ;;  %v3647_v23 = vld [vmem:[%s5555_s1 + $0x6d4] sm:$0xf0] }
  0x5a   :  { %1928 = vmatpush.bf16.msra.mxu2 %v2935_v24  ;;  %v4415_v24 = vld [vmem:[#allocation1 + $0x24] sm:$0xff]  ;;  %v3151_v40 = vor.u32 %v3647_v23, %v3150_v22  ;;  %v3054_v22 = vld [vmem:[%s5555_s1 + $0x610] sm:$0xf]  ;;  %v3623_v23 = vld [vmem:[%s5555_s1 + $0x614] sm:$0xf0] }
  0x5b   :  { %1941 = vmatpush.bf16.msra.mxu3 %v2999_v31  ;;  %v4419_v31 = vld [vmem:[#allocation1 + $0x2d] sm:$0xff] }
  0x5c   :  { %1903 = vmatpush.bf16.msra.mxu0 %v2799_v38  ;;  %332 = vst [vmem:[#allocation1] ss:$9 sm:$0xff] %v16_v4  ;;  %v3679_v38 = vld [vmem:[%s5555_s1 + $0x7d4] sm:$0xf0] }
  0x5d   :  { %1916 = vmatpush.bf16.msra.mxu1 %v2863_v41  ;;  %v3215_v41 = vor.u32 %v3663_v36, %v3214_v35  ;;  %v3279_v45 = vor.u32 %v3679_v38, %v3278_v37  ;;  %v3182_v35 = vld [vmem:[%s5555_s1 + $0x710] sm:$0xf]  ;;  %v3655_v36 = vld [vmem:[%s5555_s1 + $0x714] sm:$0xf0] }
  0x5e   :  { %1929 = vmatpush.bf16.msra.mxu2 %v2927_v42  ;;  %v3078_v42 = vld [vmem:[%s5555_s1 + $0x640] sm:$0xf]  ;;  %v3246_v37 = vld [vmem:[%s5555_s1 + $0x790] sm:$0xf]  ;;  %v3671_v38 = vld [vmem:[%s5555_s1 + $0x794] sm:$0xf0] }
  0x5f   :  { %1942 = vmatpush.bf16.msra.mxu3 %v2991_v46  ;;  %v3645_v46 = vld [vmem:[%s5555_s1 + $0x6c4] sm:$0xf0]  ;;  %v3079_v51 = vor.u32 %v3629_v43, %v3078_v42  ;;  %v3183_v43 = vor.u32 %v3655_v36, %v3182_v35  ;;  %v3438_v35 = vld [vmem:[%s5555_s1 + $0x54] sm:$0xf]  ;;  %v2320_v36 = vld [vmem:[%s5555_s1 + $0x58] sm:$0xf0] }
  0x60   :  { %1904 = vmatpush.bf16.msra.mxu0 %v2791_v53  ;;  %v3143_v52 = vor.u32 %v3645_v46, %v3142_v44  ;;  %v3207_v53 = vor.u32 %v3661_v48, %v3206_v47  ;;  %v3110_v44 = vld [vmem:[%s5555_s1 + $0x680] sm:$0xf]  ;;  %v3247_v47 = vor.u32 %v3671_v38, %v3246_v37  ;;  %v3653_v48 = vld [vmem:[%s5555_s1 + $0x704] sm:$0xf0]  ;;  %v3454_v37 = vld [vmem:[%s5555_s1 + $0xd4] sm:$0xf] }
  0x61   :  { %1917 = vmatpush.bf16.msra.mxu1 %v2855_v57  ;;  %v3271_v57 = vor.u32 %v3677_v50, %v3270_v49  ;;  %v3174_v46 = vld [vmem:[%s5555_s1 + $0x700] sm:$0xf]  ;;  %v3669_v50 = vld [vmem:[%s5555_s1 + $0x784] sm:$0xf0]  ;;  %v2384_v38 = vld [vmem:[%s5555_s1 + $0xd8] sm:$0xf0] }
  0x62   :  { %1930 = vmatpush.bf16.msra.mxu2 %v2919_v58  ;;  %v3643_v58 = vld [vmem:[%s5555_s1 + $0x6b4] sm:$0xf0]  ;;  %v3238_v49 = vld [vmem:[%s5555_s1 + $0x780] sm:$0xf] }
  0x63   :  { %1943 = vmatpush.bf16.msra.mxu3 %v2983_v62  ;;  %1905 = vmatmul.bf16.vlgmr.msra.gmra.mxu0 %v4374_v7  ;;  %v3262_v62 = vld [vmem:[%s5555_s1 + $0x7b0] sm:$0xf]  ;;  %v3135_v4 = vor.u32 %v3643_v58, %v3134_v56  ;;  %v3442_v56 = vld [vmem:[%s5555_s1 + $0x74] sm:$0xf] }
  0x64   :  { %1949 = vmatpush.bf16.msrb.mxu0 %v3103_v63  ;;  %1918 = vmatmul.bf16.vlgmr.msra.gmra.mxu1 %v4387_v13  ;;  %v3675_v63 = vld [vmem:[%s5555_s1 + $0x7b4] sm:$0xf0] }
  0x65   :  { %1962 = vmatpush.bf16.msrb.mxu1 %v3167_v5  ;;  %1931 = vmatmul.bf16.vlgmr.msra.gmra.mxu2 %v4385_v12  ;;  %v3199_v5 = vor.u32 %v3659_v60, %v3198_v59  ;;  %v3263_v10 = vor.u32 %v3675_v63, %v3262_v62  ;;  %v3175_v59 = vor.u32 %v3653_v48, %v3174_v46  ;;  %v3458_v60 = vld [vmem:[%s5555_s1 + $0xf4] sm:$0xf]  ;;  %v2400_v62 = vld [vmem:[%s5555_s1 + $0xf8] sm:$0xf0]  ;;  %v3709_v46 = vld [vmem:[%s5555_s1 + $0x8c4] sm:$0xf0] }
  0x66   :  { %1975 = vmatpush.bf16.msrb.mxu2 %v3231_v6  ;;  %1944 = vmatmul.bf16.vlgmr.msra.gmra.mxu3 %v4398_v17  ;;  %v3062_v6 = vld [vmem:[%s5555_s1 + $0x620] sm:$0xf]  ;;  %v3239_v63 = vor.u32 %v3669_v50, %v3238_v49  ;;  %v2312_v48 = vld [vmem:[%s5555_s1 + $0x48] sm:$0xf0]  ;;  %v3452_v49 = vld [vmem:[%s5555_s1 + $0xc4] sm:$0xf] }
  0x67   :  { %1988 = vmatpush.bf16.msrb.mxu3 %v3295_v11  ;;  %v3641_v11 = vld [vmem:[%s5555_s1 + $0x6a4] sm:$0xf0]  ;;  %v3063_v19 = vor.u32 %v3625_v8, %v3062_v6  ;;  %v3350_v6 = vld [vmem:[%s5555_s1 + $0x860] sm:$0xf]  ;;  %v2376_v50 = vld [vmem:[%s5555_s1 + $0xc8] sm:$0xf0] }
  0x68   :  { %1950 = vmatpush.bf16.msrb.mxu0 %v3095_v21  ;;  %v3127_v20 = vor.u32 %v3641_v11, %v3126_v9  ;;  %v3191_v21 = vor.u32 %v3657_v15, %v3190_v14  ;;  %v3697_v8 = vld [vmem:[%s5555_s1 + $0x864] sm:$0xf0]  ;;  %v3414_v9 = vld [vmem:[%s5555_s1 + $0x8e0] sm:$0xf]  ;;  %v3440_v14 = vld [vmem:[%s5555_s1 + $0x64] sm:$0xf] }
  0x69   :  { %1963 = vmatpush.bf16.msrb.mxu1 %v3159_v25  ;;  %v3118_v25 = vld [vmem:[%s5555_s1 + $0x690] sm:$0xf]  ;;  %v3713_v11 = vld [vmem:[%s5555_s1 + $0x8e4] sm:$0xf0]  ;;  %v2328_v15 = vld [vmem:[%s5555_s1 + $0x68] sm:$0xf0] }
  0x6a   :  { %1976 = vmatpush.bf16.msrb.mxu2 %v3223_v26  ;;  %v3255_v26 = vor.u32 %v3673_v18, %v3254_v16  ;;  %v3456_v16 = vld [vmem:[%s5555_s1 + $0xe4] sm:$0xf]  ;;  %v2392_v18 = vld [vmem:[%s5555_s1 + $0xe8] sm:$0xf0] }
  0x6b   :  { %1989 = vmatpush.bf16.msrb.mxu3 %v3287_v33  ;;  %v3639_v33 = vld [vmem:[%s5555_s1 + $0x694] sm:$0xf0] }
  0x6c   :  { %1951 = vmatpush.bf16.msrb.mxu0 %v3087_v39  ;;  %v3055_v39 = vor.u32 %v3623_v23, %v3054_v22  ;;  %v3119_v42 = vor.u32 %v3639_v33, %v3118_v25  ;;  %v3342_v22 = vld [vmem:[%s5555_s1 + $0x850] sm:$0xf]  ;;  %v3695_v23 = vld [vmem:[%s5555_s1 + $0x854] sm:$0xf0] }
  0x6d   :  { %1964 = vmatpush.bf16.msrb.mxu1 %v3151_v40  ;;  %v3046_v40 = vld [vmem:[%s5555_s1 + $0x600] sm:$0xf]  ;;  %v3406_v25 = vld [vmem:[%s5555_s1 + $0x8d0] sm:$0xf]  ;;  %v3711_v33 = vld [vmem:[%s5555_s1 + $0x8d4] sm:$0xf0] }
  0x6e   :  { %1977 = vmatpush.bf16.msrb.mxu2 %v3215_v41  ;;  %v3621_v41 = vld [vmem:[%s5555_s1 + $0x604] sm:$0xf0] }
  0x6f   :  { %1990 = vmatpush.bf16.msrb.mxu3 %v3279_v45  ;;  %v3637_v45 = vld [vmem:[%s5555_s1 + $0x684] sm:$0xf0]  ;;  %v3047_v54 = vor.u32 %v3621_v41, %v3046_v40  ;;  %v3407_v40 = vor.u32 %v3711_v33, %v3406_v25  ;;  %v2323_v41 = vor.u32 %v3438_v35, %v2320_v36  ;;  %v3374_v25 = vld [vmem:[%s5555_s1 + $0x890] sm:$0xf]  ;;  %v3703_v33 = vld [vmem:[%s5555_s1 + $0x894] sm:$0xf0] }
  0x70   :  { %1952 = vmatpush.bf16.msrb.mxu0 %v3079_v51  ;;  %v3358_v51 = vld [vmem:[%s5555_s1 + $0x870] sm:$0xf]  ;;  %v3111_v58 = vor.u32 %v3637_v45, %v3110_v44  ;;  %v3398_v44 = vld [vmem:[%s5555_s1 + $0x8c0] sm:$0xf]  ;;  %v2387_v45 = vor.u32 %v3454_v37, %v2384_v38  ;;  %v3430_v35 = vld [vmem:[%s5555_s1 + $0x14] sm:$0xf] }
  0x71   :  { %1965 = vmatpush.bf16.msrb.mxu1 %v3143_v52  ;;  %v3699_v52 = vld [vmem:[%s5555_s1 + $0x874] sm:$0xf0]  ;;  %v2288_v36 = vld [vmem:[%s5555_s1 + $0x18] sm:$0xf0]  ;;  %v3446_v37 = vld [vmem:[%s5555_s1 + $0x94] sm:$0xf] }
  0x72   :  { %1978 = vmatpush.bf16.msrb.mxu2 %v3207_v53  ;;  %v3422_v53 = vld [vmem:[%s5555_s1 + $0x8f0] sm:$0xf]  ;;  %v2352_v38 = vld [vmem:[%s5555_s1 + $0x98] sm:$0xf0] }
  0x73   :  { %1991 = vmatpush.bf16.msrb.mxu3 %v3271_v57  ;;  %v2336_v57 = vld [vmem:[%s5555_s1 + $0x78] sm:$0xf0] }
  0x74   :  { %1953 = vmatpush.bf16.msrb.mxu0 %v3071_v3  ;;  %v3359_v3 = vor.u32 %v3699_v52, %v3358_v51  ;;  %v3399_v52 = vor.u32 %v3709_v46, %v3398_v44  ;;  %v3366_v44 = vld [vmem:[%s5555_s1 + $0x880] sm:$0xf]  ;;  %v3428_v46 = vld [vmem:[%s5555_s1 + $0x4] sm:$0xf] }
  0x75   :  { %1966 = vmatpush.bf16.msrb.mxu1 %v3135_v4  ;;  %v3423_v4 = vor.u32 %v3715_v55, %v3422_v53  ;;  %v3691_v55 = vld [vmem:[%s5555_s1 + $0x834] sm:$0xf0] }
  0x76   :  { %1979 = vmatpush.bf16.msrb.mxu2 %v3199_v5  ;;  %v2339_v5 = vor.u32 %v3442_v56, %v2336_v57  ;;  %v3390_v56 = vld [vmem:[%s5555_s1 + $0x8b0] sm:$0xf]  ;;  %v2379_v57 = vor.u32 %v3452_v49, %v2376_v50  ;;  %v3444_v49 = vld [vmem:[%s5555_s1 + $0x84] sm:$0xf]  ;;  %v2344_v50 = vld [vmem:[%s5555_s1 + $0x88] sm:$0xf0] }
  0x77   :  { %1992 = vmatpush.bf16.msrb.mxu3 %v3263_v10  ;;  %v2403_v10 = vor.u32 %v3458_v60, %v2400_v62  ;;  %v2304_v60 = vld [vmem:[%s5555_s1 + $0x38] sm:$0xf0]  ;;  %v3450_v62 = vld [vmem:[%s5555_s1 + $0xb4] sm:$0xf] }
  0x78   :  { %1954 = vmatpush.bf16.msrb.mxu0 %v3063_v19  ;;  %v3351_v19 = vor.u32 %v3697_v8, %v3350_v6  ;;  %v3318_v6 = vld [vmem:[%s5555_s1 + $0x820] sm:$0xf]  ;;  %v3689_v8 = vld [vmem:[%s5555_s1 + $0x824] sm:$0xf0] }
  0x79   :  { %1967 = vmatpush.bf16.msrb.mxu1 %v3127_v20  ;;  %v3415_v20 = vor.u32 %v3713_v11, %v3414_v9  ;;  %v3382_v9 = vld [vmem:[%s5555_s1 + $0x8a0] sm:$0xf]  ;;  %v3705_v11 = vld [vmem:[%s5555_s1 + $0x8a4] sm:$0xf0] }
  0x7a   :  { %1980 = vmatpush.bf16.msrb.mxu2 %v3191_v21  ;;  %v2331_v21 = vor.u32 %v3440_v14, %v2328_v15  ;;  %v3432_v14 = vld [vmem:[%s5555_s1 + $0x24] sm:$0xf]  ;;  %v2296_v15 = vld [vmem:[%s5555_s1 + $0x28] sm:$0xf0] }
  0x7b   :  { %1993 = vmatpush.bf16.msrb.mxu3 %v3255_v26  ;;  %v2395_v26 = vor.u32 %v3456_v16, %v2392_v18  ;;  %v3448_v16 = vld [vmem:[%s5555_s1 + $0xa4] sm:$0xf]  ;;  %v2360_v18 = vld [vmem:[%s5555_s1 + $0xa8] sm:$0xf0] }
  0x7c   :  { %1955 = vmatpush.bf16.msrb.mxu0 %v3055_v39  ;;  %v3343_v39 = vor.u32 %v3695_v23, %v3342_v22  ;;  %v3310_v22 = vld [vmem:[%s5555_s1 + $0x810] sm:$0xf]  ;;  %v3687_v23 = vld [vmem:[%s5555_s1 + $0x814] sm:$0xf0] }
  0x7d   :  { %1968 = vmatpush.bf16.msrb.mxu1 %v3119_v42  ;;  %v3334_v42 = vld [vmem:[%s5555_s1 + $0x840] sm:$0xf] }
  0x7e   :  { %1981 = vmatpush.bf16.msrb.mxu2 %v3183_v43  ;;  %v3693_v43 = vld [vmem:[%s5555_s1 + $0x844] sm:$0xf0] }
  0x7f   :  { %1994 = vmatpush.bf16.msrb.mxu3 %v3247_v47  ;;  %v3436_v47 = vld [vmem:[%s5555_s1 + $0x44] sm:$0xf]  ;;  %v3335_v51 = vor.u32 %v3693_v43, %v3334_v42  ;;  %v3375_v42 = vor.u32 %v3703_v33, %v3374_v25  ;;  %v2291_v43 = vor.u32 %v3430_v35, %v2288_v36  ;;  %v3470_v25 = vld [vmem:[%s5555_s1 + $0x154] sm:$0xf]  ;;  %v2512_v36 = vld [vmem:[%s5555_s1 + $0x1d8] sm:$0xf0] }
  0x80   :  { %1956 = vmatpush.bf16.msrb.mxu0 %v3047_v54  ;;  %v2315_v53 = vor.u32 %v3436_v47, %v2312_v48  ;;  %v3326_v54 = vld [vmem:[%s5555_s1 + $0x830] sm:$0xf]  ;;  %v2355_v47 = vor.u32 %v3446_v37, %v2352_v38  ;;  %v2280_v48 = vld [vmem:[%s5555_s1 + $0x8] sm:$0xf0]  ;;  %v3486_v33 = vld [vmem:[%s5555_s1 + $0x1d4] sm:$0xf] }
  0x81   :  { %1969 = vmatpush.bf16.msrb.mxu1 %v3111_v58  ;;  %v3707_v58 = vld [vmem:[%s5555_s1 + $0x8b4] sm:$0xf0]  ;;  %v3502_v37 = vld [vmem:[%s5555_s1 + $0x254] sm:$0xf]  ;;  %v2576_v38 = vld [vmem:[%s5555_s1 + $0x258] sm:$0xf0] }
  0x82   :  { %1982 = vmatpush.bf16.msrb.mxu2 %v3175_v59  ;;  %v3434_v59 = vld [vmem:[%s5555_s1 + $0x34] sm:$0xf] }
  0x83   :  { %1995 = vmatpush.bf16.msrb.mxu3 %v3239_v63  ;;  %1957 = vmatmul.bf16.vlgmr.msrb.gmra.mxu0 %v4415_v24  ;;  %v2368_v63 = vld [vmem:[%s5555_s1 + $0xb8] sm:$0xf0] }
  0x84   :  { %2001 = vmatpush.bf16.msra.mxu0 %v3359_v3  ;;  %1970 = vmatmul.bf16.vlgmr.msrb.gmra.mxu1 %v4419_v31  ;;  %v3327_v3 = vor.u32 %v3691_v55, %v3326_v54  ;;  %v2528_v55 = vld [vmem:[%s5555_s1 + $0x1f8] sm:$0xf0] }
  0x85   :  { %2014 = vmatpush.bf16.msra.mxu1 %v3423_v4  ;;  %1983 = vmatmul.bf16.vlgmr.msrb.gmra.mxu2 %v4417_v30  ;;  %v3391_v4 = vor.u32 %v3707_v58, %v3390_v56  ;;  %v3506_v56 = vld [vmem:[%s5555_s1 + $0x274] sm:$0xf] }
  0x86   :  { %2027 = vmatpush.bf16.msra.mxu2 %v2339_v5  ;;  %1996 = vmatmul.bf16.vlgmr.msrb.gmra.mxu3 %v4421_v32  ;;  %v2307_v5 = vor.u32 %v3434_v59, %v2304_v60  ;;  %v2283_v59 = vor.u32 %v3428_v46, %v2280_v48  ;;  %v3522_v60 = vld [vmem:[%s5555_s1 + $0x2f4] sm:$0xf]  ;;  %v2568_v48 = vld [vmem:[%s5555_s1 + $0x248] sm:$0xf0] }
  0x87   :  { %2040 = vmatpush.bf16.msra.mxu3 %v2403_v10  ;;  %v2371_v10 = vor.u32 %v3450_v62, %v2368_v63  ;;  %v2656_v62 = vld [vmem:[%s5555_s1 + $0x2f8] sm:$0xf0]  ;;  %v2347_v63 = vor.u32 %v3444_v49, %v2344_v50  ;;  %v3516_v49 = vld [vmem:[%s5555_s1 + $0x2c4] sm:$0xf]  ;;  %v2632_v50 = vld [vmem:[%s5555_s1 + $0x2c8] sm:$0xf0] }
  0x88   :  { %2002 = vmatpush.bf16.msra.mxu0 %v3351_v19  ;;  %v3319_v19 = vor.u32 %v3689_v8, %v3318_v6  ;;  %v3472_v6 = vld [vmem:[%s5555_s1 + $0x164] sm:$0xf]  ;;  %v2456_v8 = vld [vmem:[%s5555_s1 + $0x168] sm:$0xf0] }
  0x89   :  { %2015 = vmatpush.bf16.msra.mxu1 %v3415_v20  ;;  %v3383_v20 = vor.u32 %v3705_v11, %v3382_v9  ;;  %v3488_v9 = vld [vmem:[%s5555_s1 + $0x1e4] sm:$0xf]  ;;  %v2520_v11 = vld [vmem:[%s5555_s1 + $0x1e8] sm:$0xf0] }
  0x8a   :  { %2028 = vmatpush.bf16.msra.mxu2 %v2331_v21  ;;  %v2299_v21 = vor.u32 %v3432_v14, %v2296_v15  ;;  %v3504_v14 = vld [vmem:[%s5555_s1 + $0x264] sm:$0xf]  ;;  %v2584_v15 = vld [vmem:[%s5555_s1 + $0x268] sm:$0xf0] }
  0x8b   :  { %2041 = vmatpush.bf16.msra.mxu3 %v2395_v26  ;;  %v2363_v26 = vor.u32 %v3448_v16, %v2360_v18  ;;  %v333_v16 = vld [vmem:[#allocation1] sm:$0xff] }
  0x8c   :  { %2003 = vmatpush.bf16.msra.mxu0 %v3343_v39  ;;  %v3311_v39 = vor.u32 %v3687_v23, %v3310_v22  ;;  %v3520_v18 = vld [vmem:[%s5555_s1 + $0x2e4] sm:$0xf]  ;;  %v2523_v22 = vor.u32 %v3488_v9, %v2520_v11  ;;  %v2587_v23 = vor.u32 %v3504_v14, %v2584_v15  ;;  %v2552_v15 = vld [vmem:[%s5555_s1 + $0x228] sm:$0xf0] }
  0x8d   :  { %2016 = vmatpush.bf16.msra.mxu1 %v3407_v40  ;;  %v3302_v40 = vld [vmem:[%s5555_s1 + $0x800] sm:$0xf]  ;;  %v3480_v9 = vld [vmem:[%s5555_s1 + $0x1a4] sm:$0xf] }
  0x8e   :  { %2029 = vmatpush.bf16.msra.mxu2 %v2323_v41  ;;  %v3685_v41 = vld [vmem:[%s5555_s1 + $0x804] sm:$0xf0]  ;;  %v3496_v14 = vld [vmem:[%s5555_s1 + $0x224] sm:$0xf] }
  0x8f   :  { %2042 = vmatpush.bf16.msra.mxu3 %v2387_v45  ;;  %v3701_v45 = vld [vmem:[%s5555_s1 + $0x884] sm:$0xf0]  ;;  %v3303_v54 = vor.u32 %v3685_v41, %v3302_v40  ;;  %v2640_v40 = vld [vmem:[%s5555_s1 + $0x2d8] sm:$0xf0] }
  0x90   :  { %2004 = vmatpush.bf16.msra.mxu0 %v3335_v51  ;;  %v3474_v51 = vld [vmem:[%s5555_s1 + $0x174] sm:$0xf]  ;;  %v3367_v58 = vor.u32 %v3701_v45, %v3366_v44  ;;  %v3468_v44 = vld [vmem:[%s5555_s1 + $0x144] sm:$0xf]  ;;  %v2440_v45 = vld [vmem:[%s5555_s1 + $0x148] sm:$0xf0] }
  0x91   :  { %2017 = vmatpush.bf16.msra.mxu1 %v3399_v52  ;;  %v2464_v52 = vld [vmem:[%s5555_s1 + $0x178] sm:$0xf0] }
  0x92   :  { %2030 = vmatpush.bf16.msra.mxu2 %v2315_v53  ;;  %v3490_v53 = vld [vmem:[%s5555_s1 + $0x1f4] sm:$0xf] }
  0x93   :  { %2043 = vmatpush.bf16.msra.mxu3 %v2379_v57  ;;  %v2592_v57 = vld [vmem:[%s5555_s1 + $0x278] sm:$0xf0] }
  0x94   :  { %2005 = vmatpush.bf16.msra.mxu0 %v3327_v3  ;;  %v2467_v3 = vor.u32 %v3474_v51, %v2464_v52  ;;  %v2443_v51 = vor.u32 %v3468_v44, %v2440_v45 }
  0x95   :  { %2018 = vmatpush.bf16.msra.mxu1 %v3391_v4  ;;  %v2531_v4 = vor.u32 %v3490_v53, %v2528_v55  ;;  %v2432_v55 = vld [vmem:[%s5555_s1 + $0x138] sm:$0xf0] }
  0x96   :  { %2031 = vmatpush.bf16.msra.mxu2 %v2307_v5  ;;  %v2595_v5 = vor.u32 %v3506_v56, %v2592_v57  ;;  %v3482_v56 = vld [vmem:[%s5555_s1 + $0x1b4] sm:$0xf]  ;;  %v2635_v57 = vor.u32 %v3516_v49, %v2632_v50 }
  0x97   :  { %2044 = vmatpush.bf16.msra.mxu3 %v2371_v10  ;;  %v2659_v10 = vor.u32 %v3522_v60, %v2656_v62  ;;  %v2560_v60 = vld [vmem:[%s5555_s1 + $0x238] sm:$0xf0]  ;;  %v3514_v62 = vld [vmem:[%s5555_s1 + $0x2b4] sm:$0xf] }
  0x98   :  { %2006 = vmatpush.bf16.msra.mxu0 %v3319_v19  ;;  %v2648_v19 = vld [vmem:[%s5555_s1 + $0x2e8] sm:$0xf0] }
  0x99   :  { %2019 = vmatpush.bf16.msra.mxu1 %v3383_v20  ;;  %v334_v20 = vld [vmem:[#allocation1 + $0x9] sm:$0xff]  ;;  %v2651_v35 = vor.u32 %v3520_v18, %v2648_v19  ;;  %v3512_v18 = vld [vmem:[%s5555_s1 + $0x2a4] sm:$0xf] }
  0x9a   :  { %2032 = vmatpush.bf16.msra.mxu2 %v2299_v21  ;;  %v2459_v21 = vor.u32 %v3472_v6, %v2456_v8  ;;  %v2424_v8 = vld [vmem:[%s5555_s1 + $0x128] sm:$0xf0] }
  0x9b   :  { %2045 = vmatpush.bf16.msra.mxu3 %v2363_v26  ;;  %v2448_v26 = vld [vmem:[%s5555_s1 + $0x158] sm:$0xf0]  ;;  %v2616_v19 = vld [vmem:[%s5555_s1 + $0x2a8] sm:$0xf0] }
  0x9c   :  { %2007 = vmatpush.bf16.msra.mxu0 %v3311_v39  ;;  %v3518_v39 = vld [vmem:[%s5555_s1 + $0x2d4] sm:$0xf]  ;;  %v2451_v41 = vor.u32 %v3470_v25, %v2448_v26  ;;  %v2416_v25 = vld [vmem:[%s5555_s1 + $0x118] sm:$0xf0] }
  0x9d   :  { %2020 = vmatpush.bf16.msra.mxu1 %v3375_v42  ;;  %v2515_v42 = vor.u32 %v3486_v33, %v2512_v36  ;;  %v2643_v46 = vor.u32 %v3518_v39, %v2640_v40  ;;  %v3478_v26 = vld [vmem:[%s5555_s1 + $0x194] sm:$0xf]  ;;  %v2480_v36 = vld [vmem:[%s5555_s1 + $0x198] sm:$0xf0] }
  0x9e   :  { %2033 = vmatpush.bf16.msra.mxu2 %v2291_v43  ;;  %v2579_v43 = vor.u32 %v3502_v37, %v2576_v38  ;;  %v3494_v37 = vld [vmem:[%s5555_s1 + $0x214] sm:$0xf]  ;;  %v2544_v38 = vld [vmem:[%s5555_s1 + $0x218] sm:$0xf0]  ;;  %v2483_v45 = vor.u32 %v3478_v26, %v2480_v36  ;;  %v2904_v36 = vld [vmem:[%s5555_s1 + $0x4e8] sm:$0xf0] }
  0x9f   :  { %2046 = vmatpush.bf16.msra.mxu3 %v2355_v47  ;;  %v3500_v47 = vld [vmem:[%s5555_s1 + $0x244] sm:$0xf]  ;;  %v3510_v39 = vld [vmem:[%s5555_s1 + $0x294] sm:$0xf]  ;;  %v2608_v40 = vld [vmem:[%s5555_s1 + $0x298] sm:$0xf0] }
  0xa0   :  { %2008 = vmatpush.bf16.msra.mxu0 %v3303_v54  ;;  %v2571_v53 = vor.u32 %v3500_v47, %v2568_v48  ;;  %v3466_v54 = vld [vmem:[%s5555_s1 + $0x134] sm:$0xf]  ;;  %v3492_v47 = vld [vmem:[%s5555_s1 + $0x204] sm:$0xf]  ;;  %v2611_v50 = vor.u32 %v3510_v39, %v2608_v40 }
  0xa1   :  { %2021 = vmatpush.bf16.msra.mxu1 %v3367_v58  ;;  %v2496_v58 = vld [vmem:[%s5555_s1 + $0x1b8] sm:$0xf0] }
  0xa2   :  { %2034 = vmatpush.bf16.msra.mxu2 %v2283_v59  ;;  %v3498_v59 = vld [vmem:[%s5555_s1 + $0x234] sm:$0xf] }
  0xa3   :  { %2047 = vmatpush.bf16.msra.mxu3 %v2347_v63  ;;  %2009 = vmatmul.bf16.vlgmr.msra.gmra.mxu0 %v333_v16  ;;  %v2624_v63 = vld [vmem:[%s5555_s1 + $0x2b8] sm:$0xf0]  ;;  %v2563_v6 = vor.u32 %v3498_v59, %v2560_v60  ;;  %v4898_v16 = vld [vmem:[%s5557_s2] sm:$0x3]  ;;  %v3570_v60 = vld [vmem:[%s5555_s1 + $0x474] sm:$0xf] }
  0xa4   :  { %2053 = vmatpush.bf16.msrb.mxu0 %v2467_v3  ;;  %2022 = vmatmul.bf16.vlgmr.msra.gmra.mxu1 %v334_v20  ;;  %v2435_v3 = vor.u32 %v3466_v54, %v2432_v55  ;;  %v2627_v11 = vor.u32 %v3514_v62, %v2624_v63  ;;  %v307_v33 = vperm.slane %v4898_v16, 0  ;;  %v3538_v54 = vld [vmem:[%s5555_s1 + $0x374] sm:$0xf]  ;;  %v2720_v55 = vld [vmem:[%s5555_s1 + $0x378] sm:$0xf0] }
  0xa5   :  { %2066 = vmatpush.bf16.msrb.mxu1 %v2531_v4  ;;  %2035 = vmatmul.bf16.vlgmr.msra.gmra.mxu2 %v4058_v28  ;;  %v3484_v28 = vld [vmem:[%s5555_s1 + $0x1c4] sm:$0xf]  ;;  %v2784_v59 = vld [vmem:[%s5555_s1 + $0x3f8] sm:$0xf0] }
  0xa6   :  { %2079 = vmatpush.bf16.msrb.mxu2 %v2595_v5  ;;  %2048 = vmatmul.bf16.vlgmr.msra.gmra.mxu3 %v4068_v34  ;;  %v2504_v34 = vld [vmem:[%s5555_s1 + $0x1c8] sm:$0xf0]  ;;  %v3464_v4 = vld [vmem:[%s5555_s1 + $0x124] sm:$0xf]  ;;  %v2499_v5 = vor.u32 %v3482_v56, %v2496_v58  ;;  %v1802_v44 = vpop.f32.mrf.mxu0  ;;  %v3554_v56 = vld [vmem:[%s5555_s1 + $0x3f4] sm:$0xf] }
  0xa7   :  { %2092 = vmatpush.bf16.msrb.mxu3 %v2659_v10  ;;  %v2507_v52 = vor.u32 %v3484_v28, %v2504_v34  ;;  %v2488_v10 = vld [vmem:[%s5555_s1 + $0x1a8] sm:$0xf0]  ;;  %v2427_v20 = vor.u32 %v3464_v4, %v2424_v8  ;;  %v2547_v28 = vor.u32 %v3494_v37, %v2544_v38  ;;  %v1803_v48 = vadd.f32 %v1802_v44, %v307_v33  ;;  %v1815_v49 = vpop.f32.mrf.mxu1  ;;  %v2848_v62 = vld [vmem:[%s5555_s1 + $0x478] sm:$0xf0]  ;;  %v3586_v4 = vld [vmem:[%s5555_s1 + $0x4f4] sm:$0xf] }
  0xa8   :  { %2054 = vmatpush.bf16.msrb.mxu0 %v2459_v21  ;;  %v3462_v21 = vld [vmem:[%s5555_s1 + $0x114] sm:$0xf]  ;;  %v2472_v34 = vld [vmem:[%s5555_s1 + $0x188] sm:$0xf0] }
  0xa9   :  { %2067 = vmatpush.bf16.msrb.mxu1 %v2523_v22  ;;  %v2491_v22 = vor.u32 %v3480_v9, %v2488_v10  ;;  %v2723_v9 = vor.u32 %v3538_v54, %v2720_v55  ;;  %v3564_v54 = vld [vmem:[%s5555_s1 + $0x444] sm:$0xf]  ;;  %v2824_v55 = vld [vmem:[%s5555_s1 + $0x448] sm:$0xf0] }
  0xaa   :  { %2080 = vmatpush.bf16.msrb.mxu2 %v2587_v23  ;;  %v2555_v23 = vor.u32 %v3496_v14, %v2552_v15  ;;  %v2787_v14 = vor.u32 %v3554_v56, %v2784_v59  ;;  %v2851_v15 = vor.u32 %v3570_v60, %v2848_v62  ;;  %v3580_v56 = vld [vmem:[%s5555_s1 + $0x4c4] sm:$0xf]  ;;  %v2827_v62 = vor.u32 %v3564_v54, %v2824_v55 }
  0xab   :  { %2093 = vmatpush.bf16.msrb.mxu3 %v2651_v35  ;;  %v2619_v35 = vor.u32 %v3512_v18, %v2616_v19  ;;  %v3536_v18 = vld [vmem:[%s5555_s1 + $0x364] sm:$0xf]  ;;  %v2712_v19 = vld [vmem:[%s5555_s1 + $0x368] sm:$0xf0] }
  0xac   :  { %2055 = vmatpush.bf16.msrb.mxu0 %v2451_v41  ;;  %v2419_v41 = vor.u32 %v3462_v21, %v2416_v25  ;;  %v2840_v25 = vld [vmem:[%s5555_s1 + $0x468] sm:$0xf0]  ;;  %v2715_v38 = vor.u32 %v3536_v18, %v2712_v19 }
  0xad   :  { %2068 = vmatpush.bf16.msrb.mxu1 %v2515_v42  ;;  %v3460_v42 = vld [vmem:[%s5555_s1 + $0x104] sm:$0xf] }
  0xae   :  { %2081 = vmatpush.bf16.msrb.mxu2 %v2579_v43  ;;  %v2408_v43 = vld [vmem:[%s5555_s1 + $0x108] sm:$0xf0]  ;;  %v1804_v33 = vpop.f32.mrf.mxu0 }
  0xaf   :  { %2094 = vmatpush.bf16.msrb.mxu3 %v2643_v46  ;;  %v3476_v46 = vld [vmem:[%s5555_s1 + $0x184] sm:$0xf]  ;;  %v2411_v58 = vor.u32 %v3460_v42, %v2408_v43  ;;  %v1817_v37 = vpop.f32.mrf.mxu1  ;;  %v2704_v42 = vld [vmem:[%s5555_s1 + $0x358] sm:$0xf0]  ;;  %v3550_v43 = vld [vmem:[%s5555_s1 + $0x3d4] sm:$0xf] }
  0xb0   :  { %2056 = vmatpush.bf16.msrb.mxu0 %v2443_v51  ;;  %v2536_v51 = vld [vmem:[%s5555_s1 + $0x208] sm:$0xf0]  ;;  %v2475_v63 = vor.u32 %v3476_v46, %v2472_v34  ;;  %v2832_v46 = vld [vmem:[%s5555_s1 + $0x458] sm:$0xf0]  ;;  %v3582_v34 = vld [vmem:[%s5555_s1 + $0x4d4] sm:$0xf] }
  0xb1   :  { %2069 = vmatpush.bf16.msrb.mxu1 %v2507_v52  ;;  %v3508_v52 = vld [vmem:[%s5555_s1 + $0x284] sm:$0xf]  ;;  %v2808_v37 = vld [vmem:[%s5555_s1 + $0x428] sm:$0xf0] }
  0xb2   :  { %2082 = vmatpush.bf16.msrb.mxu2 %v2571_v53  ;;  %v2600_v53 = vld [vmem:[%s5555_s1 + $0x288] sm:$0xf0] }
  0xb3   :  { %2095 = vmatpush.bf16.msrb.mxu3 %v2635_v57  ;;  %v1816_v57 = vadd.f32 %v1815_v49, %v1803_v48  ;;  %v2603_v8 = vor.u32 %v3508_v52, %v2600_v53  ;;  %v3532_v52 = vld [vmem:[%s5555_s1 + $0x344] sm:$0xf] }
  0xb4   :  { %2057 = vmatpush.bf16.msrb.mxu0 %v2435_v3  ;;  %v2539_v3 = vor.u32 %v3492_v47, %v2536_v51 }
  0xb5   :  { %2070 = vmatpush.bf16.msrb.mxu1 %v2499_v5  ;;  %v2912_v5 = vld [vmem:[%s5555_s1 + $0x4f8] sm:$0xf0] }
  0xb6   :  { %2083 = vmatpush.bf16.msrb.mxu2 %v2563_v6  ;;  %v1828_v6 = vpop.f32.mrf.mxu2  ;;  %v2915_v21 = vor.u32 %v3586_v4, %v2912_v5  ;;  %v3546_v4 = vld [vmem:[%s5555_s1 + $0x3b4] sm:$0xf] }
  0xb7   :  { %2096 = vmatpush.bf16.msrb.mxu3 %v2627_v11  ;;  %v1829_v10 = vadd.f32 %v1828_v6, %v1816_v57  ;;  %v1841_v11 = vpop.f32.mrf.mxu3  ;;  %v2888_v57 = vld [vmem:[%s5555_s1 + $0x4c8] sm:$0xf0] }
  0xb8   :  { %2058 = vmatpush.bf16.msrb.mxu0 %v2427_v20  ;;  %v3552_v20 = vld [vmem:[%s5555_s1 + $0x3e4] sm:$0xf] }
  0xb9   :  { %2071 = vmatpush.bf16.msrb.mxu1 %v2491_v22  ;;  %v2776_v22 = vld [vmem:[%s5555_s1 + $0x3e8] sm:$0xf0]  ;;  %v1842_v26 = vadd.f32 %v1841_v11, %v1829_v10  ;;  %v3562_v10 = vld [vmem:[%s5555_s1 + $0x434] sm:$0xf]  ;;  %v2816_v11 = vld [vmem:[%s5555_s1 + $0x438] sm:$0xf0] }
  0xba   :  { %2084 = vmatpush.bf16.msrb.mxu2 %v2555_v23  ;;  %v3568_v23 = vld [vmem:[%s5555_s1 + $0x464] sm:$0xf]  ;;  %v2779_v39 = vor.u32 %v3552_v20, %v2776_v22 }
  0xbb   :  { %2097 = vmatpush.bf16.msrb.mxu3 %v2619_v35  ;;  %v3584_v35 = vld [vmem:[%s5555_s1 + $0x4e4] sm:$0xf]  ;;  %v2843_v40 = vor.u32 %v3568_v23, %v2840_v25  ;;  %v2680_v23 = vld [vmem:[%s5555_s1 + $0x328] sm:$0xf0] }
  0xbc   :  { %2059 = vmatpush.bf16.msrb.mxu0 %v2419_v41  ;;  %v3534_v41 = vld [vmem:[%s5555_s1 + $0x354] sm:$0xf]  ;;  %v2907_v44 = vor.u32 %v3584_v35, %v2904_v36  ;;  %v3528_v22 = vld [vmem:[%s5555_s1 + $0x324] sm:$0xf]  ;;  %v2744_v35 = vld [vmem:[%s5555_s1 + $0x3a8] sm:$0xf0] }
  0xbd   :  { %2072 = vmatpush.bf16.msrb.mxu1 %v2483_v45  ;;  %v2768_v45 = vld [vmem:[%s5555_s1 + $0x3d8] sm:$0xf0]  ;;  %v2707_v48 = vor.u32 %v3534_v41, %v2704_v42  ;;  %v3544_v25 = vld [vmem:[%s5555_s1 + $0x3a4] sm:$0xf]  ;;  %v2872_v41 = vld [vmem:[%s5555_s1 + $0x4a8] sm:$0xf0]  ;;  %v2683_v42 = vor.u32 %v3528_v22, %v2680_v23 }
  0xbe   :  { %2085 = vmatpush.bf16.msrb.mxu2 %v2547_v28  ;;  %v3566_v28 = vld [vmem:[%s5555_s1 + $0x454] sm:$0xf]  ;;  %v1830_v47 = vpop.f32.mrf.mxu2  ;;  %v3560_v36 = vld [vmem:[%s5555_s1 + $0x424] sm:$0xf] }
  0xbf   :  { %2098 = vmatpush.bf16.msrb.mxu3 %v2611_v50  ;;  %v1843_v49 = vpop.f32.mrf.mxu3  ;;  %v2771_v50 = vor.u32 %v3550_v43, %v2768_v45  ;;  %v2835_v51 = vor.u32 %v3566_v28, %v2832_v46  ;;  %v2747_v45 = vor.u32 %v3544_v25, %v2744_v35  ;;  %v2811_v28 = vor.u32 %v3560_v36, %v2808_v37  ;;  %v3526_v46 = vld [vmem:[%s5555_s1 + $0x314] sm:$0xf]  ;;  %v3616_v35 = vld [vmem:[%s5555_s1 + $0x5e4] sm:$0xf]  ;;  %v3032_v37 = vld [vmem:[%s5555_s1 + $0x5e8] sm:$0xf0] }
  0xc0   :  { %2060 = vmatpush.bf16.msrb.mxu0 %v2411_v58  ;;  %v1854_v59 = vpop.f32.mrf.mxu0  ;;  %v2736_v49 = vld [vmem:[%s5555_s1 + $0x398] sm:$0xf0] }
  0xc1   :  { %2073 = vmatpush.bf16.msrb.mxu1 %v2475_v63  ;;  %v3530_v63 = vld [vmem:[%s5555_s1 + $0x334] sm:$0xf]  ;;  %v1855_v5 = vadd.f32 %v1854_v59, %v1842_v26  ;;  %v1867_v6 = vpop.f32.mrf.mxu1 }
  0xc2   :  { %2086 = vmatpush.bf16.msrb.mxu2 %v2539_v3  ;;  %v2688_v3 = vld [vmem:[%s5555_s1 + $0x338] sm:$0xf0] }
  0xc3   :  { %2099 = vmatpush.bf16.msrb.mxu3 %v2603_v8  ;;  %2061 = vmatmul.bf16.vlgmr.msrb.gmra.mxu0 %v4056_v27  ;;  %v2696_v27 = vld [vmem:[%s5555_s1 + $0x348] sm:$0xf0]  ;;  %v2891_v8 = vor.u32 %v3580_v56, %v2888_v57  ;;  %v1868_v18 = vadd.f32 %v1867_v6, %v1855_v5  ;;  %v2691_v19 = vor.u32 %v3530_v63, %v2688_v3  ;;  %v3540_v56 = vld [vmem:[%s5555_s1 + $0x384] sm:$0xf]  ;;  %v3602_v5 = vld [vmem:[%s5555_s1 + $0x574] sm:$0xf] }
  0xc4   :  { %2105 = vmatpush.bf16.msra.mxu0 %v2723_v9  ;;  %2074 = vmatmul.bf16.vlgmr.msrb.gmra.mxu1 %v4060_v29  ;;  %v2760_v29 = vld [vmem:[%s5555_s1 + $0x3c8] sm:$0xf0]  ;;  %v2699_v58 = vor.u32 %v3532_v52, %v2696_v27  ;;  %v2752_v9 = vld [vmem:[%s5555_s1 + $0x3b8] sm:$0xf0]  ;;  %v3574_v52 = vld [vmem:[%s5555_s1 + $0x494] sm:$0xf] }
  0xc5   :  { %2118 = vmatpush.bf16.msra.mxu1 %v2787_v14  ;;  %2087 = vmatmul.bf16.vlgmr.msrb.gmra.mxu2 %v4136_v0  ;;  %v2896_v0 = vld [vmem:[%s5555_s1 + $0x4d8] sm:$0xf0]  ;;  %v3578_v14 = vld [vmem:[%s5555_s1 + $0x4b4] sm:$0xf]  ;;  %v2755_v20 = vor.u32 %v3546_v4, %v2752_v9  ;;  %v2728_v57 = vld [vmem:[%s5555_s1 + $0x388] sm:$0xf0] }
  0xc6   :  { %2131 = vmatpush.bf16.msra.mxu2 %v2851_v15  ;;  %2100 = vmatmul.bf16.vlgmr.msrb.gmra.mxu3 %v4140_v2  ;;  %v3548_v2 = vld [vmem:[%s5555_s1 + $0x3c4] sm:$0xf]  ;;  %v2899_v53 = vor.u32 %v3582_v34, %v2896_v0  ;;  %v2880_v15 = vld [vmem:[%s5555_s1 + $0x4b8] sm:$0xf0]  ;;  %v3542_v0 = vld [vmem:[%s5555_s1 + $0x394] sm:$0xf] }
  0xc7   :  { %2144 = vmatpush.bf16.msra.mxu3 %v2915_v21  ;;  %v2763_v60 = vor.u32 %v3548_v2, %v2760_v29  ;;  %v2819_v21 = vor.u32 %v3562_v10, %v2816_v11  ;;  %v2883_v33 = vor.u32 %v3578_v14, %v2880_v15  ;;  %v2672_v34 = vld [vmem:[%s5555_s1 + $0x318] sm:$0xf0]  ;;  %v2664_v29 = vld [vmem:[%s5555_s1 + $0x308] sm:$0xf0]  ;;  %v2739_v54 = vor.u32 %v3542_v0, %v2736_v49  ;;  %v3572_v63 = vld [vmem:[%s5555_s1 + $0x484] sm:$0xf] }
  0xc8   :  { %2106 = vmatpush.bf16.msra.mxu0 %v2715_v38  ;;  %v1880_v26 = vpop.f32.mrf.mxu2  ;;  %v2864_v27 = vld [vmem:[%s5555_s1 + $0x498] sm:$0xf0]  ;;  %v2675_v2 = vor.u32 %v3526_v46, %v2672_v34  ;;  %v2856_v3 = vld [vmem:[%s5555_s1 + $0x488] sm:$0xf0]  ;;  %v3634_v11 = vld [vmem:[%s5555_s1 + $0x674] sm:$0xf]  ;;  %v2731_v15 = vor.u32 %v3540_v56, %v2728_v57 }
  0xc9   :  { %2119 = vmatpush.bf16.msra.mxu1 %v2779_v39  ;;  %v1881_v38 = vadd.f32 %v1880_v26, %v1868_v18  ;;  %v1893_v39 = vpop.f32.mrf.mxu3  ;;  %v1869_v47 = vpop.f32.mrf.mxu1  ;;  %v2976_v6 = vld [vmem:[%s5555_s1 + $0x578] sm:$0xf0]  ;;  %v3600_v26 = vld [vmem:[%s5555_s1 + $0x564] sm:$0xf]  ;;  %v3614_v34 = vld [vmem:[%s5555_s1 + $0x5d4] sm:$0xf] }
  0xca   :  { %2132 = vmatpush.bf16.msra.mxu2 %v2843_v40  ;;  %v3576_v40 = vld [vmem:[%s5555_s1 + $0x4a4] sm:$0xf]  ;;  %v3040_v10 = vld [vmem:[%s5555_s1 + $0x5f8] sm:$0xf0]  ;;  %v2979_v22 = vor.u32 %v3602_v5, %v2976_v6  ;;  %v3144_v57 = vld [vmem:[%s5555_s1 + $0x6c8] sm:$0xf0] }
  0xcb   :  { %2145 = vmatpush.bf16.msra.mxu3 %v2907_v44  ;;  %v5103_v43 = vadd.f32 %v1893_v39, %v1881_v38  ;;  %v1856_v44 = vpop.f32.mrf.mxu0  ;;  %v3104_v14 = vld [vmem:[%s5555_s1 + $0x678] sm:$0xf0]  ;;  %v3632_v38 = vld [vmem:[%s5555_s1 + $0x664] sm:$0xf]  ;;  %v3096_v39 = vld [vmem:[%s5555_s1 + $0x668] sm:$0xf0] }
  0xcc   :  { %2107 = vmatpush.bf16.msra.mxu0 %v2707_v48  ;;  %v2875_v48 = vor.u32 %v3576_v40, %v2872_v41  ;;  %v3107_v25 = vor.u32 %v3634_v11, %v3104_v14  ;;  %v3648_v40 = vld [vmem:[%s5555_s1 + $0x6e4] sm:$0xf]  ;;  %v3160_v41 = vld [vmem:[%s5555_s1 + $0x6e8] sm:$0xf0]  ;;  %v3035_v44 = vor.u32 %v3616_v35, %v3032_v37  ;;  %v2960_v46 = vld [vmem:[%s5555_s1 + $0x558] sm:$0xf0] }
  0xcd   :  { %2120 = vmatpush.bf16.msra.mxu1 %v2771_v50  ;;  %v3558_v50 = vld [vmem:[%s5555_s1 + $0x414] sm:$0xf]  ;;  %v3163_v0 = vor.u32 %v3648_v40, %v3160_v41  ;;  %v3024_v47 = vld [vmem:[%s5555_s1 + $0x5d8] sm:$0xf0]  ;;  %v3644_v56 = vld [vmem:[%s5555_s1 + $0x6c4] sm:$0xf] }
  0xce   :  { %2133 = vmatpush.bf16.msra.mxu2 %v2835_v51  ;;  %v2800_v51 = vld [vmem:[%s5555_s1 + $0x418] sm:$0xf0]  ;;  %v3610_v5 = vld [vmem:[%s5555_s1 + $0x5b4] sm:$0xf]  ;;  %v3064_v35 = vld [vmem:[%s5555_s1 + $0x628] sm:$0xf0] }
  0xcf   :  { %2146 = vmatpush.bf16.msra.mxu3 %v2899_v53  ;;  %v3524_v53 = vld [vmem:[%s5555_s1 + $0x304] sm:$0xf]  ;;  %v2803_v55 = vor.u32 %v3558_v50, %v2800_v51  ;;  %v3088_v49 = vld [vmem:[%s5555_s1 + $0x658] sm:$0xf0]  ;;  %v3642_v11 = vld [vmem:[%s5555_s1 + $0x6b4] sm:$0xf] }
  0xd0   :  { %2108 = vmatpush.bf16.msra.mxu0 %v2699_v58  ;;  %v3556_v58 = vld [vmem:[%s5555_s1 + $0x404] sm:$0xf]  ;;  %v1882_v59 = vpop.f32.mrf.mxu2  ;;  %v2667_v9 = vor.u32 %v3524_v53, %v2664_v29  ;;  %v3152_v50 = vld [vmem:[%s5555_s1 + $0x6d8] sm:$0xf0]  ;;  %v3016_v53 = vld [vmem:[%s5555_s1 + $0x5c8] sm:$0xf0] }
  0xd1   :  { %2121 = vmatpush.bf16.msra.mxu1 %v2763_v60  ;;  %v2867_v60 = vor.u32 %v3574_v52, %v2864_v27  ;;  %v1895_v4 = vpop.f32.mrf.mxu3  ;;  %v3027_v52 = vor.u32 %v3614_v34, %v3024_v47  ;;  %v3628_v29 = vld [vmem:[%s5555_s1 + $0x644] sm:$0xf]  ;;  %v3136_v14 = vld [vmem:[%s5555_s1 + $0x6b8] sm:$0xf0] }
  0xd2   :  { %2134 = vmatpush.bf16.msra.mxu2 %v2827_v62  ;;  %v2792_v62 = vld [vmem:[%s5555_s1 + $0x408] sm:$0xf0]  ;;  %v2944_v4 = vld [vmem:[%s5555_s1 + $0x538] sm:$0xf0] }
  0xd3   :  { %2147 = vmatpush.bf16.msra.mxu3 %v2891_v8  ;;  %v3618_v8 = vld [vmem:[%s5555_s1 + $0x5f4] sm:$0xf]  ;;  %v2795_v18 = vor.u32 %v3556_v58, %v2792_v62  ;;  %v2928_v34 = vld [vmem:[%s5555_s1 + $0x518] sm:$0xf0] }
  0xd4   :  { %2109 = vmatpush.bf16.msra.mxu0 %v2691_v19  ;;  %v3650_v19 = vld [vmem:[%s5555_s1 + $0x6f4] sm:$0xf]  ;;  %v3043_v23 = vor.u32 %v3618_v8, %v3040_v10  ;;  %v3008_v8 = vld [vmem:[%s5555_s1 + $0x5b8] sm:$0xf0] }
  0xd5   :  { %2122 = vmatpush.bf16.msra.mxu1 %v2755_v20  ;;  %v3168_v20 = vld [vmem:[%s5555_s1 + $0x6f8] sm:$0xf0] }
  0xd6   :  { %2135 = vmatpush.bf16.msra.mxu2 %v2819_v21  ;;  %v2859_v21 = vor.u32 %v3572_v63, %v2856_v3  ;;  %v3171_v36 = vor.u32 %v3650_v19, %v3168_v20  ;;  %v3594_v3 = vld [vmem:[%s5555_s1 + $0x534] sm:$0xf]  ;;  %v3072_v10 = vld [vmem:[%s5555_s1 + $0x638] sm:$0xf0]  ;;  %v3592_v20 = vld [vmem:[%s5555_s1 + $0x524] sm:$0xf] }
  0xd7   :  { %2148 = vmatpush.bf16.msra.mxu3 %v2883_v33  ;;  %v2968_v33 = vld [vmem:[%s5555_s1 + $0x568] sm:$0xf0] }
  0xd8   :  { %2110 = vmatpush.bf16.msra.mxu0 %v2683_v42  ;;  %v2971_v42 = vor.u32 %v3600_v26, %v2968_v33  ;;  %v3000_v26 = vld [vmem:[%s5555_s1 + $0x5a8] sm:$0xf0]  ;;  %v3624_v33 = vld [vmem:[%s5555_s1 + $0x624] sm:$0xf] }
  0xd9   :  { %2123 = vmatpush.bf16.msra.mxu1 %v2747_v45  ;;  %v3099_v45 = vor.u32 %v3632_v38, %v3096_v39  ;;  %v3640_v38 = vld [vmem:[%s5555_s1 + $0x6a4] sm:$0xf]  ;;  %v3128_v39 = vld [vmem:[%s5555_s1 + $0x6a8] sm:$0xf0] }
  0xda   :  { %2136 = vmatpush.bf16.msra.mxu2 %v2811_v28  ;;  %v3598_v28 = vld [vmem:[%s5555_s1 + $0x554] sm:$0xf]  ;;  %v3131_v47 = vor.u32 %v3640_v38, %v3128_v39 }
  0xdb   :  { %2149 = vmatpush.bf16.msra.mxu3 %v2875_v48  ;;  %v3630_v48 = vld [vmem:[%s5555_s1 + $0x654] sm:$0xf]  ;;  %v2963_v51 = vor.u32 %v3598_v28, %v2960_v46  ;;  %v3067_v28 = vor.u32 %v3624_v33, %v3064_v35  ;;  %v3712_v33 = vld [vmem:[%s5555_s1 + $0x8e4] sm:$0xf]  ;;  %v3416_v35 = vld [vmem:[%s5555_s1 + $0x8e8] sm:$0xf0] }
  0xdc   :  { %2111 = vmatpush.bf16.msra.mxu0 %v2675_v2  ;;  %v3091_v27 = vor.u32 %v3630_v48, %v3088_v49  ;;  %v3612_v2 = vld [vmem:[%s5555_s1 + $0x5c4] sm:$0xf]  ;;  %v3590_v46 = vld [vmem:[%s5555_s1 + $0x514] sm:$0xf]  ;;  %v2992_v48 = vld [vmem:[%s5555_s1 + $0x598] sm:$0xf0] }
  0xdd   :  { %2124 = vmatpush.bf16.msra.mxu1 %v2739_v54  ;;  %v3080_v54 = vld [vmem:[%s5555_s1 + $0x648] sm:$0xf0]  ;;  %v3019_v62 = vor.u32 %v3612_v2, %v3016_v53  ;;  %v3622_v49 = vld [vmem:[%s5555_s1 + $0x614] sm:$0xf] }
  0xde   :  { %2137 = vmatpush.bf16.msra.mxu2 %v2803_v55  ;;  %v3083_v63 = vor.u32 %v3628_v29, %v3080_v54  ;;  %v2984_v53 = vld [vmem:[%s5555_s1 + $0x588] sm:$0xf0]  ;;  %v3620_v29 = vld [vmem:[%s5555_s1 + $0x604] sm:$0xf]  ;;  %v3662_v39 = vld [vmem:[%s5555_s1 + $0x754] sm:$0xf] }
  0xdf   :  { %2150 = vmatpush.bf16.msra.mxu3 %v2867_v60 }
  0xe0   :  { %2112 = vmatpush.bf16.msra.mxu0 %v2667_v9  ;;  %v1906_v55 = vpop.f32.mrf.mxu0  ;;  %v3626_v9 = vld [vmem:[%s5555_s1 + $0x634] sm:$0xf] }
  0xe1   :  { %2125 = vmatpush.bf16.msra.mxu1 %v2731_v15  ;;  %v1907_v58 = vadd.f32 %v1906_v55, %v5103_v43  ;;  %v1919_v60 = vpop.f32.mrf.mxu1  ;;  %v3147_v43 = vor.u32 %v3644_v56, %v3144_v57  ;;  %v2947_v15 = vor.u32 %v3594_v3, %v2944_v4  ;;  %v3075_v19 = vor.u32 %v3626_v9, %v3072_v10  ;;  %v3048_v55 = vld [vmem:[%s5555_s1 + $0x608] sm:$0xf0]  ;;  %v3636_v56 = vld [vmem:[%s5555_s1 + $0x684] sm:$0xf]  ;;  %v3296_v4 = vld [vmem:[%s5555_s1 + $0x7f8] sm:$0xf0] }
  0xe2   :  { %2138 = vmatpush.bf16.msra.mxu2 %v2795_v18  ;;  %v3011_v18 = vor.u32 %v3610_v5, %v3008_v8  ;;  %v3112_v57 = vld [vmem:[%s5555_s1 + $0x688] sm:$0xf0]  ;;  %v3698_v5 = vld [vmem:[%s5555_s1 + $0x874] sm:$0xf]  ;;  %v3051_v8 = vor.u32 %v3620_v29, %v3048_v55  ;;  %v3424_v10 = vld [vmem:[%s5555_s1 + $0x8f8] sm:$0xf0] }
  0xe3   :  { %2151 = vmatpush.bf16.msra.mxu3 %v2859_v21  ;;  %2113 = vmatmul.bf16.vlgmr.msra.gmra.mxu0 %v4134_v61  ;;  %v3646_v61 = vld [vmem:[%s5555_s1 + $0x6d4] sm:$0xf]  ;;  %v1920_v6 = vadd.f32 %v1919_v60, %v1907_v58  ;;  %v2936_v21 = vld [vmem:[%s5555_s1 + $0x528] sm:$0xf0]  ;;  %v3232_v60 = vld [vmem:[%s5555_s1 + $0x778] sm:$0xf0] }
  0xe4   :  { %2157 = vmatpush.bf16.msrb.mxu0 %v2979_v22  ;;  %2126 = vmatmul.bf16.vlgmr.msra.gmra.mxu1 %v4138_v1  ;;  %v3596_v1 = vld [vmem:[%s5555_s1 + $0x544] sm:$0xf]  ;;  %v2939_v41 = vor.u32 %v3592_v20, %v2936_v21  ;;  %v3714_v9 = vld [vmem:[%s5555_s1 + $0x8f4] sm:$0xf]  ;;  %v3224_v20 = vld [vmem:[%s5555_s1 + $0x768] sm:$0xf0] }
  0xe5   :  { %2170 = vmatpush.bf16.msrb.mxu1 %v3043_v23  ;;  %2139 = vmatmul.bf16.vlgmr.msra.gmra.mxu2 %v4374_v7  ;;  %v2952_v7 = vld [vmem:[%s5555_s1 + $0x548] sm:$0xf0]  ;;  %v3608_v22 = vld [vmem:[%s5555_s1 + $0x5a4] sm:$0xf]  ;;  %v3139_v23 = vor.u32 %v3642_v11, %v3136_v14  ;;  %v3115_v11 = vor.u32 %v3636_v56, %v3112_v57  ;;  %v3200_v55 = vld [vmem:[%s5555_s1 + $0x738] sm:$0xf0] }
  0xe6   :  { %2183 = vmatpush.bf16.msrb.mxu2 %v3107_v25  ;;  %2152 = vmatmul.bf16.vlgmr.msra.gmra.mxu3 %v4387_v13  ;;  %v3155_v13 = vor.u32 %v3646_v61, %v3152_v50  ;;  %v2955_v59 = vor.u32 %v3596_v1, %v2952_v7  ;;  %v3056_v61 = vld [vmem:[%s5555_s1 + $0x618] sm:$0xf0]  ;;  %v3638_v50 = vld [vmem:[%s5555_s1 + $0x694] sm:$0xf]  ;;  %v2920_v1 = vld [vmem:[%s5555_s1 + $0x508] sm:$0xf0] }
  0xe7   :  { %2196 = vmatpush.bf16.msrb.mxu3 %v3171_v36  ;;  %v3059_v2 = vor.u32 %v3622_v49, %v3056_v61  ;;  %v3680_v21 = vld [vmem:[%s5555_s1 + $0x7e4] sm:$0xf]  ;;  %v3272_v61 = vld [vmem:[%s5555_s1 + $0x7c8] sm:$0xf0]  ;;  %v3674_v56 = vld [vmem:[%s5555_s1 + $0x7b4] sm:$0xf] }
  0xe8   :  { %2158 = vmatpush.bf16.msrb.mxu0 %v2971_v42  ;;  %v1932_v25 = vpop.f32.mrf.mxu2  ;;  %v1908_v40 = vpop.f32.mrf.mxu0  ;;  %v3676_v49 = vld [vmem:[%s5555_s1 + $0x7c4] sm:$0xf] }
  0xe9   :  { %2171 = vmatpush.bf16.msrb.mxu1 %v3035_v44  ;;  %v1933_v36 = vadd.f32 %v1932_v25, %v1920_v6  ;;  %v1945_v37 = vpop.f32.mrf.mxu3  ;;  %v1921_v42 = vpop.f32.mrf.mxu1  ;;  %v3696_v25 = vld [vmem:[%s5555_s1 + $0x864] sm:$0xf]  ;;  %v3216_v40 = vld [vmem:[%s5555_s1 + $0x758] sm:$0xf0] }
  0xea   :  { %2184 = vmatpush.bf16.msrb.mxu2 %v3099_v45  ;;  %v3003_v45 = vor.u32 %v3608_v22, %v3000_v26  ;;  %v3427_v22 = vor.u32 %v3714_v9, %v3424_v10  ;;  %v3352_v26 = vld [vmem:[%s5555_s1 + $0x868] sm:$0xf0]  ;;  %v3419_v42 = vor.u32 %v3712_v33, %v3416_v35 }
  0xeb   :  { %2197 = vmatpush.bf16.msrb.mxu3 %v3163_v0  ;;  %v5302_v44 = vadd.f32 %v1945_v37, %v1933_v36  ;;  %v3606_v0 = vld [vmem:[%s5555_s1 + $0x594] sm:$0xf]  ;;  %v3355_v38 = vor.u32 %v3696_v25, %v3352_v26 }
  0xec   :  { %2159 = vmatpush.bf16.msrb.mxu0 %v2963_v51  ;;  %v3120_v51 = vld [vmem:[%s5555_s1 + $0x698] sm:$0xf0]  ;;  %v2995_v7 = vor.u32 %v3606_v0, %v2992_v48  ;;  %v3219_v0 = vor.u32 %v3662_v39, %v3216_v40 }
  0xed   :  { %2172 = vmatpush.bf16.msrb.mxu1 %v3027_v52  ;;  %v2931_v52 = vor.u32 %v3590_v46, %v2928_v34  ;;  %v3123_v54 = vor.u32 %v3638_v50, %v3120_v51  ;;  %v3344_v46 = vld [vmem:[%s5555_s1 + $0x858] sm:$0xf0]  ;;  %v3692_v50 = vld [vmem:[%s5555_s1 + $0x844] sm:$0xf]  ;;  %v3336_v51 = vld [vmem:[%s5555_s1 + $0x848] sm:$0xf0] }
  0xee   :  { %2185 = vmatpush.bf16.msrb.mxu2 %v3091_v27  ;;  %v3588_v27 = vld [vmem:[%s5555_s1 + $0x504] sm:$0xf]  ;;  %v3408_v34 = vld [vmem:[%s5555_s1 + $0x8d8] sm:$0xf0]  ;;  %v3339_v29 = vor.u32 %v3692_v50, %v3336_v51  ;;  %v3368_v51 = vld [vmem:[%s5555_s1 + $0x888] sm:$0xf0] }
  0xef   :  { %2198 = vmatpush.bf16.msrb.mxu3 %v3155_v13  ;;  %v3604_v13 = vld [vmem:[%s5555_s1 + $0x584] sm:$0xf]  ;;  %v2923_v3 = vor.u32 %v3588_v27, %v2920_v1  ;;  %v3400_v1 = vld [vmem:[%s5555_s1 + $0x8c8] sm:$0xf0]  ;;  %v3248_v40 = vld [vmem:[%s5555_s1 + $0x798] sm:$0xf0] }
  0xf0   :  { %2160 = vmatpush.bf16.msrb.mxu0 %v2955_v59  ;;  %v1934_v58 = vpop.f32.mrf.mxu2  ;;  %v3666_v59 = vld [vmem:[%s5555_s1 + $0x774] sm:$0xf]  ;;  %v2987_v6 = vor.u32 %v3604_v13, %v2984_v53  ;;  %v3708_v27 = vld [vmem:[%s5555_s1 + $0x8c4] sm:$0xf]  ;;  %v3275_v53 = vor.u32 %v3676_v49, %v3272_v61 }
  0xf1   :  { %2173 = vmatpush.bf16.msrb.mxu1 %v3019_v62  ;;  %v3682_v62 = vld [vmem:[%s5555_s1 + $0x7f4] sm:$0xf]  ;;  %v3235_v14 = vor.u32 %v3666_v59, %v3232_v60  ;;  %v3264_v58 = vld [vmem:[%s5555_s1 + $0x7b8] sm:$0xf0]  ;;  %v3684_v49 = vld [vmem:[%s5555_s1 + $0x804] sm:$0xf] }
  0xf2   :  { %2186 = vmatpush.bf16.msrb.mxu2 %v3083_v63  ;;  %v1947_v63 = vpop.f32.mrf.mxu3  ;;  %v3690_v59 = vld [vmem:[%s5555_s1 + $0x834] sm:$0xf]  ;;  %v3328_v60 = vld [vmem:[%s5555_s1 + $0x838] sm:$0xf0]  ;;  %v3700_v50 = vld [vmem:[%s5555_s1 + $0x884] sm:$0xf] }
  0xf3   :  { %2199 = vmatpush.bf16.msrb.mxu3 %v3147_v43  ;;  %v3360_v43 = vld [vmem:[%s5555_s1 + $0x878] sm:$0xf0] }
  0xf4   :  { %2161 = vmatpush.bf16.msrb.mxu0 %v2947_v15  ;;  %v3299_v15 = vor.u32 %v3682_v62, %v3296_v4  ;;  %v3706_v62 = vld [vmem:[%s5555_s1 + $0x8b4] sm:$0xf]  ;;  %v3392_v63 = vld [vmem:[%s5555_s1 + $0x8b8] sm:$0xf0]  ;;  %v3267_v4 = vor.u32 %v3674_v56, %v3264_v58 }
  0xf5   :  { %2174 = vmatpush.bf16.msrb.mxu1 %v3011_v18  ;;  %v3363_v18 = vor.u32 %v3698_v5, %v3360_v43  ;;  %v3331_v5 = vor.u32 %v3690_v59, %v3328_v60  ;;  %v3656_v43 = vld [vmem:[%s5555_s1 + $0x724] sm:$0xf]  ;;  %v3395_v9 = vor.u32 %v3706_v62, %v3392_v63 }
  0xf6   :  { %2187 = vmatpush.bf16.msrb.mxu2 %v3075_v19  ;;  %v3664_v19 = vld [vmem:[%s5555_s1 + $0x764] sm:$0xf] }
  0xf7   :  { %2200 = vmatpush.bf16.msrb.mxu3 %v3139_v23  ;;  %v3288_v23 = vld [vmem:[%s5555_s1 + $0x7e8] sm:$0xf0]  ;;  %v3227_v36 = vor.u32 %v3664_v19, %v3224_v20  ;;  %v3704_v20 = vld [vmem:[%s5555_s1 + $0x8a4] sm:$0xf] }
  0xf8   :  { %2162 = vmatpush.bf16.msrb.mxu0 %v2939_v41  ;;  %v3291_v37 = vor.u32 %v3680_v21, %v3288_v23  ;;  %v3678_v41 = vld [vmem:[%s5555_s1 + $0x7d4] sm:$0xf]  ;;  %v3384_v21 = vld [vmem:[%s5555_s1 + $0x8a8] sm:$0xf0] }
  0xf9   :  { %2175 = vmatpush.bf16.msrb.mxu1 %v3003_v45  ;;  %v3280_v45 = vld [vmem:[%s5555_s1 + $0x7d8] sm:$0xf0]  ;;  %v3387_v39 = vor.u32 %v3704_v20, %v3384_v21 }
  0xfa   :  { %2188 = vmatpush.bf16.msrb.mxu2 %v3067_v28  ;;  %v3694_v28 = vld [vmem:[%s5555_s1 + $0x854] sm:$0xf] }
  0xfb   :  { %2201 = vmatpush.bf16.msrb.mxu3 %v3131_v47  ;;  %v3283_v47 = vor.u32 %v3678_v41, %v3280_v45  ;;  %v3347_v48 = vor.u32 %v3694_v28, %v3344_v46  ;;  %v3686_v41 = vld [vmem:[%s5555_s1 + $0x814] sm:$0xf]  ;;  %v3376_v28 = vld [vmem:[%s5555_s1 + $0x898] sm:$0xf0] }
  0xfc   :  { %2163 = vmatpush.bf16.msrb.mxu0 %v2931_v52  ;;  %v3702_v45 = vld [vmem:[%s5555_s1 + $0x894] sm:$0xf] }
  0xfd   :  { %2176 = vmatpush.bf16.msrb.mxu1 %v2995_v7 }
  0xfe   :  { %2189 = vmatpush.bf16.msrb.mxu2 %v3059_v2 }
  0xff   :  { %2202 = vmatpush.bf16.msrb.mxu3 %v3123_v54  ;;  %v3658_v54 = vld [vmem:[%s5555_s1 + $0x734] sm:$0xf] }
 0x100   :  { %2164 = vmatpush.bf16.msrb.mxu0 %v2923_v3  ;;  %v1958_v52 = vpop.f32.mrf.mxu0  ;;  %v3203_v3 = vor.u32 %v3658_v54, %v3200_v55 }
 0x101   :  { %2177 = vmatpush.bf16.msrb.mxu1 %v2987_v6  ;;  %v1959_v7 = vadd.f32 %v1958_v52, %v5302_v44  ;;  %v1971_v13 = vpop.f32.mrf.mxu1  ;;  %v3403_v44 = vor.u32 %v3708_v27, %v3400_v1  ;;  %v3192_v6 = vld [vmem:[%s5555_s1 + $0x728] sm:$0xf0] }
 0x102   :  { %2190 = vmatpush.bf16.msrb.mxu2 %v3051_v8  ;;  %v3672_v8 = vld [vmem:[%s5555_s1 + $0x7a4] sm:$0xf]  ;;  %v3195_v23 = vor.u32 %v3656_v43, %v3192_v6 }
 0x103   :  { %2203 = vmatpush.bf16.msrb.mxu3 %v3115_v11  ;;  %2165 = vmatmul.bf16.vlgmr.msrb.gmra.mxu0 %v4385_v12  ;;  %v3710_v12 = vld [vmem:[%s5555_s1 + $0x8d4] sm:$0xf]  ;;  %v1972_v57 = vadd.f32 %v1971_v13, %v1959_v7  ;;  %v3256_v11 = vld [vmem:[%s5555_s1 + $0x7a8] sm:$0xf0]  ;;  %v3716_v13 = vld [vmem:[#allocation1] sm:$0xff] }
 0x104   :  { %2209 = vmatpush.bf16.msra.mxu0 %v3235_v14  ;;  %2178 = vmatmul.bf16.vlgmr.msrb.gmra.mxu1 %v4398_v17  ;;  %v3660_v17 = vld [vmem:[%s5555_s1 + $0x744] sm:$0xf]  ;;  %v3259_v33 = vor.u32 %v3672_v8, %v3256_v11 }
 0x105   :  { %2222 = vmatpush.bf16.msra.mxu1 %v3299_v15  ;;  %2191 = vmatmul.bf16.vlgmr.msrb.gmra.mxu2 %v4415_v24  ;;  %v3208_v24 = vld [vmem:[%s5555_s1 + $0x748] sm:$0xf0]  ;;  %v3688_v14 = vld [vmem:[%s5555_s1 + $0x824] sm:$0xf] }
 0x106   :  { %2235 = vmatpush.bf16.msra.mxu2 %v3363_v18  ;;  %2204 = vmatmul.bf16.vlgmr.msrb.gmra.mxu3 %v4419_v31  ;;  %v3411_v31 = vor.u32 %v3710_v12, %v3408_v34  ;;  %v3211_v2 = vor.u32 %v3660_v17, %v3208_v24  ;;  %v3320_v15 = vld [vmem:[%s5555_s1 + $0x828] sm:$0xf0]  ;;  %v3379_v17 = vor.u32 %v3702_v45, %v3376_v28 }
 0x107   :  { %2248 = vmatpush.bf16.msra.mxu3 %v3427_v22  ;;  %v3323_v35 = vor.u32 %v3688_v14, %v3320_v15  ;;  %v3240_v24 = vld [vmem:[%s5555_s1 + $0x788] sm:$0xf0] }
 0x108   :  { %2210 = vmatpush.bf16.msra.mxu0 %v3227_v36  ;;  %v1984_v10 = vpop.f32.mrf.mxu2  ;;  %v1960_v22 = vpop.f32.mrf.mxu0  ;;  %v3654_v36 = vld [vmem:[%s5555_s1 + $0x714] sm:$0xf] }
 0x109   :  { %2223 = vmatpush.bf16.msra.mxu1 %v3291_v37  ;;  %v1985_v18 = vadd.f32 %v1984_v10, %v1972_v57  ;;  %v1997_v19 = vpop.f32.mrf.mxu3  ;;  %v1973_v25 = vpop.f32.mrf.mxu1  ;;  %v3184_v37 = vld [vmem:[%s5555_s1 + $0x718] sm:$0xf0] }
 0x10a   :  { %2236 = vmatpush.bf16.msra.mxu2 %v3355_v38  ;;  %v3670_v38 = vld [vmem:[%s5555_s1 + $0x794] sm:$0xf]  ;;  %v3187_v46 = vor.u32 %v3654_v36, %v3184_v37 }
 0x10b   :  { %2249 = vmatpush.bf16.msra.mxu3 %v3419_v42  ;;  %v1998_v26 = vadd.f32 %v1997_v19, %v1985_v18  ;;  %v3312_v42 = vld [vmem:[%s5555_s1 + $0x818] sm:$0xf0]  ;;  %v3251_v12 = vor.u32 %v3670_v38, %v3248_v40 }
 0x10c   :  { %2211 = vmatpush.bf16.msra.mxu0 %v3219_v0  ;;  %v3315_v34 = vor.u32 %v3686_v41, %v3312_v42  ;;  %v3652_v0 = vld [vmem:[%s5555_s1 + $0x704] sm:$0xf] }
 0x10d   :  { %2224 = vmatpush.bf16.msra.mxu1 %v3283_v47  ;;  %v3176_v47 = vld [vmem:[%s5555_s1 + $0x708] sm:$0xf0] }
 0x10e   :  { %2237 = vmatpush.bf16.msra.mxu2 %v3347_v48  ;;  %v3668_v48 = vld [vmem:[%s5555_s1 + $0x784] sm:$0xf]  ;;  %v3179_v27 = vor.u32 %v3652_v0, %v3176_v47 }
 0x10f   :  { %2250 = vmatpush.bf16.msra.mxu3 %v3411_v31  ;;  %v3304_v31 = vld [vmem:[%s5555_s1 + $0x808] sm:$0xf0]  ;;  %v3243_v1 = vor.u32 %v3668_v48, %v3240_v24 }
 0x110   :  { %2212 = vmatpush.bf16.msra.mxu0 %v3211_v2  ;;  %v1986_v61 = vpop.f32.mrf.mxu2  ;;  %v3307_v7 = vor.u32 %v3684_v49, %v3304_v31  ;;  %v3371_v2 = vor.u32 %v3700_v50, %v3368_v51 }
 0x111   :  { %2225 = vmatpush.bf16.msra.mxu1 %v3275_v53  ;;  %v1999_v52 = vpop.f32.mrf.mxu3  ;;  %v3717_v53 = vld [vmem:[#allocation1 + $0x9] sm:$0xff] }
 0x112   :  { %2238 = vmatpush.bf16.msra.mxu2 %v3339_v29 }
 0x113   :  { %2251 = vmatpush.bf16.msra.mxu3 %v3403_v44  ;;  %v308_v44 = vperm.slane %v4898_v16, 1 }
 0x114   :  { %2213 = vmatpush.bf16.msra.mxu0 %v3203_v3 }
 0x115   :  { %2226 = vmatpush.bf16.msra.mxu1 %v3267_v4 }
 0x116   :  { %2239 = vmatpush.bf16.msra.mxu2 %v3331_v5 }
 0x117   :  { %2252 = vmatpush.bf16.msra.mxu3 %v3395_v9 }
 0x118   :  { %2214 = vmatpush.bf16.msra.mxu0 %v3195_v23 }
 0x119   :  { %2227 = vmatpush.bf16.msra.mxu1 %v3259_v33 }
 0x11a   :  { %2240 = vmatpush.bf16.msra.mxu2 %v3323_v35 }
 0x11b   :  { %2253 = vmatpush.bf16.msra.mxu3 %v3387_v39 }
 0x11c   :  { %2215 = vmatpush.bf16.msra.mxu0 %v3187_v46 }
 0x11d   :  { %2228 = vmatpush.bf16.msra.mxu1 %v3251_v12 }
 0x11e   :  { %2241 = vmatpush.bf16.msra.mxu2 %v3315_v34 }
 0x11f   :  { %2254 = vmatpush.bf16.msra.mxu3 %v3379_v17 }
 0x120   :  { %2216 = vmatpush.bf16.msra.mxu0 %v3179_v27  ;;  %v2010_v29 = vpop.f32.mrf.mxu0 }
 0x121   :  { %2229 = vmatpush.bf16.msra.mxu1 %v3243_v1  ;;  %v2011_v54 = vadd.f32 %v2010_v29, %v1998_v26  ;;  %v2023_v55 = vpop.f32.mrf.mxu1 }
 0x122   :  { %2242 = vmatpush.bf16.msra.mxu2 %v3307_v7 }
 0x123   :  { %2255 = vmatpush.bf16.msra.mxu3 %v3371_v2  ;;  %2217 = vmatmul.bf16.vlgmr.msra.gmra.mxu0 %v4417_v30  ;;  %v2024_v56 = vadd.f32 %v2023_v55, %v2011_v54 }
 0x124   :  { %2230 = vmatmul.bf16.vlgmr.msra.gmra.mxu1 %v4421_v32 }
 0x125   :  { %2243 = vmatmul.bf16.vlgmr.msra.gmra.mxu2 %v3716_v13  ;;  %v2261_v1 = vmax.f32 %v2024_v56, 0.0 }
 0x126   :  { %2256 = vmatmul.bf16.vlgmr.msra.gmra.mxu3 %v3717_v53 }
 0x128   :  { %v2036_v57 = vpop.f32.mrf.mxu2  ;;  %v2012_v60 = vpop.f32.mrf.mxu0 }
 0x129   :  { %v2037_v58 = vadd.f32 %v2036_v57, %v308_v44  ;;  %v2049_v59 = vpop.f32.mrf.mxu3  ;;  %v2025_v62 = vpop.f32.mrf.mxu1 }
 0x12b   :  { %v2050_v63 = vadd.f32 %v2049_v59, %v2037_v58 }
 0x130   :  { %v2038_v3 = vpop.f32.mrf.mxu2 }
 0x131   :  { %v2051_v30 = vpop.f32.mrf.mxu3 }
 0x140   :  { %v2062_v4 = vpop.f32.mrf.mxu0 }
 0x141   :  { %v2063_v32 = vadd.f32 %v2062_v4, %v2050_v63  ;;  %v2075_v5 = vpop.f32.mrf.mxu1 }
 0x143   :  { %v2076_v43 = vadd.f32 %v2075_v5, %v2063_v32 }
 0x148   :  { %v2088_v6 = vpop.f32.mrf.mxu2  ;;  %v2064_v11 = vpop.f32.mrf.mxu0 }
 0x149   :  { %v2089_v8 = vadd.f32 %v2088_v6, %v2076_v43  ;;  %v2101_v9 = vpop.f32.mrf.mxu3  ;;  %v2077_v14 = vpop.f32.mrf.mxu1 }
 0x14b   :  { %v2102_v10 = vadd.f32 %v2101_v9, %v2089_v8 }
 0x150   :  { %v2090_v15 = vpop.f32.mrf.mxu2 }
 0x151   :  { %v2103_v16 = vpop.f32.mrf.mxu3 }
 0x160   :  { %v2114_v18 = vpop.f32.mrf.mxu0 }
 0x161   :  { %v2127_v19 = vpop.f32.mrf.mxu1  ;;  %v2115_v36 = vadd.f32 %v2114_v18, %v2102_v10 }
 0x163   :  { %v2128_v41 = vadd.f32 %v2127_v19, %v2115_v36 }
 0x168   :  { %v2140_v20 = vpop.f32.mrf.mxu2  ;;  %v2116_v22 = vpop.f32.mrf.mxu0 }
 0x169   :  { %v2153_v21 = vpop.f32.mrf.mxu3  ;;  %v2129_v23 = vpop.f32.mrf.mxu1  ;;  %v2141_v42 = vadd.f32 %v2140_v20, %v2128_v41 }
 0x16b   :  { %v2154_v46 = vadd.f32 %v2153_v21, %v2141_v42 }
 0x170   :  { %v2142_v25 = vpop.f32.mrf.mxu2 }
 0x171   :  { %v2155_v26 = vpop.f32.mrf.mxu3 }
 0x180   :  { %v2166_v33 = vpop.f32.mrf.mxu0 }
 0x181   :  { %v2179_v35 = vpop.f32.mrf.mxu1  ;;  %v2167_v12 = vadd.f32 %v2166_v33, %v2154_v46 }
 0x183   :  { %v2180_v34 = vadd.f32 %v2179_v35, %v2167_v12 }
 0x188   :  { %v2192_v37 = vpop.f32.mrf.mxu2  ;;  %v2168_v39 = vpop.f32.mrf.mxu0 }
 0x189   :  { %v2205_v38 = vpop.f32.mrf.mxu3  ;;  %v2181_v40 = vpop.f32.mrf.mxu1  ;;  %v2193_v0 = vadd.f32 %v2192_v37, %v2180_v34 }
 0x18b   :  { %v2206_v47 = vadd.f32 %v2205_v38, %v2193_v0 }
 0x190   :  { %v2194_v45 = vpop.f32.mrf.mxu2 }
 0x191   :  { %v2207_v28 = vpop.f32.mrf.mxu3 }
 0x1a0   :  { %v2218_v48 = vpop.f32.mrf.mxu0 }
 0x1a1   :  { %v2231_v17 = vpop.f32.mrf.mxu1  ;;  %v2219_v24 = vadd.f32 %v2218_v48, %v2206_v47 }
 0x1a3   :  { %v2232_v49 = vadd.f32 %v2231_v17, %v2219_v24 }
 0x1a8   :  { %v2244_v31 = vpop.f32.mrf.mxu2  ;;  %v2220_v51 = vpop.f32.mrf.mxu0 }
 0x1a9   :  { %v2245_v61 = vadd.f32 %v2244_v31, %v2232_v49  ;;  %v2257_v50 = vpop.f32.mrf.mxu3  ;;  %v2233_v52 = vpop.f32.mrf.mxu1 }
 0x1ab   :  { %v2258_v27 = vadd.f32 %v2257_v50, %v2245_v61 }
 0x1ad   :  { %v2262_v7 = vmax.f32 %v2258_v27, 0.0 }
 0x1af   :  { %v2263_v2 = vpack.c.bf16 %v2262_v7, %v2261_v1 }
 0x1b0   :  { %v2246_v13 = vpop.f32.mrf.mxu2 }
 0x1b1   :  { %v2265_v53 = vrot.slane %v2263_v2, 3  ;;  %v2259_v29 = vpop.f32.mrf.mxu3 }
 0x1b3   :  { %v2269_v54 = vsel %vm2266_vm0, %v2263_v2, %v2265_v53 }
 0x1b4   :  { %2271 = vst [vmem:[%s5558_s3] sm:$0x3] %v2269_v54 }

// kernel: unet_forward.31
= control target key start
LH: loop header
LB: loop body
LE: loop exit
PB: predicated region body
PF: predicated region fallthrough
CT: control target
= control target key end

     0   :  { %vm91_vm0 = vcmask 261120   ;;  %s398_s1 = inlined_call_operand.vmem [shape: bf16[32,128], index: 1, kind: input, shape index: {}]   ;;  %s399_s0 = inlined_call_operand.vmem [shape: bf16[128,32], index: 0, kind: input, shape index: {}]   ;;  %s400_s2 = inlined_call_operand.vmem [shape: f32[1,128], index: 2, kind: input, shape index: {}]   ;;  %s401_s3 = inlined_call_operand.vmem [shape: bf16[128,128], index: 3, kind: output, shape index: {}]  }
   0x1   :  { %v258_v0 = vld [vmem:[%s398_s1 + $0x8] sm:$0xff]  ;;  %v257_v1 = vld [vmem:[%s398_s1] sm:$0xff]  ;;  %v251_v3 = vld [vmem:[%s399_s0 + $0x10] sm:$0xff] }
   0x2   :  { %122 = vmatpush.bf16.msra.mxu0 %v258_v0  ;;  %306 = vmatpush.bf16.msra.mxu1 %v258_v0  ;;  %v249_v2 = vld [vmem:[%s399_s0] sm:$0xff]  ;;  %v255_v5 = vld [vmem:[%s399_s0 + $0x30] sm:$0xff]  ;;  %v250_v6 = vld [vmem:[%s399_s0 + $0x8] sm:$0xff] }
   0x3   :  { %307 = vmatpush.bf16.msra.mxu2 %v258_v0  ;;  %308 = vmatpush.bf16.msra.mxu3 %v258_v0  ;;  %v253_v4 = vld [vmem:[%s399_s0 + $0x20] sm:$0xff]  ;;  %v252_v7 = vld [vmem:[%s399_s0 + $0x18] sm:$0xff]  ;;  %v254_v8 = vld [vmem:[%s399_s0 + $0x28] sm:$0xff] }
   0x4   :  { %v256_v9 = vld [vmem:[%s399_s0 + $0x38] sm:$0xff]  ;;  %v312_v12 = vld [vmem:[%s400_s2] ss:$0 sm:$0xff] }
   0x6   :  { %123 = vmatpush.bf16.msra.mxu0 %v257_v1  ;;  %309 = vmatpush.bf16.msra.mxu1 %v257_v1 }
   0x7   :  { %310 = vmatpush.bf16.msra.mxu2 %v257_v1  ;;  %311 = vmatpush.bf16.msra.mxu3 %v257_v1 }
   0x9   :  { %241 = vmatmul.msk.bf16.vlgmr.msra.gmra.mxu0 %vm91_vm0, %v249_v2  ;;  %243 = vmatmul.msk.bf16.vlgmr.msra.gmra.mxu1 %vm91_vm0, %v251_v3 }
   0xa   :  { %245 = vmatmul.msk.bf16.vlgmr.msra.gmra.mxu2 %vm91_vm0, %v253_v4  ;;  %247 = vmatmul.msk.bf16.vlgmr.msra.gmra.mxu3 %vm91_vm0, %v255_v5 }
  0x19   :  { %242 = vmatmul.msk.bf16.gmra.mxu0 %vm91_vm0, %v250_v6  ;;  %244 = vmatmul.msk.bf16.gmra.mxu1 %vm91_vm0, %v252_v7 }
  0x1a   :  { %246 = vmatmul.msk.bf16.gmra.mxu2 %vm91_vm0, %v254_v8  ;;  %248 = vmatmul.msk.bf16.gmra.mxu3 %vm91_vm0, %v256_v9 }
  0x86   :  { %v125_v10 = vpop.f32.mrf.mxu0  ;;  %v135_v11 = vpop.f32.mrf.mxu1 }
  0x87   :  { %v126_v17 = vadd.f32 %v312_v12, %v125_v10  ;;  %v136_v18 = vadd.f32 %v312_v12, %v135_v11 }
  0x8d   :  { %v145_v13 = vpop.f32.mrf.mxu2  ;;  %v155_v14 = vpop.f32.mrf.mxu3 }
  0x8e   :  { %v127_v15 = vpop.f32.mrf.mxu0  ;;  %v137_v16 = vpop.f32.mrf.mxu1  ;;  %v146_v25 = vadd.f32 %v312_v12, %v145_v13  ;;  %v156_v26 = vadd.f32 %v312_v12, %v155_v14 }
  0x8f   :  { %v128_v19 = vadd.f32 %v312_v12, %v127_v15  ;;  %v138_v20 = vadd.f32 %v312_v12, %v137_v16 }
  0x91   :  { %v262_v21 = vpack.c.bf16 %v128_v19, %v126_v17  ;;  %v272_v22 = vpack.c.bf16 %v138_v20, %v136_v18 }
  0x93   :  { %263 = vst [vmem:[%s401_s3] sm:$0xff] %v262_v21  }
  0x94   :  { %300 = vst [vmem:[%s401_s3 + $0x10] sm:$0xff] %v272_v22  }
  0x95   :  { %v147_v23 = vpop.f32.mrf.mxu2  ;;  %v157_v24 = vpop.f32.mrf.mxu3 }
  0x96   :  { %v148_v27 = vadd.f32 %v312_v12, %v147_v23  ;;  %v158_v28 = vadd.f32 %v312_v12, %v157_v24  ;;  %v130_v29 = vpop.f32.mrf.mxu0  ;;  %v140_v30 = vpop.f32.mrf.mxu1 }
  0x97   :  { %v131_v37 = vadd.f32 %v312_v12, %v130_v29  ;;  %v141_v38 = vadd.f32 %v312_v12, %v140_v30 }
  0x98   :  { %v282_v31 = vpack.c.bf16 %v148_v27, %v146_v25  ;;  %v292_v32 = vpack.c.bf16 %v158_v28, %v156_v26 }
  0x9a   :  { %302 = vst [vmem:[%s401_s3 + $0x20] sm:$0xff] %v282_v31  }
  0x9b   :  { %304 = vst [vmem:[%s401_s3 + $0x30] sm:$0xff] %v292_v32  }
  0x9d   :  { %v150_v33 = vpop.f32.mrf.mxu2  ;;  %v160_v34 = vpop.f32.mrf.mxu3 }
  0x9e   :  { %v132_v35 = vpop.f32.mrf.mxu0  ;;  %v142_v36 = vpop.f32.mrf.mxu1  ;;  %v151_v45 = vadd.f32 %v312_v12, %v150_v33  ;;  %v161_v46 = vadd.f32 %v312_v12, %v160_v34 }
  0x9f   :  { %v133_v39 = vadd.f32 %v312_v12, %v132_v35  ;;  %v143_v40 = vadd.f32 %v312_v12, %v142_v36 }
  0xa1   :  { %v267_v41 = vpack.c.bf16 %v133_v39, %v131_v37  ;;  %v277_v42 = vpack.c.bf16 %v143_v40, %v141_v38 }
  0xa3   :  { %299 = vst [vmem:[%s401_s3 + $0x8] sm:$0xff] %v267_v41  }
  0xa4   :  { %301 = vst [vmem:[%s401_s3 + $0x18] sm:$0xff] %v277_v42  }
  0xa5   :  { %v152_v43 = vpop.f32.mrf.mxu2  ;;  %v162_v44 = vpop.f32.mrf.mxu3 }
  0xa6   :  { %v153_v47 = vadd.f32 %v312_v12, %v152_v43  ;;  %v163_v48 = vadd.f32 %v312_v12, %v162_v44 }
  0xa8   :  { %v287_v49 = vpack.c.bf16 %v153_v47, %v151_v45  ;;  %v297_v50 = vpack.c.bf16 %v163_v48, %v161_v46 }
  0xaa   :  { %303 = vst [vmem:[%s401_s3 + $0x28] sm:$0xff] %v287_v49  }
  0xab   :  { %305 = vst [vmem:[%s401_s3 + $0x38] sm:$0xff] %v297_v50  }

// kernel: unet_forward.33
= control target key start
LH: loop header
LB: loop body
LE: loop exit
PB: predicated region body
PF: predicated region fallthrough
CT: control target
= control target key end

     0   :  { %s1447_s12 = smov 0   ;;  %s1755_s0 = inlined_call_operand.vmem [shape: bf16[512,288], index: 0, kind: input, shape index: {}]   ;;  %s1756_s1 = inlined_call_operand.vmem [shape: bf16[288,128], index: 1, kind: input, shape index: {}]   ;;  %s1757_s2 = inlined_call_operand.vmem [shape: f32[1,128], index: 2, kind: input, shape index: {}]   ;;  %s1758_s3 = inlined_call_operand.vmem [shape: f32[512,128], index: 3, kind: output, shape index: {}]  }
   0x1 LB: > { %s1034_s13 = sadd.s32 4294967295, %s1425_s12   ;;  %p1038_p0 = scmp.ge.s32.totalorder %s1425_s12, 1  ;;  %s1425_s12 = sphi %s1447_s12, %s13_s12  }
   0x2   : > { %p139_p1 = scmp.lt.s32.totalorder %s1425_s12, 3 }
   0x4   : > { %p140_p2 = pnand %p1038_p0, %p139_p1 }
   0x5   : > { %s1039_s20 = sshll.u32 (!%p140_p2), %s1034_s13, 5 }
   0x6   : > { %143 = sbr.rel (%p140_p2) target bundleno = 372 (0x174), region = 32  ;;  %p165_p3 = scmp.lt.s32.totalorder (!%p140_p2), %s1039_s20, 63 }
   0xb   : > { %v1380_v0 = vld [vmem:[%s1756_s1 + $0x38] sm:$0xff]  ;;  %v1461_v1 = vld [vmem:[%s1756_s1 + $0x88] sm:$0xff]  ;;  %v1379_v3 = vld [vmem:[%s1756_s1 + $0x30] sm:$0xff]  ;;  %s1760_s20 = smov (!%p165_p3, %s1039_s20), 63  ;;  %vm630_vm0 = vcmask 261120  }
   0xc   : > { %v1466_v2 = vld [vmem:[%s1756_s1 + $0x78] sm:$0xff]  ;;  %679 = vmatpush.bf16.msra.mxu0 %v1380_v0  ;;  %1391 = vmatpush.bf16.msra.mxu3 %v1380_v0  ;;  %v1476_v4 = vld [vmem:[%s1756_s1 + $0x80] sm:$0xff]  ;;  %v1387_v5 = vld [vmem:[%s1756_s1 + $0x70] sm:$0xff]  ;;  %s1409_s27 = smul.u32 12, %s1760_s20  ;;  %s1042_s6 = sshll.u32 %s1760_s20, 3 }
   0xd   : > { %863 = vmatpush.bf16.msra.mxu2 %v1461_v1  ;;  %768 = vmatpush.bf16.msra.mxu1 %v1466_v2  ;;  %v1378_v6 = vld [vmem:[%s1756_s1 + $0x28] sm:$0xff]  ;;  %v1377_v11 = vld [vmem:[%s1756_s1 + $0x20] sm:$0xff]  ;;  %v1376_v13 = vld [vmem:[%s1756_s1 + $0x18] sm:$0xff]  ;;  %s1624_s9 = scalar_lea.vmem %s1758_s3, %s1042_s6 }
   0xe   : > { %s1491_s5 = scalar_lea.vmem %s1755_s0, %s1409_s27  ;;  %v1386_v7 = vld [vmem:[%s1756_s1 + $0x68] sm:$0xff]  ;;  %v1385_v12 = vld [vmem:[%s1756_s1 + $0x60] sm:$0xff]  ;;  %v1384_v14 = vld [vmem:[%s1756_s1 + $0x58] sm:$0xff] }
   0xf   : > { %v1053_v8 = vld [vmem:[%s1491_s5 + $0x8] sm:$0xf]  ;;  %v1327_v9 = vld [vmem:[%s1491_s5 + $0x10] sm:$0xf0]  ;;  %v1065_v17 = vld [vmem:[%s1491_s5 + $0x20] sm:$0xf] }
  0x10   : > { %680 = vmatpush.bf16.msra.mxu0 %v1379_v3  ;;  %1392 = vmatpush.bf16.msra.mxu3 %v1379_v3  ;;  %v1054_v10 = vor.u32 %v1327_v9, %v1053_v8  ;;  %v1375_v15 = vld [vmem:[%s1756_s1 + $0x10] sm:$0xff]  ;;  %v1330_v18 = vld [vmem:[%s1491_s5 + $0x28] sm:$0xf0]  ;;  %v1373_v22 = vld [vmem:[%s1756_s1] sm:$0xff] }
  0x11   : > { %864 = vmatpush.bf16.msra.mxu2 %v1476_v4  ;;  %769 = vmatpush.bf16.msra.mxu1 %v1387_v5  ;;  %v1383_v16 = vld [vmem:[%s1756_s1 + $0x50] sm:$0xff]  ;;  %v1374_v19 = vld [vmem:[%s1756_s1 + $0x8] sm:$0xff]  ;;  %v1066_v20 = vor.u32 %v1330_v18, %v1065_v17  ;;  %v1045_v23 = vld [vmem:[%s1491_s5] sm:$0xf] }
  0x12   : > { %v1382_v21 = vld [vmem:[%s1756_s1 + $0x48] sm:$0xff]  ;;  %v1189_v25 = vld [vmem:[%s1491_s5 + $0x120] sm:$0xf]  ;;  %v1325_v28 = vld [vmem:[%s1491_s5 + $0x4] sm:$0xf] }
  0x13   : > { %v1326_v24 = vld [vmem:[%s1491_s5 + $0x8] sm:$0xf0]  ;;  %v1381_v27 = vld [vmem:[%s1756_s1 + $0x40] sm:$0xff]  ;;  %v1047_v29 = vld [vmem:[%s1491_s5 + $0xc] sm:$0xf0] }
  0x14   : > { %681 = vmatpush.bf16.msra.mxu0 %v1378_v6  ;;  %1393 = vmatpush.bf16.msra.mxu3 %v1378_v6  ;;  %v1362_v26 = vld [vmem:[%s1491_s5 + $0x128] sm:$0xf0]  ;;  %v1046_v30 = vor.u32 %v1326_v24, %v1045_v23  ;;  %v1050_v32 = vor.u32 %v1325_v28, %v1047_v29  ;;  %v1077_v33 = vld [vmem:[%s1491_s5 + $0x38] sm:$0xf]  ;;  %v1333_v34 = vld [vmem:[%s1491_s5 + $0x40] sm:$0xf0] }
  0x15   : > { %1307 = vmatmul.msk.bf16.vlgmr.msra.gmra.mxu2 %vm630_vm0, %v1054_v10  ;;  %770 = vmatpush.bf16.msra.mxu1 %v1386_v7  ;;  %v1190_v31 = vor.u32 %v1362_v26, %v1189_v25  ;;  %v1078_v35 = vor.u32 %v1333_v34, %v1077_v33  ;;  %v1057_v36 = vld [vmem:[%s1491_s5 + $0x18] sm:$0xf]  ;;  %v1329_v37 = vld [vmem:[%s1491_s5 + $0x20] sm:$0xf0]  ;;  %v1328_v40 = vld [vmem:[%s1491_s5 + $0x1c] sm:$0xf] }
  0x16   : > { %v1201_v38 = vld [vmem:[%s1491_s5 + $0x138] sm:$0xf]  ;;  %v1365_v39 = vld [vmem:[%s1491_s5 + $0x140] sm:$0xf0]  ;;  %v1059_v41 = vld [vmem:[%s1491_s5 + $0x24] sm:$0xf0]  ;;  %v1058_v42 = vor.u32 %v1329_v37, %v1057_v36 }
  0x17   : > { %v1202_v43 = vor.u32 %v1365_v39, %v1201_v38  ;;  %v1062_v44 = vor.u32 %v1328_v40, %v1059_v41  ;;  %v1089_v45 = vld [vmem:[%s1491_s5 + $0x50] sm:$0xf]  ;;  %v1336_v46 = vld [vmem:[%s1491_s5 + $0x58] sm:$0xf0]  ;;  %v1331_v52 = vld [vmem:[%s1491_s5 + $0x34] sm:$0xf] }
  0x18   : > { %682 = vmatpush.bf16.msra.mxu0 %v1377_v11  ;;  %1394 = vmatpush.bf16.msra.mxu3 %v1377_v11  ;;  %v1090_v47 = vor.u32 %v1336_v46, %v1089_v45  ;;  %v1069_v48 = vld [vmem:[%s1491_s5 + $0x30] sm:$0xf]  ;;  %v1332_v49 = vld [vmem:[%s1491_s5 + $0x38] sm:$0xf0]  ;;  %v1071_v53 = vld [vmem:[%s1491_s5 + $0x3c] sm:$0xf0] }
  0x19   : > { %771 = vmatpush.bf16.msra.mxu1 %v1385_v12  ;;  %v1213_v50 = vld [vmem:[%s1491_s5 + $0x150] sm:$0xf]  ;;  %v1368_v51 = vld [vmem:[%s1491_s5 + $0x158] sm:$0xf0]  ;;  %v1070_v54 = vor.u32 %v1332_v49, %v1069_v48  ;;  %v1074_v56 = vor.u32 %v1331_v52, %v1071_v53  ;;  %v1101_v57 = vld [vmem:[%s1491_s5 + $0x68] sm:$0xf] }
  0x1a   : > { %v1214_v55 = vor.u32 %v1368_v51, %v1213_v50  ;;  %v1339_v58 = vld [vmem:[%s1491_s5 + $0x70] sm:$0xf0]  ;;  %v1081_v60 = vld [vmem:[%s1491_s5 + $0x48] sm:$0xf]  ;;  %v1334_v0 = vld [vmem:[%s1491_s5 + $0x4c] sm:$0xf] }
  0x1b   : > { %v1102_v59 = vor.u32 %v1339_v58, %v1101_v57  ;;  %v1335_v61 = vld [vmem:[%s1491_s5 + $0x50] sm:$0xf0]  ;;  %v1225_v62 = vld [vmem:[%s1491_s5 + $0x168] sm:$0xf]  ;;  %v1342_v6 = vld [vmem:[%s1491_s5 + $0x88] sm:$0xf0] }
  0x1c   : > { %683 = vmatpush.bf16.msra.mxu0 %v1376_v13  ;;  %1395 = vmatpush.bf16.msra.mxu3 %v1376_v13  ;;  %v1371_v63 = vld [vmem:[%s1491_s5 + $0x170] sm:$0xf0]  ;;  %v1093_v8 = vld [vmem:[%s1491_s5 + $0x60] sm:$0xf]  ;;  %v1338_v9 = vld [vmem:[%s1491_s5 + $0x68] sm:$0xf0] }
  0x1d   : > { %772 = vmatpush.bf16.msra.mxu1 %v1384_v14  ;;  %v1226_v3 = vor.u32 %v1371_v63, %v1225_v62  ;;  %v1361_v10 = vld [vmem:[%s1491_s5 + $0x124] sm:$0xf]  ;;  %v1191_v11 = vld [vmem:[%s1491_s5 + $0x12c] sm:$0xf0]  ;;  %v1125_v17 = vld [vmem:[%s1491_s5 + $0x98] sm:$0xf] }
  0x1e   : > { %v1095_v13 = vld [vmem:[%s1491_s5 + $0x6c] sm:$0xf0]  ;;  %v1345_v18 = vld [vmem:[%s1491_s5 + $0xa0] sm:$0xf0]  ;;  %v1203_v23 = vld [vmem:[%s1491_s5 + $0x144] sm:$0xf0] }
  0x1f   : > { %v1340_v24 = vld [vmem:[%s1491_s5 + $0x7c] sm:$0xf]  ;;  %v1107_v25 = vld [vmem:[%s1491_s5 + $0x84] sm:$0xf0]  ;;  %v1137_v29 = vld [vmem:[%s1491_s5 + $0xb0] sm:$0xf] }
  0x20   : > { %684 = vmatpush.bf16.msra.mxu0 %v1375_v15  ;;  %1396 = vmatpush.bf16.msra.mxu3 %v1375_v15  ;;  %v1194_v15 = vor.u32 %v1361_v10, %v1191_v11  ;;  %v1110_v28 = vor.u32 %v1340_v24, %v1107_v25  ;;  %v1344_v33 = vld [vmem:[%s1491_s5 + $0x98] sm:$0xf0]  ;;  %v1367_v34 = vld [vmem:[%s1491_s5 + $0x154] sm:$0xf]  ;;  %v1119_v37 = vld [vmem:[%s1491_s5 + $0x9c] sm:$0xf0] }
  0x21   : > { %773 = vmatpush.bf16.msra.mxu1 %v1383_v16  ;;  %v1343_v36 = vld [vmem:[%s1491_s5 + $0x94] sm:$0xf]  ;;  %v1149_v41 = vld [vmem:[%s1491_s5 + $0xc8] sm:$0xf]  ;;  %v1370_v46 = vld [vmem:[%s1491_s5 + $0x16c] sm:$0xf] }
  0x22   : > { %v1122_v40 = vor.u32 %v1343_v36, %v1119_v37  ;;  %v1347_v45 = vld [vmem:[%s1491_s5 + $0xb0] sm:$0xf0]  ;;  %v1346_v48 = vld [vmem:[%s1491_s5 + $0xac] sm:$0xf]  ;;  %v1131_v49 = vld [vmem:[%s1491_s5 + $0xb4] sm:$0xf0] }
  0x23   : > { %v1134_v53 = vor.u32 %v1346_v48, %v1131_v49  ;;  %v1141_v58 = vld [vmem:[%s1491_s5 + $0xc0] sm:$0xf]  ;;  %v1349_v63 = vld [vmem:[%s1491_s5 + $0xc4] sm:$0xf]  ;;  %v1173_v11 = vld [vmem:[%s1491_s5 + $0xf8] sm:$0xf] }
  0x24   : > { %685 = vmatpush.bf16.msra.mxu0 %v1374_v19  ;;  %1397 = vmatpush.bf16.msra.mxu3 %v1374_v19  ;;  %v1126_v19 = vor.u32 %v1345_v18, %v1125_v17  ;;  %v1614_v62 = vld [vmem:[%s1757_s2] ss:$0 sm:$0xff]  ;;  %v1352_v24 = vld [vmem:[%s1491_s5 + $0xdc] sm:$0xf]  ;;  %v1155_v25 = vld [vmem:[%s1491_s5 + $0xe4] sm:$0xf0] }
  0x25   : > { %1308 = vmatmul.msk.bf16.gmra.mxu2 %vm630_vm0, %v1066_v20  ;;  %774 = vmatpush.bf16.msra.mxu1 %v1382_v21  ;;  %v1105_v20 = vld [vmem:[%s1491_s5 + $0x78] sm:$0xf]  ;;  %v1185_v37 = vld [vmem:[%s1491_s5 + $0x110] sm:$0xf]  ;;  %v1355_v48 = vld [vmem:[%s1491_s5 + $0xf4] sm:$0xf] }
  0x26   : > { %v1167_v49 = vld [vmem:[%s1491_s5 + $0xfc] sm:$0xf0] }
  0x28   : > { %686 = vmatpush.bf16.msra.mxu0 %v1373_v22  ;;  %1398 = vmatpush.bf16.msra.mxu3 %v1373_v22  ;;  %v1364_v22 = vld [vmem:[%s1491_s5 + $0x13c] sm:$0xf] }
  0x29   : > { %775 = vmatpush.bf16.msra.mxu1 %v1381_v27 }
  0x2b   : > { %687 = vmatmul.bf16.vlgmr.msra.gmra.mxu0 %v1046_v30  ;;  %747 = vmatmul.bf16.vlgmr.msra.gmra.mxu3 %v1190_v31  ;;  %v1348_v30 = vld [vmem:[%s1491_s5 + $0xb8] sm:$0xf0] }
  0x2c   : > { %1399 = vmatpush.bf16.msrb.mxu3 %v1466_v2  ;;  %776 = vmatmul.bf16.vlgmr.msra.gmra.mxu1 %v1050_v32  ;;  %v1082_v2 = vor.u32 %v1335_v61, %v1081_v60  ;;  %v1138_v31 = vor.u32 %v1348_v30, %v1137_v29  ;;  %v1117_v32 = vld [vmem:[%s1491_s5 + $0x90] sm:$0xf]  ;;  %v1221_v60 = vld [vmem:[%s1491_s5 + $0x158] sm:$0xf]  ;;  %v1369_v61 = vld [vmem:[%s1491_s5 + $0x160] sm:$0xf0] }
  0x2d   : > { %v1118_v38 = vor.u32 %v1344_v33, %v1117_v32 }
  0x30   : > { %1400 = vmatpush.bf16.msrb.mxu3 %v1387_v5  ;;  %v1113_v5 = vld [vmem:[%s1491_s5 + $0x80] sm:$0xf] }
  0x34   : > { %1401 = vmatpush.bf16.msrb.mxu3 %v1386_v7  ;;  %v1114_v7 = vor.u32 %v1342_v6, %v1113_v5 }
  0x35   : > { %1309 = vmatmul.msk.bf16.gmra.mxu2 %vm630_vm0, %v1078_v35  ;;  %v1215_v35 = vld [vmem:[%s1491_s5 + $0x15c] sm:$0xf0] }
  0x36   : > { %v1218_v39 = vor.u32 %v1367_v34, %v1215_v35 }
  0x38   : > { %1402 = vmatpush.bf16.msrb.mxu3 %v1385_v12  ;;  %v1337_v12 = vld [vmem:[%s1491_s5 + $0x64] sm:$0xf] }
  0x3b   : > { %692 = vmatmul.bf16.gmra.mxu0 %v1058_v42  ;;  %752 = vmatmul.bf16.gmra.mxu3 %v1202_v43  ;;  %v1351_v42 = vld [vmem:[%s1491_s5 + $0xd0] sm:$0xf0] }
  0x3c   : > { %1403 = vmatpush.bf16.msrb.mxu3 %v1384_v14  ;;  %781 = vmatmul.bf16.gmra.mxu1 %v1062_v44  ;;  %v1094_v14 = vor.u32 %v1338_v9, %v1093_v8  ;;  %v1150_v43 = vor.u32 %v1351_v42, %v1149_v41  ;;  %v1129_v44 = vld [vmem:[%s1491_s5 + $0xa8] sm:$0xf] }
  0x3d   : > { %v1130_v50 = vor.u32 %v1347_v45, %v1129_v44  ;;  %v1165_v45 = vld [vmem:[%s1491_s5 + $0xf0] sm:$0xf] }
  0x40   : > { %1404 = vmatpush.bf16.msrb.mxu3 %v1383_v16  ;;  %v1098_v16 = vor.u32 %v1337_v12, %v1095_v13  ;;  %v1357_v12 = vld [vmem:[%s1491_s5 + $0x100] sm:$0xf0] }
  0x41   : > { %v1174_v17 = vor.u32 %v1357_v12, %v1173_v11 }
  0x44   : > { %1405 = vmatpush.bf16.msrb.mxu3 %v1382_v21  ;;  %v1341_v21 = vld [vmem:[%s1491_s5 + $0x80] sm:$0xf0] }
  0x45   : > { %1310 = vmatmul.msk.bf16.gmra.mxu2 %vm630_vm0, %v1090_v47  ;;  %v1106_v26 = vor.u32 %v1341_v21, %v1105_v20  ;;  %v1227_v47 = vld [vmem:[%s1491_s5 + $0x174] sm:$0xf0]  ;;  %v1353_v20 = vld [vmem:[%s1491_s5 + $0xe0] sm:$0xf0]  ;;  %v1233_v21 = vld [vmem:[%s1491_s5 + $0x170] sm:$0xf] }
  0x46   : > { %v1230_v51 = vor.u32 %v1370_v46, %v1227_v47  ;;  %v1356_v46 = vld [vmem:[%s1491_s5 + $0xf8] sm:$0xf0] }
  0x48   : > { %1406 = vmatpush.bf16.msrb.mxu3 %v1381_v27  ;;  %v1206_v27 = vor.u32 %v1364_v22, %v1203_v23  ;;  %v1372_v22 = vld [vmem:[%s1491_s5 + $0x178] sm:$0xf0] }
  0x4b   : > { %697 = vmatmul.bf16.gmra.mxu0 %v1070_v54  ;;  %757 = vmatmul.bf16.gmra.mxu3 %v1214_v55  ;;  %v1161_v54 = vld [vmem:[%s1491_s5 + $0xe0] sm:$0xf]  ;;  %v1354_v55 = vld [vmem:[%s1491_s5 + $0xe8] sm:$0xf0] }
  0x4c   : > { %1407 = vmatpush.bf16.msra.mxu3 %v1461_v1  ;;  %786 = vmatmul.bf16.gmra.mxu1 %v1074_v56  ;;  %v1083_v1 = vld [vmem:[%s1491_s5 + $0x54] sm:$0xf0]  ;;  %v1162_v57 = vor.u32 %v1354_v55, %v1161_v54  ;;  %v1170_v54 = vor.u32 %v1355_v48, %v1167_v49 }
  0x50   : > { %1408 = vmatpush.bf16.msra.mxu3 %v1476_v4  ;;  %v1086_v4 = vor.u32 %v1334_v0, %v1083_v1  ;;  %v1143_v0 = vld [vmem:[%s1491_s5 + $0xcc] sm:$0xf0] }
  0x51   : > { %v1146_v5 = vor.u32 %v1349_v63, %v1143_v0 }
  0x55   : > { %1311 = vmatmul.msk.bf16.gmra.mxu2 %vm630_vm0, %v1102_v59  ;;  %v1350_v59 = vld [vmem:[%s1491_s5 + $0xc8] sm:$0xf0] }
  0x56   : > { %v1142_v1 = vor.u32 %v1350_v59, %v1141_v58 }
  0x5b   : > { %702 = vmatmul.bf16.gmra.mxu0 %v1082_v2  ;;  %762 = vmatmul.bf16.gmra.mxu3 %v1226_v3  ;;  %v1222_v2 = vor.u32 %v1369_v61, %v1221_v60  ;;  %v1197_v60 = vld [vmem:[%s1491_s5 + $0x128] sm:$0xf]  ;;  %v1363_v61 = vld [vmem:[%s1491_s5 + $0x130] sm:$0xf0] }
  0x5c   : > { %791 = vmatmul.bf16.gmra.mxu1 %v1086_v4 }
  0x65   : > { %1312 = vmatmul.msk.bf16.gmra.mxu2 %vm630_vm0, %v1114_v7 }
  0x6b   : > { %707 = vmatmul.bf16.gmra.mxu0 %v1094_v14  ;;  %836 = vmatmul.bf16.vlgmr.msrb.gmra.mxu3 %v1194_v15 }
  0x6c   : > { %796 = vmatmul.bf16.gmra.mxu1 %v1098_v16 }
  0x75   : > { %1313 = vmatmul.msk.bf16.gmra.mxu2 %vm630_vm0, %v1126_v19  ;;  %v1153_v19 = vld [vmem:[%s1491_s5 + $0xd8] sm:$0xf] }
  0x7b   : > { %712 = vmatmul.bf16.gmra.mxu0 %v1106_v26  ;;  %841 = vmatmul.bf16.gmra.mxu3 %v1206_v27  ;;  %v1154_v27 = vor.u32 %v1353_v20, %v1153_v19 }
  0x7c   : > { %801 = vmatmul.bf16.gmra.mxu1 %v1110_v28  ;;  %v1234_v28 = vor.u32 %v1372_v22, %v1233_v21  ;;  %v1209_v21 = vld [vmem:[%s1491_s5 + $0x140] sm:$0xf]  ;;  %v1366_v22 = vld [vmem:[%s1491_s5 + $0x148] sm:$0xf0] }
  0x85   : > { %1314 = vmatmul.msk.bf16.gmra.mxu2 %vm630_vm0, %v1138_v31  ;;  %v1158_v31 = vor.u32 %v1352_v24, %v1155_v25 }
  0x8b   : > { %717 = vmatmul.bf16.gmra.mxu0 %v1118_v38  ;;  %846 = vmatmul.bf16.gmra.mxu3 %v1218_v39  ;;  %v1360_v38 = vld [vmem:[%s1491_s5 + $0x118] sm:$0xf0] }
  0x8c   : > { %806 = vmatmul.bf16.gmra.mxu1 %v1122_v40 }
  0x95   : > { %1315 = vmatmul.msk.bf16.gmra.mxu2 %vm630_vm0, %v1150_v43  ;;  %v1186_v43 = vor.u32 %v1360_v38, %v1185_v37 }
  0x98   : > { %v866_v52 = vpop.f32.mrf.mxu2 }
  0x9b   : > { %722 = vmatmul.bf16.gmra.mxu0 %v1130_v50  ;;  %851 = vmatmul.bf16.gmra.mxu3 %v1230_v51  ;;  %v1166_v51 = vor.u32 %v1356_v46, %v1165_v45 }
  0x9c   : > { %811 = vmatmul.bf16.gmra.mxu1 %v1134_v53 }
  0xa0   : > { %v868_v56 = vpop.f32.mrf.mxu2 }
  0xa5   : > { %1316 = vmatmul.msk.bf16.gmra.mxu2 %vm630_vm0, %v1162_v57 }
  0xa8   : > { %v871_v3 = vpop.f32.mrf.mxu2  ;;  %v688_v4 = vpop.f32.mrf.mxu0 }
  0xa9   : > { %v689_v6 = vadd.f32 %v1614_v62, %v688_v4  ;;  %v777_v7 = vpop.f32.mrf.mxu1 }
  0xab   : > { %v778_v8 = vadd.f32 %v777_v7, %v689_v6  ;;  %727 = vmatmul.bf16.gmra.mxu0 %v1142_v1  ;;  %1321 = vmatmul.msk.bf16.vlgmr.msra.gmra.mxu3 %vm630_vm0, %v1222_v2  ;;  %v1359_v6 = vld [vmem:[%s1491_s5 + $0x110] sm:$0xf0] }
  0xac   : > { %816 = vmatmul.bf16.gmra.mxu1 %v1146_v5  ;;  %v1177_v5 = vld [vmem:[%s1491_s5 + $0x108] sm:$0xf] }
  0xad   : > { %v867_v9 = vadd.f32 %v866_v52, %v778_v8  ;;  %v1358_v8 = vld [vmem:[%s1491_s5 + $0x10c] sm:$0xf]  ;;  %v1178_v12 = vor.u32 %v1359_v6, %v1177_v5 }
  0xae   : > { %v1626_v10 = vpop.f32.mrf.mxu3 }
  0xaf   : > { %946 = vst [vmem:[%s1624_s9] sm:$0xff] %v867_v9  ;;  %v1179_v9 = vld [vmem:[%s1491_s5 + $0x114] sm:$0xf0]  ;;  %v749_v38 = vadd.f32 %v1614_v62, %v1626_v10 }
  0xb0   : > { %v873_v13 = vpop.f32.mrf.mxu2  ;;  %v690_v14 = vpop.f32.mrf.mxu0 }
  0xb1   : > { %v691_v15 = vadd.f32 %v1614_v62, %v690_v14  ;;  %v779_v16 = vpop.f32.mrf.mxu1 }
  0xb3   : > { %v780_v18 = vadd.f32 %v779_v16, %v691_v15  ;;  %v1182_v15 = vor.u32 %v1358_v8, %v1179_v9 }
  0xb5   : > { %v869_v23 = vadd.f32 %v868_v56, %v780_v18  ;;  %1317 = vmatmul.msk.bf16.gmra.mxu2 %vm630_vm0, %v1174_v17 }
  0xb6   : > { %v1639_v26 = vpop.f32.mrf.mxu3 }
  0xb7   : > { %947 = vst [vmem:[%s1624_s9 + $0x8] sm:$0xff] %v869_v23 }
  0xb8   : > { %v876_v29 = vpop.f32.mrf.mxu2  ;;  %v693_v30 = vpop.f32.mrf.mxu0 }
  0xb9   : > { %v694_v32 = vadd.f32 %v1614_v62, %v693_v30  ;;  %v782_v33 = vpop.f32.mrf.mxu1 }
  0xbb   : > { %v783_v34 = vadd.f32 %v782_v33, %v694_v32  ;;  %732 = vmatmul.bf16.gmra.mxu0 %v1154_v27  ;;  %1322 = vmatmul.msk.bf16.gmra.mxu3 %vm630_vm0, %v1234_v28  ;;  %v1210_v28 = vor.u32 %v1366_v22, %v1209_v21 }
  0xbc   : > { %821 = vmatmul.bf16.gmra.mxu1 %v1158_v31 }
  0xbd   : > { %v872_v35 = vadd.f32 %v871_v3, %v783_v34  ;;  %v1198_v3 = vor.u32 %v1363_v61, %v1197_v60 }
  0xbe   : > { %v1644_v36 = vpop.f32.mrf.mxu3 }
  0xbf   : > { %948 = vst [vmem:[%s1624_s9 + $0x10] sm:$0xff] %v872_v35 }
  0xc0   : > { %v878_v39 = vpop.f32.mrf.mxu2  ;;  %v695_v40 = vpop.f32.mrf.mxu0 }
  0xc1   : > { %v696_v41 = vadd.f32 %v1614_v62, %v695_v40  ;;  %v784_v42 = vpop.f32.mrf.mxu1 }
  0xc3   : > { %v785_v44 = vadd.f32 %v784_v42, %v696_v41 }
  0xc5   : > { %v874_v47 = vadd.f32 %v873_v13, %v785_v44  ;;  %1318 = vmatmul.msk.bf16.gmra.mxu2 %vm630_vm0, %v1186_v43 }
  0xc6   : > { %v1655_v50 = vpop.f32.mrf.mxu3 }
  0xc7   : > { %949 = vst [vmem:[%s1624_s9 + $0x18] sm:$0xff] %v874_v47  ;;  %v751_v47 = vadd.f32 %v1614_v62, %v1639_v26 }
  0xc8   : > { %v881_v52 = vpop.f32.mrf.mxu2  ;;  %v698_v53 = vpop.f32.mrf.mxu0 }
  0xc9   : > { %v699_v55 = vadd.f32 %v1614_v62, %v698_v53  ;;  %v787_v56 = vpop.f32.mrf.mxu1 }
  0xcb   : > { %v788_v57 = vadd.f32 %v787_v56, %v699_v55  ;;  %737 = vmatmul.bf16.gmra.mxu0 %v1166_v51  ;;  %v754_v56 = vadd.f32 %v1614_v62, %v1644_v36 }
  0xcc   : > { %826 = vmatmul.bf16.gmra.mxu1 %v1170_v54 }
  0xcd   : > { %v877_v58 = vadd.f32 %v876_v29, %v788_v57 }
  0xce   : > { %v1659_v59 = vpop.f32.mrf.mxu3 }
  0xcf   : > { %950 = vst [vmem:[%s1624_s9 + $0x20] sm:$0xff] %v877_v58 }
  0xd0   : > { %v883_v63 = vpop.f32.mrf.mxu2  ;;  %v700_v0 = vpop.f32.mrf.mxu0 }
  0xd1   : > { %v701_v1 = vadd.f32 %v1614_v62, %v700_v0  ;;  %v789_v2 = vpop.f32.mrf.mxu1 }
  0xd3   : > { %v790_v4 = vadd.f32 %v789_v2, %v701_v1  ;;  %v756_v2 = vadd.f32 %v1614_v62, %v1655_v50 }
  0xd5   : > { %v879_v7 = vadd.f32 %v878_v39, %v790_v4  ;;  %1319 = vmatmul.msk.bf16.gmra.mxu2 %vm630_vm0, %v1198_v3 }
  0xd6   : > { %v1670_v11 = vpop.f32.mrf.mxu3 }
  0xd7   : > { %951 = vst [vmem:[%s1624_s9 + $0x28] sm:$0xff] %v879_v7 }
  0xd8   : > { %v886_v13 = vpop.f32.mrf.mxu2  ;;  %v703_v14 = vpop.f32.mrf.mxu0 }
  0xd9   : > { %v704_v16 = vadd.f32 %v1614_v62, %v703_v14  ;;  %v792_v17 = vpop.f32.mrf.mxu1 }
  0xdb   : > { %v793_v18 = vadd.f32 %v792_v17, %v704_v16  ;;  %742 = vmatmul.bf16.gmra.mxu0 %v1178_v12 }
  0xdc   : > { %831 = vmatmul.bf16.gmra.mxu1 %v1182_v15 }
  0xdd   : > { %v882_v19 = vadd.f32 %v881_v52, %v793_v18 }
  0xde   : > { %v1674_v20 = vpop.f32.mrf.mxu3 }
  0xdf   : > { %952 = vst [vmem:[%s1624_s9 + $0x30] sm:$0xff] %v882_v19 }
  0xe0   : > { %v888_v23 = vpop.f32.mrf.mxu2  ;;  %v705_v24 = vpop.f32.mrf.mxu0 }
  0xe1   : > { %v706_v25 = vadd.f32 %v1614_v62, %v705_v24  ;;  %v794_v27 = vpop.f32.mrf.mxu1 }
  0xe3   : > { %v795_v29 = vadd.f32 %v794_v27, %v706_v25 }
  0xe5   : > { %v884_v30 = vadd.f32 %v883_v63, %v795_v29  ;;  %1320 = vmatmul.msk.bf16.gmra.mxu2 %vm630_vm0, %v1210_v28 }
  0xe6   : > { %v1681_v31 = vpop.f32.mrf.mxu3 }
  0xe7   : > { %953 = vst [vmem:[%s1624_s9 + $0x38] sm:$0xff] %v884_v30 }
  0xe8   : > { %v891_v32 = vpop.f32.mrf.mxu2  ;;  %v708_v33 = vpop.f32.mrf.mxu0 }
  0xe9   : > { %v709_v34 = vadd.f32 %v1614_v62, %v708_v33  ;;  %v797_v35 = vpop.f32.mrf.mxu1 }
  0xeb   : > { %v798_v37 = vadd.f32 %v797_v35, %v709_v34 }
  0xed   : > { %v887_v39 = vadd.f32 %v886_v13, %v798_v37 }
  0xee   : > { %v837_v40 = vpop.f32.mrf.mxu3 }
  0xef   : > { %954 = vst [vmem:[%s1624_s9 + $0x40] sm:$0xff] %v887_v39  ;;  %v1688_v41 = vadd.f32 %v837_v40, %v749_v38 }
  0xf0   : > { %v893_v42 = vpop.f32.mrf.mxu2  ;;  %v710_v43 = vpop.f32.mrf.mxu0 }
  0xf1   : > { %v711_v44 = vadd.f32 %v1614_v62, %v710_v43  ;;  %v799_v45 = vpop.f32.mrf.mxu1  ;;  %v759_v43 = vadd.f32 %v1614_v62, %v1659_v59 }
  0xf3   : > { %v800_v46 = vadd.f32 %v799_v45, %v711_v44 }
  0xf5   : > { %v889_v48 = vadd.f32 %v888_v23, %v800_v46 }
  0xf6   : > { %v839_v49 = vpop.f32.mrf.mxu3 }
  0xf7   : > { %955 = vst [vmem:[%s1624_s9 + $0x48] sm:$0xff] %v889_v48  ;;  %v1694_v51 = vadd.f32 %v839_v49, %v751_v47 }
  0xf8   : > { %v896_v10 = vpop.f32.mrf.mxu2  ;;  %v713_v52 = vpop.f32.mrf.mxu0 }
  0xf9   : > { %v714_v53 = vadd.f32 %v1614_v62, %v713_v52  ;;  %v802_v54 = vpop.f32.mrf.mxu1 }
  0xfb   : > { %v803_v55 = vadd.f32 %v802_v54, %v714_v53  ;;  %v761_v54 = vadd.f32 %v1614_v62, %v1670_v11 }
  0xfd   : > { %v892_v57 = vadd.f32 %v891_v32, %v803_v55 }
  0xfe   : > { %v842_v58 = vpop.f32.mrf.mxu3 }
  0xff   : > { %956 = vst [vmem:[%s1624_s9 + $0x50] sm:$0xff] %v892_v57  ;;  %v1700_v60 = vadd.f32 %v842_v58, %v754_v56 }
 0x100   : > { %v898_v26 = vpop.f32.mrf.mxu2  ;;  %v715_v61 = vpop.f32.mrf.mxu0 }
 0x101   : > { %v716_v63 = vadd.f32 %v1614_v62, %v715_v61  ;;  %v804_v0 = vpop.f32.mrf.mxu1 }
 0x103   : > { %v805_v1 = vadd.f32 %v804_v0, %v716_v63 }
 0x105   : > { %v894_v3 = vadd.f32 %v893_v42, %v805_v1  ;;  %v764_v1 = vadd.f32 %v1614_v62, %v1674_v20 }
 0x106   : > { %v844_v4 = vpop.f32.mrf.mxu3 }
 0x107   : > { %957 = vst [vmem:[%s1624_s9 + $0x58] sm:$0xff] %v894_v3  ;;  %v1706_v5 = vadd.f32 %v844_v4, %v756_v2 }
 0x108   : > { %v901_v36 = vpop.f32.mrf.mxu2  ;;  %v718_v6 = vpop.f32.mrf.mxu0 }
 0x109   : > { %v719_v7 = vadd.f32 %v1614_v62, %v718_v6  ;;  %v807_v8 = vpop.f32.mrf.mxu1 }
 0x10b   : > { %v808_v9 = vadd.f32 %v807_v8, %v719_v7 }
 0x10d   : > { %v897_v12 = vadd.f32 %v896_v10, %v808_v9 }
 0x10e   : > { %v847_v13 = vpop.f32.mrf.mxu3 }
 0x10f   : > { %958 = vst [vmem:[%s1624_s9 + $0x60] sm:$0xff] %v897_v12  ;;  %v848_v45 = vadd.f32 %v847_v13, %v759_v43  ;;  %v766_v12 = vadd.f32 %v1614_v62, %v1681_v31 }
 0x110   : > { %v903_v14 = vpop.f32.mrf.mxu2  ;;  %v720_v15 = vpop.f32.mrf.mxu0 }
 0x111   : > { %v721_v50 = vadd.f32 %v1614_v62, %v720_v15  ;;  %v809_v16 = vpop.f32.mrf.mxu1 }
 0x113   : > { %v810_v17 = vadd.f32 %v809_v16, %v721_v50 }
 0x115   : > { %v899_v18 = vadd.f32 %v898_v26, %v810_v17 }
 0x116   : > { %v849_v19 = vpop.f32.mrf.mxu3 }
 0x117   : > { %959 = vst [vmem:[%s1624_s9 + $0x68] sm:$0xff] %v899_v18  ;;  %v850_v59 = vadd.f32 %v849_v19, %v761_v54 }
 0x118   : > { %v906_v21 = vpop.f32.mrf.mxu2  ;;  %v723_v22 = vpop.f32.mrf.mxu0 }
 0x119   : > { %v724_v23 = vadd.f32 %v1614_v62, %v723_v22  ;;  %v812_v24 = vpop.f32.mrf.mxu1 }
 0x11b   : > { %v813_v25 = vadd.f32 %v812_v24, %v724_v23 }
 0x11d   : > { %v902_v27 = vadd.f32 %v901_v36, %v813_v25 }
 0x11e   : > { %v852_v28 = vpop.f32.mrf.mxu3 }
 0x11f   : > { %960 = vst [vmem:[%s1624_s9 + $0x70] sm:$0xff] %v902_v27  ;;  %v853_v11 = vadd.f32 %v852_v28, %v764_v1 }
 0x120   : > { %v908_v29 = vpop.f32.mrf.mxu2  ;;  %v725_v30 = vpop.f32.mrf.mxu0 }
 0x121   : > { %v726_v32 = vadd.f32 %v1614_v62, %v725_v30  ;;  %v814_v33 = vpop.f32.mrf.mxu1 }
 0x123   : > { %v815_v34 = vadd.f32 %v814_v33, %v726_v32 }
 0x125   : > { %v904_v35 = vadd.f32 %v903_v14, %v815_v34 }
 0x126   : > { %v854_v37 = vpop.f32.mrf.mxu3 }
 0x127   : > { %961 = vst [vmem:[%s1624_s9 + $0x78] sm:$0xff] %v904_v35  ;;  %v855_v20 = vadd.f32 %v854_v37, %v766_v12 }
 0x128   : > { %v911_v38 = vpop.f32.mrf.mxu2  ;;  %v728_v39 = vpop.f32.mrf.mxu0 }
 0x129   : > { %v729_v40 = vadd.f32 %v1614_v62, %v728_v39  ;;  %v817_v42 = vpop.f32.mrf.mxu1 }
 0x12b   : > { %v818_v44 = vadd.f32 %v817_v42, %v729_v40 }
 0x12d   : > { %v907_v46 = vadd.f32 %v906_v21, %v818_v44 }
 0x12e   : > { %v936_v47 = vpop.f32.mrf.mxu3 }
 0x12f   : > { %962 = vst [vmem:[%s1624_s9 + $0x80] sm:$0xff] %v907_v46  ;;  %v937_v48 = vadd.f32 %v936_v47, %v848_v45 }
 0x130   : > { %v913_v49 = vpop.f32.mrf.mxu2  ;;  %v730_v10 = vpop.f32.mrf.mxu0 }
 0x131   : > { %974 = vst [vmem:[%s1624_s9 + $0xe0] sm:$0xff] %v937_v48  ;;  %v731_v52 = vadd.f32 %v1614_v62, %v730_v10  ;;  %v819_v53 = vpop.f32.mrf.mxu1 }
 0x133   : > { %v820_v55 = vadd.f32 %v819_v53, %v731_v52 }
 0x135   : > { %v909_v56 = vadd.f32 %v908_v29, %v820_v55 }
 0x136   : > { %v938_v57 = vpop.f32.mrf.mxu3 }
 0x137   : > { %963 = vst [vmem:[%s1624_s9 + $0x88] sm:$0xff] %v909_v56  ;;  %v939_v58 = vadd.f32 %v938_v57, %v850_v59 }
 0x138   : > { %v916_v26 = vpop.f32.mrf.mxu2  ;;  %v733_v61 = vpop.f32.mrf.mxu0 }
 0x139   : > { %975 = vst [vmem:[%s1624_s9 + $0xe8] sm:$0xff] %v939_v58  ;;  %v734_v63 = vadd.f32 %v1614_v62, %v733_v61  ;;  %v822_v0 = vpop.f32.mrf.mxu1 }
 0x13b   : > { %v823_v2 = vadd.f32 %v822_v0, %v734_v63 }
 0x13d   : > { %v912_v3 = vadd.f32 %v911_v38, %v823_v2 }
 0x13e   : > { %v941_v4 = vpop.f32.mrf.mxu3 }
 0x13f   : > { %964 = vst [vmem:[%s1624_s9 + $0x90] sm:$0xff] %v912_v3  ;;  %v942_v36 = vadd.f32 %v941_v4, %v853_v11 }
 0x140   : > { %v918_v6 = vpop.f32.mrf.mxu2  ;;  %v735_v7 = vpop.f32.mrf.mxu0 }
 0x141   : > { %976 = vst [vmem:[%s1624_s9 + $0xf0] sm:$0xff] %v942_v36  ;;  %v736_v8 = vadd.f32 %v1614_v62, %v735_v7  ;;  %v824_v9 = vpop.f32.mrf.mxu1 }
 0x143   : > { %v825_v13 = vadd.f32 %v824_v9, %v736_v8 }
 0x145   : > { %v914_v14 = vadd.f32 %v913_v49, %v825_v13 }
 0x146   : > { %v943_v15 = vpop.f32.mrf.mxu3 }
 0x147   : > { %965 = vst [vmem:[%s1624_s9 + $0x98] sm:$0xff] %v914_v14  ;;  %v944_v50 = vadd.f32 %v943_v15, %v855_v20 }
 0x148   : > { %v921_v16 = vpop.f32.mrf.mxu2  ;;  %v738_v17 = vpop.f32.mrf.mxu0 }
 0x149   : > { %977 = vst [vmem:[%s1624_s9 + $0xf8] sm:$0xff] %v944_v50  ;;  %v739_v18 = vadd.f32 %v1614_v62, %v738_v17  ;;  %v827_v19 = vpop.f32.mrf.mxu1 }
 0x14b   : > { %v828_v21 = vadd.f32 %v827_v19, %v739_v18 }
 0x14d   : > { %v917_v22 = vadd.f32 %v916_v26, %v828_v21 }
 0x14f   : > { %966 = vst [vmem:[%s1624_s9 + $0xa0] sm:$0xff] %v917_v22 }
 0x150   : > { %v923_v23 = vpop.f32.mrf.mxu2  ;;  %v740_v31 = vpop.f32.mrf.mxu0 }
 0x151   : > { %v741_v24 = vadd.f32 %v1614_v62, %v740_v31  ;;  %v829_v25 = vpop.f32.mrf.mxu1 }
 0x153   : > { %v830_v27 = vadd.f32 %v829_v25, %v741_v24 }
 0x155   : > { %v919_v28 = vadd.f32 %v918_v6, %v830_v27 }
 0x157   : > { %967 = vst [vmem:[%s1624_s9 + $0xa8] sm:$0xff] %v919_v28 }
 0x158   : > { %v926_v29 = vpop.f32.mrf.mxu2  ;;  %v743_v30 = vpop.f32.mrf.mxu0 }
 0x159   : > { %v927_v32 = vadd.f32 %v926_v29, %v1688_v41  ;;  %v744_v33 = vadd.f32 %v1614_v62, %v743_v30  ;;  %v832_v34 = vpop.f32.mrf.mxu1 }
 0x15b   : > { %970 = vst [vmem:[%s1624_s9 + $0xc0] sm:$0xff] %v927_v32  ;;  %v833_v35 = vadd.f32 %v832_v34, %v744_v33 }
 0x15d   : > { %v922_v37 = vadd.f32 %v921_v16, %v833_v35 }
 0x15f   : > { %968 = vst [vmem:[%s1624_s9 + $0xb0] sm:$0xff] %v922_v37 }
 0x160   : > { %v928_v38 = vpop.f32.mrf.mxu2  ;;  %v745_v39 = vpop.f32.mrf.mxu0 }
 0x161   : > { %v929_v40 = vadd.f32 %v928_v38, %v1694_v51  ;;  %v746_v42 = vadd.f32 %v1614_v62, %v745_v39  ;;  %v834_v43 = vpop.f32.mrf.mxu1 }
 0x163   : > { %971 = vst [vmem:[%s1624_s9 + $0xc8] sm:$0xff] %v929_v40  ;;  %v835_v44 = vadd.f32 %v834_v43, %v746_v42 }
 0x165   : > { %v924_v45 = vadd.f32 %v923_v23, %v835_v44 }
 0x167   : > { %969 = vst [vmem:[%s1624_s9 + $0xb8] sm:$0xff] %v924_v45 }
 0x168   : > { %v931_v41 = vpop.f32.mrf.mxu2 }
 0x169   : > { %v932_v46 = vadd.f32 %v931_v41, %v1700_v60 }
 0x16b   : > { %972 = vst [vmem:[%s1624_s9 + $0xd0] sm:$0xff] %v932_v46 }
 0x170   : > { %v933_v47 = vpop.f32.mrf.mxu2 }
 0x171   : > { %v934_v48 = vadd.f32 %v933_v47, %v1706_v5 }
 0x173   : > { %973 = vst [vmem:[%s1624_s9 + $0xd8] sm:$0xff] %v934_v48 }
 0x174 PF: > { %s13_s12 = sadd.s32 1, %s1425_s12  }
 0x175   : > { %p10_p4 = scmp.ge.s32.totalorder %s13_s12, 4  }
 0x177   :  { %12 = sbr.rel (!%p10_p4) target bundleno = 1 (0x1), region = 62 }

// kernel: unet_forward.32
= control target key start
LH: loop header
LB: loop body
LE: loop exit
PB: predicated region body
PF: predicated region fallthrough
CT: control target
= control target key end

     0   :  { %s1606_s12 = smov 0   ;;  %s1898_s0 = inlined_call_operand.vmem [shape: bf16[512,288], index: 0, kind: input, shape index: {}]   ;;  %s1899_s1 = inlined_call_operand.vmem [shape: bf16[288,128], index: 1, kind: input, shape index: {}]   ;;  %s1900_s2 = inlined_call_operand.vmem [shape: f32[1,128], index: 2, kind: input, shape index: {}]   ;;  %s1901_s3 = inlined_call_operand.vmem [shape: bf16[512,128], index: 3, kind: output, shape index: {}]  }
   0x1 LB: > { %s1098_s13 = sadd.s32 4294967295, %s1584_s12   ;;  %p1102_p0 = scmp.ge.s32.totalorder %s1584_s12, 1  ;;  %s1584_s12 = sphi %s1606_s12, %s13_s12  }
   0x2   : > { %p139_p1 = scmp.lt.s32.totalorder %s1584_s12, 3 }
   0x4   : > { %p140_p2 = pnand %p1102_p0, %p139_p1 }
   0x5   : > { %s1103_s20 = sshll.u32 (!%p140_p2), %s1098_s13, 5 }
   0x6   : > { %143 = sbr.rel (%p140_p2) target bundleno = 376 (0x178), region = 32  ;;  %p165_p3 = scmp.lt.s32.totalorder (!%p140_p2), %s1103_s20, 63 }
   0xb   : > { %v1444_v0 = vld [vmem:[%s1899_s1 + $0x38] sm:$0xff]  ;;  %v1620_v1 = vld [vmem:[%s1899_s1 + $0x88] sm:$0xff]  ;;  %v1443_v3 = vld [vmem:[%s1899_s1 + $0x30] sm:$0xff]  ;;  %s1903_s20 = smov (!%p165_p3, %s1103_s20), 63  ;;  %vm630_vm0 = vcmask 261120  }
   0xc   : > { %v1625_v2 = vld [vmem:[%s1899_s1 + $0x78] sm:$0xff]  ;;  %679 = vmatpush.bf16.msra.mxu0 %v1444_v0  ;;  %1550 = vmatpush.bf16.msra.mxu3 %v1444_v0  ;;  %v1635_v4 = vld [vmem:[%s1899_s1 + $0x80] sm:$0xff]  ;;  %v1451_v5 = vld [vmem:[%s1899_s1 + $0x70] sm:$0xff]  ;;  %s1568_s27 = smul.u32 12, %s1903_s20  ;;  %s1106_s6 = sshll.u32 %s1903_s20, 2 }
   0xd   : > { %863 = vmatpush.bf16.msra.mxu2 %v1620_v1  ;;  %768 = vmatpush.bf16.msra.mxu1 %v1625_v2  ;;  %v1442_v6 = vld [vmem:[%s1899_s1 + $0x28] sm:$0xff]  ;;  %v1441_v11 = vld [vmem:[%s1899_s1 + $0x20] sm:$0xff]  ;;  %v1440_v13 = vld [vmem:[%s1899_s1 + $0x18] sm:$0xff]  ;;  %s1797_s9 = scalar_lea.vmem %s1901_s3, %s1106_s6 }
   0xe   : > { %s1650_s5 = scalar_lea.vmem %s1898_s0, %s1568_s27  ;;  %v1450_v7 = vld [vmem:[%s1899_s1 + $0x68] sm:$0xff]  ;;  %v1449_v12 = vld [vmem:[%s1899_s1 + $0x60] sm:$0xff]  ;;  %v1448_v14 = vld [vmem:[%s1899_s1 + $0x58] sm:$0xff] }
   0xf   : > { %v1117_v8 = vld [vmem:[%s1650_s5 + $0x8] sm:$0xf]  ;;  %v1391_v9 = vld [vmem:[%s1650_s5 + $0x10] sm:$0xf0]  ;;  %v1129_v17 = vld [vmem:[%s1650_s5 + $0x20] sm:$0xf] }
  0x10   : > { %680 = vmatpush.bf16.msra.mxu0 %v1443_v3  ;;  %1551 = vmatpush.bf16.msra.mxu3 %v1443_v3  ;;  %v1118_v10 = vor.u32 %v1391_v9, %v1117_v8  ;;  %v1439_v15 = vld [vmem:[%s1899_s1 + $0x10] sm:$0xff]  ;;  %v1394_v18 = vld [vmem:[%s1650_s5 + $0x28] sm:$0xf0]  ;;  %v1437_v22 = vld [vmem:[%s1899_s1] sm:$0xff] }
  0x11   : > { %864 = vmatpush.bf16.msra.mxu2 %v1635_v4  ;;  %769 = vmatpush.bf16.msra.mxu1 %v1451_v5  ;;  %v1447_v16 = vld [vmem:[%s1899_s1 + $0x50] sm:$0xff]  ;;  %v1438_v19 = vld [vmem:[%s1899_s1 + $0x8] sm:$0xff]  ;;  %v1130_v20 = vor.u32 %v1394_v18, %v1129_v17  ;;  %v1109_v23 = vld [vmem:[%s1650_s5] sm:$0xf] }
  0x12   : > { %v1446_v21 = vld [vmem:[%s1899_s1 + $0x48] sm:$0xff]  ;;  %v1253_v25 = vld [vmem:[%s1650_s5 + $0x120] sm:$0xf]  ;;  %v1389_v28 = vld [vmem:[%s1650_s5 + $0x4] sm:$0xf] }
  0x13   : > { %v1390_v24 = vld [vmem:[%s1650_s5 + $0x8] sm:$0xf0]  ;;  %v1445_v27 = vld [vmem:[%s1899_s1 + $0x40] sm:$0xff]  ;;  %v1111_v29 = vld [vmem:[%s1650_s5 + $0xc] sm:$0xf0] }
  0x14   : > { %681 = vmatpush.bf16.msra.mxu0 %v1442_v6  ;;  %1552 = vmatpush.bf16.msra.mxu3 %v1442_v6  ;;  %v1426_v26 = vld [vmem:[%s1650_s5 + $0x128] sm:$0xf0]  ;;  %v1110_v30 = vor.u32 %v1390_v24, %v1109_v23  ;;  %v1114_v32 = vor.u32 %v1389_v28, %v1111_v29  ;;  %v1141_v33 = vld [vmem:[%s1650_s5 + $0x38] sm:$0xf]  ;;  %v1397_v34 = vld [vmem:[%s1650_s5 + $0x40] sm:$0xf0] }
  0x15   : > { %1371 = vmatmul.msk.bf16.vlgmr.msra.gmra.mxu2 %vm630_vm0, %v1118_v10  ;;  %770 = vmatpush.bf16.msra.mxu1 %v1450_v7  ;;  %v1254_v31 = vor.u32 %v1426_v26, %v1253_v25  ;;  %v1142_v35 = vor.u32 %v1397_v34, %v1141_v33  ;;  %v1121_v36 = vld [vmem:[%s1650_s5 + $0x18] sm:$0xf]  ;;  %v1393_v37 = vld [vmem:[%s1650_s5 + $0x20] sm:$0xf0]  ;;  %v1392_v40 = vld [vmem:[%s1650_s5 + $0x1c] sm:$0xf] }
  0x16   : > { %v1265_v38 = vld [vmem:[%s1650_s5 + $0x138] sm:$0xf]  ;;  %v1429_v39 = vld [vmem:[%s1650_s5 + $0x140] sm:$0xf0]  ;;  %v1123_v41 = vld [vmem:[%s1650_s5 + $0x24] sm:$0xf0]  ;;  %v1122_v42 = vor.u32 %v1393_v37, %v1121_v36 }
  0x17   : > { %v1266_v43 = vor.u32 %v1429_v39, %v1265_v38  ;;  %v1126_v44 = vor.u32 %v1392_v40, %v1123_v41  ;;  %v1153_v45 = vld [vmem:[%s1650_s5 + $0x50] sm:$0xf]  ;;  %v1400_v46 = vld [vmem:[%s1650_s5 + $0x58] sm:$0xf0]  ;;  %v1395_v52 = vld [vmem:[%s1650_s5 + $0x34] sm:$0xf] }
  0x18   : > { %682 = vmatpush.bf16.msra.mxu0 %v1441_v11  ;;  %1553 = vmatpush.bf16.msra.mxu3 %v1441_v11  ;;  %v1154_v47 = vor.u32 %v1400_v46, %v1153_v45  ;;  %v1133_v48 = vld [vmem:[%s1650_s5 + $0x30] sm:$0xf]  ;;  %v1396_v49 = vld [vmem:[%s1650_s5 + $0x38] sm:$0xf0]  ;;  %v1135_v53 = vld [vmem:[%s1650_s5 + $0x3c] sm:$0xf0] }
  0x19   : > { %771 = vmatpush.bf16.msra.mxu1 %v1449_v12  ;;  %v1277_v50 = vld [vmem:[%s1650_s5 + $0x150] sm:$0xf]  ;;  %v1432_v51 = vld [vmem:[%s1650_s5 + $0x158] sm:$0xf0]  ;;  %v1134_v54 = vor.u32 %v1396_v49, %v1133_v48  ;;  %v1138_v56 = vor.u32 %v1395_v52, %v1135_v53  ;;  %v1165_v57 = vld [vmem:[%s1650_s5 + $0x68] sm:$0xf] }
  0x1a   : > { %v1278_v55 = vor.u32 %v1432_v51, %v1277_v50  ;;  %v1403_v58 = vld [vmem:[%s1650_s5 + $0x70] sm:$0xf0]  ;;  %v1145_v60 = vld [vmem:[%s1650_s5 + $0x48] sm:$0xf]  ;;  %v1398_v0 = vld [vmem:[%s1650_s5 + $0x4c] sm:$0xf] }
  0x1b   : > { %v1166_v59 = vor.u32 %v1403_v58, %v1165_v57  ;;  %v1399_v61 = vld [vmem:[%s1650_s5 + $0x50] sm:$0xf0]  ;;  %v1289_v62 = vld [vmem:[%s1650_s5 + $0x168] sm:$0xf]  ;;  %v1406_v6 = vld [vmem:[%s1650_s5 + $0x88] sm:$0xf0] }
  0x1c   : > { %683 = vmatpush.bf16.msra.mxu0 %v1440_v13  ;;  %1554 = vmatpush.bf16.msra.mxu3 %v1440_v13  ;;  %v1435_v63 = vld [vmem:[%s1650_s5 + $0x170] sm:$0xf0]  ;;  %v1157_v8 = vld [vmem:[%s1650_s5 + $0x60] sm:$0xf]  ;;  %v1402_v9 = vld [vmem:[%s1650_s5 + $0x68] sm:$0xf0] }
  0x1d   : > { %772 = vmatpush.bf16.msra.mxu1 %v1448_v14  ;;  %v1290_v3 = vor.u32 %v1435_v63, %v1289_v62  ;;  %v1425_v10 = vld [vmem:[%s1650_s5 + $0x124] sm:$0xf]  ;;  %v1255_v11 = vld [vmem:[%s1650_s5 + $0x12c] sm:$0xf0]  ;;  %v1189_v17 = vld [vmem:[%s1650_s5 + $0x98] sm:$0xf] }
  0x1e   : > { %v1159_v13 = vld [vmem:[%s1650_s5 + $0x6c] sm:$0xf0]  ;;  %v1409_v18 = vld [vmem:[%s1650_s5 + $0xa0] sm:$0xf0]  ;;  %v1267_v23 = vld [vmem:[%s1650_s5 + $0x144] sm:$0xf0] }
  0x1f   : > { %v1404_v24 = vld [vmem:[%s1650_s5 + $0x7c] sm:$0xf]  ;;  %v1171_v25 = vld [vmem:[%s1650_s5 + $0x84] sm:$0xf0]  ;;  %v1201_v29 = vld [vmem:[%s1650_s5 + $0xb0] sm:$0xf] }
  0x20   : > { %684 = vmatpush.bf16.msra.mxu0 %v1439_v15  ;;  %1555 = vmatpush.bf16.msra.mxu3 %v1439_v15  ;;  %v1258_v15 = vor.u32 %v1425_v10, %v1255_v11  ;;  %v1174_v28 = vor.u32 %v1404_v24, %v1171_v25  ;;  %v1408_v33 = vld [vmem:[%s1650_s5 + $0x98] sm:$0xf0]  ;;  %v1431_v34 = vld [vmem:[%s1650_s5 + $0x154] sm:$0xf]  ;;  %v1183_v37 = vld [vmem:[%s1650_s5 + $0x9c] sm:$0xf0] }
  0x21   : > { %773 = vmatpush.bf16.msra.mxu1 %v1447_v16  ;;  %v1407_v36 = vld [vmem:[%s1650_s5 + $0x94] sm:$0xf]  ;;  %v1213_v41 = vld [vmem:[%s1650_s5 + $0xc8] sm:$0xf]  ;;  %v1434_v46 = vld [vmem:[%s1650_s5 + $0x16c] sm:$0xf] }
  0x22   : > { %v1186_v40 = vor.u32 %v1407_v36, %v1183_v37  ;;  %v1411_v45 = vld [vmem:[%s1650_s5 + $0xb0] sm:$0xf0]  ;;  %v1410_v48 = vld [vmem:[%s1650_s5 + $0xac] sm:$0xf]  ;;  %v1195_v49 = vld [vmem:[%s1650_s5 + $0xb4] sm:$0xf0] }
  0x23   : > { %v1198_v53 = vor.u32 %v1410_v48, %v1195_v49  ;;  %v1205_v58 = vld [vmem:[%s1650_s5 + $0xc0] sm:$0xf]  ;;  %v1413_v62 = vld [vmem:[%s1650_s5 + $0xc4] sm:$0xf]  ;;  %v1207_v63 = vld [vmem:[%s1650_s5 + $0xcc] sm:$0xf0] }
  0x24   : > { %685 = vmatpush.bf16.msra.mxu0 %v1438_v19  ;;  %1556 = vmatpush.bf16.msra.mxu3 %v1438_v19  ;;  %v1190_v19 = vor.u32 %v1409_v18, %v1189_v17  ;;  %v1421_v10 = vld [vmem:[%s1650_s5 + $0x100] sm:$0xf0]  ;;  %v1416_v24 = vld [vmem:[%s1650_s5 + $0xdc] sm:$0xf]  ;;  %v1219_v25 = vld [vmem:[%s1650_s5 + $0xe4] sm:$0xf0] }
  0x25   : > { %1372 = vmatmul.msk.bf16.gmra.mxu2 %vm630_vm0, %v1130_v20  ;;  %774 = vmatpush.bf16.msra.mxu1 %v1446_v21  ;;  %v1169_v20 = vld [vmem:[%s1650_s5 + $0x78] sm:$0xf]  ;;  %v1229_v48 = vld [vmem:[%s1650_s5 + $0xf0] sm:$0xf]  ;;  %v1420_v49 = vld [vmem:[%s1650_s5 + $0xf8] sm:$0xf0] }
  0x28   : > { %686 = vmatpush.bf16.msra.mxu0 %v1437_v22  ;;  %1557 = vmatpush.bf16.msra.mxu3 %v1437_v22  ;;  %v1428_v22 = vld [vmem:[%s1650_s5 + $0x13c] sm:$0xf] }
  0x29   : > { %775 = vmatpush.bf16.msra.mxu1 %v1445_v27 }
  0x2b   : > { %687 = vmatmul.bf16.vlgmr.msra.gmra.mxu0 %v1110_v30  ;;  %747 = vmatmul.bf16.vlgmr.msra.gmra.mxu3 %v1254_v31  ;;  %v1412_v30 = vld [vmem:[%s1650_s5 + $0xb8] sm:$0xf0] }
  0x2c   : > { %1558 = vmatpush.bf16.msrb.mxu3 %v1625_v2  ;;  %776 = vmatmul.bf16.vlgmr.msra.gmra.mxu1 %v1114_v32  ;;  %v1146_v2 = vor.u32 %v1399_v61, %v1145_v60  ;;  %v1202_v31 = vor.u32 %v1412_v30, %v1201_v29  ;;  %v1181_v32 = vld [vmem:[%s1650_s5 + $0x90] sm:$0xf]  ;;  %v1285_v60 = vld [vmem:[%s1650_s5 + $0x158] sm:$0xf]  ;;  %v1433_v61 = vld [vmem:[%s1650_s5 + $0x160] sm:$0xf0] }
  0x2d   : > { %v1182_v38 = vor.u32 %v1408_v33, %v1181_v32  ;;  %v1222_v33 = vor.u32 %v1416_v24, %v1219_v25 }
  0x30   : > { %1559 = vmatpush.bf16.msrb.mxu3 %v1451_v5  ;;  %v1177_v5 = vld [vmem:[%s1650_s5 + $0x80] sm:$0xf] }
  0x34   : > { %1560 = vmatpush.bf16.msrb.mxu3 %v1450_v7  ;;  %v1178_v7 = vor.u32 %v1406_v6, %v1177_v5  ;;  %v1210_v5 = vor.u32 %v1413_v62, %v1207_v63 }
  0x35   : > { %1373 = vmatmul.msk.bf16.gmra.mxu2 %vm630_vm0, %v1142_v35  ;;  %v1279_v35 = vld [vmem:[%s1650_s5 + $0x15c] sm:$0xf0] }
  0x36   : > { %v1282_v39 = vor.u32 %v1431_v34, %v1279_v35 }
  0x38   : > { %1561 = vmatpush.bf16.msrb.mxu3 %v1449_v12  ;;  %v1401_v12 = vld [vmem:[%s1650_s5 + $0x64] sm:$0xf] }
  0x3b   : > { %692 = vmatmul.bf16.gmra.mxu0 %v1122_v42  ;;  %752 = vmatmul.bf16.gmra.mxu3 %v1266_v43  ;;  %v1415_v42 = vld [vmem:[%s1650_s5 + $0xd0] sm:$0xf0] }
  0x3c   : > { %1562 = vmatpush.bf16.msrb.mxu3 %v1448_v14  ;;  %781 = vmatmul.bf16.gmra.mxu1 %v1126_v44  ;;  %v1158_v14 = vor.u32 %v1402_v9, %v1157_v8  ;;  %v1214_v43 = vor.u32 %v1415_v42, %v1213_v41  ;;  %v1193_v44 = vld [vmem:[%s1650_s5 + $0xa8] sm:$0xf]  ;;  %v1237_v9 = vld [vmem:[%s1650_s5 + $0xf8] sm:$0xf] }
  0x3d   : > { %v1194_v50 = vor.u32 %v1411_v45, %v1193_v44 }
  0x40   : > { %1563 = vmatpush.bf16.msrb.mxu3 %v1447_v16  ;;  %v1162_v16 = vor.u32 %v1401_v12, %v1159_v13 }
  0x44   : > { %1564 = vmatpush.bf16.msrb.mxu3 %v1446_v21  ;;  %v1405_v21 = vld [vmem:[%s1650_s5 + $0x80] sm:$0xf0] }
  0x45   : > { %1374 = vmatmul.msk.bf16.gmra.mxu2 %vm630_vm0, %v1154_v47  ;;  %v1170_v26 = vor.u32 %v1405_v21, %v1169_v20  ;;  %v1291_v47 = vld [vmem:[%s1650_s5 + $0x174] sm:$0xf0]  ;;  %v1417_v20 = vld [vmem:[%s1650_s5 + $0xe0] sm:$0xf0]  ;;  %v1297_v21 = vld [vmem:[%s1650_s5 + $0x170] sm:$0xf] }
  0x46   : > { %v1294_v51 = vor.u32 %v1434_v46, %v1291_v47 }
  0x48   : > { %1565 = vmatpush.bf16.msrb.mxu3 %v1445_v27  ;;  %v1270_v27 = vor.u32 %v1428_v22, %v1267_v23  ;;  %v1436_v22 = vld [vmem:[%s1650_s5 + $0x178] sm:$0xf0] }
  0x49   : > { %v1298_v30 = vor.u32 %v1436_v22, %v1297_v21 }
  0x4b   : > { %697 = vmatmul.bf16.gmra.mxu0 %v1134_v54  ;;  %757 = vmatmul.bf16.gmra.mxu3 %v1278_v55  ;;  %v1225_v54 = vld [vmem:[%s1650_s5 + $0xe0] sm:$0xf]  ;;  %v1418_v55 = vld [vmem:[%s1650_s5 + $0xe8] sm:$0xf0] }
  0x4c   : > { %1566 = vmatpush.bf16.msra.mxu3 %v1620_v1  ;;  %786 = vmatmul.bf16.gmra.mxu1 %v1138_v56  ;;  %v1147_v1 = vld [vmem:[%s1650_s5 + $0x54] sm:$0xf0]  ;;  %v1226_v57 = vor.u32 %v1418_v55, %v1225_v54 }
  0x50   : > { %1567 = vmatpush.bf16.msra.mxu3 %v1635_v4  ;;  %v1150_v4 = vor.u32 %v1398_v0, %v1147_v1  ;;  %v1775_v0 = vld [vmem:[%s1900_s2] ss:$0 sm:$0xff] }
  0x55   : > { %1375 = vmatmul.msk.bf16.gmra.mxu2 %vm630_vm0, %v1166_v59  ;;  %v1414_v59 = vld [vmem:[%s1650_s5 + $0xc8] sm:$0xf0] }
  0x56   : > { %v1206_v1 = vor.u32 %v1414_v59, %v1205_v58 }
  0x5b   : > { %702 = vmatmul.bf16.gmra.mxu0 %v1146_v2  ;;  %762 = vmatmul.bf16.gmra.mxu3 %v1290_v3  ;;  %v1286_v2 = vor.u32 %v1433_v61, %v1285_v60 }
  0x5c   : > { %791 = vmatmul.bf16.gmra.mxu1 %v1150_v4 }
  0x65   : > { %1376 = vmatmul.msk.bf16.gmra.mxu2 %vm630_vm0, %v1178_v7 }
  0x6b   : > { %707 = vmatmul.bf16.gmra.mxu0 %v1158_v14  ;;  %836 = vmatmul.bf16.vlgmr.msrb.gmra.mxu3 %v1258_v15 }
  0x6c   : > { %796 = vmatmul.bf16.gmra.mxu1 %v1162_v16  ;;  %v1238_v16 = vor.u32 %v1421_v10, %v1237_v9 }
  0x75   : > { %1377 = vmatmul.msk.bf16.gmra.mxu2 %vm630_vm0, %v1190_v19  ;;  %v1217_v19 = vld [vmem:[%s1650_s5 + $0xd8] sm:$0xf] }
  0x76   : > { %v1218_v29 = vor.u32 %v1417_v20, %v1217_v19 }
  0x7b   : > { %712 = vmatmul.bf16.gmra.mxu0 %v1170_v26  ;;  %841 = vmatmul.bf16.gmra.mxu3 %v1270_v27 }
  0x7c   : > { %801 = vmatmul.bf16.gmra.mxu1 %v1174_v28 }
  0x85   : > { %1378 = vmatmul.msk.bf16.gmra.mxu2 %vm630_vm0, %v1202_v31 }
  0x8b   : > { %717 = vmatmul.bf16.gmra.mxu0 %v1182_v38  ;;  %846 = vmatmul.bf16.gmra.mxu3 %v1282_v39  ;;  %v1249_v38 = vld [vmem:[%s1650_s5 + $0x110] sm:$0xf]  ;;  %v1424_v39 = vld [vmem:[%s1650_s5 + $0x118] sm:$0xf0] }
  0x8c   : > { %806 = vmatmul.bf16.gmra.mxu1 %v1186_v40  ;;  %v1250_v45 = vor.u32 %v1424_v39, %v1249_v38 }
  0x95   : > { %1379 = vmatmul.msk.bf16.gmra.mxu2 %vm630_vm0, %v1214_v43 }
  0x98   : > { %v866_v52 = vpop.f32.mrf.mxu2 }
  0x9b   : > { %722 = vmatmul.bf16.gmra.mxu0 %v1194_v50  ;;  %851 = vmatmul.bf16.gmra.mxu3 %v1294_v51  ;;  %v1419_v51 = vld [vmem:[%s1650_s5 + $0xf4] sm:$0xf] }
  0x9c   : > { %811 = vmatmul.bf16.gmra.mxu1 %v1198_v53 }
  0xa0   : > { %v868_v56 = vpop.f32.mrf.mxu2 }
  0xa5   : > { %1380 = vmatmul.msk.bf16.gmra.mxu2 %vm630_vm0, %v1226_v57 }
  0xa8   : > { %v871_v3 = vpop.f32.mrf.mxu2  ;;  %v688_v4 = vpop.f32.mrf.mxu0 }
  0xa9   : > { %v777_v6 = vpop.f32.mrf.mxu1  ;;  %v689_v7 = vadd.f32 %v1775_v0, %v688_v4 }
  0xab   : > { %727 = vmatmul.bf16.gmra.mxu0 %v1206_v1  ;;  %1385 = vmatmul.msk.bf16.vlgmr.msra.gmra.mxu3 %vm630_vm0, %v1286_v2  ;;  %v778_v11 = vadd.f32 %v777_v6, %v689_v7  ;;  %v1261_v1 = vld [vmem:[%s1650_s5 + $0x128] sm:$0xf]  ;;  %v1427_v2 = vld [vmem:[%s1650_s5 + $0x130] sm:$0xf0] }
  0xac   : > { %816 = vmatmul.bf16.gmra.mxu1 %v1210_v5  ;;  %v1262_v9 = vor.u32 %v1427_v2, %v1261_v1 }
  0xad   : > { %v867_v17 = vadd.f32 %v866_v52, %v778_v11  ;;  %v1231_v52 = vld [vmem:[%s1650_s5 + $0xfc] sm:$0xf0] }
  0xae   : > { %v1779_v8 = vpop.f32.mrf.mxu3  ;;  %v1234_v59 = vor.u32 %v1419_v51, %v1231_v52 }
  0xaf   : > { %v946_v27 = vmax.f32 %v867_v17, 0.0 }
  0xb0   : > { %v873_v12 = vpop.f32.mrf.mxu2  ;;  %v690_v13 = vpop.f32.mrf.mxu0 }
  0xb1   : > { %v691_v14 = vadd.f32 %v1775_v0, %v690_v13  ;;  %v779_v15 = vpop.f32.mrf.mxu1  ;;  %v1423_v13 = vld [vmem:[%s1650_s5 + $0x110] sm:$0xf0] }
  0xb3   : > { %v780_v18 = vadd.f32 %v779_v15, %v691_v14  ;;  %v1422_v15 = vld [vmem:[%s1650_s5 + $0x10c] sm:$0xf] }
  0xb5   : > { %v869_v23 = vadd.f32 %v868_v56, %v780_v18  ;;  %1381 = vmatmul.msk.bf16.gmra.mxu2 %vm630_vm0, %v1238_v16  ;;  %v1230_v56 = vor.u32 %v1420_v49, %v1229_v48  ;;  %v1243_v16 = vld [vmem:[%s1650_s5 + $0x114] sm:$0xf0]  ;;  %v749_v49 = vadd.f32 %v1775_v0, %v1779_v8 }
  0xb6   : > { %v1792_v26 = vpop.f32.mrf.mxu3 }
  0xb7   : > { %v947_v28 = vmax.f32 %v869_v23, 0.0  ;;  %v1246_v23 = vor.u32 %v1422_v15, %v1243_v16 }
  0xb8   : > { %v876_v31 = vpop.f32.mrf.mxu2  ;;  %v693_v32 = vpop.f32.mrf.mxu0 }
  0xb9   : > { %v1458_v34 = vpack.c.bf16 %v947_v28, %v946_v27  ;;  %v782_v35 = vpop.f32.mrf.mxu1  ;;  %v694_v36 = vadd.f32 %v1775_v0, %v693_v32 }
  0xbb   : > { %1459 = vst [vmem:[%s1797_s9] sm:$0xff] %v1458_v34   ;;  %732 = vmatmul.bf16.gmra.mxu0 %v1218_v29  ;;  %1386 = vmatmul.msk.bf16.gmra.mxu3 %vm630_vm0, %v1298_v30  ;;  %v783_v40 = vadd.f32 %v782_v35, %v694_v36  ;;  %v1273_v29 = vld [vmem:[%s1650_s5 + $0x140] sm:$0xf]  ;;  %v1430_v30 = vld [vmem:[%s1650_s5 + $0x148] sm:$0xf0] }
  0xbc   : > { %821 = vmatmul.bf16.gmra.mxu1 %v1222_v33  ;;  %v1274_v36 = vor.u32 %v1430_v30, %v1273_v29 }
  0xbd   : > { %v872_v46 = vadd.f32 %v871_v3, %v783_v40 }
  0xbe   : > { %v1802_v37 = vpop.f32.mrf.mxu3 }
  0xbf   : > { %v948_v54 = vmax.f32 %v872_v46, 0.0 }
  0xc0   : > { %v878_v41 = vpop.f32.mrf.mxu2  ;;  %v695_v42 = vpop.f32.mrf.mxu0 }
  0xc1   : > { %v696_v43 = vadd.f32 %v1775_v0, %v695_v42  ;;  %v784_v44 = vpop.f32.mrf.mxu1 }
  0xc3   : > { %v785_v47 = vadd.f32 %v784_v44, %v696_v43 }
  0xc5   : > { %v874_v50 = vadd.f32 %v873_v12, %v785_v47  ;;  %1382 = vmatmul.msk.bf16.gmra.mxu2 %vm630_vm0, %v1250_v45  ;;  %v1241_v12 = vld [vmem:[%s1650_s5 + $0x108] sm:$0xf] }
  0xc6   : > { %v1812_v53 = vpop.f32.mrf.mxu3  ;;  %v1242_v20 = vor.u32 %v1423_v13, %v1241_v12 }
  0xc7   : > { %v949_v55 = vmax.f32 %v874_v50, 0.0 }
  0xc8   : > { %v881_v57 = vpop.f32.mrf.mxu2  ;;  %v698_v58 = vpop.f32.mrf.mxu0 }
  0xc9   : > { %v1463_v60 = vpack.c.bf16 %v949_v55, %v948_v54  ;;  %v787_v61 = vpop.f32.mrf.mxu1  ;;  %v699_v62 = vadd.f32 %v1775_v0, %v698_v58 }
  0xcb   : > { %1535 = vst [vmem:[%s1797_s9 + $0x8] sm:$0xff] %v1463_v60   ;;  %737 = vmatmul.bf16.gmra.mxu0 %v1230_v56  ;;  %v788_v3 = vadd.f32 %v787_v61, %v699_v62  ;;  %v751_v60 = vadd.f32 %v1775_v0, %v1792_v26 }
  0xcc   : > { %826 = vmatmul.bf16.gmra.mxu1 %v1234_v59 }
  0xcd   : > { %v877_v10 = vadd.f32 %v876_v31, %v788_v3 }
  0xce   : > { %v1816_v63 = vpop.f32.mrf.mxu3 }
  0xcf   : > { %v950_v18 = vmax.f32 %v877_v10, 0.0 }
  0xd0   : > { %v883_v4 = vpop.f32.mrf.mxu2  ;;  %v700_v5 = vpop.f32.mrf.mxu0 }
  0xd1   : > { %v701_v6 = vadd.f32 %v1775_v0, %v700_v5  ;;  %v789_v7 = vpop.f32.mrf.mxu1 }
  0xd3   : > { %v790_v11 = vadd.f32 %v789_v7, %v701_v6 }
  0xd5   : > { %v879_v14 = vadd.f32 %v878_v41, %v790_v11  ;;  %1383 = vmatmul.msk.bf16.gmra.mxu2 %vm630_vm0, %v1262_v9  ;;  %v754_v9 = vadd.f32 %v1775_v0, %v1802_v37 }
  0xd6   : > { %v1826_v17 = vpop.f32.mrf.mxu3 }
  0xd7   : > { %v951_v19 = vmax.f32 %v879_v14, 0.0 }
  0xd8   : > { %v886_v21 = vpop.f32.mrf.mxu2  ;;  %v703_v22 = vpop.f32.mrf.mxu0 }
  0xd9   : > { %v1468_v24 = vpack.c.bf16 %v951_v19, %v950_v18  ;;  %v792_v25 = vpop.f32.mrf.mxu1  ;;  %v704_v27 = vadd.f32 %v1775_v0, %v703_v22  ;;  %v756_v19 = vadd.f32 %v1775_v0, %v1812_v53 }
  0xdb   : > { %1536 = vst [vmem:[%s1797_s9 + $0x10] sm:$0xff] %v1468_v24   ;;  %742 = vmatmul.bf16.gmra.mxu0 %v1242_v20  ;;  %v793_v31 = vadd.f32 %v792_v25, %v704_v27 }
  0xdc   : > { %831 = vmatmul.bf16.gmra.mxu1 %v1246_v23 }
  0xdd   : > { %v882_v38 = vadd.f32 %v881_v57, %v793_v31 }
  0xde   : > { %v1830_v28 = vpop.f32.mrf.mxu3 }
  0xdf   : > { %v952_v42 = vmax.f32 %v882_v38, 0.0 }
  0xe0   : > { %v888_v32 = vpop.f32.mrf.mxu2  ;;  %v705_v33 = vpop.f32.mrf.mxu0 }
  0xe1   : > { %v706_v34 = vadd.f32 %v1775_v0, %v705_v33  ;;  %v794_v35 = vpop.f32.mrf.mxu1 }
  0xe3   : > { %v795_v39 = vadd.f32 %v794_v35, %v706_v34 }
  0xe5   : > { %v884_v40 = vadd.f32 %v883_v4, %v795_v39  ;;  %1384 = vmatmul.msk.bf16.gmra.mxu2 %vm630_vm0, %v1274_v36 }
  0xe6   : > { %v1836_v41 = vpop.f32.mrf.mxu3 }
  0xe7   : > { %v953_v43 = vmax.f32 %v884_v40, 0.0 }
  0xe8   : > { %v891_v44 = vpop.f32.mrf.mxu2  ;;  %v708_v45 = vpop.f32.mrf.mxu0 }
  0xe9   : > { %v1473_v46 = vpack.c.bf16 %v953_v43, %v952_v42  ;;  %v797_v47 = vpop.f32.mrf.mxu1  ;;  %v709_v48 = vadd.f32 %v1775_v0, %v708_v45 }
  0xeb   : > { %1537 = vst [vmem:[%s1797_s9 + $0x18] sm:$0xff] %v1473_v46   ;;  %v798_v51 = vadd.f32 %v797_v47, %v709_v48 }
  0xed   : > { %v887_v58 = vadd.f32 %v886_v21, %v798_v51 }
  0xee   : > { %v837_v50 = vpop.f32.mrf.mxu3 }
  0xef   : > { %v1842_v52 = vadd.f32 %v837_v50, %v749_v49  ;;  %v954_v1 = vmax.f32 %v887_v58, 0.0 }
  0xf0   : > { %v893_v54 = vpop.f32.mrf.mxu2  ;;  %v710_v55 = vpop.f32.mrf.mxu0 }
  0xf1   : > { %v711_v56 = vadd.f32 %v1775_v0, %v710_v55  ;;  %v799_v57 = vpop.f32.mrf.mxu1 }
  0xf3   : > { %v800_v59 = vadd.f32 %v799_v57, %v711_v56 }
  0xf5   : > { %v889_v61 = vadd.f32 %v888_v32, %v800_v59 }
  0xf6   : > { %v839_v62 = vpop.f32.mrf.mxu3 }
  0xf7   : > { %v955_v2 = vmax.f32 %v889_v61, 0.0  ;;  %v1847_v8 = vadd.f32 %v839_v62, %v751_v60 }
  0xf8   : > { %v896_v3 = vpop.f32.mrf.mxu2  ;;  %v713_v4 = vpop.f32.mrf.mxu0 }
  0xf9   : > { %v1478_v5 = vpack.c.bf16 %v955_v2, %v954_v1  ;;  %v802_v6 = vpop.f32.mrf.mxu1  ;;  %v714_v7 = vadd.f32 %v1775_v0, %v713_v4 }
  0xfb   : > { %1538 = vst [vmem:[%s1797_s9 + $0x20] sm:$0xff] %v1478_v5   ;;  %v803_v11 = vadd.f32 %v802_v6, %v714_v7 }
  0xfd   : > { %v892_v16 = vadd.f32 %v891_v44, %v803_v11  ;;  %v759_v11 = vadd.f32 %v1775_v0, %v1816_v63 }
  0xfe   : > { %v842_v10 = vpop.f32.mrf.mxu3 }
  0xff   : > { %v1853_v12 = vadd.f32 %v842_v10, %v754_v9  ;;  %v956_v22 = vmax.f32 %v892_v16, 0.0 }
 0x100   : > { %v898_v26 = vpop.f32.mrf.mxu2  ;;  %v715_v13 = vpop.f32.mrf.mxu0 }
 0x101   : > { %v716_v14 = vadd.f32 %v1775_v0, %v715_v13  ;;  %v804_v15 = vpop.f32.mrf.mxu1 }
 0x103   : > { %v805_v18 = vadd.f32 %v804_v15, %v716_v14  ;;  %v761_v14 = vadd.f32 %v1775_v0, %v1826_v17 }
 0x105   : > { %v894_v20 = vadd.f32 %v893_v54, %v805_v18 }
 0x106   : > { %v844_v21 = vpop.f32.mrf.mxu3 }
 0x107   : > { %v957_v23 = vmax.f32 %v894_v20, 0.0  ;;  %v1858_v37 = vadd.f32 %v844_v21, %v756_v19 }
 0x108   : > { %v901_v24 = vpop.f32.mrf.mxu2  ;;  %v718_v25 = vpop.f32.mrf.mxu0 }
 0x109   : > { %v1483_v27 = vpack.c.bf16 %v957_v23, %v956_v22  ;;  %v807_v29 = vpop.f32.mrf.mxu1  ;;  %v719_v30 = vadd.f32 %v1775_v0, %v718_v25 }
 0x10b   : > { %1539 = vst [vmem:[%s1797_s9 + $0x28] sm:$0xff] %v1483_v27   ;;  %v808_v32 = vadd.f32 %v807_v29, %v719_v30 }
 0x10d   : > { %v897_v36 = vadd.f32 %v896_v3, %v808_v32 }
 0x10e   : > { %v847_v31 = vpop.f32.mrf.mxu3 }
 0x10f   : > { %v958_v42 = vmax.f32 %v897_v36, 0.0  ;;  %v848_v15 = vadd.f32 %v847_v31, %v759_v11 }
 0x110   : > { %v903_v33 = vpop.f32.mrf.mxu2  ;;  %v720_v34 = vpop.f32.mrf.mxu0 }
 0x111   : > { %v721_v53 = vadd.f32 %v1775_v0, %v720_v34  ;;  %v809_v35 = vpop.f32.mrf.mxu1 }
 0x113   : > { %v810_v38 = vadd.f32 %v809_v35, %v721_v53 }
 0x115   : > { %v899_v39 = vadd.f32 %v898_v26, %v810_v38  ;;  %v764_v38 = vadd.f32 %v1775_v0, %v1830_v28 }
 0x116   : > { %v849_v40 = vpop.f32.mrf.mxu3 }
 0x117   : > { %v959_v43 = vmax.f32 %v899_v39, 0.0  ;;  %v850_v19 = vadd.f32 %v849_v40, %v761_v14 }
 0x118   : > { %v906_v44 = vpop.f32.mrf.mxu2  ;;  %v723_v45 = vpop.f32.mrf.mxu0 }
 0x119   : > { %v1488_v46 = vpack.c.bf16 %v959_v43, %v958_v42  ;;  %v812_v47 = vpop.f32.mrf.mxu1  ;;  %v724_v48 = vadd.f32 %v1775_v0, %v723_v45  ;;  %v766_v42 = vadd.f32 %v1775_v0, %v1836_v41 }
 0x11b   : > { %1540 = vst [vmem:[%s1797_s9 + $0x30] sm:$0xff] %v1488_v46   ;;  %v813_v50 = vadd.f32 %v812_v47, %v724_v48 }
 0x11d   : > { %v902_v57 = vadd.f32 %v901_v24, %v813_v50 }
 0x11e   : > { %v852_v49 = vpop.f32.mrf.mxu3 }
 0x11f   : > { %v960_v61 = vmax.f32 %v902_v57, 0.0  ;;  %v853_v43 = vadd.f32 %v852_v49, %v764_v38 }
 0x120   : > { %v908_v51 = vpop.f32.mrf.mxu2  ;;  %v725_v54 = vpop.f32.mrf.mxu0 }
 0x121   : > { %v726_v55 = vadd.f32 %v1775_v0, %v725_v54  ;;  %v814_v56 = vpop.f32.mrf.mxu1 }
 0x123   : > { %v815_v58 = vadd.f32 %v814_v56, %v726_v55 }
 0x125   : > { %v904_v59 = vadd.f32 %v903_v33, %v815_v58 }
 0x126   : > { %v854_v60 = vpop.f32.mrf.mxu3 }
 0x127   : > { %v961_v62 = vmax.f32 %v904_v59, 0.0  ;;  %v855_v46 = vadd.f32 %v854_v60, %v766_v42 }
 0x128   : > { %v911_v1 = vpop.f32.mrf.mxu2  ;;  %v728_v2 = vpop.f32.mrf.mxu0 }
 0x129   : > { %v1493_v3 = vpack.c.bf16 %v961_v62, %v960_v61  ;;  %v817_v4 = vpop.f32.mrf.mxu1  ;;  %v729_v5 = vadd.f32 %v1775_v0, %v728_v2 }
 0x12b   : > { %1541 = vst [vmem:[%s1797_s9 + $0x38] sm:$0xff] %v1493_v3   ;;  %v818_v7 = vadd.f32 %v817_v4, %v729_v5 }
 0x12d   : > { %v907_v16 = vadd.f32 %v906_v44, %v818_v7 }
 0x12e   : > { %v936_v6 = vpop.f32.mrf.mxu3 }
 0x12f   : > { %v937_v20 = vadd.f32 %v936_v6, %v848_v15  ;;  %v962_v23 = vmax.f32 %v907_v16, 0.0 }
 0x130   : > { %v913_v9 = vpop.f32.mrf.mxu2  ;;  %v730_v10 = vpop.f32.mrf.mxu0 }
 0x131   : > { %v731_v26 = vadd.f32 %v1775_v0, %v730_v10  ;;  %v819_v13 = vpop.f32.mrf.mxu1  ;;  %v974_v29 = vmax.f32 %v937_v20, 0.0 }
 0x133   : > { %v820_v18 = vadd.f32 %v819_v13, %v731_v26 }
 0x135   : > { %v909_v21 = vadd.f32 %v908_v51, %v820_v18 }
 0x136   : > { %v938_v22 = vpop.f32.mrf.mxu3 }
 0x137   : > { %v963_v24 = vmax.f32 %v909_v21, 0.0  ;;  %v939_v25 = vadd.f32 %v938_v22, %v850_v19 }
 0x138   : > { %v916_v27 = vpop.f32.mrf.mxu2  ;;  %v733_v63 = vpop.f32.mrf.mxu0 }
 0x139   : > { %v1498_v30 = vpack.c.bf16 %v963_v24, %v962_v23  ;;  %v975_v32 = vmax.f32 %v939_v25, 0.0  ;;  %v822_v33 = vpop.f32.mrf.mxu1  ;;  %v734_v31 = vadd.f32 %v1775_v0, %v733_v63 }
 0x13b   : > { %1542 = vst [vmem:[%s1797_s9 + $0x40] sm:$0xff] %v1498_v30   ;;  %v1528_v17 = vpack.c.bf16 %v975_v32, %v974_v29  ;;  %v823_v53 = vadd.f32 %v822_v33, %v734_v31 }
 0x13d   : > { %1548 = vst [vmem:[%s1797_s9 + $0x70] sm:$0xff] %v1528_v17   ;;  %v912_v44 = vadd.f32 %v911_v1, %v823_v53 }
 0x13e   : > { %v941_v34 = vpop.f32.mrf.mxu3 }
 0x13f   : > { %v942_v47 = vadd.f32 %v941_v34, %v853_v43  ;;  %v964_v51 = vmax.f32 %v912_v44, 0.0 }
 0x140   : > { %v918_v35 = vpop.f32.mrf.mxu2  ;;  %v735_v36 = vpop.f32.mrf.mxu0 }
 0x141   : > { %v736_v39 = vadd.f32 %v1775_v0, %v735_v36  ;;  %v824_v40 = vpop.f32.mrf.mxu1  ;;  %v976_v57 = vmax.f32 %v942_v47, 0.0 }
 0x143   : > { %v825_v45 = vadd.f32 %v824_v40, %v736_v39 }
 0x145   : > { %v914_v48 = vadd.f32 %v913_v9, %v825_v45 }
 0x146   : > { %v943_v50 = vpop.f32.mrf.mxu3 }
 0x147   : > { %v965_v54 = vmax.f32 %v914_v48, 0.0  ;;  %v944_v55 = vadd.f32 %v943_v50, %v855_v46 }
 0x148   : > { %v921_v56 = vpop.f32.mrf.mxu2  ;;  %v738_v28 = vpop.f32.mrf.mxu0 }
 0x149   : > { %v1503_v58 = vpack.c.bf16 %v965_v54, %v964_v51  ;;  %v977_v59 = vmax.f32 %v944_v55, 0.0  ;;  %v827_v61 = vpop.f32.mrf.mxu1  ;;  %v739_v49 = vadd.f32 %v1775_v0, %v738_v28 }
 0x14b   : > { %1543 = vst [vmem:[%s1797_s9 + $0x48] sm:$0xff] %v1503_v58   ;;  %v1533_v41 = vpack.c.bf16 %v977_v59, %v976_v57  ;;  %v828_v60 = vadd.f32 %v827_v61, %v739_v49 }
 0x14d   : > { %1549 = vst [vmem:[%s1797_s9 + $0x78] sm:$0xff] %v1533_v41   ;;  %v917_v4 = vadd.f32 %v916_v27, %v828_v60 }
 0x14f   : > { %v966_v7 = vmax.f32 %v917_v4, 0.0 }
 0x150   : > { %v923_v62 = vpop.f32.mrf.mxu2  ;;  %v740_v1 = vpop.f32.mrf.mxu0 }
 0x151   : > { %v741_v2 = vadd.f32 %v1775_v0, %v740_v1  ;;  %v829_v3 = vpop.f32.mrf.mxu1 }
 0x153   : > { %v830_v5 = vadd.f32 %v829_v3, %v741_v2 }
 0x155   : > { %v919_v6 = vadd.f32 %v918_v35, %v830_v5 }
 0x157   : > { %v967_v9 = vmax.f32 %v919_v6, 0.0 }
 0x158   : > { %v926_v10 = vpop.f32.mrf.mxu2  ;;  %v743_v11 = vpop.f32.mrf.mxu0 }
 0x159   : > { %v1508_v26 = vpack.c.bf16 %v967_v9, %v966_v7  ;;  %v832_v13 = vpop.f32.mrf.mxu1  ;;  %v744_v14 = vadd.f32 %v1775_v0, %v743_v11  ;;  %v927_v15 = vadd.f32 %v926_v10, %v1842_v52 }
 0x15b   : > { %1544 = vst [vmem:[%s1797_s9 + $0x50] sm:$0xff] %v1508_v26   ;;  %v833_v16 = vadd.f32 %v832_v13, %v744_v14  ;;  %v970_v23 = vmax.f32 %v927_v15, 0.0 }
 0x15d   : > { %v922_v24 = vadd.f32 %v921_v56, %v833_v16 }
 0x15f   : > { %v968_v30 = vmax.f32 %v922_v24, 0.0 }
 0x160   : > { %v928_v18 = vpop.f32.mrf.mxu2  ;;  %v745_v19 = vpop.f32.mrf.mxu0 }
 0x161   : > { %v929_v20 = vadd.f32 %v928_v18, %v1847_v8  ;;  %v746_v21 = vadd.f32 %v1775_v0, %v745_v19  ;;  %v834_v22 = vpop.f32.mrf.mxu1 }
 0x163   : > { %v971_v25 = vmax.f32 %v929_v20, 0.0  ;;  %v835_v27 = vadd.f32 %v834_v22, %v746_v21 }
 0x165   : > { %v1518_v63 = vpack.c.bf16 %v971_v25, %v970_v23  ;;  %v924_v29 = vadd.f32 %v923_v62, %v835_v27 }
 0x167   : > { %1546 = vst [vmem:[%s1797_s9 + $0x60] sm:$0xff] %v1518_v63   ;;  %v969_v32 = vmax.f32 %v924_v29, 0.0 }
 0x168   : > { %v931_v52 = vpop.f32.mrf.mxu2 }
 0x169   : > { %v1513_v33 = vpack.c.bf16 %v969_v32, %v968_v30  ;;  %v932_v17 = vadd.f32 %v931_v52, %v1853_v12 }
 0x16b   : > { %1545 = vst [vmem:[%s1797_s9 + $0x58] sm:$0xff] %v1513_v33   ;;  %v972_v0 = vmax.f32 %v932_v17, 0.0 }
 0x170   : > { %v933_v31 = vpop.f32.mrf.mxu2 }
 0x171   : > { %v934_v8 = vadd.f32 %v933_v31, %v1858_v37 }
 0x173   : > { %v973_v34 = vmax.f32 %v934_v8, 0.0 }
 0x175   : > { %v1523_v53 = vpack.c.bf16 %v973_v34, %v972_v0 }
 0x177   : > { %1547 = vst [vmem:[%s1797_s9 + $0x68] sm:$0xff] %v1523_v53  }
 0x178 PF: > { %s13_s12 = sadd.s32 1, %s1584_s12  }
 0x179   : > { %p10_p4 = scmp.ge.s32.totalorder %s13_s12, 4  }
 0x17b   :  { %12 = sbr.rel (!%p10_p4) target bundleno = 1 (0x1), region = 62 }

</bundles_post_ra>
